<compile_context>
chip_gen: v6e
topology: v6e:2x2x1
jax: 0.10.0
libtpu: 0.0.40
codegen_flags: <defaults>
</compile_context>

<pallas_src>
import functools

import jax
import jax.numpy as jnp
from jax import lax
from jax.experimental import pallas as pl
from jax.experimental.pallas import tpu as pltpu


# ----------------------------- helpers --------------------------------------

def _round_up(x, m):
    return (x + m - 1) // m * m


def _pick_tile(dim_p, cap, quantum):
    """Largest multiple of `quantum` that divides dim_p and is <= cap."""
    t = min(cap, dim_p)
    t -= t % quantum
    while t > quantum and dim_p % t != 0:
        t -= quantum
    return max(t, quantum)


# ----------------------------- Pallas matmul kernel --------------------------

def _mm_kernel(*refs, has_pre, has_post, relu, post_first):
    """Tiled matmul with fused per-K prologue / per-N epilogue.

    refs = (a, b, bias, [pre_s, pre_b], [post_s, post_b], out, acc_scratch)
      acc   = sum_k prologue(A_k) @ B_k,  prologue(a) = relu(a*pre_s + pre_b)
      y     = acc + bias
      y     = y*post_s + post_b                (if has_post and post_first)
      y     = relu(y)                          (if relu)
      y     = y*post_s + post_b                (if has_post and not post_first)
    """
    idx = 0
    a_ref = refs[idx]; idx += 1
    b_ref = refs[idx]; idx += 1
    bias_ref = refs[idx]; idx += 1
    if has_pre:
        pre_s_ref, pre_b_ref = refs[idx], refs[idx + 1]; idx += 2
    if has_post:
        post_s_ref, post_b_ref = refs[idx], refs[idx + 1]; idx += 2
    o_ref, acc_ref = refs[idx], refs[idx + 1]

    k = pl.program_id(2)

    @pl.when(k == 0)
    def _():
        acc_ref[...] = jnp.zeros_like(acc_ref)

    a = a_ref[...]
    if has_pre:
        # BN+ReLU prologue in f32 on the VPU (v5e has no bf16 VPU), bf16 to MXU.
        a = jnp.maximum(a.astype(jnp.float32) * pre_s_ref[...] + pre_b_ref[...], 0.0)
        a = a.astype(jnp.bfloat16)
    acc_ref[...] += jnp.dot(a, b_ref[...], preferred_element_type=jnp.float32)

    @pl.when(k == pl.num_programs(2) - 1)
    def _():
        y = acc_ref[...] + bias_ref[...]
        if has_post and post_first:
            y = y * post_s_ref[...] + post_b_ref[...]
        if relu:
            y = jnp.maximum(y, 0.0)
        if has_post and not post_first:
            y = y * post_s_ref[...] + post_b_ref[...]
        o_ref[...] = y.astype(o_ref.dtype)


def _vmem_limit(tm, tn, tk, out_bytes, has_pre):
    """Scoped-VMEM limit derived from the actual tile footprint (+margin)."""
    need = (2 * (tm * tk * 2 + tk * tn * 2 + tm * tn * out_bytes)   # dbl-buffered A/B/out
            + tm * tn * 4                                           # f32 accumulator
            + (tm * tk * 4 if has_pre else 0)                       # f32 prologue temp
            + 2 * 6 * (tk + tn) * 4)                                # bias / BN vectors
    return int(min(max(2 * need + (2 << 20), 8 << 20), 48 << 20))   # safe on 64MiB v7x


def matmul_fused(a, b_p, bias_p, *, relu=False, prologue=None, post=None,
                 post_first=False, out_dtype=jnp.bfloat16):
    """C = epilogue(prologue(A) @ B + bias).

    A:(M,K) any float;  B (pre-padded bf16):(Kp,Np);  bias:(1,Np) f32.
    Returns (M, Np): the output keeps the lane-padded N so downstream convs can
    consume it directly (callers slice to the logical channel count only when a
    concat/pool actually needs it).
    """
    M, K = a.shape
    Kp, Np = b_p.shape
    assert K <= Kp and Kp % 128 == 0 and Np % 128 == 0

    Mp = _round_up(M, 16)                    # bf16 sublane pack = (16, 128)
    tm = _pick_tile(Mp, 256, 16)             # 512-row conv0 -> 2 parallel M blocks
    tn = 128                                 # >=2 N blocks for 256/512-out convs (v7x)
    tk = _pick_tile(Kp, 2048, 128)           # big K in 1-3 grid steps

    a_p = jnp.pad(a, ((0, Mp - M), (0, Kp - K))).astype(jnp.bfloat16)

    args = [a_p, b_p, bias_p]
    in_specs = [
        pl.BlockSpec((tm, tk), lambda i, j, k: (i, k)),
        pl.BlockSpec((tk, tn), lambda i, j, k: (k, j)),
        pl.BlockSpec((1, tn), lambda i, j, k: (0, j)),
    ]
    if prologue is not None:
        args += list(prologue)
        in_specs += [pl.BlockSpec((1, tk), lambda i, j, k: (0, k)),
                     pl.BlockSpec((1, tk), lambda i, j, k: (0, k))]
    if post is not None:
        args += list(post)
        in_specs += [pl.BlockSpec((1, tn), lambda i, j, k: (0, j)),
                     pl.BlockSpec((1, tn), lambda i, j, k: (0, j))]

    kern = functools.partial(_mm_kernel, has_pre=prologue is not None,
                             has_post=post is not None, relu=relu,
                             post_first=post_first)
    out_bytes = jnp.dtype(out_dtype).itemsize
    cost = pl.CostEstimate(
        flops=2 * Mp * Np * Kp, transcendentals=0,
        bytes_accessed=int(Mp * Kp * 2 + Kp * Np * 2 + Mp * Np * out_bytes))

    out = pl.pallas_call(
        kern,
        out_shape=jax.ShapeDtypeStruct((Mp, Np), out_dtype),
        grid_spec=pltpu.PrefetchScalarGridSpec(
            num_scalar_prefetch=0,
            grid=(Mp // tm, Np // tn, Kp // tk),
            in_specs=in_specs,
            out_specs=pl.BlockSpec((tm, tn), lambda i, j, k: (i, j)),
            scratch_shapes=[pltpu.VMEM((tm, tn), jnp.float32)]),
        compiler_params=pltpu.CompilerParams(
            dimension_semantics=("parallel", "parallel", "arbitrary"),
            vmem_limit_bytes=_vmem_limit(tm, tn, tk, out_bytes,
                                         prologue is not None)),
        cost_estimate=cost,
    )(*args)
    if Mp != M:
        out = out[:M]
    return out


# ------------------------------- glue ops ------------------------------------

def im2col(x, kh, kw, stride, pad):
    # NOTE: stride/pad are static Python ints (they drive slicing).
    # TODO(synk): for large images fold the (kh,kw) tap loop into the matmul's
    #             K grid axis via shifted index_maps instead of materializing
    #             the kh*kw-inflated patch matrix in HBM.
    n, h, w, c = x.shape
    if pad:
        x = jnp.pad(x, ((0, 0), (pad, pad), (pad, pad), (0, 0)))
    oh = (h + 2 * pad - kh) // stride + 1
    ow = (w + 2 * pad - kw) // stride + 1
    if kh == 1 and kw == 1 and stride == 1:
        return x.reshape(n * oh * ow, c), (n, oh, ow)
    cols = []
    for i in range(kh):
        for j in range(kw):
            cols.append(x[:, i:i + stride * oh:stride, j:j + stride * ow:stride, :])
    patches = jnp.concatenate(cols, axis=-1)          # (n, oh, ow, kh*kw*c)
    return patches.reshape(n * oh * ow, kh * kw * c), (n, oh, ow)


def conv2d(x, cp, *, kh, kw, stride=1, pad=0, relu=False, post_first=False,
           cout=None, out_dtype=jnp.bfloat16):
    """x: NHWC; cp: prepared conv params ({'w':(Kp,Np) bf16, 'b':(1,Np) f32,
    optional 'pre_s'/'pre_b' (1,Kp), optional 'post_s'/'post_b' (1,Np)}).

    Output keeps the padded lane width (Np) unless `cout` is given (needed only
    where a concat / pooling stage requires the logical channel count).
    """
    a, (n, oh, ow) = im2col(x, kh, kw, stride, pad)
    prologue = (cp['pre_s'], cp['pre_b']) if 'pre_s' in cp else None
    post = (cp['post_s'], cp['post_b']) if 'post_s' in cp else None
    y = matmul_fused(a, cp['w'], cp['b'], relu=relu, prologue=prologue,
                     post=post, post_first=post_first, out_dtype=out_dtype)
    Np = cp['w'].shape[1]
    y = y.reshape(n, oh, ow, Np)
    if cout is not None and cout != Np:
        y = y[..., :cout]
    return y


def maxpool2d(x, k, stride, pad):
    init = jnp.array(-jnp.inf, x.dtype)
    return lax.reduce_window(
        x, init, lax.max, (1, k, k, 1), (1, stride, stride, 1),
        ((0, 0), (pad, pad), (pad, pad), (0, 0)))


def avgpool2d(x, k=2, stride=2):
    init = jnp.array(0, x.dtype)
    s = lax.reduce_window(
        x, init, lax.add, (1, k, k, 1), (1, stride, stride, 1),
        ((0, 0), (0, 0), (0, 0), (0, 0)))
    return s / float(k * k)


def upsample_nearest(x, f):
    # single broadcast+reshape instead of two jnp.repeat passes
    n, h, w, c = x.shape
    x = jnp.broadcast_to(x[:, :, None, :, None, :], (n, h, f, w, f, c))
    return x.reshape(n, h * f, w * f, c)


# --------------------------- parameter creation ------------------------------

class KeyGen:
    def __init__(self, seed):
        self.key = jax.random.PRNGKey(seed)

    def __call__(self):
        self.key, sub = jax.random.split(self.key)
        return sub


def conv_params(kg, kh, kw, cin, cout, bias=False):
    fan_in = kh * kw * cin
    w = jax.random.normal(kg(), (kh, kw, cin, cout), jnp.float32) / jnp.sqrt(fan_in)
    b = (0.01 * jax.random.normal(kg(), (cout,), jnp.float32)
         if bias else jnp.zeros((cout,), jnp.float32))
    return {'w': w, 'b': b}


def bn_params(kg, c, eps=1e-5):
    gamma = 1.0 + 0.1 * jax.random.normal(kg(), (c,), jnp.float32)
    beta = 0.1 * jax.random.normal(kg(), (c,), jnp.float32)
    mean = 0.1 * jax.random.normal(kg(), (c,), jnp.float32)
    var = jnp.abs(1.0 + 0.1 * jax.random.normal(kg(), (c,), jnp.float32))
    scale = gamma / jnp.sqrt(var + eps)
    bias = beta - mean * scale
    return {'scale': scale, 'bias': bias}


GROWTH = 8      # synthetic small DenseNet growth rate
BN_SIZE = 4
CLASS_COUNT = 4
NUM_ANCHORS = 4
PYRAMID_STRIDES = (1, 2, 2)   # static config (Python ints under jit)
FUSION_COUT = (512, 128, 32)  # matches BatchNorm2d(512 + 128 + 32)


def make_dense_layer_params(kg, cin):
    inter = BN_SIZE * GROWTH
    return {
        'norm1': bn_params(kg, cin),
        'conv1': conv_params(kg, 1, 1, cin, inter),
        'norm2': bn_params(kg, inter),
        'conv2': conv_params(kg, 3, 3, inter, GROWTH),
    }


def make_dense_block_params(kg, cin, n_layers):
    ps, c = [], cin
    for _ in range(n_layers):
        ps.append(make_dense_layer_params(kg, c))
        c += GROWTH
    return ps, c


def make_transition_params(kg, cin):
    cout = cin // 2
    return {'norm': bn_params(kg, cin), 'conv': conv_params(kg, 1, 1, cin, cout)}, cout


def build_params(seed=0):
    kg = KeyGen(seed)
    P = {}
    # DenseNet-style base (features.norm5 is skipped, as in the reference module).
    P['conv0'] = conv_params(kg, 7, 7, 3, 16)
    P['norm0'] = bn_params(kg, 16)
    c = 16
    P['block1'], c = make_dense_block_params(kg, c, 2)
    P['trans1'], c = make_transition_params(kg, c)
    P['block2'], c2 = make_dense_block_params(kg, c, 2)       # source 0
    P['trans2'], c = make_transition_params(kg, c2)
    P['block3'], c3 = make_dense_block_params(kg, c, 2)       # source 1
    P['trans3'], c = make_transition_params(kg, c3)
    P['block4'], c4 = make_dense_block_params(kg, c, 2)       # source 2
    P['fusion'] = [
        conv_params(kg, 3, 3, c2, FUSION_COUT[0], bias=True),
        conv_params(kg, 3, 3, c3, FUSION_COUT[1], bias=True),
        conv_params(kg, 3, 3, c4, FUSION_COUT[2], bias=True),
    ]
    P['batch_norm'] = bn_params(kg, sum(FUSION_COUT))
    P['pyramid'] = [
        conv_params(kg, 3, 3, sum(FUSION_COUT), 256, bias=True),
        conv_params(kg, 3, 3, 256, 256, bias=True),
        conv_params(kg, 3, 3, 256, 256, bias=True),
    ]
    P['class_head'] = [conv_params(kg, 3, 3, 256, NUM_ANCHORS * CLASS_COUNT, bias=True)
                       for _ in range(3)]
    P['loc_head'] = [conv_params(kg, 3, 3, 256, NUM_ANCHORS * 4, bias=True)
                     for _ in range(3)]
    return P


# ----------------------- one-time weight preparation --------------------------

def _vec_pad(v, n):
    return jnp.pad(v.astype(jnp.float32), (0, n - v.shape[0])).reshape(1, n)


def prep_conv(p, *, bn_fold=None, prologue=None, post=None, cin_pad=None):
    """Fold BN, zero-pad to lane-dense (Kp,Np), cast to bf16 — done ONCE."""
    w, b = p['w'], p['b']
    kh, kw, cin, cout = w.shape
    if bn_fold is not None:                       # BN AFTER conv -> per-cout affine fold
        w = w * bn_fold['scale']
        b = b * bn_fold['scale'] + bn_fold['bias']
    cin_p = cin if cin_pad is None else cin_pad
    if cin_p != cin:                              # consume a lane-padded input directly
        w = jnp.pad(w, ((0, 0), (0, 0), (0, cin_p - cin), (0, 0)))
    K, N = kh * kw * cin_p, cout
    Kp, Np = _round_up(K, 128), _round_up(N, 128)
    wmat = jnp.pad(w.reshape(K, N), ((0, Kp - K), (0, Np - N))).astype(jnp.bfloat16)
    out = {'w': wmat, 'b': _vec_pad(b, Np)}
    if prologue is not None:                      # BN+ReLU BEFORE conv -> per-K prologue
        ps = jnp.pad(prologue['scale'], (0, cin_p - cin))
        pb = jnp.pad(prologue['bias'], (0, cin_p - cin))
        out['pre_s'] = _vec_pad(jnp.tile(ps, kh * kw), Kp)
        out['pre_b'] = _vec_pad(jnp.tile(pb, kh * kw), Kp)
    if post is not None:                          # per-cout affine epilogue
        out['post_s'] = _vec_pad(post['scale'], Np)
        out['post_b'] = _vec_pad(post['bias'], Np)
    return out


def prepare_params(P):
    inter_pad = _round_up(BN_SIZE * GROWTH, 128)  # conv1's padded lane width
    prep = {'conv0': prep_conv(P['conv0'], bn_fold=P['norm0'])}
    for name in ('block1', 'block2', 'block3', 'block4'):
        prep[name] = [
            {  # conv1: norm1+relu1 prologue AND norm2+relu2 epilogue fused in
               'conv1': prep_conv(lp['conv1'], prologue=lp['norm1'], post=lp['norm2']),
               # conv2 consumes conv1's 128-lane padded output directly
               'conv2': prep_conv(lp['conv2'], cin_pad=inter_pad)}
            for lp in P[name]]
    for name in ('trans1', 'trans2', 'trans3'):
        prep[name] = prep_conv(P[name]['conv'], prologue=P[name]['norm'])
    # post-concat BatchNorm2d(672), sliced per fusion conv and fused as epilogue
    bn_s, bn_b = P['batch_norm']['scale'], P['batch_norm']['bias']
    prep['fusion'] = []
    off = 0
    for fp in P['fusion']:
        cout = fp['w'].shape[-1]
        prep['fusion'].append(prep_conv(
            fp, post={'scale': bn_s[off:off + cout], 'bias': bn_b[off:off + cout]}))
        off += cout
    prep['pyramid'] = [prep_conv(p) for p in P['pyramid']]
    # class_head[i] + loc_head[i] merged into one conv (shared im2col A)
    prep['head'] = [prep_conv({'w': jnp.concatenate([cp['w'], lp['w']], -1),
                               'b': jnp.concatenate([cp['b'], lp['b']], -1)})
                    for cp, lp in zip(P['class_head'], P['loc_head'])]
    return prep


# ------------------------------- forward -------------------------------------

def dense_layer(x, lp):
    # conv1 = conv(relu(norm1(x))) with norm2+relu2 fused as (affine -> relu)
    # epilogue; its padded lanes are exactly zero, so conv2 consumes it directly.
    y = conv2d(x, lp['conv1'], kh=1, kw=1, relu=True, post_first=True)
    y = conv2d(y, lp['conv2'], kh=3, kw=3, pad=1, cout=GROWTH)
    return jnp.concatenate([x, y], axis=-1)


def dense_block(x, layers):
    for lp in layers:
        x = dense_layer(x, lp)
    return x


def transition(x, tp):
    cout = x.shape[-1] // 2
    x = conv2d(x, tp, kh=1, kw=1, cout=cout)   # norm+relu fused as prologue (exact)
    return avgpool2d(x, 2, 2)


def sfdet_densenet_forward(prep, x_nchw):
    """mode='train' forward pass: returns (class_preds, loc_preds)."""
    batch = x_nchw.shape[0]
    x = jnp.transpose(x_nchw, (0, 2, 3, 1))            # NCHW -> NHWC

    # conv0 + norm0 + relu0 (BN folded into the conv weights at prepare time).
    x = conv2d(x, prep['conv0'], kh=7, kw=7, stride=2, pad=3, relu=True, cout=16)
    x = maxpool2d(x, 3, 2, 1)                          # pool0

    sources = []
    x = dense_block(x, prep['block1'])
    x = transition(x, prep['trans1'])
    x = dense_block(x, prep['block2'])
    sources.append(x)
    x = transition(x, prep['trans2'])
    x = dense_block(x, prep['block3'])
    sources.append(x)
    x = transition(x, prep['trans3'])
    x = dense_block(x, prep['block4'])
    sources.append(x)

    # Fusion: conv3x3 + ReLU with the post-concat BatchNorm2d(672) channel slice
    # fused into each conv's epilogue (exact: per-channel BN commutes with the
    # nearest-neighbor upsample and the channel concat).
    feats = []
    target_hw = sources[0].shape[1]
    for src, fp, cout in zip(sources, prep['fusion'], FUSION_COUT):
        f = conv2d(src, fp, kh=3, kw=3, pad=1, relu=True, post_first=False, cout=cout)
        up = target_hw // f.shape[1]
        if up > 1:
            f = upsample_nearest(f, up)
        feats.append(f)
    x = jnp.concatenate(feats, axis=-1)                # == BN(cat(features, 1))

    feature_pyramid = []
    for lp, stride in zip(prep['pyramid'], PYRAMID_STRIDES):
        x = conv2d(x, lp, kh=3, kw=3, stride=stride, pad=1, relu=True)
        feature_pyramid.append(x)

    # Heads: one merged conv per level, split columns afterwards.
    class_preds, loc_preds = [], []
    nc = NUM_ANCHORS * CLASS_COUNT
    nl = NUM_ANCHORS * 4
    for f, hp in zip(feature_pyramid, prep['head']):
        y = conv2d(f, hp, kh=3, kw=3, pad=1, out_dtype=jnp.float32)
        # NHWC already equals permute(0,2,3,1).contiguous()
        class_preds.append(y[..., :nc].reshape(batch, -1))
        loc_preds.append(y[..., nc:nc + nl].reshape(batch, -1))
    class_preds = jnp.concatenate(class_preds, axis=1).reshape(batch, -1, CLASS_COUNT)
    loc_preds = jnp.concatenate(loc_preds, axis=1).reshape(batch, -1, 4)

    # TODO(synk): test-mode path (softmax over class_preds + Detect NMS) not
    #             implemented; this reproduces the mode='train' output tuple.
    return class_preds, loc_preds


# --------------------------------- main ---------------------------------------

if __name__ == "__main__":
    raw_params = build_params(seed=0)
    # One-time weight fold / pad / bf16 cast — NOT part of the per-step graph.
    prepared = prepare_params(raw_params)

    x = jax.random.normal(jax.random.PRNGKey(0), (2, 3, 32, 32), jnp.float32)  # NCHW

    fwd = jax.jit(sfdet_densenet_forward)
    class_preds, loc_preds = fwd(prepared, x)
    jax.block_until_ready((class_preds, loc_preds))

    # pyramid levels: 4x4, 2x2, 1x1 with 4 anchors -> 84 boxes
    assert class_preds.shape == (2, 84, CLASS_COUNT), class_preds.shape
    assert loc_preds.shape == (2, 84, 4), loc_preds.shape
    assert bool(jnp.all(jnp.isfinite(class_preds)))
    assert bool(jnp.all(jnp.isfinite(loc_preds)))
    print("KERNEL_OK")
</pallas_src>

<mosaic_0001>
module attributes {stable_mosaic.version = 11 : i64} {
  func.func @_mm_kernel(%arg0: i32, %arg1: i32, %arg2: i32, %arg3: memref<256x256xbf16, #tpu.memory_space<vmem>>, %arg4: memref<256x128xbf16, #tpu.memory_space<vmem>>, %arg5: memref<1x128xf32, #tpu.memory_space<vmem>>, %arg6: memref<256x128xbf16, #tpu.memory_space<vmem>>, %arg7: memref<256x128xf32, #tpu.memory_space<vmem>>) attributes {dimension_semantics = [#tpu.dimension_semantics<parallel>, #tpu.dimension_semantics<parallel>, #tpu.dimension_semantics<arbitrary>], iteration_bounds = array<i64: 2, 1, 1>, scalar_prefetch = 0 : i64, scratch_operands = 1 : i64, tpu.core_type = #tpu.core_type<tc>, window_params = [{transform_indices = @transform_0, window_bounds = array<i64: 256, 256>}, {transform_indices = @transform_1, window_bounds = array<i64: 256, 128>}, {transform_indices = @transform_2, window_bounds = array<i64: 1, 128>}, {transform_indices = @transform_3, window_bounds = array<i64: 256, 128>}]} {
    %c0_i32 = arith.constant 0 : i32
    %0 = arith.cmpi eq, %arg2, %c0_i32 : i32
    %1 = arith.extui %0 : i1 to i32
    %c0_i32_0 = arith.constant 0 : i32
    %2 = arith.cmpi ne, %1, %c0_i32_0 : i32
    scf.if %2 {
      %cst_10 = arith.constant 0.000000e+00 : f32
      %12 = vector.broadcast %cst_10 : f32 to vector<256x128xf32>
      %c0_11 = arith.constant 0 : index
      %c0_12 = arith.constant 0 : index
      %13 = vector.load %arg7[%c0_11, %c0_12] : memref<256x128xf32, #tpu.memory_space<vmem>>, vector<256x128xf32>
      tpu.vector_store %arg7[%c0_11, %c0_12], %12 {strides = array<i32>} : memref<256x128xf32, #tpu.memory_space<vmem>>, vector<256x128xf32>,
    } else {
    }
    %c0 = arith.constant 0 : index
    %c0_1 = arith.constant 0 : index
    %3 = vector.load %arg3[%c0, %c0_1] : memref<256x256xbf16, #tpu.memory_space<vmem>>, vector<256x256xbf16>
    %c0_2 = arith.constant 0 : index
    %c0_3 = arith.constant 0 : index
    %4 = vector.load %arg7[%c0_2, %c0_3] : memref<256x128xf32, #tpu.memory_space<vmem>>, vector<256x128xf32>
    %c0_4 = arith.constant 0 : index
    %c0_5 = arith.constant 0 : index
    %5 = vector.load %arg4[%c0_4, %c0_5] : memref<256x128xbf16, #tpu.memory_space<vmem>>, vector<256x128xbf16>
    %cst = arith.constant dense<0.000000e+00> : vector<256x128xf32>
    %6 = tpu.matmul %3, %5, %cst {dimension_numbers = #tpu.dot_dimension_numbers<[1], [0], [0], [1], [0, 0, 1, 1], [], []>} : vector<256x256xbf16>, vector<256x128xbf16>, vector<256x128xf32> -> vector<256x128xf32>
    %7 = arith.addf %4, %6 : vector<256x128xf32>
    %c0_6 = arith.constant 0 : index
    %c0_7 = arith.constant 0 : index
    %8 = vector.load %arg7[%c0_6, %c0_7] : memref<256x128xf32, #tpu.memory_space<vmem>>, vector<256x128xf32>
    tpu.vector_store %arg7[%c0_6, %c0_7], %7 {strides = array<i32>} : memref<256x128xf32, #tpu.memory_space<vmem>>, vector<256x128xf32>,
    %c0_i32_8 = arith.constant 0 : i32
    %9 = arith.cmpi eq, %arg2, %c0_i32_8 : i32
    %10 = arith.extui %9 : i1 to i32
    %c0_i32_9 = arith.constant 0 : i32
    %11 = arith.cmpi ne, %10, %c0_i32_9 : i32
    scf.if %11 {
      %c0_10 = arith.constant 0 : index
      %c0_11 = arith.constant 0 : index
      %12 = vector.load %arg7[%c0_10, %c0_11] : memref<256x128xf32, #tpu.memory_space<vmem>>, vector<256x128xf32>
      %c0_12 = arith.constant 0 : index
      %c0_13 = arith.constant 0 : index
      %13 = vector.load %arg5[%c0_12, %c0_13] : memref<1x128xf32, #tpu.memory_space<vmem>>, vector<1x128xf32>
      %14 = vector.broadcast %13 : vector<1x128xf32> to vector<256x128xf32>
      %15 = arith.addf %12, %14 : vector<256x128xf32>
      %cst_14 = arith.constant 0.000000e+00 : f32
      %16 = vector.broadcast %cst_14 : f32 to vector<256x128xf32>
      %17 = arith.maximumf %15, %16 : vector<256x128xf32>
      %18 = arith.truncf %17 : vector<256x128xf32> to vector<256x128xbf16>
      %c0_15 = arith.constant 0 : index
      %c0_16 = arith.constant 0 : index
      %19 = vector.load %arg6[%c0_15, %c0_16] : memref<256x128xbf16, #tpu.memory_space<vmem>>, vector<256x128xbf16>
      tpu.vector_store %arg6[%c0_15, %c0_16], %18 {strides = array<i32>} : memref<256x128xbf16, #tpu.memory_space<vmem>>, vector<256x128xbf16>,
    } else {
    }
    return
  }
  func.func @transform_0(%arg0: i32, %arg1: i32, %arg2: i32) -> (i32, i32) {
    %c0_i32 = arith.constant 0 : i32
    return %arg0, %arg2 : i32, i32
  }
  func.func @transform_1(%arg0: i32, %arg1: i32, %arg2: i32) -> (i32, i32) {
    %c0_i32 = arith.constant 0 : i32
    return %arg2, %arg1 : i32, i32
  }
  func.func @transform_2(%arg0: i32, %arg1: i32, %arg2: i32) -> (i32, i32) {
    %c0_i32 = arith.constant 0 : i32
    %c0_i32_0 = arith.constant 0 : i32
    return %c0_i32, %arg1 : i32, i32
  }
  func.func @transform_3(%arg0: i32, %arg1: i32, %arg2: i32) -> (i32, i32) {
    %c0_i32 = arith.constant 0 : i32
    return %arg0, %arg1 : i32, i32
  }
}

module attributes {stable_mosaic.version = 11 : i64} {
  func.func @_mm_kernel(%arg0: i32, %arg1: i32, %arg2: i32, %arg3: memref<128x128xbf16, #tpu.memory_space<vmem>>, %arg4: memref<128x128xbf16, #tpu.memory_space<vmem>>, %arg5: memref<1x128xf32, #tpu.memory_space<vmem>>, %arg6: memref<1x128xf32, #tpu.memory_space<vmem>>, %arg7: memref<1x128xf32, #tpu.memory_space<vmem>>, %arg8: memref<1x128xf32, #tpu.memory_space<vmem>>, %arg9: memref<1x128xf32, #tpu.memory_space<vmem>>, %arg10: memref<128x128xbf16, #tpu.memory_space<vmem>>, %arg11: memref<128x128xf32, #tpu.memory_space<vmem>>) attributes {dimension_semantics = [#tpu.dimension_semantics<parallel>, #tpu.dimension_semantics<parallel>, #tpu.dimension_semantics<arbitrary>], iteration_bounds = array<i64: 1, 1, 1>, scalar_prefetch = 0 : i64, scratch_operands = 1 : i64, tpu.core_type = #tpu.core_type<tc>, window_params = [{transform_indices = @transform_0, window_bounds = array<i64: 128, 128>}, {transform_indices = @transform_1, window_bounds = array<i64: 128, 128>}, {transform_indices = @transform_2, window_bounds = array<i64: 1, 128>}, {transform_indices = @transform_3, window_bounds = array<i64: 1, 128>}, {transform_indices = @transform_4, window_bounds = array<i64: 1, 128>}, {transform_indices = @transform_5, window_bounds = array<i64: 1, 128>}, {transform_indices = @transform_6, window_bounds = array<i64: 1, 128>}, {transform_indices = @transform_7, window_bounds = array<i64: 128, 128>}]} {
    %c0_i32 = arith.constant 0 : i32
    %0 = arith.cmpi eq, %arg2, %c0_i32 : i32
    %1 = arith.extui %0 : i1 to i32
    %c0_i32_0 = arith.constant 0 : i32
    %2 = arith.cmpi ne, %1, %c0_i32_0 : i32
    scf.if %2 {
      %cst_15 = arith.constant 0.000000e+00 : f32
      %22 = vector.broadcast %cst_15 : f32 to vector<128x128xf32>
      %c0_16 = arith.constant 0 : index
      %c0_17 = arith.constant 0 : index
      %23 = vector.load %arg11[%c0_16, %c0_17] : memref<128x128xf32, #tpu.memory_space<vmem>>, vector<128x128xf32>
      tpu.vector_store %arg11[%c0_16, %c0_17], %22 {strides = array<i32>} : memref<128x128xf32, #tpu.memory_space<vmem>>, vector<128x128xf32>,
    } else {
    }
    %c0 = arith.constant 0 : index
    %c0_1 = arith.constant 0 : index
    %3 = vector.load %arg3[%c0, %c0_1] : memref<128x128xbf16, #tpu.memory_space<vmem>>, vector<128x128xbf16>
    %4 = arith.extf %3 : vector<128x128xbf16> to vector<128x128xf32>
    %c0_2 = arith.constant 0 : index
    %c0_3 = arith.constant 0 : index
    %5 = vector.load %arg6[%c0_2, %c0_3] : memref<1x128xf32, #tpu.memory_space<vmem>>, vector<1x128xf32>
    %6 = vector.broadcast %5 : vector<1x128xf32> to vector<128x128xf32>
    %7 = arith.mulf %4, %6 : vector<128x128xf32>
    %c0_4 = arith.constant 0 : index
    %c0_5 = arith.constant 0 : index
    %8 = vector.load %arg7[%c0_4, %c0_5] : memref<1x128xf32, #tpu.memory_space<vmem>>, vector<1x128xf32>
    %9 = vector.broadcast %8 : vector<1x128xf32> to vector<128x128xf32>
    %10 = arith.addf %7, %9 : vector<128x128xf32>
    %cst = arith.constant 0.000000e+00 : f32
    %11 = vector.broadcast %cst : f32 to vector<128x128xf32>
    %12 = arith.maximumf %10, %11 : vector<128x128xf32>
    %13 = arith.truncf %12 : vector<128x128xf32> to vector<128x128xbf16>
    %c0_6 = arith.constant 0 : index
    %c0_7 = arith.constant 0 : index
    %14 = vector.load %arg11[%c0_6, %c0_7] : memref<128x128xf32, #tpu.memory_space<vmem>>, vector<128x128xf32>
    %c0_8 = arith.constant 0 : index
    %c0_9 = arith.constant 0 : index
    %15 = vector.load %arg4[%c0_8, %c0_9] : memref<128x128xbf16, #tpu.memory_space<vmem>>, vector<128x128xbf16>
    %cst_10 = arith.constant dense<0.000000e+00> : vector<128x128xf32>
    %16 = tpu.matmul %13, %15, %cst_10 {dimension_numbers = #tpu.dot_dimension_numbers<[1], [0], [0], [1], [0, 0, 1, 1], [], []>} : vector<128x128xbf16>, vector<128x128xbf16>, vector<128x128xf32> -> vector<128x128xf32>
    %17 = arith.addf %14, %16 : vector<128x128xf32>
    %c0_11 = arith.constant 0 : index
    %c0_12 = arith.constant 0 : index
    %18 = vector.load %arg11[%c0_11, %c0_12] : memref<128x128xf32, #tpu.memory_space<vmem>>, vector<128x128xf32>
    tpu.vector_store %arg11[%c0_11, %c0_12], %17 {strides = array<i32>} : memref<128x128xf32, #tpu.memory_space<vmem>>, vector<128x128xf32>,
    %c0_i32_13 = arith.constant 0 : i32
    %19 = arith.cmpi eq, %arg2, %c0_i32_13 : i32
    %20 = arith.extui %19 : i1 to i32
    %c0_i32_14 = arith.constant 0 : i32
    %21 = arith.cmpi ne, %20, %c0_i32_14 : i32
    scf.if %21 {
      %c0_15 = arith.constant 0 : index
      %c0_16 = arith.constant 0 : index
      %22 = vector.load %arg11[%c0_15, %c0_16] : memref<128x128xf32, #tpu.memory_space<vmem>>, vector<128x128xf32>
      %c0_17 = arith.constant 0 : index
      %c0_18 = arith.constant 0 : index
      %23 = vector.load %arg5[%c0_17, %c0_18] : memref<1x128xf32, #tpu.memory_space<vmem>>, vector<1x128xf32>
      %24 = vector.broadcast %23 : vector<1x128xf32> to vector<128x128xf32>
      %25 = arith.addf %22, %24 : vector<128x128xf32>
      %c0_19 = arith.constant 0 : index
      %c0_20 = arith.constant 0 : index
      %26 = vector.load %arg8[%c0_19, %c0_20] : memref<1x128xf32, #tpu.memory_space<vmem>>, vector<1x128xf32>
      %27 = vector.broadcast %26 : vector<1x128xf32> to vector<128x128xf32>
      %28 = arith.mulf %25, %27 : vector<128x128xf32>
      %c0_21 = arith.constant 0 : index
      %c0_22 = arith.constant 0 : index
      %29 = vector.load %arg9[%c0_21, %c0_22] : memref<1x128xf32, #tpu.memory_space<vmem>>, vector<1x128xf32>
      %30 = vector.broadcast %29 : vector<1x128xf32> to vector<128x128xf32>
      %31 = arith.addf %28, %30 : vector<128x128xf32>
      %cst_23 = arith.constant 0.000000e+00 : f32
      %32 = vector.broadcast %cst_23 : f32 to vector<128x128xf32>
      %33 = arith.maximumf %31, %32 : vector<128x128xf32>
      %34 = arith.truncf %33 : vector<128x128xf32> to vector<128x128xbf16>
      %c0_24 = arith.constant 0 : index
      %c0_25 = arith.constant 0 : index
      %35 = vector.load %arg10[%c0_24, %c0_25] : memref<128x128xbf16, #tpu.memory_space<vmem>>, vector<128x128xbf16>
      tpu.vector_store %arg10[%c0_24, %c0_25], %34 {strides = array<i32>} : memref<128x128xbf16, #tpu.memory_space<vmem>>, vector<128x128xbf16>,
    } else {
    }
    return
  }
  func.func @transform_0(%arg0: i32, %arg1: i32, %arg2: i32) -> (i32, i32) {
    %c0_i32 = arith.constant 0 : i32
    return %arg0, %arg2 : i32, i32
  }
  func.func @transform_1(%arg0: i32, %arg1: i32, %arg2: i32) -> (i32, i32) {
    %c0_i32 = arith.constant 0 : i32
    return %arg2, %arg1 : i32, i32
  }
  func.func @transform_2(%arg0: i32, %arg1: i32, %arg2: i32) -> (i32, i32) {
    %c0_i32 = arith.constant 0 : i32
    %c0_i32_0 = arith.constant 0 : i32
    return %c0_i32, %arg1 : i32, i32
  }
  func.func @transform_3(%arg0: i32, %arg1: i32, %arg2: i32) -> (i32, i32) {
    %c0_i32 = arith.constant 0 : i32
    %c0_i32_0 = arith.constant 0 : i32
    return %c0_i32, %arg2 : i32, i32
  }
  func.func @transform_4(%arg0: i32, %arg1: i32, %arg2: i32) -> (i32, i32) {
    %c0_i32 = arith.constant 0 : i32
    %c0_i32_0 = arith.constant 0 : i32
    return %c0_i32, %arg2 : i32, i32
  }
  func.func @transform_5(%arg0: i32, %arg1: i32, %arg2: i32) -> (i32, i32) {
    %c0_i32 = arith.constant 0 : i32
    %c0_i32_0 = arith.constant 0 : i32
    return %c0_i32, %arg1 : i32, i32
  }
  func.func @transform_6(%arg0: i32, %arg1: i32, %arg2: i32) -> (i32, i32) {
    %c0_i32 = arith.constant 0 : i32
    %c0_i32_0 = arith.constant 0 : i32
    return %c0_i32, %arg1 : i32, i32
  }
  func.func @transform_7(%arg0: i32, %arg1: i32, %arg2: i32) -> (i32, i32) {
    %c0_i32 = arith.constant 0 : i32
    return %arg0, %arg1 : i32, i32
  }
}

module attributes {stable_mosaic.version = 11 : i64} {
  func.func @_mm_kernel(%arg0: i32, %arg1: i32, %arg2: i32, %arg3: memref<128x1152xbf16, #tpu.memory_space<vmem>>, %arg4: memref<1152x128xbf16, #tpu.memory_space<vmem>>, %arg5: memref<1x128xf32, #tpu.memory_space<vmem>>, %arg6: memref<128x128xbf16, #tpu.memory_space<vmem>>, %arg7: memref<128x128xf32, #tpu.memory_space<vmem>>) attributes {dimension_semantics = [#tpu.dimension_semantics<parallel>, #tpu.dimension_semantics<parallel>, #tpu.dimension_semantics<arbitrary>], iteration_bounds = array<i64: 1, 1, 1>, scalar_prefetch = 0 : i64, scratch_operands = 1 : i64, tpu.core_type = #tpu.core_type<tc>, window_params = [{transform_indices = @transform_0, window_bounds = array<i64: 128, 1152>}, {transform_indices = @transform_1, window_bounds = array<i64: 1152, 128>}, {transform_indices = @transform_2, window_bounds = array<i64: 1, 128>}, {transform_indices = @transform_3, window_bounds = array<i64: 128, 128>}]} {
    %c0_i32 = arith.constant 0 : i32
    %0 = arith.cmpi eq, %arg2, %c0_i32 : i32
    %1 = arith.extui %0 : i1 to i32
    %c0_i32_0 = arith.constant 0 : i32
    %2 = arith.cmpi ne, %1, %c0_i32_0 : i32
    scf.if %2 {
      %cst_10 = arith.constant 0.000000e+00 : f32
      %12 = vector.broadcast %cst_10 : f32 to vector<128x128xf32>
      %c0_11 = arith.constant 0 : index
      %c0_12 = arith.constant 0 : index
      %13 = vector.load %arg7[%c0_11, %c0_12] : memref<128x128xf32, #tpu.memory_space<vmem>>, vector<128x128xf32>
      tpu.vector_store %arg7[%c0_11, %c0_12], %12 {strides = array<i32>} : memref<128x128xf32, #tpu.memory_space<vmem>>, vector<128x128xf32>,
    } else {
    }
    %c0 = arith.constant 0 : index
    %c0_1 = arith.constant 0 : index
    %3 = vector.load %arg3[%c0, %c0_1] : memref<128x1152xbf16, #tpu.memory_space<vmem>>, vector<128x1152xbf16>
    %c0_2 = arith.constant 0 : index
    %c0_3 = arith.constant 0 : index
    %4 = vector.load %arg7[%c0_2, %c0_3] : memref<128x128xf32, #tpu.memory_space<vmem>>, vector<128x128xf32>
    %c0_4 = arith.constant 0 : index
    %c0_5 = arith.constant 0 : index
    %5 = vector.load %arg4[%c0_4, %c0_5] : memref<1152x128xbf16, #tpu.memory_space<vmem>>, vector<1152x128xbf16>
    %cst = arith.constant dense<0.000000e+00> : vector<128x128xf32>
    %6 = tpu.matmul %3, %5, %cst {dimension_numbers = #tpu.dot_dimension_numbers<[1], [0], [0], [1], [0, 0, 1, 1], [], []>} : vector<128x1152xbf16>, vector<1152x128xbf16>, vector<128x128xf32> -> vector<128x128xf32>
    %7 = arith.addf %4, %6 : vector<128x128xf32>
    %c0_6 = arith.constant 0 : index
    %c0_7 = arith.constant 0 : index
    %8 = vector.load %arg7[%c0_6, %c0_7] : memref<128x128xf32, #tpu.memory_space<vmem>>, vector<128x128xf32>
    tpu.vector_store %arg7[%c0_6, %c0_7], %7 {strides = array<i32>} : memref<128x128xf32, #tpu.memory_space<vmem>>, vector<128x128xf32>,
    %c0_i32_8 = arith.constant 0 : i32
    %9 = arith.cmpi eq, %arg2, %c0_i32_8 : i32
    %10 = arith.extui %9 : i1 to i32
    %c0_i32_9 = arith.constant 0 : i32
    %11 = arith.cmpi ne, %10, %c0_i32_9 : i32
    scf.if %11 {
      %c0_10 = arith.constant 0 : index
      %c0_11 = arith.constant 0 : index
      %12 = vector.load %arg7[%c0_10, %c0_11] : memref<128x128xf32, #tpu.memory_space<vmem>>, vector<128x128xf32>
      %c0_12 = arith.constant 0 : index
      %c0_13 = arith.constant 0 : index
      %13 = vector.load %arg5[%c0_12, %c0_13] : memref<1x128xf32, #tpu.memory_space<vmem>>, vector<1x128xf32>
      %14 = vector.broadcast %13 : vector<1x128xf32> to vector<128x128xf32>
      %15 = arith.addf %12, %14 : vector<128x128xf32>
      %16 = arith.truncf %15 : vector<128x128xf32> to vector<128x128xbf16>
      %c0_14 = arith.constant 0 : index
      %c0_15 = arith.constant 0 : index
      %17 = vector.load %arg6[%c0_14, %c0_15] : memref<128x128xbf16, #tpu.memory_space<vmem>>, vector<128x128xbf16>
      tpu.vector_store %arg6[%c0_14, %c0_15], %16 {strides = array<i32>} : memref<128x128xbf16, #tpu.memory_space<vmem>>, vector<128x128xbf16>,
    } else {
    }
    return
  }
  func.func @transform_0(%arg0: i32, %arg1: i32, %arg2: i32) -> (i32, i32) {
    %c0_i32 = arith.constant 0 : i32
    return %arg0, %arg2 : i32, i32
  }
  func.func @transform_1(%arg0: i32, %arg1: i32, %arg2: i32) -> (i32, i32) {
    %c0_i32 = arith.constant 0 : i32
    return %arg2, %arg1 : i32, i32
  }
  func.func @transform_2(%arg0: i32, %arg1: i32, %arg2: i32) -> (i32, i32) {
    %c0_i32 = arith.constant 0 : i32
    %c0_i32_0 = arith.constant 0 : i32
    return %c0_i32, %arg1 : i32, i32
  }
  func.func @transform_3(%arg0: i32, %arg1: i32, %arg2: i32) -> (i32, i32) {
    %c0_i32 = arith.constant 0 : i32
    return %arg0, %arg1 : i32, i32
  }
}

module attributes {stable_mosaic.version = 11 : i64} {
  func.func @_mm_kernel(%arg0: i32, %arg1: i32, %arg2: i32, %arg3: memref<128x128xbf16, #tpu.memory_space<vmem>>, %arg4: memref<128x128xbf16, #tpu.memory_space<vmem>>, %arg5: memref<1x128xf32, #tpu.memory_space<vmem>>, %arg6: memref<1x128xf32, #tpu.memory_space<vmem>>, %arg7: memref<1x128xf32, #tpu.memory_space<vmem>>, %arg8: memref<128x128xbf16, #tpu.memory_space<vmem>>, %arg9: memref<128x128xf32, #tpu.memory_space<vmem>>) attributes {dimension_semantics = [#tpu.dimension_semantics<parallel>, #tpu.dimension_semantics<parallel>, #tpu.dimension_semantics<arbitrary>], iteration_bounds = array<i64: 1, 1, 1>, scalar_prefetch = 0 : i64, scratch_operands = 1 : i64, tpu.core_type = #tpu.core_type<tc>, window_params = [{transform_indices = @transform_0, window_bounds = array<i64: 128, 128>}, {transform_indices = @transform_1, window_bounds = array<i64: 128, 128>}, {transform_indices = @transform_2, window_bounds = array<i64: 1, 128>}, {transform_indices = @transform_3, window_bounds = array<i64: 1, 128>}, {transform_indices = @transform_4, window_bounds = array<i64: 1, 128>}, {transform_indices = @transform_5, window_bounds = array<i64: 128, 128>}]} {
    %c0_i32 = arith.constant 0 : i32
    %0 = arith.cmpi eq, %arg2, %c0_i32 : i32
    %1 = arith.extui %0 : i1 to i32
    %c0_i32_0 = arith.constant 0 : i32
    %2 = arith.cmpi ne, %1, %c0_i32_0 : i32
    scf.if %2 {
      %cst_15 = arith.constant 0.000000e+00 : f32
      %22 = vector.broadcast %cst_15 : f32 to vector<128x128xf32>
      %c0_16 = arith.constant 0 : index
      %c0_17 = arith.constant 0 : index
      %23 = vector.load %arg9[%c0_16, %c0_17] : memref<128x128xf32, #tpu.memory_space<vmem>>, vector<128x128xf32>
      tpu.vector_store %arg9[%c0_16, %c0_17], %22 {strides = array<i32>} : memref<128x128xf32, #tpu.memory_space<vmem>>, vector<128x128xf32>,
    } else {
    }
    %c0 = arith.constant 0 : index
    %c0_1 = arith.constant 0 : index
    %3 = vector.load %arg3[%c0, %c0_1] : memref<128x128xbf16, #tpu.memory_space<vmem>>, vector<128x128xbf16>
    %4 = arith.extf %3 : vector<128x128xbf16> to vector<128x128xf32>
    %c0_2 = arith.constant 0 : index
    %c0_3 = arith.constant 0 : index
    %5 = vector.load %arg6[%c0_2, %c0_3] : memref<1x128xf32, #tpu.memory_space<vmem>>, vector<1x128xf32>
    %6 = vector.broadcast %5 : vector<1x128xf32> to vector<128x128xf32>
    %7 = arith.mulf %4, %6 : vector<128x128xf32>
    %c0_4 = arith.constant 0 : index
    %c0_5 = arith.constant 0 : index
    %8 = vector.load %arg7[%c0_4, %c0_5] : memref<1x128xf32, #tpu.memory_space<vmem>>, vector<1x128xf32>
    %9 = vector.broadcast %8 : vector<1x128xf32> to vector<128x128xf32>
    %10 = arith.addf %7, %9 : vector<128x128xf32>
    %cst = arith.constant 0.000000e+00 : f32
    %11 = vector.broadcast %cst : f32 to vector<128x128xf32>
    %12 = arith.maximumf %10, %11 : vector<128x128xf32>
    %13 = arith.truncf %12 : vector<128x128xf32> to vector<128x128xbf16>
    %c0_6 = arith.constant 0 : index
    %c0_7 = arith.constant 0 : index
    %14 = vector.load %arg9[%c0_6, %c0_7] : memref<128x128xf32, #tpu.memory_space<vmem>>, vector<128x128xf32>
    %c0_8 = arith.constant 0 : index
    %c0_9 = arith.constant 0 : index
    %15 = vector.load %arg4[%c0_8, %c0_9] : memref<128x128xbf16, #tpu.memory_space<vmem>>, vector<128x128xbf16>
    %cst_10 = arith.constant dense<0.000000e+00> : vector<128x128xf32>
    %16 = tpu.matmul %13, %15, %cst_10 {dimension_numbers = #tpu.dot_dimension_numbers<[1], [0], [0], [1], [0, 0, 1, 1], [], []>} : vector<128x128xbf16>, vector<128x128xbf16>, vector<128x128xf32> -> vector<128x128xf32>
    %17 = arith.addf %14, %16 : vector<128x128xf32>
    %c0_11 = arith.constant 0 : index
    %c0_12 = arith.constant 0 : index
    %18 = vector.load %arg9[%c0_11, %c0_12] : memref<128x128xf32, #tpu.memory_space<vmem>>, vector<128x128xf32>
    tpu.vector_store %arg9[%c0_11, %c0_12], %17 {strides = array<i32>} : memref<128x128xf32, #tpu.memory_space<vmem>>, vector<128x128xf32>,
    %c0_i32_13 = arith.constant 0 : i32
    %19 = arith.cmpi eq, %arg2, %c0_i32_13 : i32
    %20 = arith.extui %19 : i1 to i32
    %c0_i32_14 = arith.constant 0 : i32
    %21 = arith.cmpi ne, %20, %c0_i32_14 : i32
    scf.if %21 {
      %c0_15 = arith.constant 0 : index
      %c0_16 = arith.constant 0 : index
      %22 = vector.load %arg9[%c0_15, %c0_16] : memref<128x128xf32, #tpu.memory_space<vmem>>, vector<128x128xf32>
      %c0_17 = arith.constant 0 : index
      %c0_18 = arith.constant 0 : index
      %23 = vector.load %arg5[%c0_17, %c0_18] : memref<1x128xf32, #tpu.memory_space<vmem>>, vector<1x128xf32>
      %24 = vector.broadcast %23 : vector<1x128xf32> to vector<128x128xf32>
      %25 = arith.addf %22, %24 : vector<128x128xf32>
      %26 = arith.truncf %25 : vector<128x128xf32> to vector<128x128xbf16>
      %c0_19 = arith.constant 0 : index
      %c0_20 = arith.constant 0 : index
      %27 = vector.load %arg8[%c0_19, %c0_20] : memref<128x128xbf16, #tpu.memory_space<vmem>>, vector<128x128xbf16>
      tpu.vector_store %arg8[%c0_19, %c0_20], %26 {strides = array<i32>} : memref<128x128xbf16, #tpu.memory_space<vmem>>, vector<128x128xbf16>,
    } else {
    }
    return
  }
  func.func @transform_0(%arg0: i32, %arg1: i32, %arg2: i32) -> (i32, i32) {
    %c0_i32 = arith.constant 0 : i32
    return %arg0, %arg2 : i32, i32
  }
  func.func @transform_1(%arg0: i32, %arg1: i32, %arg2: i32) -> (i32, i32) {
    %c0_i32 = arith.constant 0 : i32
    return %arg2, %arg1 : i32, i32
  }
  func.func @transform_2(%arg0: i32, %arg1: i32, %arg2: i32) -> (i32, i32) {
    %c0_i32 = arith.constant 0 : i32
    %c0_i32_0 = arith.constant 0 : i32
    return %c0_i32, %arg1 : i32, i32
  }
  func.func @transform_3(%arg0: i32, %arg1: i32, %arg2: i32) -> (i32, i32) {
    %c0_i32 = arith.constant 0 : i32
    %c0_i32_0 = arith.constant 0 : i32
    return %c0_i32, %arg2 : i32, i32
  }
  func.func @transform_4(%arg0: i32, %arg1: i32, %arg2: i32) -> (i32, i32) {
    %c0_i32 = arith.constant 0 : i32
    %c0_i32_0 = arith.constant 0 : i32
    return %c0_i32, %arg2 : i32, i32
  }
  func.func @transform_5(%arg0: i32, %arg1: i32, %arg2: i32) -> (i32, i32) {
    %c0_i32 = arith.constant 0 : i32
    return %arg0, %arg1 : i32, i32
  }
}

module attributes {stable_mosaic.version = 11 : i64} {
  func.func @_mm_kernel(%arg0: i32, %arg1: i32, %arg2: i32, %arg3: memref<32x128xbf16, #tpu.memory_space<vmem>>, %arg4: memref<128x128xbf16, #tpu.memory_space<vmem>>, %arg5: memref<1x128xf32, #tpu.memory_space<vmem>>, %arg6: memref<1x128xf32, #tpu.memory_space<vmem>>, %arg7: memref<1x128xf32, #tpu.memory_space<vmem>>, %arg8: memref<1x128xf32, #tpu.memory_space<vmem>>, %arg9: memref<1x128xf32, #tpu.memory_space<vmem>>, %arg10: memref<32x128xbf16, #tpu.memory_space<vmem>>, %arg11: memref<32x128xf32, #tpu.memory_space<vmem>>) attributes {dimension_semantics = [#tpu.dimension_semantics<parallel>, #tpu.dimension_semantics<parallel>, #tpu.dimension_semantics<arbitrary>], iteration_bounds = array<i64: 1, 1, 1>, scalar_prefetch = 0 : i64, scratch_operands = 1 : i64, tpu.core_type = #tpu.core_type<tc>, window_params = [{transform_indices = @transform_0, window_bounds = array<i64: 32, 128>}, {transform_indices = @transform_1, window_bounds = array<i64: 128, 128>}, {transform_indices = @transform_2, window_bounds = array<i64: 1, 128>}, {transform_indices = @transform_3, window_bounds = array<i64: 1, 128>}, {transform_indices = @transform_4, window_bounds = array<i64: 1, 128>}, {transform_indices = @transform_5, window_bounds = array<i64: 1, 128>}, {transform_indices = @transform_6, window_bounds = array<i64: 1, 128>}, {transform_indices = @transform_7, window_bounds = array<i64: 32, 128>}]} {
    %c0_i32 = arith.constant 0 : i32
    %0 = arith.cmpi eq, %arg2, %c0_i32 : i32
    %1 = arith.extui %0 : i1 to i32
    %c0_i32_0 = arith.constant 0 : i32
    %2 = arith.cmpi ne, %1, %c0_i32_0 : i32
    scf.if %2 {
      %cst_15 = arith.constant 0.000000e+00 : f32
      %22 = vector.broadcast %cst_15 : f32 to vector<32x128xf32>
      %c0_16 = arith.constant 0 : index
      %c0_17 = arith.constant 0 : index
      %23 = vector.load %arg11[%c0_16, %c0_17] : memref<32x128xf32, #tpu.memory_space<vmem>>, vector<32x128xf32>
      tpu.vector_store %arg11[%c0_16, %c0_17], %22 {strides = array<i32>} : memref<32x128xf32, #tpu.memory_space<vmem>>, vector<32x128xf32>,
    } else {
    }
    %c0 = arith.constant 0 : index
    %c0_1 = arith.constant 0 : index
    %3 = vector.load %arg3[%c0, %c0_1] : memref<32x128xbf16, #tpu.memory_space<vmem>>, vector<32x128xbf16>
    %4 = arith.extf %3 : vector<32x128xbf16> to vector<32x128xf32>
    %c0_2 = arith.constant 0 : index
    %c0_3 = arith.constant 0 : index
    %5 = vector.load %arg6[%c0_2, %c0_3] : memref<1x128xf32, #tpu.memory_space<vmem>>, vector<1x128xf32>
    %6 = vector.broadcast %5 : vector<1x128xf32> to vector<32x128xf32>
    %7 = arith.mulf %4, %6 : vector<32x128xf32>
    %c0_4 = arith.constant 0 : index
    %c0_5 = arith.constant 0 : index
    %8 = vector.load %arg7[%c0_4, %c0_5] : memref<1x128xf32, #tpu.memory_space<vmem>>, vector<1x128xf32>
    %9 = vector.broadcast %8 : vector<1x128xf32> to vector<32x128xf32>
    %10 = arith.addf %7, %9 : vector<32x128xf32>
    %cst = arith.constant 0.000000e+00 : f32
    %11 = vector.broadcast %cst : f32 to vector<32x128xf32>
    %12 = arith.maximumf %10, %11 : vector<32x128xf32>
    %13 = arith.truncf %12 : vector<32x128xf32> to vector<32x128xbf16>
    %c0_6 = arith.constant 0 : index
    %c0_7 = arith.constant 0 : index
    %14 = vector.load %arg11[%c0_6, %c0_7] : memref<32x128xf32, #tpu.memory_space<vmem>>, vector<32x128xf32>
    %c0_8 = arith.constant 0 : index
    %c0_9 = arith.constant 0 : index
    %15 = vector.load %arg4[%c0_8, %c0_9] : memref<128x128xbf16, #tpu.memory_space<vmem>>, vector<128x128xbf16>
    %cst_10 = arith.constant dense<0.000000e+00> : vector<32x128xf32>
    %16 = tpu.matmul %13, %15, %cst_10 {dimension_numbers = #tpu.dot_dimension_numbers<[1], [0], [0], [1], [0, 0, 1, 1], [], []>} : vector<32x128xbf16>, vector<128x128xbf16>, vector<32x128xf32> -> vector<32x128xf32>
    %17 = arith.addf %14, %16 : vector<32x128xf32>
    %c0_11 = arith.constant 0 : index
    %c0_12 = arith.constant 0 : index
    %18 = vector.load %arg11[%c0_11, %c0_12] : memref<32x128xf32, #tpu.memory_space<vmem>>, vector<32x128xf32>
    tpu.vector_store %arg11[%c0_11, %c0_12], %17 {strides = array<i32>} : memref<32x128xf32, #tpu.memory_space<vmem>>, vector<32x128xf32>,
    %c0_i32_13 = arith.constant 0 : i32
    %19 = arith.cmpi eq, %arg2, %c0_i32_13 : i32
    %20 = arith.extui %19 : i1 to i32
    %c0_i32_14 = arith.constant 0 : i32
    %21 = arith.cmpi ne, %20, %c0_i32_14 : i32
    scf.if %21 {
      %c0_15 = arith.constant 0 : index
      %c0_16 = arith.constant 0 : index
      %22 = vector.load %arg11[%c0_15, %c0_16] : memref<32x128xf32, #tpu.memory_space<vmem>>, vector<32x128xf32>
      %c0_17 = arith.constant 0 : index
      %c0_18 = arith.constant 0 : index
      %23 = vector.load %arg5[%c0_17, %c0_18] : memref<1x128xf32, #tpu.memory_space<vmem>>, vector<1x128xf32>
      %24 = vector.broadcast %23 : vector<1x128xf32> to vector<32x128xf32>
      %25 = arith.addf %22, %24 : vector<32x128xf32>
      %c0_19 = arith.constant 0 : index
      %c0_20 = arith.constant 0 : index
      %26 = vector.load %arg8[%c0_19, %c0_20] : memref<1x128xf32, #tpu.memory_space<vmem>>, vector<1x128xf32>
      %27 = vector.broadcast %26 : vector<1x128xf32> to vector<32x128xf32>
      %28 = arith.mulf %25, %27 : vector<32x128xf32>
      %c0_21 = arith.constant 0 : index
      %c0_22 = arith.constant 0 : index
      %29 = vector.load %arg9[%c0_21, %c0_22] : memref<1x128xf32, #tpu.memory_space<vmem>>, vector<1x128xf32>
      %30 = vector.broadcast %29 : vector<1x128xf32> to vector<32x128xf32>
      %31 = arith.addf %28, %30 : vector<32x128xf32>
      %cst_23 = arith.constant 0.000000e+00 : f32
      %32 = vector.broadcast %cst_23 : f32 to vector<32x128xf32>
      %33 = arith.maximumf %31, %32 : vector<32x128xf32>
      %34 = arith.truncf %33 : vector<32x128xf32> to vector<32x128xbf16>
      %c0_24 = arith.constant 0 : index
      %c0_25 = arith.constant 0 : index
      %35 = vector.load %arg10[%c0_24, %c0_25] : memref<32x128xbf16, #tpu.memory_space<vmem>>, vector<32x128xbf16>
      tpu.vector_store %arg10[%c0_24, %c0_25], %34 {strides = array<i32>} : memref<32x128xbf16, #tpu.memory_space<vmem>>, vector<32x128xbf16>,
    } else {
    }
    return
  }
  func.func @transform_0(%arg0: i32, %arg1: i32, %arg2: i32) -> (i32, i32) {
    %c0_i32 = arith.constant 0 : i32
    return %arg0, %arg2 : i32, i32
  }
  func.func @transform_1(%arg0: i32, %arg1: i32, %arg2: i32) -> (i32, i32) {
    %c0_i32 = arith.constant 0 : i32
    return %arg2, %arg1 : i32, i32
  }
  func.func @transform_2(%arg0: i32, %arg1: i32, %arg2: i32) -> (i32, i32) {
    %c0_i32 = arith.constant 0 : i32
    %c0_i32_0 = arith.constant 0 : i32
    return %c0_i32, %arg1 : i32, i32
  }
  func.func @transform_3(%arg0: i32, %arg1: i32, %arg2: i32) -> (i32, i32) {
    %c0_i32 = arith.constant 0 : i32
    %c0_i32_0 = arith.constant 0 : i32
    return %c0_i32, %arg2 : i32, i32
  }
  func.func @transform_4(%arg0: i32, %arg1: i32, %arg2: i32) -> (i32, i32) {
    %c0_i32 = arith.constant 0 : i32
    %c0_i32_0 = arith.constant 0 : i32
    return %c0_i32, %arg2 : i32, i32
  }
  func.func @transform_5(%arg0: i32, %arg1: i32, %arg2: i32) -> (i32, i32) {
    %c0_i32 = arith.constant 0 : i32
    %c0_i32_0 = arith.constant 0 : i32
    return %c0_i32, %arg1 : i32, i32
  }
  func.func @transform_6(%arg0: i32, %arg1: i32, %arg2: i32) -> (i32, i32) {
    %c0_i32 = arith.constant 0 : i32
    %c0_i32_0 = arith.constant 0 : i32
    return %c0_i32, %arg1 : i32, i32
  }
  func.func @transform_7(%arg0: i32, %arg1: i32, %arg2: i32) -> (i32, i32) {
    %c0_i32 = arith.constant 0 : i32
    return %arg0, %arg1 : i32, i32
  }
}

module attributes {stable_mosaic.version = 11 : i64} {
  func.func @_mm_kernel(%arg0: i32, %arg1: i32, %arg2: i32, %arg3: memref<32x1152xbf16, #tpu.memory_space<vmem>>, %arg4: memref<1152x128xbf16, #tpu.memory_space<vmem>>, %arg5: memref<1x128xf32, #tpu.memory_space<vmem>>, %arg6: memref<32x128xbf16, #tpu.memory_space<vmem>>, %arg7: memref<32x128xf32, #tpu.memory_space<vmem>>) attributes {dimension_semantics = [#tpu.dimension_semantics<parallel>, #tpu.dimension_semantics<parallel>, #tpu.dimension_semantics<arbitrary>], iteration_bounds = array<i64: 1, 1, 1>, scalar_prefetch = 0 : i64, scratch_operands = 1 : i64, tpu.core_type = #tpu.core_type<tc>, window_params = [{transform_indices = @transform_0, window_bounds = array<i64: 32, 1152>}, {transform_indices = @transform_1, window_bounds = array<i64: 1152, 128>}, {transform_indices = @transform_2, window_bounds = array<i64: 1, 128>}, {transform_indices = @transform_3, window_bounds = array<i64: 32, 128>}]} {
    %c0_i32 = arith.constant 0 : i32
    %0 = arith.cmpi eq, %arg2, %c0_i32 : i32
    %1 = arith.extui %0 : i1 to i32
    %c0_i32_0 = arith.constant 0 : i32
    %2 = arith.cmpi ne, %1, %c0_i32_0 : i32
    scf.if %2 {
      %cst_10 = arith.constant 0.000000e+00 : f32
      %12 = vector.broadcast %cst_10 : f32 to vector<32x128xf32>
      %c0_11 = arith.constant 0 : index
      %c0_12 = arith.constant 0 : index
      %13 = vector.load %arg7[%c0_11, %c0_12] : memref<32x128xf32, #tpu.memory_space<vmem>>, vector<32x128xf32>
      tpu.vector_store %arg7[%c0_11, %c0_12], %12 {strides = array<i32>} : memref<32x128xf32, #tpu.memory_space<vmem>>, vector<32x128xf32>,
    } else {
    }
    %c0 = arith.constant 0 : index
    %c0_1 = arith.constant 0 : index
    %3 = vector.load %arg3[%c0, %c0_1] : memref<32x1152xbf16, #tpu.memory_space<vmem>>, vector<32x1152xbf16>
    %c0_2 = arith.constant 0 : index
    %c0_3 = arith.constant 0 : index
    %4 = vector.load %arg7[%c0_2, %c0_3] : memref<32x128xf32, #tpu.memory_space<vmem>>, vector<32x128xf32>
    %c0_4 = arith.constant 0 : index
    %c0_5 = arith.constant 0 : index
    %5 = vector.load %arg4[%c0_4, %c0_5] : memref<1152x128xbf16, #tpu.memory_space<vmem>>, vector<1152x128xbf16>
    %cst = arith.constant dense<0.000000e+00> : vector<32x128xf32>
    %6 = tpu.matmul %3, %5, %cst {dimension_numbers = #tpu.dot_dimension_numbers<[1], [0], [0], [1], [0, 0, 1, 1], [], []>} : vector<32x1152xbf16>, vector<1152x128xbf16>, vector<32x128xf32> -> vector<32x128xf32>
    %7 = arith.addf %4, %6 : vector<32x128xf32>
    %c0_6 = arith.constant 0 : index
    %c0_7 = arith.constant 0 : index
    %8 = vector.load %arg7[%c0_6, %c0_7] : memref<32x128xf32, #tpu.memory_space<vmem>>, vector<32x128xf32>
    tpu.vector_store %arg7[%c0_6, %c0_7], %7 {strides = array<i32>} : memref<32x128xf32, #tpu.memory_space<vmem>>, vector<32x128xf32>,
    %c0_i32_8 = arith.constant 0 : i32
    %9 = arith.cmpi eq, %arg2, %c0_i32_8 : i32
    %10 = arith.extui %9 : i1 to i32
    %c0_i32_9 = arith.constant 0 : i32
    %11 = arith.cmpi ne, %10, %c0_i32_9 : i32
    scf.if %11 {
      %c0_10 = arith.constant 0 : index
      %c0_11 = arith.constant 0 : index
      %12 = vector.load %arg7[%c0_10, %c0_11] : memref<32x128xf32, #tpu.memory_space<vmem>>, vector<32x128xf32>
      %c0_12 = arith.constant 0 : index
      %c0_13 = arith.constant 0 : index
      %13 = vector.load %arg5[%c0_12, %c0_13] : memref<1x128xf32, #tpu.memory_space<vmem>>, vector<1x128xf32>
      %14 = vector.broadcast %13 : vector<1x128xf32> to vector<32x128xf32>
      %15 = arith.addf %12, %14 : vector<32x128xf32>
      %16 = arith.truncf %15 : vector<32x128xf32> to vector<32x128xbf16>
      %c0_14 = arith.constant 0 : index
      %c0_15 = arith.constant 0 : index
      %17 = vector.load %arg6[%c0_14, %c0_15] : memref<32x128xbf16, #tpu.memory_space<vmem>>, vector<32x128xbf16>
      tpu.vector_store %arg6[%c0_14, %c0_15], %16 {strides = array<i32>} : memref<32x128xbf16, #tpu.memory_space<vmem>>, vector<32x128xbf16>,
    } else {
    }
    return
  }
  func.func @transform_0(%arg0: i32, %arg1: i32, %arg2: i32) -> (i32, i32) {
    %c0_i32 = arith.constant 0 : i32
    return %arg0, %arg2 : i32, i32
  }
  func.func @transform_1(%arg0: i32, %arg1: i32, %arg2: i32) -> (i32, i32) {
    %c0_i32 = arith.constant 0 : i32
    return %arg2, %arg1 : i32, i32
  }
  func.func @transform_2(%arg0: i32, %arg1: i32, %arg2: i32) -> (i32, i32) {
    %c0_i32 = arith.constant 0 : i32
    %c0_i32_0 = arith.constant 0 : i32
    return %c0_i32, %arg1 : i32, i32
  }
  func.func @transform_3(%arg0: i32, %arg1: i32, %arg2: i32) -> (i32, i32) {
    %c0_i32 = arith.constant 0 : i32
    return %arg0, %arg1 : i32, i32
  }
}

module attributes {stable_mosaic.version = 11 : i64} {
  func.func @_mm_kernel(%arg0: i32, %arg1: i32, %arg2: i32, %arg3: memref<32x128xbf16, #tpu.memory_space<vmem>>, %arg4: memref<128x128xbf16, #tpu.memory_space<vmem>>, %arg5: memref<1x128xf32, #tpu.memory_space<vmem>>, %arg6: memref<1x128xf32, #tpu.memory_space<vmem>>, %arg7: memref<1x128xf32, #tpu.memory_space<vmem>>, %arg8: memref<1x128xf32, #tpu.memory_space<vmem>>, %arg9: memref<1x128xf32, #tpu.memory_space<vmem>>, %arg10: memref<32x128xbf16, #tpu.memory_space<vmem>>, %arg11: memref<32x128xf32, #tpu.memory_space<vmem>>) attributes {dimension_semantics = [#tpu.dimension_semantics<parallel>, #tpu.dimension_semantics<parallel>, #tpu.dimension_semantics<arbitrary>], iteration_bounds = array<i64: 1, 1, 1>, scalar_prefetch = 0 : i64, scratch_operands = 1 : i64, tpu.core_type = #tpu.core_type<tc>, window_params = [{transform_indices = @transform_0, window_bounds = array<i64: 32, 128>}, {transform_indices = @transform_1, window_bounds = array<i64: 128, 128>}, {transform_indices = @transform_2, window_bounds = array<i64: 1, 128>}, {transform_indices = @transform_3, window_bounds = array<i64: 1, 128>}, {transform_indices = @transform_4, window_bounds = array<i64: 1, 128>}, {transform_indices = @transform_5, window_bounds = array<i64: 1, 128>}, {transform_indices = @transform_6, window_bounds = array<i64: 1, 128>}, {transform_indices = @transform_7, window_bounds = array<i64: 32, 128>}]} {
    %c0_i32 = arith.constant 0 : i32
    %0 = arith.cmpi eq, %arg2, %c0_i32 : i32
    %1 = arith.extui %0 : i1 to i32
    %c0_i32_0 = arith.constant 0 : i32
    %2 = arith.cmpi ne, %1, %c0_i32_0 : i32
    scf.if %2 {
      %cst_15 = arith.constant 0.000000e+00 : f32
      %22 = vector.broadcast %cst_15 : f32 to vector<32x128xf32>
      %c0_16 = arith.constant 0 : index
      %c0_17 = arith.constant 0 : index
      %23 = vector.load %arg11[%c0_16, %c0_17] : memref<32x128xf32, #tpu.memory_space<vmem>>, vector<32x128xf32>
      tpu.vector_store %arg11[%c0_16, %c0_17], %22 {strides = array<i32>} : memref<32x128xf32, #tpu.memory_space<vmem>>, vector<32x128xf32>,
    } else {
    }
    %c0 = arith.constant 0 : index
    %c0_1 = arith.constant 0 : index
    %3 = vector.load %arg3[%c0, %c0_1] : memref<32x128xbf16, #tpu.memory_space<vmem>>, vector<32x128xbf16>
    %4 = arith.extf %3 : vector<32x128xbf16> to vector<32x128xf32>
    %c0_2 = arith.constant 0 : index
    %c0_3 = arith.constant 0 : index
    %5 = vector.load %arg6[%c0_2, %c0_3] : memref<1x128xf32, #tpu.memory_space<vmem>>, vector<1x128xf32>
    %6 = vector.broadcast %5 : vector<1x128xf32> to vector<32x128xf32>
    %7 = arith.mulf %4, %6 : vector<32x128xf32>
    %c0_4 = arith.constant 0 : index
    %c0_5 = arith.constant 0 : index
    %8 = vector.load %arg7[%c0_4, %c0_5] : memref<1x128xf32, #tpu.memory_space<vmem>>, vector<1x128xf32>
    %9 = vector.broadcast %8 : vector<1x128xf32> to vector<32x128xf32>
    %10 = arith.addf %7, %9 : vector<32x128xf32>
    %cst = arith.constant 0.000000e+00 : f32
    %11 = vector.broadcast %cst : f32 to vector<32x128xf32>
    %12 = arith.maximumf %10, %11 : vector<32x128xf32>
    %13 = arith.truncf %12 : vector<32x128xf32> to vector<32x128xbf16>
    %c0_6 = arith.constant 0 : index
    %c0_7 = arith.constant 0 : index
    %14 = vector.load %arg11[%c0_6, %c0_7] : memref<32x128xf32, #tpu.memory_space<vmem>>, vector<32x128xf32>
    %c0_8 = arith.constant 0 : index
    %c0_9 = arith.constant 0 : index
    %15 = vector.load %arg4[%c0_8, %c0_9] : memref<128x128xbf16, #tpu.memory_space<vmem>>, vector<128x128xbf16>
    %cst_10 = arith.constant dense<0.000000e+00> : vector<32x128xf32>
    %16 = tpu.matmul %13, %15, %cst_10 {dimension_numbers = #tpu.dot_dimension_numbers<[1], [0], [0], [1], [0, 0, 1, 1], [], []>} : vector<32x128xbf16>, vector<128x128xbf16>, vector<32x128xf32> -> vector<32x128xf32>
    %17 = arith.addf %14, %16 : vector<32x128xf32>
    %c0_11 = arith.constant 0 : index
    %c0_12 = arith.constant 0 : index
    %18 = vector.load %arg11[%c0_11, %c0_12] : memref<32x128xf32, #tpu.memory_space<vmem>>, vector<32x128xf32>
    tpu.vector_store %arg11[%c0_11, %c0_12], %17 {strides = array<i32>} : memref<32x128xf32, #tpu.memory_space<vmem>>, vector<32x128xf32>,
    %c0_i32_13 = arith.constant 0 : i32
    %19 = arith.cmpi eq, %arg2, %c0_i32_13 : i32
    %20 = arith.extui %19 : i1 to i32
    %c0_i32_14 = arith.constant 0 : i32
    %21 = arith.cmpi ne, %20, %c0_i32_14 : i32
    scf.if %21 {
      %c0_15 = arith.constant 0 : index
      %c0_16 = arith.constant 0 : index
      %22 = vector.load %arg11[%c0_15, %c0_16] : memref<32x128xf32, #tpu.memory_space<vmem>>, vector<32x128xf32>
      %c0_17 = arith.constant 0 : index
      %c0_18 = arith.constant 0 : index
      %23 = vector.load %arg5[%c0_17, %c0_18] : memref<1x128xf32, #tpu.memory_space<vmem>>, vector<1x128xf32>
      %24 = vector.broadcast %23 : vector<1x128xf32> to vector<32x128xf32>
      %25 = arith.addf %22, %24 : vector<32x128xf32>
      %c0_19 = arith.constant 0 : index
      %c0_20 = arith.constant 0 : index
      %26 = vector.load %arg8[%c0_19, %c0_20] : memref<1x128xf32, #tpu.memory_space<vmem>>, vector<1x128xf32>
      %27 = vector.broadcast %26 : vector<1x128xf32> to vector<32x128xf32>
      %28 = arith.mulf %25, %27 : vector<32x128xf32>
      %c0_21 = arith.constant 0 : index
      %c0_22 = arith.constant 0 : index
      %29 = vector.load %arg9[%c0_21, %c0_22] : memref<1x128xf32, #tpu.memory_space<vmem>>, vector<1x128xf32>
      %30 = vector.broadcast %29 : vector<1x128xf32> to vector<32x128xf32>
      %31 = arith.addf %28, %30 : vector<32x128xf32>
      %cst_23 = arith.constant 0.000000e+00 : f32
      %32 = vector.broadcast %cst_23 : f32 to vector<32x128xf32>
      %33 = arith.maximumf %31, %32 : vector<32x128xf32>
      %34 = arith.truncf %33 : vector<32x128xf32> to vector<32x128xbf16>
      %c0_24 = arith.constant 0 : index
      %c0_25 = arith.constant 0 : index
      %35 = vector.load %arg10[%c0_24, %c0_25] : memref<32x128xbf16, #tpu.memory_space<vmem>>, vector<32x128xbf16>
      tpu.vector_store %arg10[%c0_24, %c0_25], %34 {strides = array<i32>} : memref<32x128xbf16, #tpu.memory_space<vmem>>, vector<32x128xbf16>,
    } else {
    }
    return
  }
  func.func @transform_0(%arg0: i32, %arg1: i32, %arg2: i32) -> (i32, i32) {
    %c0_i32 = arith.constant 0 : i32
    return %arg0, %arg2 : i32, i32
  }
  func.func @transform_1(%arg0: i32, %arg1: i32, %arg2: i32) -> (i32, i32) {
    %c0_i32 = arith.constant 0 : i32
    return %arg2, %arg1 : i32, i32
  }
  func.func @transform_2(%arg0: i32, %arg1: i32, %arg2: i32) -> (i32, i32) {
    %c0_i32 = arith.constant 0 : i32
    %c0_i32_0 = arith.constant 0 : i32
    return %c0_i32, %arg1 : i32, i32
  }
  func.func @transform_3(%arg0: i32, %arg1: i32, %arg2: i32) -> (i32, i32) {
    %c0_i32 = arith.constant 0 : i32
    %c0_i32_0 = arith.constant 0 : i32
    return %c0_i32, %arg2 : i32, i32
  }
  func.func @transform_4(%arg0: i32, %arg1: i32, %arg2: i32) -> (i32, i32) {
    %c0_i32 = arith.constant 0 : i32
    %c0_i32_0 = arith.constant 0 : i32
    return %c0_i32, %arg2 : i32, i32
  }
  func.func @transform_5(%arg0: i32, %arg1: i32, %arg2: i32) -> (i32, i32) {
    %c0_i32 = arith.constant 0 : i32
    %c0_i32_0 = arith.constant 0 : i32
    return %c0_i32, %arg1 : i32, i32
  }
  func.func @transform_6(%arg0: i32, %arg1: i32, %arg2: i32) -> (i32, i32) {
    %c0_i32 = arith.constant 0 : i32
    %c0_i32_0 = arith.constant 0 : i32
    return %c0_i32, %arg1 : i32, i32
  }
  func.func @transform_7(%arg0: i32, %arg1: i32, %arg2: i32) -> (i32, i32) {
    %c0_i32 = arith.constant 0 : i32
    return %arg0, %arg1 : i32, i32
  }
}

module attributes {stable_mosaic.version = 11 : i64} {
  func.func @_mm_kernel(%arg0: i32, %arg1: i32, %arg2: i32, %arg3: memref<32x384xbf16, #tpu.memory_space<vmem>>, %arg4: memref<384x128xbf16, #tpu.memory_space<vmem>>, %arg5: memref<1x128xf32, #tpu.memory_space<vmem>>, %arg6: memref<1x128xf32, #tpu.memory_space<vmem>>, %arg7: memref<1x128xf32, #tpu.memory_space<vmem>>, %arg8: memref<32x128xbf16, #tpu.memory_space<vmem>>, %arg9: memref<32x128xf32, #tpu.memory_space<vmem>>) attributes {dimension_semantics = [#tpu.dimension_semantics<parallel>, #tpu.dimension_semantics<parallel>, #tpu.dimension_semantics<arbitrary>], iteration_bounds = array<i64: 1, 4, 1>, scalar_prefetch = 0 : i64, scratch_operands = 1 : i64, tpu.core_type = #tpu.core_type<tc>, window_params = [{transform_indices = @transform_0, window_bounds = array<i64: 32, 384>}, {transform_indices = @transform_1, window_bounds = array<i64: 384, 128>}, {transform_indices = @transform_2, window_bounds = array<i64: 1, 128>}, {transform_indices = @transform_3, window_bounds = array<i64: 1, 128>}, {transform_indices = @transform_4, window_bounds = array<i64: 1, 128>}, {transform_indices = @transform_5, window_bounds = array<i64: 32, 128>}]} {
    %c0_i32 = arith.constant 0 : i32
    %0 = arith.cmpi eq, %arg2, %c0_i32 : i32
    %1 = arith.extui %0 : i1 to i32
    %c0_i32_0 = arith.constant 0 : i32
    %2 = arith.cmpi ne, %1, %c0_i32_0 : i32
    scf.if %2 {
      %cst_10 = arith.constant 0.000000e+00 : f32
      %12 = vector.broadcast %cst_10 : f32 to vector<32x128xf32>
      %c0_11 = arith.constant 0 : index
      %c0_12 = arith.constant 0 : index
      %13 = vector.load %arg9[%c0_11, %c0_12] : memref<32x128xf32, #tpu.memory_space<vmem>>, vector<32x128xf32>
      tpu.vector_store %arg9[%c0_11, %c0_12], %12 {strides = array<i32>} : memref<32x128xf32, #tpu.memory_space<vmem>>, vector<32x128xf32>,
    } else {
    }
    %c0 = arith.constant 0 : index
    %c0_1 = arith.constant 0 : index
    %3 = vector.load %arg3[%c0, %c0_1] : memref<32x384xbf16, #tpu.memory_space<vmem>>, vector<32x384xbf16>
    %c0_2 = arith.constant 0 : index
    %c0_3 = arith.constant 0 : index
    %4 = vector.load %arg9[%c0_2, %c0_3] : memref<32x128xf32, #tpu.memory_space<vmem>>, vector<32x128xf32>
    %c0_4 = arith.constant 0 : index
    %c0_5 = arith.constant 0 : index
    %5 = vector.load %arg4[%c0_4, %c0_5] : memref<384x128xbf16, #tpu.memory_space<vmem>>, vector<384x128xbf16>
    %cst = arith.constant dense<0.000000e+00> : vector<32x128xf32>
    %6 = tpu.matmul %3, %5, %cst {dimension_numbers = #tpu.dot_dimension_numbers<[1], [0], [0], [1], [0, 0, 1, 1], [], []>} : vector<32x384xbf16>, vector<384x128xbf16>, vector<32x128xf32> -> vector<32x128xf32>
    %7 = arith.addf %4, %6 : vector<32x128xf32>
    %c0_6 = arith.constant 0 : index
    %c0_7 = arith.constant 0 : index
    %8 = vector.load %arg9[%c0_6, %c0_7] : memref<32x128xf32, #tpu.memory_space<vmem>>, vector<32x128xf32>
    tpu.vector_store %arg9[%c0_6, %c0_7], %7 {strides = array<i32>} : memref<32x128xf32, #tpu.memory_space<vmem>>, vector<32x128xf32>,
    %c0_i32_8 = arith.constant 0 : i32
    %9 = arith.cmpi eq, %arg2, %c0_i32_8 : i32
    %10 = arith.extui %9 : i1 to i32
    %c0_i32_9 = arith.constant 0 : i32
    %11 = arith.cmpi ne, %10, %c0_i32_9 : i32
    scf.if %11 {
      %c0_10 = arith.constant 0 : index
      %c0_11 = arith.constant 0 : index
      %12 = vector.load %arg9[%c0_10, %c0_11] : memref<32x128xf32, #tpu.memory_space<vmem>>, vector<32x128xf32>
      %c0_12 = arith.constant 0 : index
      %c0_13 = arith.constant 0 : index
      %13 = vector.load %arg5[%c0_12, %c0_13] : memref<1x128xf32, #tpu.memory_space<vmem>>, vector<1x128xf32>
      %14 = vector.broadcast %13 : vector<1x128xf32> to vector<32x128xf32>
      %15 = arith.addf %12, %14 : vector<32x128xf32>
      %cst_14 = arith.constant 0.000000e+00 : f32
      %16 = vector.broadcast %cst_14 : f32 to vector<32x128xf32>
      %17 = arith.maximumf %15, %16 : vector<32x128xf32>
      %c0_15 = arith.constant 0 : index
      %c0_16 = arith.constant 0 : index
      %18 = vector.load %arg6[%c0_15, %c0_16] : memref<1x128xf32, #tpu.memory_space<vmem>>, vector<1x128xf32>
      %19 = vector.broadcast %18 : vector<1x128xf32> to vector<32x128xf32>
      %20 = arith.mulf %17, %19 : vector<32x128xf32>
      %c0_17 = arith.constant 0 : index
      %c0_18 = arith.constant 0 : index
      %21 = vector.load %arg7[%c0_17, %c0_18] : memref<1x128xf32, #tpu.memory_space<vmem>>, vector<1x128xf32>
      %22 = vector.broadcast %21 : vector<1x128xf32> to vector<32x128xf32>
      %23 = arith.addf %20, %22 : vector<32x128xf32>
      %24 = arith.truncf %23 : vector<32x128xf32> to vector<32x128xbf16>
      %c0_19 = arith.constant 0 : index
      %c0_20 = arith.constant 0 : index
      %25 = vector.load %arg8[%c0_19, %c0_20] : memref<32x128xbf16, #tpu.memory_space<vmem>>, vector<32x128xbf16>
      tpu.vector_store %arg8[%c0_19, %c0_20], %24 {strides = array<i32>} : memref<32x128xbf16, #tpu.memory_space<vmem>>, vector<32x128xbf16>,
    } else {
    }
    return
  }
  func.func @transform_0(%arg0: i32, %arg1: i32, %arg2: i32) -> (i32, i32) {
    %c0_i32 = arith.constant 0 : i32
    return %arg0, %arg2 : i32, i32
  }
  func.func @transform_1(%arg0: i32, %arg1: i32, %arg2: i32) -> (i32, i32) {
    %c0_i32 = arith.constant 0 : i32
    return %arg2, %arg1 : i32, i32
  }
  func.func @transform_2(%arg0: i32, %arg1: i32, %arg2: i32) -> (i32, i32) {
    %c0_i32 = arith.constant 0 : i32
    %c0_i32_0 = arith.constant 0 : i32
    return %c0_i32, %arg1 : i32, i32
  }
  func.func @transform_3(%arg0: i32, %arg1: i32, %arg2: i32) -> (i32, i32) {
    %c0_i32 = arith.constant 0 : i32
    %c0_i32_0 = arith.constant 0 : i32
    return %c0_i32, %arg1 : i32, i32
  }
  func.func @transform_4(%arg0: i32, %arg1: i32, %arg2: i32) -> (i32, i32) {
    %c0_i32 = arith.constant 0 : i32
    %c0_i32_0 = arith.constant 0 : i32
    return %c0_i32, %arg1 : i32, i32
  }
  func.func @transform_5(%arg0: i32, %arg1: i32, %arg2: i32) -> (i32, i32) {
    %c0_i32 = arith.constant 0 : i32
    return %arg0, %arg1 : i32, i32
  }
}

module attributes {stable_mosaic.version = 11 : i64} {
  func.func @_mm_kernel(%arg0: i32, %arg1: i32, %arg2: i32, %arg3: memref<32x128xbf16, #tpu.memory_space<vmem>>, %arg4: memref<128x128xbf16, #tpu.memory_space<vmem>>, %arg5: memref<1x128xf32, #tpu.memory_space<vmem>>, %arg6: memref<1x128xf32, #tpu.memory_space<vmem>>, %arg7: memref<1x128xf32, #tpu.memory_space<vmem>>, %arg8: memref<32x128xbf16, #tpu.memory_space<vmem>>, %arg9: memref<32x128xf32, #tpu.memory_space<vmem>>) attributes {dimension_semantics = [#tpu.dimension_semantics<parallel>, #tpu.dimension_semantics<parallel>, #tpu.dimension_semantics<arbitrary>], iteration_bounds = array<i64: 1, 1, 1>, scalar_prefetch = 0 : i64, scratch_operands = 1 : i64, tpu.core_type = #tpu.core_type<tc>, window_params = [{transform_indices = @transform_0, window_bounds = array<i64: 32, 128>}, {transform_indices = @transform_1, window_bounds = array<i64: 128, 128>}, {transform_indices = @transform_2, window_bounds = array<i64: 1, 128>}, {transform_indices = @transform_3, window_bounds = array<i64: 1, 128>}, {transform_indices = @transform_4, window_bounds = array<i64: 1, 128>}, {transform_indices = @transform_5, window_bounds = array<i64: 32, 128>}]} {
    %c0_i32 = arith.constant 0 : i32
    %0 = arith.cmpi eq, %arg2, %c0_i32 : i32
    %1 = arith.extui %0 : i1 to i32
    %c0_i32_0 = arith.constant 0 : i32
    %2 = arith.cmpi ne, %1, %c0_i32_0 : i32
    scf.if %2 {
      %cst_15 = arith.constant 0.000000e+00 : f32
      %22 = vector.broadcast %cst_15 : f32 to vector<32x128xf32>
      %c0_16 = arith.constant 0 : index
      %c0_17 = arith.constant 0 : index
      %23 = vector.load %arg9[%c0_16, %c0_17] : memref<32x128xf32, #tpu.memory_space<vmem>>, vector<32x128xf32>
      tpu.vector_store %arg9[%c0_16, %c0_17], %22 {strides = array<i32>} : memref<32x128xf32, #tpu.memory_space<vmem>>, vector<32x128xf32>,
    } else {
    }
    %c0 = arith.constant 0 : index
    %c0_1 = arith.constant 0 : index
    %3 = vector.load %arg3[%c0, %c0_1] : memref<32x128xbf16, #tpu.memory_space<vmem>>, vector<32x128xbf16>
    %4 = arith.extf %3 : vector<32x128xbf16> to vector<32x128xf32>
    %c0_2 = arith.constant 0 : index
    %c0_3 = arith.constant 0 : index
    %5 = vector.load %arg6[%c0_2, %c0_3] : memref<1x128xf32, #tpu.memory_space<vmem>>, vector<1x128xf32>
    %6 = vector.broadcast %5 : vector<1x128xf32> to vector<32x128xf32>
    %7 = arith.mulf %4, %6 : vector<32x128xf32>
    %c0_4 = arith.constant 0 : index
    %c0_5 = arith.constant 0 : index
    %8 = vector.load %arg7[%c0_4, %c0_5] : memref<1x128xf32, #tpu.memory_space<vmem>>, vector<1x128xf32>
    %9 = vector.broadcast %8 : vector<1x128xf32> to vector<32x128xf32>
    %10 = arith.addf %7, %9 : vector<32x128xf32>
    %cst = arith.constant 0.000000e+00 : f32
    %11 = vector.broadcast %cst : f32 to vector<32x128xf32>
    %12 = arith.maximumf %10, %11 : vector<32x128xf32>
    %13 = arith.truncf %12 : vector<32x128xf32> to vector<32x128xbf16>
    %c0_6 = arith.constant 0 : index
    %c0_7 = arith.constant 0 : index
    %14 = vector.load %arg9[%c0_6, %c0_7] : memref<32x128xf32, #tpu.memory_space<vmem>>, vector<32x128xf32>
    %c0_8 = arith.constant 0 : index
    %c0_9 = arith.constant 0 : index
    %15 = vector.load %arg4[%c0_8, %c0_9] : memref<128x128xbf16, #tpu.memory_space<vmem>>, vector<128x128xbf16>
    %cst_10 = arith.constant dense<0.000000e+00> : vector<32x128xf32>
    %16 = tpu.matmul %13, %15, %cst_10 {dimension_numbers = #tpu.dot_dimension_numbers<[1], [0], [0], [1], [0, 0, 1, 1], [], []>} : vector<32x128xbf16>, vector<128x128xbf16>, vector<32x128xf32> -> vector<32x128xf32>
    %17 = arith.addf %14, %16 : vector<32x128xf32>
    %c0_11 = arith.constant 0 : index
    %c0_12 = arith.constant 0 : index
    %18 = vector.load %arg9[%c0_11, %c0_12] : memref<32x128xf32, #tpu.memory_space<vmem>>, vector<32x128xf32>
    tpu.vector_store %arg9[%c0_11, %c0_12], %17 {strides = array<i32>} : memref<32x128xf32, #tpu.memory_space<vmem>>, vector<32x128xf32>,
    %c0_i32_13 = arith.constant 0 : i32
    %19 = arith.cmpi eq, %arg2, %c0_i32_13 : i32
    %20 = arith.extui %19 : i1 to i32
    %c0_i32_14 = arith.constant 0 : i32
    %21 = arith.cmpi ne, %20, %c0_i32_14 : i32
    scf.if %21 {
      %c0_15 = arith.constant 0 : index
      %c0_16 = arith.constant 0 : index
      %22 = vector.load %arg9[%c0_15, %c0_16] : memref<32x128xf32, #tpu.memory_space<vmem>>, vector<32x128xf32>
      %c0_17 = arith.constant 0 : index
      %c0_18 = arith.constant 0 : index
      %23 = vector.load %arg5[%c0_17, %c0_18] : memref<1x128xf32, #tpu.memory_space<vmem>>, vector<1x128xf32>
      %24 = vector.broadcast %23 : vector<1x128xf32> to vector<32x128xf32>
      %25 = arith.addf %22, %24 : vector<32x128xf32>
      %26 = arith.truncf %25 : vector<32x128xf32> to vector<32x128xbf16>
      %c0_19 = arith.constant 0 : index
      %c0_20 = arith.constant 0 : index
      %27 = vector.load %arg8[%c0_19, %c0_20] : memref<32x128xbf16, #tpu.memory_space<vmem>>, vector<32x128xbf16>
      tpu.vector_store %arg8[%c0_19, %c0_20], %26 {strides = array<i32>} : memref<32x128xbf16, #tpu.memory_space<vmem>>, vector<32x128xbf16>,
    } else {
    }
    return
  }
  func.func @transform_0(%arg0: i32, %arg1: i32, %arg2: i32) -> (i32, i32) {
    %c0_i32 = arith.constant 0 : i32
    return %arg0, %arg2 : i32, i32
  }
  func.func @transform_1(%arg0: i32, %arg1: i32, %arg2: i32) -> (i32, i32) {
    %c0_i32 = arith.constant 0 : i32
    return %arg2, %arg1 : i32, i32
  }
  func.func @transform_2(%arg0: i32, %arg1: i32, %arg2: i32) -> (i32, i32) {
    %c0_i32 = arith.constant 0 : i32
    %c0_i32_0 = arith.constant 0 : i32
    return %c0_i32, %arg1 : i32, i32
  }
  func.func @transform_3(%arg0: i32, %arg1: i32, %arg2: i32) -> (i32, i32) {
    %c0_i32 = arith.constant 0 : i32
    %c0_i32_0 = arith.constant 0 : i32
    return %c0_i32, %arg2 : i32, i32
  }
  func.func @transform_4(%arg0: i32, %arg1: i32, %arg2: i32) -> (i32, i32) {
    %c0_i32 = arith.constant 0 : i32
    %c0_i32_0 = arith.constant 0 : i32
    return %c0_i32, %arg2 : i32, i32
  }
  func.func @transform_5(%arg0: i32, %arg1: i32, %arg2: i32) -> (i32, i32) {
    %c0_i32 = arith.constant 0 : i32
    return %arg0, %arg1 : i32, i32
  }
}

module attributes {stable_mosaic.version = 11 : i64} {
  func.func @_mm_kernel(%arg0: i32, %arg1: i32, %arg2: i32, %arg3: memref<16x1152xbf16, #tpu.memory_space<vmem>>, %arg4: memref<1152x128xbf16, #tpu.memory_space<vmem>>, %arg5: memref<1x128xf32, #tpu.memory_space<vmem>>, %arg6: memref<16x128xbf16, #tpu.memory_space<vmem>>, %arg7: memref<16x128xf32, #tpu.memory_space<vmem>>) attributes {dimension_semantics = [#tpu.dimension_semantics<parallel>, #tpu.dimension_semantics<parallel>, #tpu.dimension_semantics<arbitrary>], iteration_bounds = array<i64: 1, 1, 1>, scalar_prefetch = 0 : i64, scratch_operands = 1 : i64, tpu.core_type = #tpu.core_type<tc>, window_params = [{transform_indices = @transform_0, window_bounds = array<i64: 16, 1152>}, {transform_indices = @transform_1, window_bounds = array<i64: 1152, 128>}, {transform_indices = @transform_2, window_bounds = array<i64: 1, 128>}, {transform_indices = @transform_3, window_bounds = array<i64: 16, 128>}]} {
    %c0_i32 = arith.constant 0 : i32
    %0 = arith.cmpi eq, %arg2, %c0_i32 : i32
    %1 = arith.extui %0 : i1 to i32
    %c0_i32_0 = arith.constant 0 : i32
    %2 = arith.cmpi ne, %1, %c0_i32_0 : i32
    scf.if %2 {
      %cst_10 = arith.constant 0.000000e+00 : f32
      %12 = vector.broadcast %cst_10 : f32 to vector<16x128xf32>
      %c0_11 = arith.constant 0 : index
      %c0_12 = arith.constant 0 : index
      %13 = vector.load %arg7[%c0_11, %c0_12] : memref<16x128xf32, #tpu.memory_space<vmem>>, vector<16x128xf32>
      tpu.vector_store %arg7[%c0_11, %c0_12], %12 {strides = array<i32>} : memref<16x128xf32, #tpu.memory_space<vmem>>, vector<16x128xf32>,
    } else {
    }
    %c0 = arith.constant 0 : index
    %c0_1 = arith.constant 0 : index
    %3 = vector.load %arg3[%c0, %c0_1] : memref<16x1152xbf16, #tpu.memory_space<vmem>>, vector<16x1152xbf16>
    %c0_2 = arith.constant 0 : index
    %c0_3 = arith.constant 0 : index
    %4 = vector.load %arg7[%c0_2, %c0_3] : memref<16x128xf32, #tpu.memory_space<vmem>>, vector<16x128xf32>
    %c0_4 = arith.constant 0 : index
    %c0_5 = arith.constant 0 : index
    %5 = vector.load %arg4[%c0_4, %c0_5] : memref<1152x128xbf16, #tpu.memory_space<vmem>>, vector<1152x128xbf16>
    %cst = arith.constant dense<0.000000e+00> : vector<16x128xf32>
    %6 = tpu.matmul %3, %5, %cst {dimension_numbers = #tpu.dot_dimension_numbers<[1], [0], [0], [1], [0, 0, 1, 1], [], []>} : vector<16x1152xbf16>, vector<1152x128xbf16>, vector<16x128xf32> -> vector<16x128xf32>
    %7 = arith.addf %4, %6 : vector<16x128xf32>
    %c0_6 = arith.constant 0 : index
    %c0_7 = arith.constant 0 : index
    %8 = vector.load %arg7[%c0_6, %c0_7] : memref<16x128xf32, #tpu.memory_space<vmem>>, vector<16x128xf32>
    tpu.vector_store %arg7[%c0_6, %c0_7], %7 {strides = array<i32>} : memref<16x128xf32, #tpu.memory_space<vmem>>, vector<16x128xf32>,
    %c0_i32_8 = arith.constant 0 : i32
    %9 = arith.cmpi eq, %arg2, %c0_i32_8 : i32
    %10 = arith.extui %9 : i1 to i32
    %c0_i32_9 = arith.constant 0 : i32
    %11 = arith.cmpi ne, %10, %c0_i32_9 : i32
    scf.if %11 {
      %c0_10 = arith.constant 0 : index
      %c0_11 = arith.constant 0 : index
      %12 = vector.load %arg7[%c0_10, %c0_11] : memref<16x128xf32, #tpu.memory_space<vmem>>, vector<16x128xf32>
      %c0_12 = arith.constant 0 : index
      %c0_13 = arith.constant 0 : index
      %13 = vector.load %arg5[%c0_12, %c0_13] : memref<1x128xf32, #tpu.memory_space<vmem>>, vector<1x128xf32>
      %14 = vector.broadcast %13 : vector<1x128xf32> to vector<16x128xf32>
      %15 = arith.addf %12, %14 : vector<16x128xf32>
      %16 = arith.truncf %15 : vector<16x128xf32> to vector<16x128xbf16>
      %c0_14 = arith.constant 0 : index
      %c0_15 = arith.constant 0 : index
      %17 = vector.load %arg6[%c0_14, %c0_15] : memref<16x128xbf16, #tpu.memory_space<vmem>>, vector<16x128xbf16>
      tpu.vector_store %arg6[%c0_14, %c0_15], %16 {strides = array<i32>} : memref<16x128xbf16, #tpu.memory_space<vmem>>, vector<16x128xbf16>,
    } else {
    }
    return
  }
  func.func @transform_0(%arg0: i32, %arg1: i32, %arg2: i32) -> (i32, i32) {
    %c0_i32 = arith.constant 0 : i32
    return %arg0, %arg2 : i32, i32
  }
  func.func @transform_1(%arg0: i32, %arg1: i32, %arg2: i32) -> (i32, i32) {
    %c0_i32 = arith.constant 0 : i32
    return %arg2, %arg1 : i32, i32
  }
  func.func @transform_2(%arg0: i32, %arg1: i32, %arg2: i32) -> (i32, i32) {
    %c0_i32 = arith.constant 0 : i32
    %c0_i32_0 = arith.constant 0 : i32
    return %c0_i32, %arg1 : i32, i32
  }
  func.func @transform_3(%arg0: i32, %arg1: i32, %arg2: i32) -> (i32, i32) {
    %c0_i32 = arith.constant 0 : i32
    return %arg0, %arg1 : i32, i32
  }
}

module attributes {stable_mosaic.version = 11 : i64} {
  func.func @_mm_kernel(%arg0: i32, %arg1: i32, %arg2: i32, %arg3: memref<16x128xbf16, #tpu.memory_space<vmem>>, %arg4: memref<128x128xbf16, #tpu.memory_space<vmem>>, %arg5: memref<1x128xf32, #tpu.memory_space<vmem>>, %arg6: memref<1x128xf32, #tpu.memory_space<vmem>>, %arg7: memref<1x128xf32, #tpu.memory_space<vmem>>, %arg8: memref<1x128xf32, #tpu.memory_space<vmem>>, %arg9: memref<1x128xf32, #tpu.memory_space<vmem>>, %arg10: memref<16x128xbf16, #tpu.memory_space<vmem>>, %arg11: memref<16x128xf32, #tpu.memory_space<vmem>>) attributes {dimension_semantics = [#tpu.dimension_semantics<parallel>, #tpu.dimension_semantics<parallel>, #tpu.dimension_semantics<arbitrary>], iteration_bounds = array<i64: 1, 1, 1>, scalar_prefetch = 0 : i64, scratch_operands = 1 : i64, tpu.core_type = #tpu.core_type<tc>, window_params = [{transform_indices = @transform_0, window_bounds = array<i64: 16, 128>}, {transform_indices = @transform_1, window_bounds = array<i64: 128, 128>}, {transform_indices = @transform_2, window_bounds = array<i64: 1, 128>}, {transform_indices = @transform_3, window_bounds = array<i64: 1, 128>}, {transform_indices = @transform_4, window_bounds = array<i64: 1, 128>}, {transform_indices = @transform_5, window_bounds = array<i64: 1, 128>}, {transform_indices = @transform_6, window_bounds = array<i64: 1, 128>}, {transform_indices = @transform_7, window_bounds = array<i64: 16, 128>}]} {
    %c0_i32 = arith.constant 0 : i32
    %0 = arith.cmpi eq, %arg2, %c0_i32 : i32
    %1 = arith.extui %0 : i1 to i32
    %c0_i32_0 = arith.constant 0 : i32
    %2 = arith.cmpi ne, %1, %c0_i32_0 : i32
    scf.if %2 {
      %cst_15 = arith.constant 0.000000e+00 : f32
      %22 = vector.broadcast %cst_15 : f32 to vector<16x128xf32>
      %c0_16 = arith.constant 0 : index
      %c0_17 = arith.constant 0 : index
      %23 = vector.load %arg11[%c0_16, %c0_17] : memref<16x128xf32, #tpu.memory_space<vmem>>, vector<16x128xf32>
      tpu.vector_store %arg11[%c0_16, %c0_17], %22 {strides = array<i32>} : memref<16x128xf32, #tpu.memory_space<vmem>>, vector<16x128xf32>,
    } else {
    }
    %c0 = arith.constant 0 : index
    %c0_1 = arith.constant 0 : index
    %3 = vector.load %arg3[%c0, %c0_1] : memref<16x128xbf16, #tpu.memory_space<vmem>>, vector<16x128xbf16>
    %4 = arith.extf %3 : vector<16x128xbf16> to vector<16x128xf32>
    %c0_2 = arith.constant 0 : index
    %c0_3 = arith.constant 0 : index
    %5 = vector.load %arg6[%c0_2, %c0_3] : memref<1x128xf32, #tpu.memory_space<vmem>>, vector<1x128xf32>
    %6 = vector.broadcast %5 : vector<1x128xf32> to vector<16x128xf32>
    %7 = arith.mulf %4, %6 : vector<16x128xf32>
    %c0_4 = arith.constant 0 : index
    %c0_5 = arith.constant 0 : index
    %8 = vector.load %arg7[%c0_4, %c0_5] : memref<1x128xf32, #tpu.memory_space<vmem>>, vector<1x128xf32>
    %9 = vector.broadcast %8 : vector<1x128xf32> to vector<16x128xf32>
    %10 = arith.addf %7, %9 : vector<16x128xf32>
    %cst = arith.constant 0.000000e+00 : f32
    %11 = vector.broadcast %cst : f32 to vector<16x128xf32>
    %12 = arith.maximumf %10, %11 : vector<16x128xf32>
    %13 = arith.truncf %12 : vector<16x128xf32> to vector<16x128xbf16>
    %c0_6 = arith.constant 0 : index
    %c0_7 = arith.constant 0 : index
    %14 = vector.load %arg11[%c0_6, %c0_7] : memref<16x128xf32, #tpu.memory_space<vmem>>, vector<16x128xf32>
    %c0_8 = arith.constant 0 : index
    %c0_9 = arith.constant 0 : index
    %15 = vector.load %arg4[%c0_8, %c0_9] : memref<128x128xbf16, #tpu.memory_space<vmem>>, vector<128x128xbf16>
    %cst_10 = arith.constant dense<0.000000e+00> : vector<16x128xf32>
    %16 = tpu.matmul %13, %15, %cst_10 {dimension_numbers = #tpu.dot_dimension_numbers<[1], [0], [0], [1], [0, 0, 1, 1], [], []>} : vector<16x128xbf16>, vector<128x128xbf16>, vector<16x128xf32> -> vector<16x128xf32>
    %17 = arith.addf %14, %16 : vector<16x128xf32>
    %c0_11 = arith.constant 0 : index
    %c0_12 = arith.constant 0 : index
    %18 = vector.load %arg11[%c0_11, %c0_12] : memref<16x128xf32, #tpu.memory_space<vmem>>, vector<16x128xf32>
    tpu.vector_store %arg11[%c0_11, %c0_12], %17 {strides = array<i32>} : memref<16x128xf32, #tpu.memory_space<vmem>>, vector<16x128xf32>,
    %c0_i32_13 = arith.constant 0 : i32
    %19 = arith.cmpi eq, %arg2, %c0_i32_13 : i32
    %20 = arith.extui %19 : i1 to i32
    %c0_i32_14 = arith.constant 0 : i32
    %21 = arith.cmpi ne, %20, %c0_i32_14 : i32
    scf.if %21 {
      %c0_15 = arith.constant 0 : index
      %c0_16 = arith.constant 0 : index
      %22 = vector.load %arg11[%c0_15, %c0_16] : memref<16x128xf32, #tpu.memory_space<vmem>>, vector<16x128xf32>
      %c0_17 = arith.constant 0 : index
      %c0_18 = arith.constant 0 : index
      %23 = vector.load %arg5[%c0_17, %c0_18] : memref<1x128xf32, #tpu.memory_space<vmem>>, vector<1x128xf32>
      %24 = vector.broadcast %23 : vector<1x128xf32> to vector<16x128xf32>
      %25 = arith.addf %22, %24 : vector<16x128xf32>
      %c0_19 = arith.constant 0 : index
      %c0_20 = arith.constant 0 : index
      %26 = vector.load %arg8[%c0_19, %c0_20] : memref<1x128xf32, #tpu.memory_space<vmem>>, vector<1x128xf32>
      %27 = vector.broadcast %26 : vector<1x128xf32> to vector<16x128xf32>
      %28 = arith.mulf %25, %27 : vector<16x128xf32>
      %c0_21 = arith.constant 0 : index
      %c0_22 = arith.constant 0 : index
      %29 = vector.load %arg9[%c0_21, %c0_22] : memref<1x128xf32, #tpu.memory_space<vmem>>, vector<1x128xf32>
      %30 = vector.broadcast %29 : vector<1x128xf32> to vector<16x128xf32>
      %31 = arith.addf %28, %30 : vector<16x128xf32>
      %cst_23 = arith.constant 0.000000e+00 : f32
      %32 = vector.broadcast %cst_23 : f32 to vector<16x128xf32>
      %33 = arith.maximumf %31, %32 : vector<16x128xf32>
      %34 = arith.truncf %33 : vector<16x128xf32> to vector<16x128xbf16>
      %c0_24 = arith.constant 0 : index
      %c0_25 = arith.constant 0 : index
      %35 = vector.load %arg10[%c0_24, %c0_25] : memref<16x128xbf16, #tpu.memory_space<vmem>>, vector<16x128xbf16>
      tpu.vector_store %arg10[%c0_24, %c0_25], %34 {strides = array<i32>} : memref<16x128xbf16, #tpu.memory_space<vmem>>, vector<16x128xbf16>,
    } else {
    }
    return
  }
  func.func @transform_0(%arg0: i32, %arg1: i32, %arg2: i32) -> (i32, i32) {
    %c0_i32 = arith.constant 0 : i32
    return %arg0, %arg2 : i32, i32
  }
  func.func @transform_1(%arg0: i32, %arg1: i32, %arg2: i32) -> (i32, i32) {
    %c0_i32 = arith.constant 0 : i32
    return %arg2, %arg1 : i32, i32
  }
  func.func @transform_2(%arg0: i32, %arg1: i32, %arg2: i32) -> (i32, i32) {
    %c0_i32 = arith.constant 0 : i32
    %c0_i32_0 = arith.constant 0 : i32
    return %c0_i32, %arg1 : i32, i32
  }
  func.func @transform_3(%arg0: i32, %arg1: i32, %arg2: i32) -> (i32, i32) {
    %c0_i32 = arith.constant 0 : i32
    %c0_i32_0 = arith.constant 0 : i32
    return %c0_i32, %arg2 : i32, i32
  }
  func.func @transform_4(%arg0: i32, %arg1: i32, %arg2: i32) -> (i32, i32) {
    %c0_i32 = arith.constant 0 : i32
    %c0_i32_0 = arith.constant 0 : i32
    return %c0_i32, %arg2 : i32, i32
  }
  func.func @transform_5(%arg0: i32, %arg1: i32, %arg2: i32) -> (i32, i32) {
    %c0_i32 = arith.constant 0 : i32
    %c0_i32_0 = arith.constant 0 : i32
    return %c0_i32, %arg1 : i32, i32
  }
  func.func @transform_6(%arg0: i32, %arg1: i32, %arg2: i32) -> (i32, i32) {
    %c0_i32 = arith.constant 0 : i32
    %c0_i32_0 = arith.constant 0 : i32
    return %c0_i32, %arg1 : i32, i32
  }
  func.func @transform_7(%arg0: i32, %arg1: i32, %arg2: i32) -> (i32, i32) {
    %c0_i32 = arith.constant 0 : i32
    return %arg0, %arg1 : i32, i32
  }
}

module attributes {stable_mosaic.version = 11 : i64} {
  func.func @_mm_kernel(%arg0: i32, %arg1: i32, %arg2: i32, %arg3: memref<16x384xbf16, #tpu.memory_space<vmem>>, %arg4: memref<384x128xbf16, #tpu.memory_space<vmem>>, %arg5: memref<1x128xf32, #tpu.memory_space<vmem>>, %arg6: memref<1x128xf32, #tpu.memory_space<vmem>>, %arg7: memref<1x128xf32, #tpu.memory_space<vmem>>, %arg8: memref<16x128xbf16, #tpu.memory_space<vmem>>, %arg9: memref<16x128xf32, #tpu.memory_space<vmem>>) attributes {dimension_semantics = [#tpu.dimension_semantics<parallel>, #tpu.dimension_semantics<parallel>, #tpu.dimension_semantics<arbitrary>], iteration_bounds = array<i64: 1, 1, 1>, scalar_prefetch = 0 : i64, scratch_operands = 1 : i64, tpu.core_type = #tpu.core_type<tc>, window_params = [{transform_indices = @transform_0, window_bounds = array<i64: 16, 384>}, {transform_indices = @transform_1, window_bounds = array<i64: 384, 128>}, {transform_indices = @transform_2, window_bounds = array<i64: 1, 128>}, {transform_indices = @transform_3, window_bounds = array<i64: 1, 128>}, {transform_indices = @transform_4, window_bounds = array<i64: 1, 128>}, {transform_indices = @transform_5, window_bounds = array<i64: 16, 128>}]} {
    %c0_i32 = arith.constant 0 : i32
    %0 = arith.cmpi eq, %arg2, %c0_i32 : i32
    %1 = arith.extui %0 : i1 to i32
    %c0_i32_0 = arith.constant 0 : i32
    %2 = arith.cmpi ne, %1, %c0_i32_0 : i32
    scf.if %2 {
      %cst_10 = arith.constant 0.000000e+00 : f32
      %12 = vector.broadcast %cst_10 : f32 to vector<16x128xf32>
      %c0_11 = arith.constant 0 : index
      %c0_12 = arith.constant 0 : index
      %13 = vector.load %arg9[%c0_11, %c0_12] : memref<16x128xf32, #tpu.memory_space<vmem>>, vector<16x128xf32>
      tpu.vector_store %arg9[%c0_11, %c0_12], %12 {strides = array<i32>} : memref<16x128xf32, #tpu.memory_space<vmem>>, vector<16x128xf32>,
    } else {
    }
    %c0 = arith.constant 0 : index
    %c0_1 = arith.constant 0 : index
    %3 = vector.load %arg3[%c0, %c0_1] : memref<16x384xbf16, #tpu.memory_space<vmem>>, vector<16x384xbf16>
    %c0_2 = arith.constant 0 : index
    %c0_3 = arith.constant 0 : index
    %4 = vector.load %arg9[%c0_2, %c0_3] : memref<16x128xf32, #tpu.memory_space<vmem>>, vector<16x128xf32>
    %c0_4 = arith.constant 0 : index
    %c0_5 = arith.constant 0 : index
    %5 = vector.load %arg4[%c0_4, %c0_5] : memref<384x128xbf16, #tpu.memory_space<vmem>>, vector<384x128xbf16>
    %cst = arith.constant dense<0.000000e+00> : vector<16x128xf32>
    %6 = tpu.matmul %3, %5, %cst {dimension_numbers = #tpu.dot_dimension_numbers<[1], [0], [0], [1], [0, 0, 1, 1], [], []>} : vector<16x384xbf16>, vector<384x128xbf16>, vector<16x128xf32> -> vector<16x128xf32>
    %7 = arith.addf %4, %6 : vector<16x128xf32>
    %c0_6 = arith.constant 0 : index
    %c0_7 = arith.constant 0 : index
    %8 = vector.load %arg9[%c0_6, %c0_7] : memref<16x128xf32, #tpu.memory_space<vmem>>, vector<16x128xf32>
    tpu.vector_store %arg9[%c0_6, %c0_7], %7 {strides = array<i32>} : memref<16x128xf32, #tpu.memory_space<vmem>>, vector<16x128xf32>,
    %c0_i32_8 = arith.constant 0 : i32
    %9 = arith.cmpi eq, %arg2, %c0_i32_8 : i32
    %10 = arith.extui %9 : i1 to i32
    %c0_i32_9 = arith.constant 0 : i32
    %11 = arith.cmpi ne, %10, %c0_i32_9 : i32
    scf.if %11 {
      %c0_10 = arith.constant 0 : index
      %c0_11 = arith.constant 0 : index
      %12 = vector.load %arg9[%c0_10, %c0_11] : memref<16x128xf32, #tpu.memory_space<vmem>>, vector<16x128xf32>
      %c0_12 = arith.constant 0 : index
      %c0_13 = arith.constant 0 : index
      %13 = vector.load %arg5[%c0_12, %c0_13] : memref<1x128xf32, #tpu.memory_space<vmem>>, vector<1x128xf32>
      %14 = vector.broadcast %13 : vector<1x128xf32> to vector<16x128xf32>
      %15 = arith.addf %12, %14 : vector<16x128xf32>
      %cst_14 = arith.constant 0.000000e+00 : f32
      %16 = vector.broadcast %cst_14 : f32 to vector<16x128xf32>
      %17 = arith.maximumf %15, %16 : vector<16x128xf32>
      %c0_15 = arith.constant 0 : index
      %c0_16 = arith.constant 0 : index
      %18 = vector.load %arg6[%c0_15, %c0_16] : memref<1x128xf32, #tpu.memory_space<vmem>>, vector<1x128xf32>
      %19 = vector.broadcast %18 : vector<1x128xf32> to vector<16x128xf32>
      %20 = arith.mulf %17, %19 : vector<16x128xf32>
      %c0_17 = arith.constant 0 : index
      %c0_18 = arith.constant 0 : index
      %21 = vector.load %arg7[%c0_17, %c0_18] : memref<1x128xf32, #tpu.memory_space<vmem>>, vector<1x128xf32>
      %22 = vector.broadcast %21 : vector<1x128xf32> to vector<16x128xf32>
      %23 = arith.addf %20, %22 : vector<16x128xf32>
      %24 = arith.truncf %23 : vector<16x128xf32> to vector<16x128xbf16>
      %c0_19 = arith.constant 0 : index
      %c0_20 = arith.constant 0 : index
      %25 = vector.load %arg8[%c0_19, %c0_20] : memref<16x128xbf16, #tpu.memory_space<vmem>>, vector<16x128xbf16>
      tpu.vector_store %arg8[%c0_19, %c0_20], %24 {strides = array<i32>} : memref<16x128xbf16, #tpu.memory_space<vmem>>, vector<16x128xbf16>,
    } else {
    }
    return
  }
  func.func @transform_0(%arg0: i32, %arg1: i32, %arg2: i32) -> (i32, i32) {
    %c0_i32 = arith.constant 0 : i32
    return %arg0, %arg2 : i32, i32
  }
  func.func @transform_1(%arg0: i32, %arg1: i32, %arg2: i32) -> (i32, i32) {
    %c0_i32 = arith.constant 0 : i32
    return %arg2, %arg1 : i32, i32
  }
  func.func @transform_2(%arg0: i32, %arg1: i32, %arg2: i32) -> (i32, i32) {
    %c0_i32 = arith.constant 0 : i32
    %c0_i32_0 = arith.constant 0 : i32
    return %c0_i32, %arg1 : i32, i32
  }
  func.func @transform_3(%arg0: i32, %arg1: i32, %arg2: i32) -> (i32, i32) {
    %c0_i32 = arith.constant 0 : i32
    %c0_i32_0 = arith.constant 0 : i32
    return %c0_i32, %arg1 : i32, i32
  }
  func.func @transform_4(%arg0: i32, %arg1: i32, %arg2: i32) -> (i32, i32) {
    %c0_i32 = arith.constant 0 : i32
    %c0_i32_0 = arith.constant 0 : i32
    return %c0_i32, %arg1 : i32, i32
  }
  func.func @transform_5(%arg0: i32, %arg1: i32, %arg2: i32) -> (i32, i32) {
    %c0_i32 = arith.constant 0 : i32
    return %arg0, %arg1 : i32, i32
  }
}

module attributes {stable_mosaic.version = 11 : i64} {
  func.func @_mm_kernel(%arg0: i32, %arg1: i32, %arg2: i32, %arg3: memref<16x128xbf16, #tpu.memory_space<vmem>>, %arg4: memref<128x128xbf16, #tpu.memory_space<vmem>>, %arg5: memref<1x128xf32, #tpu.memory_space<vmem>>, %arg6: memref<1x128xf32, #tpu.memory_space<vmem>>, %arg7: memref<1x128xf32, #tpu.memory_space<vmem>>, %arg8: memref<16x128xbf16, #tpu.memory_space<vmem>>, %arg9: memref<16x128xf32, #tpu.memory_space<vmem>>) attributes {dimension_semantics = [#tpu.dimension_semantics<parallel>, #tpu.dimension_semantics<parallel>, #tpu.dimension_semantics<arbitrary>], iteration_bounds = array<i64: 1, 1, 1>, scalar_prefetch = 0 : i64, scratch_operands = 1 : i64, tpu.core_type = #tpu.core_type<tc>, window_params = [{transform_indices = @transform_0, window_bounds = array<i64: 16, 128>}, {transform_indices = @transform_1, window_bounds = array<i64: 128, 128>}, {transform_indices = @transform_2, window_bounds = array<i64: 1, 128>}, {transform_indices = @transform_3, window_bounds = array<i64: 1, 128>}, {transform_indices = @transform_4, window_bounds = array<i64: 1, 128>}, {transform_indices = @transform_5, window_bounds = array<i64: 16, 128>}]} {
    %c0_i32 = arith.constant 0 : i32
    %0 = arith.cmpi eq, %arg2, %c0_i32 : i32
    %1 = arith.extui %0 : i1 to i32
    %c0_i32_0 = arith.constant 0 : i32
    %2 = arith.cmpi ne, %1, %c0_i32_0 : i32
    scf.if %2 {
      %cst_15 = arith.constant 0.000000e+00 : f32
      %22 = vector.broadcast %cst_15 : f32 to vector<16x128xf32>
      %c0_16 = arith.constant 0 : index
      %c0_17 = arith.constant 0 : index
      %23 = vector.load %arg9[%c0_16, %c0_17] : memref<16x128xf32, #tpu.memory_space<vmem>>, vector<16x128xf32>
      tpu.vector_store %arg9[%c0_16, %c0_17], %22 {strides = array<i32>} : memref<16x128xf32, #tpu.memory_space<vmem>>, vector<16x128xf32>,
    } else {
    }
    %c0 = arith.constant 0 : index
    %c0_1 = arith.constant 0 : index
    %3 = vector.load %arg3[%c0, %c0_1] : memref<16x128xbf16, #tpu.memory_space<vmem>>, vector<16x128xbf16>
    %4 = arith.extf %3 : vector<16x128xbf16> to vector<16x128xf32>
    %c0_2 = arith.constant 0 : index
    %c0_3 = arith.constant 0 : index
    %5 = vector.load %arg6[%c0_2, %c0_3] : memref<1x128xf32, #tpu.memory_space<vmem>>, vector<1x128xf32>
    %6 = vector.broadcast %5 : vector<1x128xf32> to vector<16x128xf32>
    %7 = arith.mulf %4, %6 : vector<16x128xf32>
    %c0_4 = arith.constant 0 : index
    %c0_5 = arith.constant 0 : index
    %8 = vector.load %arg7[%c0_4, %c0_5] : memref<1x128xf32, #tpu.memory_space<vmem>>, vector<1x128xf32>
    %9 = vector.broadcast %8 : vector<1x128xf32> to vector<16x128xf32>
    %10 = arith.addf %7, %9 : vector<16x128xf32>
    %cst = arith.constant 0.000000e+00 : f32
    %11 = vector.broadcast %cst : f32 to vector<16x128xf32>
    %12 = arith.maximumf %10, %11 : vector<16x128xf32>
    %13 = arith.truncf %12 : vector<16x128xf32> to vector<16x128xbf16>
    %c0_6 = arith.constant 0 : index
    %c0_7 = arith.constant 0 : index
    %14 = vector.load %arg9[%c0_6, %c0_7] : memref<16x128xf32, #tpu.memory_space<vmem>>, vector<16x128xf32>
    %c0_8 = arith.constant 0 : index
    %c0_9 = arith.constant 0 : index
    %15 = vector.load %arg4[%c0_8, %c0_9] : memref<128x128xbf16, #tpu.memory_space<vmem>>, vector<128x128xbf16>
    %cst_10 = arith.constant dense<0.000000e+00> : vector<16x128xf32>
    %16 = tpu.matmul %13, %15, %cst_10 {dimension_numbers = #tpu.dot_dimension_numbers<[1], [0], [0], [1], [0, 0, 1, 1], [], []>} : vector<16x128xbf16>, vector<128x128xbf16>, vector<16x128xf32> -> vector<16x128xf32>
    %17 = arith.addf %14, %16 : vector<16x128xf32>
    %c0_11 = arith.constant 0 : index
    %c0_12 = arith.constant 0 : index
    %18 = vector.load %arg9[%c0_11, %c0_12] : memref<16x128xf32, #tpu.memory_space<vmem>>, vector<16x128xf32>
    tpu.vector_store %arg9[%c0_11, %c0_12], %17 {strides = array<i32>} : memref<16x128xf32, #tpu.memory_space<vmem>>, vector<16x128xf32>,
    %c0_i32_13 = arith.constant 0 : i32
    %19 = arith.cmpi eq, %arg2, %c0_i32_13 : i32
    %20 = arith.extui %19 : i1 to i32
    %c0_i32_14 = arith.constant 0 : i32
    %21 = arith.cmpi ne, %20, %c0_i32_14 : i32
    scf.if %21 {
      %c0_15 = arith.constant 0 : index
      %c0_16 = arith.constant 0 : index
      %22 = vector.load %arg9[%c0_15, %c0_16] : memref<16x128xf32, #tpu.memory_space<vmem>>, vector<16x128xf32>
      %c0_17 = arith.constant 0 : index
      %c0_18 = arith.constant 0 : index
      %23 = vector.load %arg5[%c0_17, %c0_18] : memref<1x128xf32, #tpu.memory_space<vmem>>, vector<1x128xf32>
      %24 = vector.broadcast %23 : vector<1x128xf32> to vector<16x128xf32>
      %25 = arith.addf %22, %24 : vector<16x128xf32>
      %26 = arith.truncf %25 : vector<16x128xf32> to vector<16x128xbf16>
      %c0_19 = arith.constant 0 : index
      %c0_20 = arith.constant 0 : index
      %27 = vector.load %arg8[%c0_19, %c0_20] : memref<16x128xbf16, #tpu.memory_space<vmem>>, vector<16x128xbf16>
      tpu.vector_store %arg8[%c0_19, %c0_20], %26 {strides = array<i32>} : memref<16x128xbf16, #tpu.memory_space<vmem>>, vector<16x128xbf16>,
    } else {
    }
    return
  }
  func.func @transform_0(%arg0: i32, %arg1: i32, %arg2: i32) -> (i32, i32) {
    %c0_i32 = arith.constant 0 : i32
    return %arg0, %arg2 : i32, i32
  }
  func.func @transform_1(%arg0: i32, %arg1: i32, %arg2: i32) -> (i32, i32) {
    %c0_i32 = arith.constant 0 : i32
    return %arg2, %arg1 : i32, i32
  }
  func.func @transform_2(%arg0: i32, %arg1: i32, %arg2: i32) -> (i32, i32) {
    %c0_i32 = arith.constant 0 : i32
    %c0_i32_0 = arith.constant 0 : i32
    return %c0_i32, %arg1 : i32, i32
  }
  func.func @transform_3(%arg0: i32, %arg1: i32, %arg2: i32) -> (i32, i32) {
    %c0_i32 = arith.constant 0 : i32
    %c0_i32_0 = arith.constant 0 : i32
    return %c0_i32, %arg2 : i32, i32
  }
  func.func @transform_4(%arg0: i32, %arg1: i32, %arg2: i32) -> (i32, i32) {
    %c0_i32 = arith.constant 0 : i32
    %c0_i32_0 = arith.constant 0 : i32
    return %c0_i32, %arg2 : i32, i32
  }
  func.func @transform_5(%arg0: i32, %arg1: i32, %arg2: i32) -> (i32, i32) {
    %c0_i32 = arith.constant 0 : i32
    return %arg0, %arg1 : i32, i32
  }
}

module attributes {stable_mosaic.version = 11 : i64} {
  func.func @_mm_kernel(%arg0: i32, %arg1: i32, %arg2: i32, %arg3: memref<32x2048xbf16, #tpu.memory_space<vmem>>, %arg4: memref<2048x128xbf16, #tpu.memory_space<vmem>>, %arg5: memref<1x128xf32, #tpu.memory_space<vmem>>, %arg6: memref<32x128xbf16, #tpu.memory_space<vmem>>, %arg7: memref<32x128xf32, #tpu.memory_space<vmem>>) attributes {dimension_semantics = [#tpu.dimension_semantics<parallel>, #tpu.dimension_semantics<parallel>, #tpu.dimension_semantics<arbitrary>], iteration_bounds = array<i64: 1, 2, 3>, scalar_prefetch = 0 : i64, scratch_operands = 1 : i64, tpu.core_type = #tpu.core_type<tc>, window_params = [{transform_indices = @transform_0, window_bounds = array<i64: 32, 2048>}, {transform_indices = @transform_1, window_bounds = array<i64: 2048, 128>}, {transform_indices = @transform_2, window_bounds = array<i64: 1, 128>}, {transform_indices = @transform_3, window_bounds = array<i64: 32, 128>}]} {
    %c0_i32 = arith.constant 0 : i32
    %0 = arith.cmpi eq, %arg2, %c0_i32 : i32
    %1 = arith.extui %0 : i1 to i32
    %c0_i32_0 = arith.constant 0 : i32
    %2 = arith.cmpi ne, %1, %c0_i32_0 : i32
    scf.if %2 {
      %cst_9 = arith.constant 0.000000e+00 : f32
      %12 = vector.broadcast %cst_9 : f32 to vector<32x128xf32>
      %c0_10 = arith.constant 0 : index
      %c0_11 = arith.constant 0 : index
      %13 = vector.load %arg7[%c0_10, %c0_11] : memref<32x128xf32, #tpu.memory_space<vmem>>, vector<32x128xf32>
      tpu.vector_store %arg7[%c0_10, %c0_11], %12 {strides = array<i32>} : memref<32x128xf32, #tpu.memory_space<vmem>>, vector<32x128xf32>,
    } else {
    }
    %c0 = arith.constant 0 : index
    %c0_1 = arith.constant 0 : index
    %3 = vector.load %arg3[%c0, %c0_1] : memref<32x2048xbf16, #tpu.memory_space<vmem>>, vector<32x2048xbf16>
    %c0_2 = arith.constant 0 : index
    %c0_3 = arith.constant 0 : index
    %4 = vector.load %arg7[%c0_2, %c0_3] : memref<32x128xf32, #tpu.memory_space<vmem>>, vector<32x128xf32>
    %c0_4 = arith.constant 0 : index
    %c0_5 = arith.constant 0 : index
    %5 = vector.load %arg4[%c0_4, %c0_5] : memref<2048x128xbf16, #tpu.memory_space<vmem>>, vector<2048x128xbf16>
    %cst = arith.constant dense<0.000000e+00> : vector<32x128xf32>
    %6 = tpu.matmul %3, %5, %cst {dimension_numbers = #tpu.dot_dimension_numbers<[1], [0], [0], [1], [0, 0, 1, 1], [], []>} : vector<32x2048xbf16>, vector<2048x128xbf16>, vector<32x128xf32> -> vector<32x128xf32>
    %7 = arith.addf %4, %6 : vector<32x128xf32>
    %c0_6 = arith.constant 0 : index
    %c0_7 = arith.constant 0 : index
    %8 = vector.load %arg7[%c0_6, %c0_7] : memref<32x128xf32, #tpu.memory_space<vmem>>, vector<32x128xf32>
    tpu.vector_store %arg7[%c0_6, %c0_7], %7 {strides = array<i32>} : memref<32x128xf32, #tpu.memory_space<vmem>>, vector<32x128xf32>,
    %c2_i32 = arith.constant 2 : i32
    %9 = arith.cmpi eq, %arg2, %c2_i32 : i32
    %10 = arith.extui %9 : i1 to i32
    %c0_i32_8 = arith.constant 0 : i32
    %11 = arith.cmpi ne, %10, %c0_i32_8 : i32
    scf.if %11 {
      %c0_9 = arith.constant 0 : index
      %c0_10 = arith.constant 0 : index
      %12 = vector.load %arg7[%c0_9, %c0_10] : memref<32x128xf32, #tpu.memory_space<vmem>>, vector<32x128xf32>
      %c0_11 = arith.constant 0 : index
      %c0_12 = arith.constant 0 : index
      %13 = vector.load %arg5[%c0_11, %c0_12] : memref<1x128xf32, #tpu.memory_space<vmem>>, vector<1x128xf32>
      %14 = vector.broadcast %13 : vector<1x128xf32> to vector<32x128xf32>
      %15 = arith.addf %12, %14 : vector<32x128xf32>
      %cst_13 = arith.constant 0.000000e+00 : f32
      %16 = vector.broadcast %cst_13 : f32 to vector<32x128xf32>
      %17 = arith.maximumf %15, %16 : vector<32x128xf32>
      %18 = arith.truncf %17 : vector<32x128xf32> to vector<32x128xbf16>
      %c0_14 = arith.constant 0 : index
      %c0_15 = arith.constant 0 : index
      %19 = vector.load %arg6[%c0_14, %c0_15] : memref<32x128xbf16, #tpu.memory_space<vmem>>, vector<32x128xbf16>
      tpu.vector_store %arg6[%c0_14, %c0_15], %18 {strides = array<i32>} : memref<32x128xbf16, #tpu.memory_space<vmem>>, vector<32x128xbf16>,
    } else {
    }
    return
  }
  func.func @transform_0(%arg0: i32, %arg1: i32, %arg2: i32) -> (i32, i32) {
    %c0_i32 = arith.constant 0 : i32
    return %arg0, %arg2 : i32, i32
  }
  func.func @transform_1(%arg0: i32, %arg1: i32, %arg2: i32) -> (i32, i32) {
    %c0_i32 = arith.constant 0 : i32
    return %arg2, %arg1 : i32, i32
  }
  func.func @transform_2(%arg0: i32, %arg1: i32, %arg2: i32) -> (i32, i32) {
    %c0_i32 = arith.constant 0 : i32
    %c0_i32_0 = arith.constant 0 : i32
    return %c0_i32, %arg1 : i32, i32
  }
  func.func @transform_3(%arg0: i32, %arg1: i32, %arg2: i32) -> (i32, i32) {
    %c0_i32 = arith.constant 0 : i32
    return %arg0, %arg1 : i32, i32
  }
}

module attributes {stable_mosaic.version = 11 : i64} {
  func.func @_mm_kernel(%arg0: i32, %arg1: i32, %arg2: i32, %arg3: memref<32x1152xbf16, #tpu.memory_space<vmem>>, %arg4: memref<1152x128xbf16, #tpu.memory_space<vmem>>, %arg5: memref<1x128xf32, #tpu.memory_space<vmem>>, %arg6: memref<32x128xf32, #tpu.memory_space<vmem>>, %arg7: memref<32x128xf32, #tpu.memory_space<vmem>>) attributes {dimension_semantics = [#tpu.dimension_semantics<parallel>, #tpu.dimension_semantics<parallel>, #tpu.dimension_semantics<arbitrary>], iteration_bounds = array<i64: 1, 1, 2>, scalar_prefetch = 0 : i64, scratch_operands = 1 : i64, tpu.core_type = #tpu.core_type<tc>, window_params = [{transform_indices = @transform_0, window_bounds = array<i64: 32, 1152>}, {transform_indices = @transform_1, window_bounds = array<i64: 1152, 128>}, {transform_indices = @transform_2, window_bounds = array<i64: 1, 128>}, {transform_indices = @transform_3, window_bounds = array<i64: 32, 128>}]} {
    %c0_i32 = arith.constant 0 : i32
    %0 = arith.cmpi eq, %arg2, %c0_i32 : i32
    %1 = arith.extui %0 : i1 to i32
    %c0_i32_0 = arith.constant 0 : i32
    %2 = arith.cmpi ne, %1, %c0_i32_0 : i32
    scf.if %2 {
      %cst_9 = arith.constant 0.000000e+00 : f32
      %12 = vector.broadcast %cst_9 : f32 to vector<32x128xf32>
      %c0_10 = arith.constant 0 : index
      %c0_11 = arith.constant 0 : index
      %13 = vector.load %arg7[%c0_10, %c0_11] : memref<32x128xf32, #tpu.memory_space<vmem>>, vector<32x128xf32>
      tpu.vector_store %arg7[%c0_10, %c0_11], %12 {strides = array<i32>} : memref<32x128xf32, #tpu.memory_space<vmem>>, vector<32x128xf32>,
    } else {
    }
    %c0 = arith.constant 0 : index
    %c0_1 = arith.constant 0 : index
    %3 = vector.load %arg3[%c0, %c0_1] : memref<32x1152xbf16, #tpu.memory_space<vmem>>, vector<32x1152xbf16>
    %c0_2 = arith.constant 0 : index
    %c0_3 = arith.constant 0 : index
    %4 = vector.load %arg7[%c0_2, %c0_3] : memref<32x128xf32, #tpu.memory_space<vmem>>, vector<32x128xf32>
    %c0_4 = arith.constant 0 : index
    %c0_5 = arith.constant 0 : index
    %5 = vector.load %arg4[%c0_4, %c0_5] : memref<1152x128xbf16, #tpu.memory_space<vmem>>, vector<1152x128xbf16>
    %cst = arith.constant dense<0.000000e+00> : vector<32x128xf32>
    %6 = tpu.matmul %3, %5, %cst {dimension_numbers = #tpu.dot_dimension_numbers<[1], [0], [0], [1], [0, 0, 1, 1], [], []>} : vector<32x1152xbf16>, vector<1152x128xbf16>, vector<32x128xf32> -> vector<32x128xf32>
    %7 = arith.addf %4, %6 : vector<32x128xf32>
    %c0_6 = arith.constant 0 : index
    %c0_7 = arith.constant 0 : index
    %8 = vector.load %arg7[%c0_6, %c0_7] : memref<32x128xf32, #tpu.memory_space<vmem>>, vector<32x128xf32>
    tpu.vector_store %arg7[%c0_6, %c0_7], %7 {strides = array<i32>} : memref<32x128xf32, #tpu.memory_space<vmem>>, vector<32x128xf32>,
    %c1_i32 = arith.constant 1 : i32
    %9 = arith.cmpi eq, %arg2, %c1_i32 : i32
    %10 = arith.extui %9 : i1 to i32
    %c0_i32_8 = arith.constant 0 : i32
    %11 = arith.cmpi ne, %10, %c0_i32_8 : i32
    scf.if %11 {
      %c0_9 = arith.constant 0 : index
      %c0_10 = arith.constant 0 : index
      %12 = vector.load %arg7[%c0_9, %c0_10] : memref<32x128xf32, #tpu.memory_space<vmem>>, vector<32x128xf32>
      %c0_11 = arith.constant 0 : index
      %c0_12 = arith.constant 0 : index
      %13 = vector.load %arg5[%c0_11, %c0_12] : memref<1x128xf32, #tpu.memory_space<vmem>>, vector<1x128xf32>
      %14 = vector.broadcast %13 : vector<1x128xf32> to vector<32x128xf32>
      %15 = arith.addf %12, %14 : vector<32x128xf32>
      %c0_13 = arith.constant 0 : index
      %c0_14 = arith.constant 0 : index
      %16 = vector.load %arg6[%c0_13, %c0_14] : memref<32x128xf32, #tpu.memory_space<vmem>>, vector<32x128xf32>
      tpu.vector_store %arg6[%c0_13, %c0_14], %15 {strides = array<i32>} : memref<32x128xf32, #tpu.memory_space<vmem>>, vector<32x128xf32>,
    } else {
    }
    return
  }
  func.func @transform_0(%arg0: i32, %arg1: i32, %arg2: i32) -> (i32, i32) {
    %c0_i32 = arith.constant 0 : i32
    return %arg0, %arg2 : i32, i32
  }
  func.func @transform_1(%arg0: i32, %arg1: i32, %arg2: i32) -> (i32, i32) {
    %c0_i32 = arith.constant 0 : i32
    return %arg2, %arg1 : i32, i32
  }
  func.func @transform_2(%arg0: i32, %arg1: i32, %arg2: i32) -> (i32, i32) {
    %c0_i32 = arith.constant 0 : i32
    %c0_i32_0 = arith.constant 0 : i32
    return %c0_i32, %arg1 : i32, i32
  }
  func.func @transform_3(%arg0: i32, %arg1: i32, %arg2: i32) -> (i32, i32) {
    %c0_i32 = arith.constant 0 : i32
    return %arg0, %arg1 : i32, i32
  }
}

module attributes {stable_mosaic.version = 11 : i64} {
  func.func @_mm_kernel(%arg0: i32, %arg1: i32, %arg2: i32, %arg3: memref<16x1152xbf16, #tpu.memory_space<vmem>>, %arg4: memref<1152x128xbf16, #tpu.memory_space<vmem>>, %arg5: memref<1x128xf32, #tpu.memory_space<vmem>>, %arg6: memref<16x128xbf16, #tpu.memory_space<vmem>>, %arg7: memref<16x128xf32, #tpu.memory_space<vmem>>) attributes {dimension_semantics = [#tpu.dimension_semantics<parallel>, #tpu.dimension_semantics<parallel>, #tpu.dimension_semantics<arbitrary>], iteration_bounds = array<i64: 1, 2, 2>, scalar_prefetch = 0 : i64, scratch_operands = 1 : i64, tpu.core_type = #tpu.core_type<tc>, window_params = [{transform_indices = @transform_0, window_bounds = array<i64: 16, 1152>}, {transform_indices = @transform_1, window_bounds = array<i64: 1152, 128>}, {transform_indices = @transform_2, window_bounds = array<i64: 1, 128>}, {transform_indices = @transform_3, window_bounds = array<i64: 16, 128>}]} {
    %c0_i32 = arith.constant 0 : i32
    %0 = arith.cmpi eq, %arg2, %c0_i32 : i32
    %1 = arith.extui %0 : i1 to i32
    %c0_i32_0 = arith.constant 0 : i32
    %2 = arith.cmpi ne, %1, %c0_i32_0 : i32
    scf.if %2 {
      %cst_9 = arith.constant 0.000000e+00 : f32
      %12 = vector.broadcast %cst_9 : f32 to vector<16x128xf32>
      %c0_10 = arith.constant 0 : index
      %c0_11 = arith.constant 0 : index
      %13 = vector.load %arg7[%c0_10, %c0_11] : memref<16x128xf32, #tpu.memory_space<vmem>>, vector<16x128xf32>
      tpu.vector_store %arg7[%c0_10, %c0_11], %12 {strides = array<i32>} : memref<16x128xf32, #tpu.memory_space<vmem>>, vector<16x128xf32>,
    } else {
    }
    %c0 = arith.constant 0 : index
    %c0_1 = arith.constant 0 : index
    %3 = vector.load %arg3[%c0, %c0_1] : memref<16x1152xbf16, #tpu.memory_space<vmem>>, vector<16x1152xbf16>
    %c0_2 = arith.constant 0 : index
    %c0_3 = arith.constant 0 : index
    %4 = vector.load %arg7[%c0_2, %c0_3] : memref<16x128xf32, #tpu.memory_space<vmem>>, vector<16x128xf32>
    %c0_4 = arith.constant 0 : index
    %c0_5 = arith.constant 0 : index
    %5 = vector.load %arg4[%c0_4, %c0_5] : memref<1152x128xbf16, #tpu.memory_space<vmem>>, vector<1152x128xbf16>
    %cst = arith.constant dense<0.000000e+00> : vector<16x128xf32>
    %6 = tpu.matmul %3, %5, %cst {dimension_numbers = #tpu.dot_dimension_numbers<[1], [0], [0], [1], [0, 0, 1, 1], [], []>} : vector<16x1152xbf16>, vector<1152x128xbf16>, vector<16x128xf32> -> vector<16x128xf32>
    %7 = arith.addf %4, %6 : vector<16x128xf32>
    %c0_6 = arith.constant 0 : index
    %c0_7 = arith.constant 0 : index
    %8 = vector.load %arg7[%c0_6, %c0_7] : memref<16x128xf32, #tpu.memory_space<vmem>>, vector<16x128xf32>
    tpu.vector_store %arg7[%c0_6, %c0_7], %7 {strides = array<i32>} : memref<16x128xf32, #tpu.memory_space<vmem>>, vector<16x128xf32>,
    %c1_i32 = arith.constant 1 : i32
    %9 = arith.cmpi eq, %arg2, %c1_i32 : i32
    %10 = arith.extui %9 : i1 to i32
    %c0_i32_8 = arith.constant 0 : i32
    %11 = arith.cmpi ne, %10, %c0_i32_8 : i32
    scf.if %11 {
      %c0_9 = arith.constant 0 : index
      %c0_10 = arith.constant 0 : index
      %12 = vector.load %arg7[%c0_9, %c0_10] : memref<16x128xf32, #tpu.memory_space<vmem>>, vector<16x128xf32>
      %c0_11 = arith.constant 0 : index
      %c0_12 = arith.constant 0 : index
      %13 = vector.load %arg5[%c0_11, %c0_12] : memref<1x128xf32, #tpu.memory_space<vmem>>, vector<1x128xf32>
      %14 = vector.broadcast %13 : vector<1x128xf32> to vector<16x128xf32>
      %15 = arith.addf %12, %14 : vector<16x128xf32>
      %cst_13 = arith.constant 0.000000e+00 : f32
      %16 = vector.broadcast %cst_13 : f32 to vector<16x128xf32>
      %17 = arith.maximumf %15, %16 : vector<16x128xf32>
      %18 = arith.truncf %17 : vector<16x128xf32> to vector<16x128xbf16>
      %c0_14 = arith.constant 0 : index
      %c0_15 = arith.constant 0 : index
      %19 = vector.load %arg6[%c0_14, %c0_15] : memref<16x128xbf16, #tpu.memory_space<vmem>>, vector<16x128xbf16>
      tpu.vector_store %arg6[%c0_14, %c0_15], %18 {strides = array<i32>} : memref<16x128xbf16, #tpu.memory_space<vmem>>, vector<16x128xbf16>,
    } else {
    }
    return
  }
  func.func @transform_0(%arg0: i32, %arg1: i32, %arg2: i32) -> (i32, i32) {
    %c0_i32 = arith.constant 0 : i32
    return %arg0, %arg2 : i32, i32
  }
  func.func @transform_1(%arg0: i32, %arg1: i32, %arg2: i32) -> (i32, i32) {
    %c0_i32 = arith.constant 0 : i32
    return %arg2, %arg1 : i32, i32
  }
  func.func @transform_2(%arg0: i32, %arg1: i32, %arg2: i32) -> (i32, i32) {
    %c0_i32 = arith.constant 0 : i32
    %c0_i32_0 = arith.constant 0 : i32
    return %c0_i32, %arg1 : i32, i32
  }
  func.func @transform_3(%arg0: i32, %arg1: i32, %arg2: i32) -> (i32, i32) {
    %c0_i32 = arith.constant 0 : i32
    return %arg0, %arg1 : i32, i32
  }
}

module attributes {stable_mosaic.version = 11 : i64} {
  func.func @_mm_kernel(%arg0: i32, %arg1: i32, %arg2: i32, %arg3: memref<16x1152xbf16, #tpu.memory_space<vmem>>, %arg4: memref<1152x128xbf16, #tpu.memory_space<vmem>>, %arg5: memref<1x128xf32, #tpu.memory_space<vmem>>, %arg6: memref<16x128xf32, #tpu.memory_space<vmem>>, %arg7: memref<16x128xf32, #tpu.memory_space<vmem>>) attributes {dimension_semantics = [#tpu.dimension_semantics<parallel>, #tpu.dimension_semantics<parallel>, #tpu.dimension_semantics<arbitrary>], iteration_bounds = array<i64: 1, 1, 2>, scalar_prefetch = 0 : i64, scratch_operands = 1 : i64, tpu.core_type = #tpu.core_type<tc>, window_params = [{transform_indices = @transform_0, window_bounds = array<i64: 16, 1152>}, {transform_indices = @transform_1, window_bounds = array<i64: 1152, 128>}, {transform_indices = @transform_2, window_bounds = array<i64: 1, 128>}, {transform_indices = @transform_3, window_bounds = array<i64: 16, 128>}]} {
    %c0_i32 = arith.constant 0 : i32
    %0 = arith.cmpi eq, %arg2, %c0_i32 : i32
    %1 = arith.extui %0 : i1 to i32
    %c0_i32_0 = arith.constant 0 : i32
    %2 = arith.cmpi ne, %1, %c0_i32_0 : i32
    scf.if %2 {
      %cst_9 = arith.constant 0.000000e+00 : f32
      %12 = vector.broadcast %cst_9 : f32 to vector<16x128xf32>
      %c0_10 = arith.constant 0 : index
      %c0_11 = arith.constant 0 : index
      %13 = vector.load %arg7[%c0_10, %c0_11] : memref<16x128xf32, #tpu.memory_space<vmem>>, vector<16x128xf32>
      tpu.vector_store %arg7[%c0_10, %c0_11], %12 {strides = array<i32>} : memref<16x128xf32, #tpu.memory_space<vmem>>, vector<16x128xf32>,
    } else {
    }
    %c0 = arith.constant 0 : index
    %c0_1 = arith.constant 0 : index
    %3 = vector.load %arg3[%c0, %c0_1] : memref<16x1152xbf16, #tpu.memory_space<vmem>>, vector<16x1152xbf16>
    %c0_2 = arith.constant 0 : index
    %c0_3 = arith.constant 0 : index
    %4 = vector.load %arg7[%c0_2, %c0_3] : memref<16x128xf32, #tpu.memory_space<vmem>>, vector<16x128xf32>
    %c0_4 = arith.constant 0 : index
    %c0_5 = arith.constant 0 : index
    %5 = vector.load %arg4[%c0_4, %c0_5] : memref<1152x128xbf16, #tpu.memory_space<vmem>>, vector<1152x128xbf16>
    %cst = arith.constant dense<0.000000e+00> : vector<16x128xf32>
    %6 = tpu.matmul %3, %5, %cst {dimension_numbers = #tpu.dot_dimension_numbers<[1], [0], [0], [1], [0, 0, 1, 1], [], []>} : vector<16x1152xbf16>, vector<1152x128xbf16>, vector<16x128xf32> -> vector<16x128xf32>
    %7 = arith.addf %4, %6 : vector<16x128xf32>
    %c0_6 = arith.constant 0 : index
    %c0_7 = arith.constant 0 : index
    %8 = vector.load %arg7[%c0_6, %c0_7] : memref<16x128xf32, #tpu.memory_space<vmem>>, vector<16x128xf32>
    tpu.vector_store %arg7[%c0_6, %c0_7], %7 {strides = array<i32>} : memref<16x128xf32, #tpu.memory_space<vmem>>, vector<16x128xf32>,
    %c1_i32 = arith.constant 1 : i32
    %9 = arith.cmpi eq, %arg2, %c1_i32 : i32
    %10 = arith.extui %9 : i1 to i32
    %c0_i32_8 = arith.constant 0 : i32
    %11 = arith.cmpi ne, %10, %c0_i32_8 : i32
    scf.if %11 {
      %c0_9 = arith.constant 0 : index
      %c0_10 = arith.constant 0 : index
      %12 = vector.load %arg7[%c0_9, %c0_10] : memref<16x128xf32, #tpu.memory_space<vmem>>, vector<16x128xf32>
      %c0_11 = arith.constant 0 : index
      %c0_12 = arith.constant 0 : index
      %13 = vector.load %arg5[%c0_11, %c0_12] : memref<1x128xf32, #tpu.memory_space<vmem>>, vector<1x128xf32>
      %14 = vector.broadcast %13 : vector<1x128xf32> to vector<16x128xf32>
      %15 = arith.addf %12, %14 : vector<16x128xf32>
      %c0_13 = arith.constant 0 : index
      %c0_14 = arith.constant 0 : index
      %16 = vector.load %arg6[%c0_13, %c0_14] : memref<16x128xf32, #tpu.memory_space<vmem>>, vector<16x128xf32>
      tpu.vector_store %arg6[%c0_13, %c0_14], %15 {strides = array<i32>} : memref<16x128xf32, #tpu.memory_space<vmem>>, vector<16x128xf32>,
    } else {
    }
    return
  }
  func.func @transform_0(%arg0: i32, %arg1: i32, %arg2: i32) -> (i32, i32) {
    %c0_i32 = arith.constant 0 : i32
    return %arg0, %arg2 : i32, i32
  }
  func.func @transform_1(%arg0: i32, %arg1: i32, %arg2: i32) -> (i32, i32) {
    %c0_i32 = arith.constant 0 : i32
    return %arg2, %arg1 : i32, i32
  }
  func.func @transform_2(%arg0: i32, %arg1: i32, %arg2: i32) -> (i32, i32) {
    %c0_i32 = arith.constant 0 : i32
    %c0_i32_0 = arith.constant 0 : i32
    return %c0_i32, %arg1 : i32, i32
  }
  func.func @transform_3(%arg0: i32, %arg1: i32, %arg2: i32) -> (i32, i32) {
    %c0_i32 = arith.constant 0 : i32
    return %arg0, %arg1 : i32, i32
  }
}

</mosaic_0001>

<bundles_post_ra>
// kernel: sfdet_densenet_forward.30
= control target key start
LH: loop header
LB: loop body
LE: loop exit
PB: predicated region body
PF: predicated region fallthrough
CT: control target
= control target key end

     0   :  { %s966_s1 = inlined_call_operand.vmem [shape: bf16[128,128], index: 1, kind: input, shape index: {}]   ;;  %s967_s0 = inlined_call_operand.vmem [shape: bf16[128,128], index: 0, kind: input, shape index: {}]   ;;  %s968_s3 = inlined_call_operand.vmem [shape: f32[1,128], index: 3, kind: input, shape index: {}]   ;;  %s969_s4 = inlined_call_operand.vmem [shape: f32[1,128], index: 4, kind: input, shape index: {}]   ;;  %s970_s2 = inlined_call_operand.vmem [shape: f32[1,128], index: 2, kind: input, shape index: {}]   ;;  %s971_s5 = inlined_call_operand.vmem [shape: f32[1,128], index: 5, kind: input, shape index: {}]   ;;  %s972_s6 = inlined_call_operand.vmem [shape: f32[1,128], index: 6, kind: input, shape index: {}]   ;;  %s973_s7 = inlined_call_operand.vmem [shape: bf16[128,128], index: 7, kind: output, shape index: {}]  }
   0x1   :  { %v741_v0 = vld [vmem:[%s966_s1 + $0x38] sm:$0xff]   ;;  %v742_v1 = vld [vmem:[%s966_s1 + $0x30] sm:$0xff]   ;;  %v743_v2 = vld [vmem:[%s966_s1 + $0x28] sm:$0xff]  }
   0x2   :  { %693 = vmatprep.subr.bf16.mxu0 %v741_v0  ;;  %725 = vmatprep.subr.bf16.mxu1 %v741_v0  ;;  %v744_v3 = vld [vmem:[%s966_s1 + $0x20] sm:$0xff]   ;;  %v663_v9 = vld [vmem:[%s967_s0 + $0x8] sm:$0xff]   ;;  %v664_v16 = vld [vmem:[%s967_s0 + $0x10] sm:$0xff]  }
   0x3   :  { %694 = vmatpush3.bf16.msra.mxu0 %v741_v0  ;;  %733 = vmatpush3.bf16.msra.mxu1 %v741_v0  ;;  %v592_v4 = vld [vmem:[%s967_s0] sm:$0xff]   ;;  %v667_v13 = vld [vmem:[%s967_s0 + $0x28] sm:$0xff]   ;;  %v745_v17 = vld [vmem:[%s966_s1 + $0x18] sm:$0xff]   ;;  %v597_v20 = vunpack.c.l.bf16 %v663_v9  ;;  %v598_v21 = vunpack.c.h.bf16 %v663_v9  ;;  %v601_v28 = vunpack.c.l.bf16 %v664_v16  ;;  %v602_v40 = vunpack.c.h.bf16 %v664_v16 }
   0x4   :  { %695 = vmatprep.subr.bf16.mxu0 %v742_v1  ;;  %726 = vmatprep.subr.bf16.mxu1 %v742_v1  ;;  %v807_v5 = vld [vmem:[%s968_s3] ss:$0 sm:$0xff]  ;;  %v593_v6 = vunpack.c.l.bf16 %v592_v4  ;;  %v594_v7 = vunpack.c.h.bf16 %v592_v4  ;;  %v613_v24 = vunpack.c.l.bf16 %v667_v13  ;;  %v614_v25 = vunpack.c.h.bf16 %v667_v13  ;;  %v668_v31 = vld [vmem:[%s967_s0 + $0x30] sm:$0xff]   ;;  %v665_v44 = vld [vmem:[%s967_s0 + $0x18] sm:$0xff]  }
   0x5   :  { %v666_v8 = vld [vmem:[%s967_s0 + $0x20] sm:$0xff]   ;;  %v746_v32 = vld [vmem:[%s966_s1 + $0x10] sm:$0xff]   ;;  %v88_v35 = vmul.f32 %v597_v20, %v807_v5  ;;  %v89_v36 = vmul.f32 %v598_v21, %v807_v5  ;;  %v90_v42 = vmul.f32 %v601_v28, %v807_v5  ;;  %v617_v43 = vunpack.c.l.bf16 %v668_v31  ;;  %v669_v47 = vld [vmem:[%s967_s0 + $0x38] sm:$0xff]  }
   0x6   :  { %v818_v10 = vld [vmem:[%s969_s4] ss:$0 sm:$0xff]  ;;  %v609_v11 = vunpack.c.l.bf16 %v666_v8  ;;  %v610_v12 = vunpack.c.h.bf16 %v666_v8  ;;  %v86_v14 = vmul.f32 %v593_v6, %v807_v5  ;;  %v87_v15 = vmul.f32 %v594_v7, %v807_v5  ;;  %v747_v48 = vld [vmem:[%s966_s1 + $0x8] sm:$0xff]  }
   0x7   :  { %696 = vmatpush3.bf16.msra.mxu0 %v742_v1  ;;  %734 = vmatpush3.bf16.msra.mxu1 %v742_v1  ;;  %v96_v38 = vmul.f32 %v613_v24, %v807_v5  ;;  %v97_v39 = vmul.f32 %v614_v25, %v807_v5  ;;  %v91_v45 = vmul.f32 %v602_v40, %v807_v5  ;;  %v618_v46 = vunpack.c.h.bf16 %v668_v31  ;;  %v748_v63 = vld [vmem:[%s966_s1] sm:$0xff]  }
   0x8   :  { %697 = vmatprep.subr.bf16.mxu0 %v743_v2  ;;  %727 = vmatprep.subr.bf16.mxu1 %v743_v2  ;;  %v94_v18 = vmul.f32 %v609_v11, %v807_v5  ;;  %v95_v19 = vmul.f32 %v610_v12, %v807_v5  ;;  %v109_v22 = vadd.f32 %v818_v10, %v86_v14  ;;  %v605_v55 = vunpack.c.l.bf16 %v665_v44  ;;  %v887_v28 = vld [vmem:[%s971_s5] ss:$0 sm:$0xff] }
   0x9   :  { %v110_v23 = vadd.f32 %v818_v10, %v87_v15  ;;  %v111_v49 = vadd.f32 %v818_v10, %v88_v35  ;;  %v112_v50 = vadd.f32 %v818_v10, %v89_v36  ;;  %v98_v51 = vmul.f32 %v617_v43, %v807_v5 }
   0xa   :  { %v117_v26 = vadd.f32 %v818_v10, %v94_v18  ;;  %v118_v27 = vadd.f32 %v818_v10, %v95_v19  ;;  %v125_v29 = vmax.f32 %v109_v22, 0.0  ;;  %v119_v52 = vadd.f32 %v818_v10, %v96_v38  ;;  %v898_v38 = vld [vmem:[%s972_s6] ss:$0 sm:$0xff] }
   0xb   :  { %698 = vmatpush3.bf16.msra.mxu0 %v743_v2  ;;  %735 = vmatpush3.bf16.msra.mxu1 %v743_v2  ;;  %v126_v30 = vmax.f32 %v110_v23, 0.0  ;;  %v120_v53 = vadd.f32 %v818_v10, %v97_v39  ;;  %v99_v54 = vmul.f32 %v618_v46, %v807_v5  ;;  %v113_v56 = vadd.f32 %v818_v10, %v90_v42 }
   0xc   :  { %699 = vmatprep.subr.bf16.mxu0 %v744_v3  ;;  %728 = vmatprep.subr.bf16.mxu1 %v744_v3  ;;  %v133_v33 = vmax.f32 %v117_v26, 0.0  ;;  %v134_v34 = vmax.f32 %v118_v27, 0.0  ;;  %v606_v57 = vunpack.c.h.bf16 %v665_v44  ;;  %v621_v58 = vunpack.c.l.bf16 %v669_v47 }
   0xd   :  { %v141_v37 = vpack.c.bf16 %v126_v30, %v125_v29  ;;  %v622_v59 = vunpack.c.h.bf16 %v669_v47  ;;  %v114_v60 = vadd.f32 %v818_v10, %v91_v45  ;;  %v121_v61 = vadd.f32 %v818_v10, %v98_v51 }
   0xe   :  { %v145_v41 = vpack.c.bf16 %v134_v34, %v133_v33  ;;  %v122_v62 = vadd.f32 %v818_v10, %v99_v54  ;;  %v127_v0 = vmax.f32 %v111_v49, 0.0  ;;  %v128_v1 = vmax.f32 %v112_v50, 0.0 }
   0xf   :  { %700 = vmatpush3.bf16.msra.mxu0 %v744_v3  ;;  %736 = vmatpush3.bf16.msra.mxu1 %v744_v3  ;;  %v135_v2 = vmax.f32 %v119_v52, 0.0  ;;  %v136_v3 = vmax.f32 %v120_v53, 0.0  ;;  %v92_v4 = vmul.f32 %v605_v55, %v807_v5  ;;  %v93_v6 = vmul.f32 %v606_v57, %v807_v5 }
  0x10   :  { %701 = vmatprep.subr.bf16.mxu0 %v745_v17  ;;  %729 = vmatprep.subr.bf16.mxu1 %v745_v17  ;;  %v100_v7 = vmul.f32 %v621_v58, %v807_v5  ;;  %v101_v8 = vmul.f32 %v622_v59, %v807_v5  ;;  %v129_v9 = vmax.f32 %v113_v56, 0.0  ;;  %v130_v11 = vmax.f32 %v114_v60, 0.0 }
  0x11   :  { %709 = vmatprep.mubr.bf16.mxu0 %v141_v37  ;;  %717 = vmatprep.mubr.bf16.mxu1 %v145_v41  ;;  %v137_v12 = vmax.f32 %v121_v61, 0.0  ;;  %v138_v13 = vmax.f32 %v122_v62, 0.0  ;;  %v142_v14 = vpack.c.bf16 %v128_v1, %v127_v0  ;;  %v146_v15 = vpack.c.bf16 %v136_v3, %v135_v2 }
  0x12   :  { %v115_v16 = vadd.f32 %v818_v10, %v92_v4  ;;  %v123_v18 = vadd.f32 %v818_v10, %v100_v7  ;;  %v124_v19 = vadd.f32 %v818_v10, %v101_v8  ;;  %v143_v5 = vpack.c.bf16 %v130_v11, %v129_v9 }
  0x13   :  { %702 = vmatpush3.bf16.msra.mxu0 %v745_v17  ;;  %737 = vmatpush3.bf16.msra.mxu1 %v745_v17  ;;  %v116_v17 = vadd.f32 %v818_v10, %v93_v6  ;;  %v147_v20 = vpack.c.bf16 %v138_v13, %v137_v12  ;;  %v882_v10 = vld [vmem:[%s970_s2] ss:$0 sm:$0xff] }
  0x14   :  { %703 = vmatprep.subr.bf16.mxu0 %v746_v32  ;;  %730 = vmatprep.subr.bf16.mxu1 %v746_v32  ;;  %v131_v21 = vmax.f32 %v115_v16, 0.0  ;;  %v139_v23 = vmax.f32 %v123_v18, 0.0  ;;  %v140_v24 = vmax.f32 %v124_v19, 0.0 }
  0x15   :  { %v132_v22 = vmax.f32 %v116_v17, 0.0 }
  0x16   :  { %v148_v26 = vpack.c.bf16 %v140_v24, %v139_v23 }
  0x17   :  { %704 = vmatpush3.bf16.msra.mxu0 %v746_v32  ;;  %738 = vmatpush3.bf16.msra.mxu1 %v746_v32  ;;  %v144_v25 = vpack.c.bf16 %v132_v22, %v131_v21 }
  0x18   :  { %705 = vmatprep.subr.bf16.mxu0 %v747_v48  ;;  %731 = vmatprep.subr.bf16.mxu1 %v747_v48 }
  0x1b   :  { %706 = vmatpush3.bf16.msra.mxu0 %v747_v48  ;;  %739 = vmatpush3.bf16.msra.mxu1 %v747_v48 }
  0x1c   :  { %707 = vmatprep.subr.bf16.mxu0 %v748_v63  ;;  %732 = vmatprep.subr.bf16.mxu1 %v748_v63 }
  0x1f   :  { %708 = vmatpush3.bf16.msra.mxu0 %v748_v63  ;;  %740 = vmatpush3.bf16.msra.mxu1 %v748_v63 }
  0x22   :  { %710 = vmatmul.mubr.bf16.vlgmr.msra.gmra.mxu0 %v142_v14  ;;  %718 = vmatmul.mubr.bf16.vlgmr.msra.gmra.mxu1 %v146_v15 }
  0x23   :  { %713 = vmatprep.mubr.bf16.mxu0 %v143_v5  ;;  %721 = vmatprep.mubr.bf16.mxu1 %v147_v20 }
  0x2a   :  { %714 = vmatmul.mubr.bf16.gmra.mxu0 %v144_v25  ;;  %722 = vmatmul.mubr.bf16.gmra.mxu1 %v148_v26 }
  0xe2   :  { %v711_v27 = vpop.f32.mrf.mxu0  ;;  %v719_v29 = vpop.f32.mrf.mxu1 }
  0xe3   :  { %v386_v30 = vadd.f32 %v711_v27, %v882_v10  ;;  %v394_v31 = vadd.f32 %v719_v29, %v882_v10 }
  0xe4   :  { %v263_v32 = vpop.f32.mrf.mxu0  ;;  %v295_v33 = vpop.f32.mrf.mxu1 }
  0xe5   :  { %v409_v34 = vmul.f32 %v887_v28, %v386_v30  ;;  %v417_v35 = vmul.f32 %v887_v28, %v394_v31  ;;  %v384_v36 = vadd.f32 %v882_v10, %v263_v32  ;;  %v392_v37 = vadd.f32 %v882_v10, %v295_v33 }
  0xe6   :  { %v712_v39 = vpop.f32.mrf.mxu0  ;;  %v720_v40 = vpop.f32.mrf.mxu1 }
  0xe7   :  { %v407_v41 = vmul.f32 %v887_v28, %v384_v36  ;;  %v415_v42 = vmul.f32 %v887_v28, %v392_v37  ;;  %v387_v43 = vadd.f32 %v712_v39, %v882_v10  ;;  %v395_v44 = vadd.f32 %v720_v40, %v882_v10 }
  0xe8   :  { %v266_v45 = vpop.f32.mrf.mxu0  ;;  %v298_v46 = vpop.f32.mrf.mxu1  ;;  %v432_v47 = vadd.f32 %v898_v38, %v409_v34  ;;  %v440_v48 = vadd.f32 %v898_v38, %v417_v35 }
  0xe9   :  { %v410_v49 = vmul.f32 %v887_v28, %v387_v43  ;;  %v418_v50 = vmul.f32 %v887_v28, %v395_v44  ;;  %v385_v51 = vadd.f32 %v882_v10, %v266_v45  ;;  %v393_v52 = vadd.f32 %v882_v10, %v298_v46 }
  0xea   :  { %v715_v53 = vpop.f32.mrf.mxu0  ;;  %v723_v54 = vpop.f32.mrf.mxu1  ;;  %v430_v55 = vadd.f32 %v898_v38, %v407_v41  ;;  %v438_v56 = vadd.f32 %v898_v38, %v415_v42  ;;  %v448_v1 = vmax.f32 %v432_v47, 0.0  ;;  %v456_v2 = vmax.f32 %v440_v48, 0.0 }
  0xeb   :  { %v390_v57 = vadd.f32 %v715_v53, %v882_v10  ;;  %v398_v58 = vadd.f32 %v723_v54, %v882_v10  ;;  %v433_v59 = vadd.f32 %v898_v38, %v410_v49  ;;  %v441_v60 = vadd.f32 %v898_v38, %v418_v50 }
  0xec   :  { %v408_v61 = vmul.f32 %v887_v28, %v385_v51  ;;  %v416_v62 = vmul.f32 %v887_v28, %v393_v52  ;;  %v279_v63 = vpop.f32.mrf.mxu0  ;;  %v311_v0 = vpop.f32.mrf.mxu1  ;;  %v446_v13 = vmax.f32 %v430_v55, 0.0  ;;  %v454_v14 = vmax.f32 %v438_v56, 0.0 }
  0xed   :  { %v388_v3 = vadd.f32 %v882_v10, %v279_v63  ;;  %v396_v4 = vadd.f32 %v882_v10, %v311_v0  ;;  %v449_v6 = vmax.f32 %v433_v59, 0.0  ;;  %v457_v7 = vmax.f32 %v441_v60, 0.0 }
  0xee   :  { %v431_v8 = vadd.f32 %v898_v38, %v408_v61  ;;  %v439_v9 = vadd.f32 %v898_v38, %v416_v62  ;;  %v716_v11 = vpop.f32.mrf.mxu0  ;;  %v724_v12 = vpop.f32.mrf.mxu1  ;;  %v413_v15 = vmul.f32 %v887_v28, %v390_v57  ;;  %v421_v16 = vmul.f32 %v887_v28, %v398_v58 }
  0xef   :  { %v631_v17 = vpack.c.bf16 %v449_v6, %v448_v1  ;;  %v651_v18 = vpack.c.bf16 %v457_v7, %v456_v2  ;;  %v411_v22 = vmul.f32 %v887_v28, %v388_v3  ;;  %v419_v23 = vmul.f32 %v887_v28, %v396_v4 }
  0xf0   :  { %v447_v19 = vmax.f32 %v431_v8, 0.0  ;;  %v455_v5 = vmax.f32 %v439_v9, 0.0  ;;  %v282_v20 = vpop.f32.mrf.mxu0  ;;  %v314_v21 = vpop.f32.mrf.mxu1  ;;  %v391_v26 = vadd.f32 %v716_v11, %v882_v10  ;;  %v399_v27 = vadd.f32 %v724_v12, %v882_v10 }
  0xf1   :  { %670 = vst [vmem:[%s973_s7 + $0x8] sm:$0xff] %v631_v17   ;;  %674 = vst [vmem:[%s973_s7 + $0x28] sm:$0xff] %v651_v18   ;;  %v389_v29 = vadd.f32 %v882_v10, %v282_v20  ;;  %v397_v30 = vadd.f32 %v882_v10, %v314_v21  ;;  %v436_v31 = vadd.f32 %v898_v38, %v413_v15 }
  0xf2   :  { %v626_v24 = vpack.c.bf16 %v447_v19, %v446_v13  ;;  %v646_v25 = vpack.c.bf16 %v455_v5, %v454_v14  ;;  %v444_v32 = vadd.f32 %v898_v38, %v421_v16  ;;  %v414_v33 = vmul.f32 %v887_v28, %v391_v26 }
  0xf3   :  { %v422_v34 = vmul.f32 %v887_v28, %v399_v27  ;;  %v434_v35 = vadd.f32 %v898_v38, %v411_v22  ;;  %v442_v10 = vadd.f32 %v898_v38, %v419_v23  ;;  %v412_v36 = vmul.f32 %v887_v28, %v389_v29 }
  0xf4   :  { %627 = vst [vmem:[%s973_s7] sm:$0xff] %v626_v24   ;;  %673 = vst [vmem:[%s973_s7 + $0x20] sm:$0xff] %v646_v25   ;;  %v420_v37 = vmul.f32 %v887_v28, %v397_v30  ;;  %v437_v39 = vadd.f32 %v898_v38, %v414_v33  ;;  %v452_v43 = vmax.f32 %v436_v31, 0.0  ;;  %v460_v44 = vmax.f32 %v444_v32, 0.0 }
  0xf5   :  { %v445_v40 = vadd.f32 %v898_v38, %v422_v34  ;;  %v435_v41 = vadd.f32 %v898_v38, %v412_v36  ;;  %v450_v47 = vmax.f32 %v434_v35, 0.0  ;;  %v458_v48 = vmax.f32 %v442_v10, 0.0 }
  0xf6   :  { %v443_v42 = vadd.f32 %v898_v38, %v420_v37  ;;  %v453_v45 = vmax.f32 %v437_v39, 0.0 }
  0xf7   :  { %v461_v46 = vmax.f32 %v445_v40, 0.0  ;;  %v451_v49 = vmax.f32 %v435_v41, 0.0 }
  0xf8   :  { %v459_v50 = vmax.f32 %v443_v42, 0.0  ;;  %v641_v51 = vpack.c.bf16 %v453_v45, %v452_v43 }
  0xf9   :  { %v661_v52 = vpack.c.bf16 %v461_v46, %v460_v44  ;;  %v636_v53 = vpack.c.bf16 %v451_v49, %v450_v47 }
  0xfa   :  { %v656_v28 = vpack.c.bf16 %v459_v50, %v458_v48  ;;  %672 = vst [vmem:[%s973_s7 + $0x18] sm:$0xff] %v641_v51  }
  0xfb   :  { %676 = vst [vmem:[%s973_s7 + $0x38] sm:$0xff] %v661_v52   ;;  %671 = vst [vmem:[%s973_s7 + $0x10] sm:$0xff] %v636_v53  }
  0xfc   :  { %675 = vst [vmem:[%s973_s7 + $0x30] sm:$0xff] %v656_v28  }

// kernel: sfdet_densenet_forward.29
= control target key start
LH: loop header
LB: loop body
LE: loop exit
PB: predicated region body
PF: predicated region fallthrough
CT: control target
= control target key end

     0   :  { %s1744_s12 = smov 0   ;;  %s1746_s13 = smov 0   ;;  %s1918_s0 = inlined_call_operand.vmem [shape: bf16[512,256], index: 0, kind: input, shape index: {}]   ;;  %s1919_s1 = inlined_call_operand.vmem [shape: bf16[256,128], index: 1, kind: input, shape index: {}]   ;;  %s1920_s2 = inlined_call_operand.vmem [shape: f32[1,128], index: 2, kind: input, shape index: {}]   ;;  %s1921_s3 = inlined_call_operand.vmem [shape: bf16[512,128], index: 3, kind: output, shape index: {}]  }
   0x1   :  { %s1748_s14 = smov 0  }
   0x2 LB: > { %s32_s15 = sadd.s32 1, %s1718_s13  ;;  %p1267_p0 = scmp.ge.s32.totalorder %s1722_s14, 1  ;;  %s1722_s14 = sphi %s1748_s14, %s13_s14   ;;  %s1718_s13 = sphi %s1746_s13, %s1923_s13   ;;  %s1714_s12 = sphi %s1744_s12, %s1922_s12  }
   0x3   : > { %p34_p1 = scmp.ge.s32.totalorder %s32_s15, 2  ;;  %p191_p2 = scmp.lt.s32.totalorder %s1722_s14, 3 }
   0x5   : > { %s1925_s15 = smov (%p34_p1, %s32_s15), 0  ;;  %p192_p3 = pnand %p1267_p0, %p191_p2 }
   0x6   : > { %s1268_s18 = sshll.u32 (!%p192_p3), %s1714_s12, 5 }
   0x7   : > { %195 = sbr.rel (%p192_p3) target bundleno = 309 (0x135), region = 32  ;;  %p236_p4 = scmp.lt.s32.totalorder (!%p192_p3), %s1268_s18, 63 }
   0xc   : > { %v1636_v0 = vld [vmem:[%s1919_s1 + $0x78] sm:$0xff]   ;;  %v1638_v2 = vld [vmem:[%s1919_s1 + $0x70] sm:$0xff]   ;;  %v1640_v4 = vld [vmem:[%s1919_s1 + $0x68] sm:$0xff]   ;;  %s1927_s18 = smov (!%p236_p4, %s1268_s18), 63 }
   0xd   : > { %v1637_v1 = vld [vmem:[%s1919_s1 + $0x38] sm:$0xff]   ;;  %1484 = vmatprep.subr.bf16.mxu0 %v1636_v0  ;;  %1596 = vmatprep.subr.bf16.mxu1 %v1636_v0  ;;  %v1639_v3 = vld [vmem:[%s1919_s1 + $0x30] sm:$0xff]   ;;  %v1641_v5 = vld [vmem:[%s1919_s1 + $0x28] sm:$0xff]   ;;  %s1356_s6 = sshll.u32 %s1927_s18, 3  ;;  %s1272_s5 = sshll.u32 %s1927_s18, 2 }
   0xe   : > { %1485 = vmatpush3.bf16.msra.mxu0 %v1637_v1  ;;  %1604 = vmatpush3.bf16.msra.mxu1 %v1637_v1  ;;  %v1642_v6 = vld [vmem:[%s1919_s1 + $0x60] sm:$0xff]   ;;  %v1644_v8 = vld [vmem:[%s1919_s1 + $0x58] sm:$0xff]   ;;  %s1795_s11 = scalar_lea.vmem %s1918_s0, %s1356_s6  ;;  %v1646_v10 = vld [vmem:[%s1919_s1 + $0x50] sm:$0xff]   ;;  %s1863_s8 = scalar_lea.vmem %s1921_s3, %s1272_s5 }
   0xf   : > { %1486 = vmatprep.subr.bf16.mxu0 %v1638_v2  ;;  %1597 = vmatprep.subr.bf16.mxu1 %v1638_v2  ;;  %v1643_v7 = vld [vmem:[%s1919_s1 + $0x20] sm:$0xff]   ;;  %v1645_v9 = vld [vmem:[%s1919_s1 + $0x18] sm:$0xff]   ;;  %v1647_v13 = vld [vmem:[%s1919_s1 + $0x10] sm:$0xff]  }
  0x10   : > { %v1654_v11 = vld [vmem:[%s1795_s11 + $0x4] ss:$8 sps:$4 sm:$0xff]   ;;  %v1652_v18 = vld [vmem:[%s1795_s11] ss:$8 sps:$4 sm:$0xff]   ;;  %v1658_v20 = vld [vmem:[%s1795_s11 + $0x14] ss:$8 sps:$4 sm:$0xff]  }
  0x11   : > { %v1657_v12 = vld [vmem:[%s1795_s11 + $0x84] ss:$8 sps:$4 sm:$0xff]   ;;  %688 = vmatprep.mubr.bf16.mxu0 %v1654_v11  ;;  %v1655_v19 = vld [vmem:[%s1795_s11 + $0x80] ss:$8 sps:$4 sm:$0xff]   ;;  %v1660_v21 = vld [vmem:[%s1795_s11 + $0x94] ss:$8 sps:$4 sm:$0xff]  }
  0x12   : > { %1487 = vmatpush3.bf16.msra.mxu0 %v1639_v3  ;;  %1605 = vmatpush3.bf16.msra.mxu1 %v1639_v3  ;;  %v1648_v14 = vld [vmem:[%s1919_s1 + $0x48] sm:$0xff]   ;;  %v1650_v16 = vld [vmem:[%s1919_s1 + $0x40] sm:$0xff]   ;;  %v1662_v22 = vld [vmem:[%s1795_s11 + $0x10] ss:$8 sps:$4 sm:$0xff]  }
  0x13   : > { %1488 = vmatprep.subr.bf16.mxu0 %v1640_v4  ;;  %1598 = vmatprep.subr.bf16.mxu1 %v1640_v4  ;;  %v1649_v15 = vld [vmem:[%s1919_s1 + $0x8] sm:$0xff]   ;;  %v1651_v17 = vld [vmem:[%s1919_s1] sm:$0xff]   ;;  %v1663_v23 = vld [vmem:[%s1795_s11 + $0x90] ss:$8 sps:$4 sm:$0xff]  }
  0x14   : > { %752 = vmatprep.mubr.bf16.mxu1 %v1657_v12  ;;  %v1664_v24 = vld [vmem:[%s1795_s11 + $0x24] ss:$8 sps:$4 sm:$0xff]   ;;  %v1668_v26 = vld [vmem:[%s1795_s11 + $0x20] ss:$8 sps:$4 sm:$0xff]   ;;  %v1670_v28 = vld [vmem:[%s1795_s11 + $0x34] ss:$8 sps:$4 sm:$0xff]  }
  0x15   : > { %v1666_v25 = vld [vmem:[%s1795_s11 + $0xa4] ss:$8 sps:$4 sm:$0xff]   ;;  %v1669_v27 = vld [vmem:[%s1795_s11 + $0xa0] ss:$8 sps:$4 sm:$0xff]   ;;  %v1672_v29 = vld [vmem:[%s1795_s11 + $0xb4] ss:$8 sps:$4 sm:$0xff]  }
  0x16   : > { %1489 = vmatpush3.bf16.msra.mxu0 %v1641_v5  ;;  %1606 = vmatpush3.bf16.msra.mxu1 %v1641_v5  ;;  %v1674_v30 = vld [vmem:[%s1795_s11 + $0x30] ss:$8 sps:$4 sm:$0xff]   ;;  %v1676_v32 = vld [vmem:[%s1795_s11 + $0x44] ss:$8 sps:$4 sm:$0xff]   ;;  %v1680_v34 = vld [vmem:[%s1795_s11 + $0x40] ss:$8 sps:$4 sm:$0xff]  }
  0x17   : > { %1490 = vmatprep.subr.bf16.mxu0 %v1642_v6  ;;  %1599 = vmatprep.subr.bf16.mxu1 %v1642_v6  ;;  %v1675_v31 = vld [vmem:[%s1795_s11 + $0xb0] ss:$8 sps:$4 sm:$0xff]   ;;  %v1678_v33 = vld [vmem:[%s1795_s11 + $0xc4] ss:$8 sps:$4 sm:$0xff]   ;;  %v1681_v35 = vld [vmem:[%s1795_s11 + $0xc0] ss:$8 sps:$4 sm:$0xff]  }
  0x18   : > { %v1682_v36 = vld [vmem:[%s1795_s11 + $0x54] ss:$8 sps:$4 sm:$0xff]   ;;  %v1686_v38 = vld [vmem:[%s1795_s11 + $0x50] ss:$8 sps:$4 sm:$0xff]   ;;  %v1688_v40 = vld [vmem:[%s1795_s11 + $0x64] ss:$8 sps:$4 sm:$0xff]  }
  0x19   : > { %v1684_v37 = vld [vmem:[%s1795_s11 + $0xd4] ss:$8 sps:$4 sm:$0xff]   ;;  %v1687_v39 = vld [vmem:[%s1795_s11 + $0xd0] ss:$8 sps:$4 sm:$0xff]   ;;  %v1690_v41 = vld [vmem:[%s1795_s11 + $0xe4] ss:$8 sps:$4 sm:$0xff]  }
  0x1a   : > { %1491 = vmatpush3.bf16.msra.mxu0 %v1643_v7  ;;  %1607 = vmatpush3.bf16.msra.mxu1 %v1643_v7  ;;  %v1692_v42 = vld [vmem:[%s1795_s11 + $0x60] ss:$8 sps:$4 sm:$0xff]   ;;  %v1694_v44 = vld [vmem:[%s1795_s11 + $0x74] ss:$8 sps:$4 sm:$0xff]   ;;  %v1698_v46 = vld [vmem:[%s1795_s11 + $0x70] ss:$8 sps:$4 sm:$0xff]  }
  0x1b   : > { %1492 = vmatprep.subr.bf16.mxu0 %v1644_v8  ;;  %1600 = vmatprep.subr.bf16.mxu1 %v1644_v8  ;;  %v1693_v43 = vld [vmem:[%s1795_s11 + $0xe0] ss:$8 sps:$4 sm:$0xff]   ;;  %v1696_v45 = vld [vmem:[%s1795_s11 + $0xf4] ss:$8 sps:$4 sm:$0xff]   ;;  %v1699_v47 = vld [vmem:[%s1795_s11 + $0xf0] ss:$8 sps:$4 sm:$0xff]  }
  0x1c   : > { %v1853_v53 = vld [vmem:[%s1920_s2] ss:$0 sm:$0xff] }
  0x1e   : > { %1493 = vmatpush3.bf16.msra.mxu0 %v1645_v9  ;;  %1608 = vmatpush3.bf16.msra.mxu1 %v1645_v9 }
  0x1f   : > { %1494 = vmatprep.subr.bf16.mxu0 %v1646_v10  ;;  %1601 = vmatprep.subr.bf16.mxu1 %v1646_v10 }
  0x22   : > { %1495 = vmatpush3.bf16.msra.mxu0 %v1647_v13  ;;  %1609 = vmatpush3.bf16.msra.mxu1 %v1647_v13 }
  0x23   : > { %1496 = vmatprep.subr.bf16.mxu0 %v1648_v14  ;;  %1602 = vmatprep.subr.bf16.mxu1 %v1648_v14 }
  0x26   : > { %1497 = vmatpush3.bf16.msra.mxu0 %v1649_v15  ;;  %1610 = vmatpush3.bf16.msra.mxu1 %v1649_v15 }
  0x27   : > { %1498 = vmatprep.subr.bf16.mxu0 %v1650_v16  ;;  %1603 = vmatprep.subr.bf16.mxu1 %v1650_v16 }
  0x2a   : > { %1499 = vmatpush3.bf16.msra.mxu0 %v1651_v17  ;;  %1611 = vmatpush3.bf16.msra.mxu1 %v1651_v17 }
  0x2d   : > { %689 = vmatmul.mubr.bf16.vlgmr.msra.gmra.mxu0 %v1652_v18  ;;  %753 = vmatmul.mubr.bf16.vlgmr.msra.gmra.mxu1 %v1655_v19 }
  0x2e   : > { %696 = vmatprep.mubr.bf16.mxu0 %v1658_v20  ;;  %760 = vmatprep.mubr.bf16.mxu1 %v1660_v21 }
  0x35   : > { %697 = vmatmul.mubr.bf16.gmra.mxu0 %v1662_v22  ;;  %761 = vmatmul.mubr.bf16.gmra.mxu1 %v1663_v23 }
  0x36   : > { %704 = vmatprep.mubr.bf16.mxu0 %v1664_v24  ;;  %768 = vmatprep.mubr.bf16.mxu1 %v1666_v25 }
  0x3d   : > { %705 = vmatmul.mubr.bf16.gmra.mxu0 %v1668_v26  ;;  %769 = vmatmul.mubr.bf16.gmra.mxu1 %v1669_v27 }
  0x3e   : > { %712 = vmatprep.mubr.bf16.mxu0 %v1670_v28  ;;  %776 = vmatprep.mubr.bf16.mxu1 %v1672_v29 }
  0x45   : > { %713 = vmatmul.mubr.bf16.gmra.mxu0 %v1674_v30  ;;  %777 = vmatmul.mubr.bf16.gmra.mxu1 %v1675_v31 }
  0x46   : > { %720 = vmatprep.mubr.bf16.mxu0 %v1676_v32  ;;  %784 = vmatprep.mubr.bf16.mxu1 %v1678_v33 }
  0x4d   : > { %721 = vmatmul.mubr.bf16.gmra.mxu0 %v1680_v34  ;;  %785 = vmatmul.mubr.bf16.gmra.mxu1 %v1681_v35 }
  0x4e   : > { %728 = vmatprep.mubr.bf16.mxu0 %v1682_v36  ;;  %792 = vmatprep.mubr.bf16.mxu1 %v1684_v37 }
  0x55   : > { %729 = vmatmul.mubr.bf16.gmra.mxu0 %v1686_v38  ;;  %793 = vmatmul.mubr.bf16.gmra.mxu1 %v1687_v39 }
  0x56   : > { %736 = vmatprep.mubr.bf16.mxu0 %v1688_v40  ;;  %800 = vmatprep.mubr.bf16.mxu1 %v1690_v41 }
  0x5d   : > { %737 = vmatmul.mubr.bf16.gmra.mxu0 %v1692_v42  ;;  %801 = vmatmul.mubr.bf16.gmra.mxu1 %v1693_v43 }
  0x5e   : > { %744 = vmatprep.mubr.bf16.mxu0 %v1694_v44  ;;  %808 = vmatprep.mubr.bf16.mxu1 %v1696_v45 }
  0x65   : > { %745 = vmatmul.mubr.bf16.gmra.mxu0 %v1698_v46  ;;  %809 = vmatmul.mubr.bf16.gmra.mxu1 %v1699_v47 }
  0xed   : > { %v1500_v48 = vpop.f32.mrf.mxu0  ;;  %v1548_v49 = vpop.f32.mrf.mxu1 }
  0xef   : > { %v1501_v50 = vpop.f32.mrf.mxu0  ;;  %v1549_v51 = vpop.f32.mrf.mxu1 }
  0xf0   : > { %v1502_v52 = vadd.f32 %v1501_v50, %v1500_v48  ;;  %v1550_v54 = vadd.f32 %v1549_v51, %v1548_v49 }
  0xf1   : > { %v1503_v55 = vpop.f32.mrf.mxu0  ;;  %v1551_v56 = vpop.f32.mrf.mxu1 }
  0xf2   : > { %v923_v57 = vadd.f32 %v1502_v52, %v1853_v53  ;;  %v939_v58 = vadd.f32 %v1550_v54, %v1853_v53 }
  0xf3   : > { %v1504_v59 = vpop.f32.mrf.mxu0  ;;  %v1552_v60 = vpop.f32.mrf.mxu1 }
  0xf4   : > { %v1505_v61 = vadd.f32 %v1504_v59, %v1503_v55  ;;  %v1553_v62 = vadd.f32 %v1552_v60, %v1551_v56  ;;  %v955_v3 = vmax.f32 %v923_v57, 0.0  ;;  %v971_v4 = vmax.f32 %v939_v58, 0.0 }
  0xf5   : > { %v1506_v63 = vpop.f32.mrf.mxu0  ;;  %v1554_v0 = vpop.f32.mrf.mxu1 }
  0xf6   : > { %v924_v1 = vadd.f32 %v1505_v61, %v1853_v53  ;;  %v940_v2 = vadd.f32 %v1553_v62, %v1853_v53 }
  0xf7   : > { %v1507_v5 = vpop.f32.mrf.mxu0  ;;  %v1555_v6 = vpop.f32.mrf.mxu1 }
  0xf8   : > { %v956_v7 = vmax.f32 %v924_v1, 0.0  ;;  %v972_v8 = vmax.f32 %v940_v2, 0.0  ;;  %v1508_v9 = vadd.f32 %v1507_v5, %v1506_v63  ;;  %v1556_v10 = vadd.f32 %v1555_v6, %v1554_v0 }
  0xf9   : > { %v1509_v11 = vpop.f32.mrf.mxu0  ;;  %v1557_v12 = vpop.f32.mrf.mxu1 }
  0xfa   : > { %v1392_v13 = vpack.c.bf16 %v956_v7, %v955_v3  ;;  %v1432_v14 = vpack.c.bf16 %v972_v8, %v971_v4  ;;  %v925_v15 = vadd.f32 %v1508_v9, %v1853_v53  ;;  %v941_v16 = vadd.f32 %v1556_v10, %v1853_v53 }
  0xfb   : > { %v1510_v17 = vpop.f32.mrf.mxu0  ;;  %v1558_v18 = vpop.f32.mrf.mxu1 }
  0xfc   : > { %1393 = vst [vmem:[%s1863_s8] sm:$0xff] %v1392_v13   ;;  %1476 = vst [vmem:[%s1863_s8 + $0x40] sm:$0xff] %v1432_v14   ;;  %v1511_v19 = vadd.f32 %v1510_v17, %v1509_v11  ;;  %v1559_v20 = vadd.f32 %v1558_v18, %v1557_v12  ;;  %v957_v25 = vmax.f32 %v925_v15, 0.0  ;;  %v973_v26 = vmax.f32 %v941_v16, 0.0 }
  0xfd   : > { %v1512_v21 = vpop.f32.mrf.mxu0  ;;  %v1560_v22 = vpop.f32.mrf.mxu1 }
  0xfe   : > { %v926_v23 = vadd.f32 %v1511_v19, %v1853_v53  ;;  %v942_v24 = vadd.f32 %v1559_v20, %v1853_v53 }
  0xff   : > { %v1513_v27 = vpop.f32.mrf.mxu0  ;;  %v1561_v28 = vpop.f32.mrf.mxu1 }
 0x100   : > { %v958_v29 = vmax.f32 %v926_v23, 0.0  ;;  %v974_v30 = vmax.f32 %v942_v24, 0.0  ;;  %v1514_v31 = vadd.f32 %v1513_v27, %v1512_v21  ;;  %v1562_v32 = vadd.f32 %v1561_v28, %v1560_v22 }
 0x101   : > { %v1515_v33 = vpop.f32.mrf.mxu0  ;;  %v1563_v34 = vpop.f32.mrf.mxu1 }
 0x102   : > { %v1397_v35 = vpack.c.bf16 %v958_v29, %v957_v25  ;;  %v1437_v36 = vpack.c.bf16 %v974_v30, %v973_v26  ;;  %v927_v37 = vadd.f32 %v1514_v31, %v1853_v53  ;;  %v943_v38 = vadd.f32 %v1562_v32, %v1853_v53 }
 0x103   : > { %v1516_v39 = vpop.f32.mrf.mxu0  ;;  %v1564_v40 = vpop.f32.mrf.mxu1 }
 0x104   : > { %1469 = vst [vmem:[%s1863_s8 + $0x8] sm:$0xff] %v1397_v35   ;;  %1477 = vst [vmem:[%s1863_s8 + $0x48] sm:$0xff] %v1437_v36   ;;  %v1517_v41 = vadd.f32 %v1516_v39, %v1515_v33  ;;  %v1565_v42 = vadd.f32 %v1564_v40, %v1563_v34  ;;  %v959_v47 = vmax.f32 %v927_v37, 0.0  ;;  %v975_v48 = vmax.f32 %v943_v38, 0.0 }
 0x105   : > { %v1518_v43 = vpop.f32.mrf.mxu0  ;;  %v1566_v44 = vpop.f32.mrf.mxu1 }
 0x106   : > { %v928_v45 = vadd.f32 %v1517_v41, %v1853_v53  ;;  %v944_v46 = vadd.f32 %v1565_v42, %v1853_v53 }
 0x107   : > { %v1519_v49 = vpop.f32.mrf.mxu0  ;;  %v1567_v50 = vpop.f32.mrf.mxu1 }
 0x108   : > { %v960_v51 = vmax.f32 %v928_v45, 0.0  ;;  %v976_v52 = vmax.f32 %v944_v46, 0.0  ;;  %v1520_v54 = vadd.f32 %v1519_v49, %v1518_v43  ;;  %v1568_v55 = vadd.f32 %v1567_v50, %v1566_v44 }
 0x109   : > { %v1521_v56 = vpop.f32.mrf.mxu0  ;;  %v1569_v57 = vpop.f32.mrf.mxu1 }
 0x10a   : > { %v1402_v58 = vpack.c.bf16 %v960_v51, %v959_v47  ;;  %v1442_v59 = vpack.c.bf16 %v976_v52, %v975_v48  ;;  %v929_v60 = vadd.f32 %v1520_v54, %v1853_v53  ;;  %v945_v61 = vadd.f32 %v1568_v55, %v1853_v53 }
 0x10b   : > { %v1522_v62 = vpop.f32.mrf.mxu0  ;;  %v1570_v63 = vpop.f32.mrf.mxu1 }
 0x10c   : > { %1470 = vst [vmem:[%s1863_s8 + $0x10] sm:$0xff] %v1402_v58   ;;  %1478 = vst [vmem:[%s1863_s8 + $0x50] sm:$0xff] %v1442_v59   ;;  %v1523_v0 = vadd.f32 %v1522_v62, %v1521_v56  ;;  %v1571_v1 = vadd.f32 %v1570_v63, %v1569_v57  ;;  %v961_v6 = vmax.f32 %v929_v60, 0.0  ;;  %v977_v7 = vmax.f32 %v945_v61, 0.0 }
 0x10d   : > { %v1524_v2 = vpop.f32.mrf.mxu0  ;;  %v1572_v3 = vpop.f32.mrf.mxu1 }
 0x10e   : > { %v930_v4 = vadd.f32 %v1523_v0, %v1853_v53  ;;  %v946_v5 = vadd.f32 %v1571_v1, %v1853_v53 }
 0x10f   : > { %v1525_v8 = vpop.f32.mrf.mxu0  ;;  %v1573_v9 = vpop.f32.mrf.mxu1 }
 0x110   : > { %v962_v10 = vmax.f32 %v930_v4, 0.0  ;;  %v978_v11 = vmax.f32 %v946_v5, 0.0  ;;  %v1526_v12 = vadd.f32 %v1525_v8, %v1524_v2  ;;  %v1574_v13 = vadd.f32 %v1573_v9, %v1572_v3 }
 0x111   : > { %v1527_v14 = vpop.f32.mrf.mxu0  ;;  %v1575_v15 = vpop.f32.mrf.mxu1 }
 0x112   : > { %v1407_v16 = vpack.c.bf16 %v962_v10, %v961_v6  ;;  %v1447_v17 = vpack.c.bf16 %v978_v11, %v977_v7  ;;  %v931_v18 = vadd.f32 %v1526_v12, %v1853_v53  ;;  %v947_v19 = vadd.f32 %v1574_v13, %v1853_v53 }
 0x113   : > { %v1528_v20 = vpop.f32.mrf.mxu0  ;;  %v1576_v21 = vpop.f32.mrf.mxu1 }
 0x114   : > { %1471 = vst [vmem:[%s1863_s8 + $0x18] sm:$0xff] %v1407_v16   ;;  %1479 = vst [vmem:[%s1863_s8 + $0x58] sm:$0xff] %v1447_v17   ;;  %v1529_v22 = vadd.f32 %v1528_v20, %v1527_v14  ;;  %v1577_v23 = vadd.f32 %v1576_v21, %v1575_v15  ;;  %v963_v28 = vmax.f32 %v931_v18, 0.0  ;;  %v979_v29 = vmax.f32 %v947_v19, 0.0 }
 0x115   : > { %v1530_v24 = vpop.f32.mrf.mxu0  ;;  %v1578_v25 = vpop.f32.mrf.mxu1 }
 0x116   : > { %v932_v26 = vadd.f32 %v1529_v22, %v1853_v53  ;;  %v948_v27 = vadd.f32 %v1577_v23, %v1853_v53 }
 0x117   : > { %v1531_v30 = vpop.f32.mrf.mxu0  ;;  %v1579_v31 = vpop.f32.mrf.mxu1 }
 0x118   : > { %v964_v32 = vmax.f32 %v932_v26, 0.0  ;;  %v980_v33 = vmax.f32 %v948_v27, 0.0  ;;  %v1532_v34 = vadd.f32 %v1531_v30, %v1530_v24  ;;  %v1580_v35 = vadd.f32 %v1579_v31, %v1578_v25 }
 0x119   : > { %v1533_v36 = vpop.f32.mrf.mxu0  ;;  %v1581_v37 = vpop.f32.mrf.mxu1 }
 0x11a   : > { %v1412_v38 = vpack.c.bf16 %v964_v32, %v963_v28  ;;  %v1452_v39 = vpack.c.bf16 %v980_v33, %v979_v29  ;;  %v933_v40 = vadd.f32 %v1532_v34, %v1853_v53  ;;  %v949_v41 = vadd.f32 %v1580_v35, %v1853_v53 }
 0x11b   : > { %v1534_v42 = vpop.f32.mrf.mxu0  ;;  %v1582_v43 = vpop.f32.mrf.mxu1 }
 0x11c   : > { %1472 = vst [vmem:[%s1863_s8 + $0x20] sm:$0xff] %v1412_v38   ;;  %1480 = vst [vmem:[%s1863_s8 + $0x60] sm:$0xff] %v1452_v39   ;;  %v1535_v44 = vadd.f32 %v1534_v42, %v1533_v36  ;;  %v1583_v45 = vadd.f32 %v1582_v43, %v1581_v37  ;;  %v965_v50 = vmax.f32 %v933_v40, 0.0  ;;  %v981_v51 = vmax.f32 %v949_v41, 0.0 }
 0x11d   : > { %v1536_v46 = vpop.f32.mrf.mxu0  ;;  %v1584_v47 = vpop.f32.mrf.mxu1 }
 0x11e   : > { %v934_v48 = vadd.f32 %v1535_v44, %v1853_v53  ;;  %v950_v49 = vadd.f32 %v1583_v45, %v1853_v53 }
 0x11f   : > { %v1537_v52 = vpop.f32.mrf.mxu0  ;;  %v1585_v54 = vpop.f32.mrf.mxu1 }
 0x120   : > { %v966_v55 = vmax.f32 %v934_v48, 0.0  ;;  %v982_v56 = vmax.f32 %v950_v49, 0.0  ;;  %v1538_v57 = vadd.f32 %v1537_v52, %v1536_v46  ;;  %v1586_v58 = vadd.f32 %v1585_v54, %v1584_v47 }
 0x121   : > { %v1539_v59 = vpop.f32.mrf.mxu0  ;;  %v1587_v60 = vpop.f32.mrf.mxu1 }
 0x122   : > { %v1417_v61 = vpack.c.bf16 %v966_v55, %v965_v50  ;;  %v1457_v62 = vpack.c.bf16 %v982_v56, %v981_v51  ;;  %v935_v63 = vadd.f32 %v1538_v57, %v1853_v53  ;;  %v951_v0 = vadd.f32 %v1586_v58, %v1853_v53 }
 0x123   : > { %v1540_v1 = vpop.f32.mrf.mxu0  ;;  %v1588_v2 = vpop.f32.mrf.mxu1 }
 0x124   : > { %1473 = vst [vmem:[%s1863_s8 + $0x28] sm:$0xff] %v1417_v61   ;;  %1481 = vst [vmem:[%s1863_s8 + $0x68] sm:$0xff] %v1457_v62   ;;  %v1541_v3 = vadd.f32 %v1540_v1, %v1539_v59  ;;  %v1589_v4 = vadd.f32 %v1588_v2, %v1587_v60  ;;  %v967_v9 = vmax.f32 %v935_v63, 0.0  ;;  %v983_v10 = vmax.f32 %v951_v0, 0.0 }
 0x125   : > { %v1542_v5 = vpop.f32.mrf.mxu0  ;;  %v1590_v6 = vpop.f32.mrf.mxu1 }
 0x126   : > { %v936_v7 = vadd.f32 %v1541_v3, %v1853_v53  ;;  %v952_v8 = vadd.f32 %v1589_v4, %v1853_v53 }
 0x127   : > { %v1543_v11 = vpop.f32.mrf.mxu0  ;;  %v1591_v12 = vpop.f32.mrf.mxu1 }
 0x128   : > { %v968_v13 = vmax.f32 %v936_v7, 0.0  ;;  %v984_v14 = vmax.f32 %v952_v8, 0.0  ;;  %v1544_v15 = vadd.f32 %v1543_v11, %v1542_v5  ;;  %v1592_v16 = vadd.f32 %v1591_v12, %v1590_v6 }
 0x129   : > { %v1545_v17 = vpop.f32.mrf.mxu0  ;;  %v1593_v18 = vpop.f32.mrf.mxu1 }
 0x12a   : > { %v1422_v19 = vpack.c.bf16 %v968_v13, %v967_v9  ;;  %v1462_v20 = vpack.c.bf16 %v984_v14, %v983_v10  ;;  %v937_v23 = vadd.f32 %v1544_v15, %v1853_v53  ;;  %v953_v24 = vadd.f32 %v1592_v16, %v1853_v53 }
 0x12b   : > { %v1546_v21 = vpop.f32.mrf.mxu0  ;;  %v1594_v22 = vpop.f32.mrf.mxu1 }
 0x12c   : > { %1474 = vst [vmem:[%s1863_s8 + $0x30] sm:$0xff] %v1422_v19   ;;  %1482 = vst [vmem:[%s1863_s8 + $0x70] sm:$0xff] %v1462_v20   ;;  %v1547_v25 = vadd.f32 %v1546_v21, %v1545_v17  ;;  %v1595_v26 = vadd.f32 %v1594_v22, %v1593_v18  ;;  %v969_v29 = vmax.f32 %v937_v23, 0.0  ;;  %v985_v30 = vmax.f32 %v953_v24, 0.0 }
 0x12e   : > { %v938_v27 = vadd.f32 %v1547_v25, %v1853_v53  ;;  %v954_v28 = vadd.f32 %v1595_v26, %v1853_v53 }
 0x130   : > { %v970_v31 = vmax.f32 %v938_v27, 0.0  ;;  %v986_v32 = vmax.f32 %v954_v28, 0.0 }
 0x132   : > { %v1427_v33 = vpack.c.bf16 %v970_v31, %v969_v29  ;;  %v1467_v34 = vpack.c.bf16 %v986_v32, %v985_v30 }
 0x134   : > { %1475 = vst [vmem:[%s1863_s8 + $0x38] sm:$0xff] %v1427_v33   ;;  %1483 = vst [vmem:[%s1863_s8 + $0x78] sm:$0xff] %v1467_v34  }
 0x135 PF: > { %s13_s14 = sadd.s32 1, %s1722_s14   ;;  %s1922_s12 = smov %s1718_s13 }
 0x136   : > { %p10_p5 = scmp.ge.s32.totalorder %s13_s14, 4   ;;  %s1923_s13 = smov %s1925_s15 }
 0x138   :  { %12 = sbr.rel (!%p10_p5) target bundleno = 2 (0x2), region = 76 }

// kernel: sfdet_densenet_forward.34
= control target key start
LH: loop header
LB: loop body
LE: loop exit
PB: predicated region body
PF: predicated region fallthrough
CT: control target
= control target key end

     0   :  { %s826_s1 = inlined_call_operand.vmem [shape: bf16[128,128], index: 1, kind: input, shape index: {}]   ;;  %s827_s0 = inlined_call_operand.vmem [shape: bf16[128,128], index: 0, kind: input, shape index: {}]   ;;  %s828_s3 = inlined_call_operand.vmem [shape: f32[1,128], index: 3, kind: input, shape index: {}]   ;;  %s829_s4 = inlined_call_operand.vmem [shape: f32[1,128], index: 4, kind: input, shape index: {}]   ;;  %s830_s2 = inlined_call_operand.vmem [shape: f32[1,128], index: 2, kind: input, shape index: {}]   ;;  %s831_s5 = inlined_call_operand.vmem [shape: bf16[128,128], index: 5, kind: output, shape index: {}]  }
   0x1   :  { %v671_v0 = vld [vmem:[%s826_s1 + $0x38] sm:$0xff]   ;;  %v672_v1 = vld [vmem:[%s826_s1 + $0x30] sm:$0xff]   ;;  %v673_v2 = vld [vmem:[%s826_s1 + $0x28] sm:$0xff]  }
   0x2   :  { %623 = vmatprep.subr.bf16.mxu0 %v671_v0  ;;  %655 = vmatprep.subr.bf16.mxu1 %v671_v0  ;;  %v674_v3 = vld [vmem:[%s826_s1 + $0x20] sm:$0xff]   ;;  %v593_v9 = vld [vmem:[%s827_s0 + $0x8] sm:$0xff]   ;;  %v594_v16 = vld [vmem:[%s827_s0 + $0x10] sm:$0xff]  }
   0x3   :  { %624 = vmatpush3.bf16.msra.mxu0 %v671_v0  ;;  %663 = vmatpush3.bf16.msra.mxu1 %v671_v0  ;;  %v522_v4 = vld [vmem:[%s827_s0] sm:$0xff]   ;;  %v597_v13 = vld [vmem:[%s827_s0 + $0x28] sm:$0xff]   ;;  %v675_v17 = vld [vmem:[%s826_s1 + $0x18] sm:$0xff]   ;;  %v527_v20 = vunpack.c.l.bf16 %v593_v9  ;;  %v528_v21 = vunpack.c.h.bf16 %v593_v9  ;;  %v531_v28 = vunpack.c.l.bf16 %v594_v16  ;;  %v532_v40 = vunpack.c.h.bf16 %v594_v16 }
   0x4   :  { %625 = vmatprep.subr.bf16.mxu0 %v672_v1  ;;  %656 = vmatprep.subr.bf16.mxu1 %v672_v1  ;;  %v727_v5 = vld [vmem:[%s828_s3] ss:$0 sm:$0xff]  ;;  %v523_v6 = vunpack.c.l.bf16 %v522_v4  ;;  %v524_v7 = vunpack.c.h.bf16 %v522_v4  ;;  %v543_v24 = vunpack.c.l.bf16 %v597_v13  ;;  %v544_v25 = vunpack.c.h.bf16 %v597_v13  ;;  %v598_v31 = vld [vmem:[%s827_s0 + $0x30] sm:$0xff]   ;;  %v595_v44 = vld [vmem:[%s827_s0 + $0x18] sm:$0xff]  }
   0x5   :  { %v596_v8 = vld [vmem:[%s827_s0 + $0x20] sm:$0xff]   ;;  %v676_v32 = vld [vmem:[%s826_s1 + $0x10] sm:$0xff]   ;;  %v82_v35 = vmul.f32 %v527_v20, %v727_v5  ;;  %v83_v36 = vmul.f32 %v528_v21, %v727_v5  ;;  %v84_v42 = vmul.f32 %v531_v28, %v727_v5  ;;  %v547_v43 = vunpack.c.l.bf16 %v598_v31  ;;  %v599_v47 = vld [vmem:[%s827_s0 + $0x38] sm:$0xff]  }
   0x6   :  { %v738_v10 = vld [vmem:[%s829_s4] ss:$0 sm:$0xff]  ;;  %v539_v11 = vunpack.c.l.bf16 %v596_v8  ;;  %v540_v12 = vunpack.c.h.bf16 %v596_v8  ;;  %v80_v14 = vmul.f32 %v523_v6, %v727_v5  ;;  %v81_v15 = vmul.f32 %v524_v7, %v727_v5  ;;  %v677_v48 = vld [vmem:[%s826_s1 + $0x8] sm:$0xff]  }
   0x7   :  { %626 = vmatpush3.bf16.msra.mxu0 %v672_v1  ;;  %664 = vmatpush3.bf16.msra.mxu1 %v672_v1  ;;  %v90_v38 = vmul.f32 %v543_v24, %v727_v5  ;;  %v91_v39 = vmul.f32 %v544_v25, %v727_v5  ;;  %v85_v45 = vmul.f32 %v532_v40, %v727_v5  ;;  %v548_v46 = vunpack.c.h.bf16 %v598_v31  ;;  %v678_v63 = vld [vmem:[%s826_s1] sm:$0xff]  }
   0x8   :  { %627 = vmatprep.subr.bf16.mxu0 %v673_v2  ;;  %657 = vmatprep.subr.bf16.mxu1 %v673_v2  ;;  %v88_v18 = vmul.f32 %v539_v11, %v727_v5  ;;  %v89_v19 = vmul.f32 %v540_v12, %v727_v5  ;;  %v103_v22 = vadd.f32 %v738_v10, %v80_v14  ;;  %v535_v55 = vunpack.c.l.bf16 %v595_v44 }
   0x9   :  { %v104_v23 = vadd.f32 %v738_v10, %v81_v15  ;;  %v105_v49 = vadd.f32 %v738_v10, %v82_v35  ;;  %v106_v50 = vadd.f32 %v738_v10, %v83_v36  ;;  %v92_v51 = vmul.f32 %v547_v43, %v727_v5 }
   0xa   :  { %v111_v26 = vadd.f32 %v738_v10, %v88_v18  ;;  %v112_v27 = vadd.f32 %v738_v10, %v89_v19  ;;  %v119_v29 = vmax.f32 %v103_v22, 0.0  ;;  %v113_v52 = vadd.f32 %v738_v10, %v90_v38 }
   0xb   :  { %628 = vmatpush3.bf16.msra.mxu0 %v673_v2  ;;  %665 = vmatpush3.bf16.msra.mxu1 %v673_v2  ;;  %v120_v30 = vmax.f32 %v104_v23, 0.0  ;;  %v114_v53 = vadd.f32 %v738_v10, %v91_v39  ;;  %v93_v54 = vmul.f32 %v548_v46, %v727_v5  ;;  %v107_v56 = vadd.f32 %v738_v10, %v84_v42 }
   0xc   :  { %629 = vmatprep.subr.bf16.mxu0 %v674_v3  ;;  %658 = vmatprep.subr.bf16.mxu1 %v674_v3  ;;  %v127_v33 = vmax.f32 %v111_v26, 0.0  ;;  %v128_v34 = vmax.f32 %v112_v27, 0.0  ;;  %v536_v57 = vunpack.c.h.bf16 %v595_v44  ;;  %v551_v58 = vunpack.c.l.bf16 %v599_v47 }
   0xd   :  { %v135_v37 = vpack.c.bf16 %v120_v30, %v119_v29  ;;  %v552_v59 = vunpack.c.h.bf16 %v599_v47  ;;  %v108_v60 = vadd.f32 %v738_v10, %v85_v45  ;;  %v115_v61 = vadd.f32 %v738_v10, %v92_v51 }
   0xe   :  { %v139_v41 = vpack.c.bf16 %v128_v34, %v127_v33  ;;  %v116_v62 = vadd.f32 %v738_v10, %v93_v54  ;;  %v121_v0 = vmax.f32 %v105_v49, 0.0  ;;  %v122_v1 = vmax.f32 %v106_v50, 0.0 }
   0xf   :  { %630 = vmatpush3.bf16.msra.mxu0 %v674_v3  ;;  %666 = vmatpush3.bf16.msra.mxu1 %v674_v3  ;;  %v129_v2 = vmax.f32 %v113_v52, 0.0  ;;  %v130_v3 = vmax.f32 %v114_v53, 0.0  ;;  %v86_v4 = vmul.f32 %v535_v55, %v727_v5  ;;  %v87_v6 = vmul.f32 %v536_v57, %v727_v5 }
  0x10   :  { %631 = vmatprep.subr.bf16.mxu0 %v675_v17  ;;  %659 = vmatprep.subr.bf16.mxu1 %v675_v17  ;;  %v94_v7 = vmul.f32 %v551_v58, %v727_v5  ;;  %v95_v8 = vmul.f32 %v552_v59, %v727_v5  ;;  %v123_v9 = vmax.f32 %v107_v56, 0.0  ;;  %v124_v11 = vmax.f32 %v108_v60, 0.0 }
  0x11   :  { %639 = vmatprep.mubr.bf16.mxu0 %v135_v37  ;;  %647 = vmatprep.mubr.bf16.mxu1 %v139_v41  ;;  %v131_v12 = vmax.f32 %v115_v61, 0.0  ;;  %v132_v13 = vmax.f32 %v116_v62, 0.0  ;;  %v136_v14 = vpack.c.bf16 %v122_v1, %v121_v0  ;;  %v140_v15 = vpack.c.bf16 %v130_v3, %v129_v2 }
  0x12   :  { %v109_v16 = vadd.f32 %v738_v10, %v86_v4  ;;  %v117_v18 = vadd.f32 %v738_v10, %v94_v7  ;;  %v118_v19 = vadd.f32 %v738_v10, %v95_v8  ;;  %v137_v5 = vpack.c.bf16 %v124_v11, %v123_v9 }
  0x13   :  { %632 = vmatpush3.bf16.msra.mxu0 %v675_v17  ;;  %667 = vmatpush3.bf16.msra.mxu1 %v675_v17  ;;  %v110_v17 = vadd.f32 %v738_v10, %v87_v6  ;;  %v141_v20 = vpack.c.bf16 %v132_v13, %v131_v12  ;;  %v488_v10 = vld [vmem:[%s830_s2] ss:$0 sm:$0xff] }
  0x14   :  { %633 = vmatprep.subr.bf16.mxu0 %v676_v32  ;;  %660 = vmatprep.subr.bf16.mxu1 %v676_v32  ;;  %v125_v21 = vmax.f32 %v109_v16, 0.0  ;;  %v133_v23 = vmax.f32 %v117_v18, 0.0  ;;  %v134_v24 = vmax.f32 %v118_v19, 0.0 }
  0x15   :  { %v126_v22 = vmax.f32 %v110_v17, 0.0 }
  0x16   :  { %v142_v26 = vpack.c.bf16 %v134_v24, %v133_v23 }
  0x17   :  { %634 = vmatpush3.bf16.msra.mxu0 %v676_v32  ;;  %668 = vmatpush3.bf16.msra.mxu1 %v676_v32  ;;  %v138_v25 = vpack.c.bf16 %v126_v22, %v125_v21 }
  0x18   :  { %635 = vmatprep.subr.bf16.mxu0 %v677_v48  ;;  %661 = vmatprep.subr.bf16.mxu1 %v677_v48 }
  0x1b   :  { %636 = vmatpush3.bf16.msra.mxu0 %v677_v48  ;;  %669 = vmatpush3.bf16.msra.mxu1 %v677_v48 }
  0x1c   :  { %637 = vmatprep.subr.bf16.mxu0 %v678_v63  ;;  %662 = vmatprep.subr.bf16.mxu1 %v678_v63 }
  0x1f   :  { %638 = vmatpush3.bf16.msra.mxu0 %v678_v63  ;;  %670 = vmatpush3.bf16.msra.mxu1 %v678_v63 }
  0x22   :  { %640 = vmatmul.mubr.bf16.vlgmr.msra.gmra.mxu0 %v136_v14  ;;  %648 = vmatmul.mubr.bf16.vlgmr.msra.gmra.mxu1 %v140_v15 }
  0x23   :  { %643 = vmatprep.mubr.bf16.mxu0 %v137_v5  ;;  %651 = vmatprep.mubr.bf16.mxu1 %v141_v20 }
  0x2a   :  { %644 = vmatmul.mubr.bf16.gmra.mxu0 %v138_v25  ;;  %652 = vmatmul.mubr.bf16.gmra.mxu1 %v142_v26 }
  0xe2   :  { %v641_v27 = vpop.f32.mrf.mxu0  ;;  %v649_v28 = vpop.f32.mrf.mxu1 }
  0xe3   :  { %v380_v33 = vadd.f32 %v641_v27, %v488_v10  ;;  %v388_v34 = vadd.f32 %v649_v28, %v488_v10 }
  0xe4   :  { %v257_v29 = vpop.f32.mrf.mxu0  ;;  %v289_v30 = vpop.f32.mrf.mxu1 }
  0xe5   :  { %v378_v37 = vadd.f32 %v488_v10, %v257_v29  ;;  %v386_v38 = vadd.f32 %v488_v10, %v289_v30 }
  0xe6   :  { %v642_v31 = vpop.f32.mrf.mxu0  ;;  %v650_v32 = vpop.f32.mrf.mxu1 }
  0xe7   :  { %v381_v35 = vadd.f32 %v642_v31, %v488_v10  ;;  %v389_v36 = vadd.f32 %v650_v32, %v488_v10 }
  0xe8   :  { %v260_v39 = vpop.f32.mrf.mxu0  ;;  %v292_v40 = vpop.f32.mrf.mxu1 }
  0xe9   :  { %v561_v41 = vpack.c.bf16 %v381_v35, %v380_v33  ;;  %v581_v42 = vpack.c.bf16 %v389_v36, %v388_v34  ;;  %v379_v43 = vadd.f32 %v488_v10, %v260_v39  ;;  %v387_v44 = vadd.f32 %v488_v10, %v292_v40 }
  0xea   :  { %v645_v45 = vpop.f32.mrf.mxu0  ;;  %v653_v46 = vpop.f32.mrf.mxu1 }
  0xeb   :  { %600 = vst [vmem:[%s831_s5 + $0x8] sm:$0xff] %v561_v41   ;;  %604 = vst [vmem:[%s831_s5 + $0x28] sm:$0xff] %v581_v42   ;;  %v556_v47 = vpack.c.bf16 %v379_v43, %v378_v37  ;;  %v576_v48 = vpack.c.bf16 %v387_v44, %v386_v38  ;;  %v384_v53 = vadd.f32 %v645_v45, %v488_v10 }
  0xec   :  { %v273_v49 = vpop.f32.mrf.mxu0  ;;  %v305_v50 = vpop.f32.mrf.mxu1  ;;  %v392_v54 = vadd.f32 %v653_v46, %v488_v10 }
  0xed   :  { %557 = vst [vmem:[%s831_s5] sm:$0xff] %v556_v47   ;;  %603 = vst [vmem:[%s831_s5 + $0x20] sm:$0xff] %v576_v48   ;;  %v382_v57 = vadd.f32 %v488_v10, %v273_v49  ;;  %v390_v58 = vadd.f32 %v488_v10, %v305_v50 }
  0xee   :  { %v646_v51 = vpop.f32.mrf.mxu0  ;;  %v654_v52 = vpop.f32.mrf.mxu1 }
  0xef   :  { %v385_v55 = vadd.f32 %v646_v51, %v488_v10  ;;  %v393_v56 = vadd.f32 %v654_v52, %v488_v10 }
  0xf0   :  { %v276_v59 = vpop.f32.mrf.mxu0  ;;  %v308_v60 = vpop.f32.mrf.mxu1 }
  0xf1   :  { %v571_v61 = vpack.c.bf16 %v385_v55, %v384_v53  ;;  %v591_v62 = vpack.c.bf16 %v393_v56, %v392_v54  ;;  %v383_v63 = vadd.f32 %v488_v10, %v276_v59  ;;  %v391_v0 = vadd.f32 %v488_v10, %v308_v60 }
  0xf3   :  { %602 = vst [vmem:[%s831_s5 + $0x18] sm:$0xff] %v571_v61   ;;  %606 = vst [vmem:[%s831_s5 + $0x38] sm:$0xff] %v591_v62   ;;  %v566_v1 = vpack.c.bf16 %v383_v63, %v382_v57  ;;  %v586_v2 = vpack.c.bf16 %v391_v0, %v390_v58 }
  0xf5   :  { %601 = vst [vmem:[%s831_s5 + $0x10] sm:$0xff] %v566_v1   ;;  %605 = vst [vmem:[%s831_s5 + $0x30] sm:$0xff] %v586_v2  }

// kernel: sfdet_densenet_forward.35
= control target key start
LH: loop header
LB: loop body
LE: loop exit
PB: predicated region body
PF: predicated region fallthrough
CT: control target
= control target key end

     0   :  { %s434_s1 = inlined_call_operand.vmem [shape: bf16[128,128], index: 1, kind: input, shape index: {}]   ;;  %s435_s0 = inlined_call_operand.vmem [shape: bf16[32,128], index: 0, kind: input, shape index: {}]   ;;  %s436_s3 = inlined_call_operand.vmem [shape: f32[1,128], index: 3, kind: input, shape index: {}]   ;;  %s437_s4 = inlined_call_operand.vmem [shape: f32[1,128], index: 4, kind: input, shape index: {}]   ;;  %s438_s2 = inlined_call_operand.vmem [shape: f32[1,128], index: 2, kind: input, shape index: {}]   ;;  %s439_s5 = inlined_call_operand.vmem [shape: f32[1,128], index: 5, kind: input, shape index: {}]   ;;  %s440_s6 = inlined_call_operand.vmem [shape: f32[1,128], index: 6, kind: input, shape index: {}]   ;;  %s441_s7 = inlined_call_operand.vmem [shape: bf16[32,128], index: 7, kind: output, shape index: {}]  }
   0x1   :  { %v335_v0 = vld [vmem:[%s434_s1 + $0x38] sm:$0xff]   ;;  %v336_v1 = vld [vmem:[%s434_s1 + $0x30] sm:$0xff]   ;;  %v337_v2 = vld [vmem:[%s434_s1 + $0x28] sm:$0xff]  }
   0x2   :  { %315 = vmatprep.subr.bf16.mxu0 %v335_v0  ;;  %v338_v3 = vld [vmem:[%s434_s1 + $0x20] sm:$0xff]   ;;  %v303_v9 = vld [vmem:[%s435_s0 + $0x8] sm:$0xff]   ;;  %v339_v12 = vld [vmem:[%s434_s1 + $0x18] sm:$0xff]  }
   0x3   :  { %316 = vmatpush3.bf16.msra.mxu0 %v335_v0  ;;  %v286_v4 = vld [vmem:[%s435_s0] sm:$0xff]   ;;  %v291_v15 = vunpack.c.l.bf16 %v303_v9  ;;  %v292_v16 = vunpack.c.h.bf16 %v303_v9  ;;  %v340_v19 = vld [vmem:[%s434_s1 + $0x10] sm:$0xff]   ;;  %v341_v23 = vld [vmem:[%s434_s1 + $0x8] sm:$0xff]  }
   0x4   :  { %317 = vmatprep.subr.bf16.mxu0 %v336_v1  ;;  %v264_v5 = vld [vmem:[%s436_s3] ss:$0 sm:$0xff]  ;;  %v287_v6 = vunpack.c.l.bf16 %v286_v4  ;;  %v288_v7 = vunpack.c.h.bf16 %v286_v4 }
   0x5   :  { %v265_v8 = vld [vmem:[%s437_s4] ss:$0 sm:$0xff]  ;;  %v52_v21 = vmul.f32 %v291_v15, %v264_v5  ;;  %v53_v22 = vmul.f32 %v292_v16, %v264_v5 }
   0x6   :  { %v50_v10 = vmul.f32 %v287_v6, %v264_v5  ;;  %v51_v11 = vmul.f32 %v288_v7, %v264_v5  ;;  %v342_v26 = vld [vmem:[%s434_s1] sm:$0xff]  }
   0x7   :  { %318 = vmatpush3.bf16.msra.mxu0 %v336_v1  ;;  %v63_v24 = vadd.f32 %v265_v8, %v52_v21  ;;  %v64_v25 = vadd.f32 %v265_v8, %v53_v22  ;;  %v274_v30 = vld [vmem:[%s438_s2] ss:$0 sm:$0xff] }
   0x8   :  { %319 = vmatprep.subr.bf16.mxu0 %v337_v2  ;;  %v61_v13 = vadd.f32 %v265_v8, %v50_v10  ;;  %v62_v14 = vadd.f32 %v265_v8, %v51_v11  ;;  %v275_v32 = vld [vmem:[%s439_s5] ss:$0 sm:$0xff] }
   0x9   :  { %v67_v27 = vmax.f32 %v63_v24, 0.0  ;;  %v68_v28 = vmax.f32 %v64_v25, 0.0  ;;  %v276_v37 = vld [vmem:[%s440_s6] ss:$0 sm:$0xff] }
   0xa   :  { %v65_v17 = vmax.f32 %v61_v13, 0.0  ;;  %v66_v18 = vmax.f32 %v62_v14, 0.0 }
   0xb   :  { %320 = vmatpush3.bf16.msra.mxu0 %v337_v2  ;;  %v70_v29 = vpack.c.bf16 %v68_v28, %v67_v27 }
   0xc   :  { %321 = vmatprep.subr.bf16.mxu0 %v338_v3  ;;  %v69_v20 = vpack.c.bf16 %v66_v18, %v65_v17 }
   0xe   :  { %331 = vmatprep.mubr.bf16.mxu0 %v69_v20 }
   0xf   :  { %322 = vmatpush3.bf16.msra.mxu0 %v338_v3 }
  0x10   :  { %323 = vmatprep.subr.bf16.mxu0 %v339_v12 }
  0x13   :  { %324 = vmatpush3.bf16.msra.mxu0 %v339_v12 }
  0x14   :  { %325 = vmatprep.subr.bf16.mxu0 %v340_v19 }
  0x17   :  { %326 = vmatpush3.bf16.msra.mxu0 %v340_v19 }
  0x18   :  { %327 = vmatprep.subr.bf16.mxu0 %v341_v23 }
  0x1b   :  { %328 = vmatpush3.bf16.msra.mxu0 %v341_v23 }
  0x1c   :  { %329 = vmatprep.subr.bf16.mxu0 %v342_v26 }
  0x1f   :  { %330 = vmatpush3.bf16.msra.mxu0 %v342_v26 }
  0x22   :  { %332 = vmatmul.mubr.bf16.vlgmr.msra.gmra.mxu0 %v70_v29 }
  0xe2   :  { %v333_v31 = vpop.f32.mrf.mxu0 }
  0xe3   :  { %v212_v33 = vadd.f32 %v333_v31, %v274_v30 }
  0xe4   :  { %v173_v34 = vpop.f32.mrf.mxu0 }
  0xe5   :  { %v223_v35 = vmul.f32 %v275_v32, %v212_v33  ;;  %v210_v36 = vadd.f32 %v274_v30, %v173_v34 }
  0xe6   :  { %v334_v38 = vpop.f32.mrf.mxu0 }
  0xe7   :  { %v221_v39 = vmul.f32 %v275_v32, %v210_v36  ;;  %v213_v40 = vadd.f32 %v334_v38, %v274_v30  ;;  %v234_v42 = vadd.f32 %v276_v37, %v223_v35 }
  0xe8   :  { %v176_v41 = vpop.f32.mrf.mxu0 }
  0xe9   :  { %v224_v43 = vmul.f32 %v275_v32, %v213_v40  ;;  %v211_v44 = vadd.f32 %v274_v30, %v176_v41  ;;  %v232_v45 = vadd.f32 %v276_v37, %v221_v39  ;;  %v238_v48 = vmax.f32 %v234_v42, 0.0 }
  0xeb   :  { %v235_v46 = vadd.f32 %v276_v37, %v224_v43  ;;  %v222_v47 = vmul.f32 %v275_v32, %v211_v44  ;;  %v236_v51 = vmax.f32 %v232_v45, 0.0 }
  0xed   :  { %v239_v49 = vmax.f32 %v235_v46, 0.0  ;;  %v233_v50 = vadd.f32 %v276_v37, %v222_v47 }
  0xef   :  { %v301_v52 = vpack.c.bf16 %v239_v49, %v238_v48  ;;  %v237_v53 = vmax.f32 %v233_v50, 0.0 }
  0xf1   :  { %304 = vst [vmem:[%s441_s7 + $0x8] sm:$0xff] %v301_v52   ;;  %v296_v54 = vpack.c.bf16 %v237_v53, %v236_v51 }
  0xf3   :  { %297 = vst [vmem:[%s441_s7] sm:$0xff] %v296_v54  }

// kernel: sfdet_densenet_forward.31
= control target key start
LH: loop header
LB: loop body
LE: loop exit
PB: predicated region body
PF: predicated region fallthrough
CT: control target
= control target key end

     0   :  { %s3037_s1 = inlined_call_operand.vmem [shape: bf16[1152,128], index: 1, kind: input, shape index: {}]   ;;  %s3038_s0 = inlined_call_operand.vmem [shape: bf16[128,1152], index: 0, kind: input, shape index: {}]   ;;  %s3039_s2 = inlined_call_operand.vmem [shape: f32[1,128], index: 2, kind: input, shape index: {}]   ;;  %s3040_s3 = inlined_call_operand.vmem [shape: bf16[128,128], index: 3, kind: output, shape index: {}]  }
   0x1   :  { %v2262_v0 = vld [vmem:[%s3037_s1 + $0x78] sm:$0xff]   ;;  %v2266_v4 = vld [vmem:[%s3037_s1 + $0x70] sm:$0xff]   ;;  %v2270_v8 = vld [vmem:[%s3037_s1 + $0x68] sm:$0xff]  }
   0x2   :  { %v2263_v1 = vld [vmem:[%s3037_s1 + $0xf8] sm:$0xff]   ;;  %1942 = vmatprep.subr.bf16.mxu0 %v2262_v0  ;;  %v2267_v5 = vld [vmem:[%s3037_s1 + $0xf0] sm:$0xff]   ;;  %v2271_v9 = vld [vmem:[%s3037_s1 + $0xe8] sm:$0xff]  }
   0x3   :  { %v2264_v2 = vld [vmem:[%s3037_s1 + $0x38] sm:$0xff]   ;;  %2006 = vmatprep.subr.bf16.mxu1 %v2263_v1  ;;  %v2268_v6 = vld [vmem:[%s3037_s1 + $0x30] sm:$0xff]   ;;  %v2272_v10 = vld [vmem:[%s3037_s1 + $0x28] sm:$0xff]  }
   0x4   :  { %v2265_v3 = vld [vmem:[%s3037_s1 + $0xb8] sm:$0xff]   ;;  %1943 = vmatpush3.bf16.msra.mxu0 %v2264_v2  ;;  %v2269_v7 = vld [vmem:[%s3037_s1 + $0xb0] sm:$0xff]   ;;  %v2273_v11 = vld [vmem:[%s3037_s1 + $0xa8] sm:$0xff]  }
   0x5   :  { %2007 = vmatpush3.bf16.msra.mxu1 %v2265_v3  ;;  %1944 = vmatprep.subr.bf16.mxu0 %v2266_v4  ;;  %v2274_v12 = vld [vmem:[%s3037_s1 + $0x60] sm:$0xff]   ;;  %v2278_v16 = vld [vmem:[%s3037_s1 + $0x58] sm:$0xff]   ;;  %v2282_v20 = vld [vmem:[%s3037_s1 + $0x50] sm:$0xff]  }
   0x6   :  { %2008 = vmatprep.subr.bf16.mxu1 %v2267_v5  ;;  %v2275_v13 = vld [vmem:[%s3037_s1 + $0xe0] sm:$0xff]   ;;  %v2279_v17 = vld [vmem:[%s3037_s1 + $0xd8] sm:$0xff]   ;;  %v2283_v21 = vld [vmem:[%s3037_s1 + $0xd0] sm:$0xff]  }
   0x7   :  { %v2276_v14 = vld [vmem:[%s3037_s1 + $0x20] sm:$0xff]   ;;  %v2280_v18 = vld [vmem:[%s3037_s1 + $0x18] sm:$0xff]   ;;  %v2284_v22 = vld [vmem:[%s3037_s1 + $0x10] sm:$0xff]  }
   0x8   :  { %1945 = vmatpush3.bf16.msra.mxu0 %v2268_v6  ;;  %v2277_v15 = vld [vmem:[%s3037_s1 + $0xa0] sm:$0xff]   ;;  %v2281_v19 = vld [vmem:[%s3037_s1 + $0x98] sm:$0xff]   ;;  %v2285_v23 = vld [vmem:[%s3037_s1 + $0x90] sm:$0xff]  }
   0x9   :  { %2009 = vmatpush3.bf16.msra.mxu1 %v2269_v7  ;;  %1946 = vmatprep.subr.bf16.mxu0 %v2270_v8  ;;  %v2286_v24 = vld [vmem:[%s3037_s1 + $0x48] sm:$0xff]   ;;  %v2290_v28 = vld [vmem:[%s3037_s1 + $0x40] sm:$0xff]   ;;  %v2300_v36 = vld [vmem:[%s3037_s1 + $0x178] sm:$0xff]  }
   0xa   :  { %2010 = vmatprep.subr.bf16.mxu1 %v2271_v9  ;;  %v2287_v25 = vld [vmem:[%s3037_s1 + $0xc8] sm:$0xff]   ;;  %v2291_v29 = vld [vmem:[%s3037_s1 + $0xc0] sm:$0xff]   ;;  %v2301_v37 = vld [vmem:[%s3037_s1 + $0x1f8] sm:$0xff]  }
   0xb   :  { %v2288_v26 = vld [vmem:[%s3037_s1 + $0x8] sm:$0xff]   ;;  %v2292_v30 = vld [vmem:[%s3037_s1] sm:$0xff]   ;;  %v2302_v38 = vld [vmem:[%s3037_s1 + $0x138] sm:$0xff]  }
   0xc   :  { %1947 = vmatpush3.bf16.msra.mxu0 %v2272_v10  ;;  %v2289_v27 = vld [vmem:[%s3037_s1 + $0x88] sm:$0xff]   ;;  %v2293_v31 = vld [vmem:[%s3037_s1 + $0x80] sm:$0xff]   ;;  %v2303_v39 = vld [vmem:[%s3037_s1 + $0x1b8] sm:$0xff]  }
   0xd   :  { %2011 = vmatpush3.bf16.msra.mxu1 %v2273_v11  ;;  %1948 = vmatprep.subr.bf16.mxu0 %v2274_v12  ;;  %v2294_v32 = vld [vmem:[%s3038_s0] ss:$36 sps:$4 sm:$0xff]   ;;  %v2297_v34 = vld [vmem:[%s3038_s0 + $0x8] ss:$36 sps:$4 sm:$0xff]   ;;  %v2306_v41 = vld [vmem:[%s3038_s0 + $0x54] ss:$36 sps:$4 sm:$0xff]  }
   0xe   :  { %2012 = vmatprep.subr.bf16.mxu1 %v2275_v13  ;;  %v2296_v33 = vld [vmem:[%s3038_s0 + $0x4] ss:$36 sps:$4 sm:$0xff]   ;;  %v2299_v35 = vld [vmem:[%s3038_s0 + $0xc] ss:$36 sps:$4 sm:$0xff]   ;;  %v2314_v48 = vld [vmem:[%s3038_s0 + $0x94] ss:$36 sps:$4 sm:$0xff]  }
   0xf   :  { %1107 = vmatprep.mubr.bf16.mxu0 %v2296_v33  ;;  %1204 = vmatprep.mubr.bf16.mxu1 %v2299_v35  ;;  %v2304_v40 = vld [vmem:[%s3038_s0 + $0x4c] ss:$36 sps:$4 sm:$0xff]   ;;  %v2316_v49 = vld [vmem:[%s3038_s0 + $0x9c] ss:$36 sps:$4 sm:$0xff]   ;;  %v2326_v57 = vld [vmem:[%s3038_s0 + $0xe4] ss:$36 sps:$4 sm:$0xff]  }
  0x10   :  { %1949 = vmatpush3.bf16.msra.mxu0 %v2276_v14  ;;  %v2308_v42 = vld [vmem:[%s3038_s0 + $0x48] ss:$36 sps:$4 sm:$0xff]   ;;  %v2309_v43 = vld [vmem:[%s3038_s0 + $0x50] ss:$36 sps:$4 sm:$0xff]   ;;  %v2319_v51 = vld [vmem:[%s3038_s0 + $0x98] ss:$36 sps:$4 sm:$0xff]  }
  0x11   :  { %2013 = vmatpush3.bf16.msra.mxu1 %v2277_v15  ;;  %1950 = vmatprep.subr.bf16.mxu0 %v2278_v16  ;;  %v2310_v44 = vld [vmem:[%s3037_s1 + $0x170] sm:$0xff]   ;;  %v2320_v52 = vld [vmem:[%s3037_s1 + $0x168] sm:$0xff]   ;;  %v2324_v56 = vld [vmem:[%s3038_s0 + $0xdc] ss:$36 sps:$4 sm:$0xff]  }
  0x12   :  { %2014 = vmatprep.subr.bf16.mxu1 %v2279_v17  ;;  %v2311_v45 = vld [vmem:[%s3037_s1 + $0x1f0] sm:$0xff]   ;;  %v2321_v53 = vld [vmem:[%s3037_s1 + $0x1e8] sm:$0xff]   ;;  %v2328_v58 = vld [vmem:[%s3038_s0 + $0xd8] ss:$36 sps:$4 sm:$0xff]  }
  0x13   :  { %v2312_v46 = vld [vmem:[%s3037_s1 + $0x130] sm:$0xff]   ;;  %v2322_v54 = vld [vmem:[%s3037_s1 + $0x128] sm:$0xff]   ;;  %v2329_v59 = vld [vmem:[%s3038_s0 + $0xe0] ss:$36 sps:$4 sm:$0xff]  }
  0x14   :  { %1951 = vmatpush3.bf16.msra.mxu0 %v2280_v18  ;;  %v2313_v47 = vld [vmem:[%s3037_s1 + $0x1b0] sm:$0xff]   ;;  %v2323_v55 = vld [vmem:[%s3037_s1 + $0x1a8] sm:$0xff]   ;;  %v2330_v60 = vld [vmem:[%s3037_s1 + $0x160] sm:$0xff]  }
  0x15   :  { %2015 = vmatpush3.bf16.msra.mxu1 %v2281_v19  ;;  %1952 = vmatprep.subr.bf16.mxu0 %v2282_v20  ;;  %v2318_v50 = vld [vmem:[%s3038_s0 + $0x90] ss:$36 sps:$4 sm:$0xff]   ;;  %v2331_v61 = vld [vmem:[%s3037_s1 + $0x1e0] sm:$0xff]   ;;  %v2340_v3 = vld [vmem:[%s3037_s1 + $0x158] sm:$0xff]  }
  0x16   :  { %2016 = vmatprep.subr.bf16.mxu1 %v2283_v21  ;;  %v2332_v62 = vld [vmem:[%s3037_s1 + $0x120] sm:$0xff]   ;;  %v2336_v1 = vld [vmem:[%s3038_s0 + $0x12c] ss:$36 sps:$4 sm:$0xff]   ;;  %v2341_v5 = vld [vmem:[%s3037_s1 + $0x1d8] sm:$0xff]  }
  0x17   :  { %v2333_v63 = vld [vmem:[%s3037_s1 + $0x1a0] sm:$0xff]   ;;  %v2339_v4 = vld [vmem:[%s3038_s0 + $0x128] ss:$36 sps:$4 sm:$0xff]   ;;  %v2342_v6 = vld [vmem:[%s3037_s1 + $0x118] sm:$0xff]  }
  0x18   :  { %1953 = vmatpush3.bf16.msra.mxu0 %v2284_v22  ;;  %v2334_v0 = vld [vmem:[%s3038_s0 + $0x124] ss:$36 sps:$4 sm:$0xff]   ;;  %v2343_v7 = vld [vmem:[%s3037_s1 + $0x198] sm:$0xff]   ;;  %v2344_v8 = vld [vmem:[%s3038_s0 + $0x16c] ss:$36 sps:$4 sm:$0xff]  }
  0x19   :  { %2017 = vmatpush3.bf16.msra.mxu1 %v2285_v23  ;;  %1954 = vmatprep.subr.bf16.mxu0 %v2286_v24  ;;  %v2338_v2 = vld [vmem:[%s3038_s0 + $0x120] ss:$36 sps:$4 sm:$0xff]   ;;  %v2346_v9 = vld [vmem:[%s3038_s0 + $0x174] ss:$36 sps:$4 sm:$0xff]   ;;  %v2348_v12 = vld [vmem:[%s3038_s0 + $0x168] ss:$36 sps:$4 sm:$0xff]  }
  0x1a   :  { %2018 = vmatprep.subr.bf16.mxu1 %v2287_v25  ;;  %v2350_v10 = vld [vmem:[%s3037_s1 + $0x150] sm:$0xff]   ;;  %v2356_v17 = vld [vmem:[%s3038_s0 + $0x1bc] ss:$36 sps:$4 sm:$0xff]   ;;  %v2360_v18 = vld [vmem:[%s3037_s1 + $0x148] sm:$0xff]  }
  0x1b   :  { %v2351_v11 = vld [vmem:[%s3037_s1 + $0x1d0] sm:$0xff]   ;;  %v2361_v19 = vld [vmem:[%s3037_s1 + $0x1c8] sm:$0xff]   ;;  %v2359_v23 = vld [vmem:[%s3038_s0 + $0x1b8] ss:$36 sps:$4 sm:$0xff]  }
  0x1c   :  { %1955 = vmatpush3.bf16.msra.mxu0 %v2288_v26  ;;  %v2352_v13 = vld [vmem:[%s3037_s1 + $0x110] sm:$0xff]   ;;  %v2362_v20 = vld [vmem:[%s3037_s1 + $0x108] sm:$0xff]   ;;  %v2364_v24 = vld [vmem:[%s3038_s0 + $0x1fc] ss:$36 sps:$4 sm:$0xff]  }
  0x1d   :  { %2019 = vmatpush3.bf16.msra.mxu1 %v2289_v27  ;;  %1956 = vmatprep.subr.bf16.mxu0 %v2290_v28  ;;  %v2353_v14 = vld [vmem:[%s3037_s1 + $0x190] sm:$0xff]   ;;  %v2363_v21 = vld [vmem:[%s3037_s1 + $0x188] sm:$0xff]   ;;  %v2370_v26 = vld [vmem:[%s3037_s1 + $0x140] sm:$0xff]  }
  0x1e   :  { %2020 = vmatprep.subr.bf16.mxu1 %v2291_v29  ;;  %v2349_v15 = vld [vmem:[%s3038_s0 + $0x170] ss:$36 sps:$4 sm:$0xff]   ;;  %v2366_v25 = vld [vmem:[%s3038_s0 + $0x204] ss:$36 sps:$4 sm:$0xff]  }
  0x1f   :  { %v2354_v16 = vld [vmem:[%s3038_s0 + $0x1b4] ss:$36 sps:$4 sm:$0xff]   ;;  %v2371_v27 = vld [vmem:[%s3037_s1 + $0x1c0] sm:$0xff]  }
  0x20   :  { %1957 = vmatpush3.bf16.msra.mxu0 %v2292_v30  ;;  %v2358_v22 = vld [vmem:[%s3038_s0 + $0x1b0] ss:$36 sps:$4 sm:$0xff]   ;;  %v2372_v28 = vld [vmem:[%s3037_s1 + $0x100] sm:$0xff]   ;;  %v2368_v30 = vld [vmem:[%s3038_s0 + $0x1f8] ss:$36 sps:$4 sm:$0xff]  }
  0x21   :  { %2021 = vmatpush3.bf16.msra.mxu1 %v2293_v31  ;;  %2070 = vmatprep.subr.bf16.mxu0 %v2300_v36  ;;  %v2373_v29 = vld [vmem:[%s3037_s1 + $0x180] sm:$0xff]   ;;  %v2376_v33 = vld [vmem:[%s3038_s0 + $0x14] ss:$36 sps:$4 sm:$0xff]  }
  0x22   :  { %2134 = vmatprep.subr.bf16.mxu1 %v2301_v37  ;;  %v2369_v31 = vld [vmem:[%s3038_s0 + $0x200] ss:$36 sps:$4 sm:$0xff]   ;;  %v2374_v35 = vld [vmem:[%s3038_s0 + $0x10] ss:$36 sps:$4 sm:$0xff]   ;;  %v2377_v36 = vld [vmem:[%s3038_s0 + $0x18] ss:$36 sps:$4 sm:$0xff]  }
  0x23   :  { %1108 = vmatmul.mubr.bf16.vlgmr.msra.gmra.mxu0 %v2294_v32  ;;  %v2380_v32 = vld [vmem:[%s3037_s1 + $0x238] sm:$0xff]  }
  0x24   :  { %1205 = vmatmul.mubr.bf16.vlgmr.msra.gmra.mxu1 %v2297_v34  ;;  %2071 = vmatpush3.bf16.msra.mxu0 %v2302_v38  ;;  %v2379_v34 = vld [vmem:[%s3038_s0 + $0x1c] ss:$36 sps:$4 sm:$0xff]   ;;  %v2383_v38 = vld [vmem:[%s3038_s0 + $0x64] ss:$36 sps:$4 sm:$0xff]  }
  0x25   :  { %2135 = vmatpush3.bf16.msra.mxu1 %v2303_v39  ;;  %1115 = vmatprep.mubr.bf16.mxu0 %v2304_v40  ;;  %v2381_v37 = vld [vmem:[%s3038_s0 + $0x5c] ss:$36 sps:$4 sm:$0xff]   ;;  %v2387_v39 = vld [vmem:[%s3037_s1 + $0x230] sm:$0xff]   ;;  %v2394_v40 = vld [vmem:[%s3037_s1 + $0x228] sm:$0xff]  }
  0x26   :  { %1212 = vmatprep.mubr.bf16.mxu1 %v2306_v41  ;;  %2072 = vmatprep.subr.bf16.mxu0 %v2310_v44  ;;  %v2385_v41 = vld [vmem:[%s3038_s0 + $0x58] ss:$36 sps:$4 sm:$0xff]   ;;  %v2390_v44 = vld [vmem:[%s3038_s0 + $0xac] ss:$36 sps:$4 sm:$0xff]  }
  0x27   :  { %2136 = vmatprep.subr.bf16.mxu1 %v2311_v45  ;;  %v2401_v45 = vld [vmem:[%s3037_s1 + $0x220] sm:$0xff]  }
  0x28   :  { %2073 = vmatpush3.bf16.msra.mxu0 %v2312_v46  ;;  %v2408_v46 = vld [vmem:[%s3037_s1 + $0x218] sm:$0xff]  }
  0x29   :  { %2137 = vmatpush3.bf16.msra.mxu1 %v2313_v47  ;;  %2074 = vmatprep.subr.bf16.mxu0 %v2320_v52  ;;  %v2392_v47 = vld [vmem:[%s3038_s0 + $0xa0] ss:$36 sps:$4 sm:$0xff]   ;;  %v2399_v52 = vld [vmem:[%s3038_s0 + $0xe8] ss:$36 sps:$4 sm:$0xff]  }
  0x2a   :  { %2138 = vmatprep.subr.bf16.mxu1 %v2321_v53  ;;  %v2422_v53 = vld [vmem:[%s3037_s1 + $0x208] sm:$0xff]  }
  0x2b   :  { %1116 = vmatmul.mubr.bf16.gmra.mxu0 %v2308_v42  ;;  %v2386_v42 = vld [vmem:[%s3038_s0 + $0x60] ss:$36 sps:$4 sm:$0xff]  }
  0x2c   :  { %1213 = vmatmul.mubr.bf16.gmra.mxu1 %v2309_v43  ;;  %1123 = vmatprep.mubr.bf16.mxu0 %v2314_v48  ;;  %v2388_v43 = vld [vmem:[%s3038_s0 + $0xa4] ss:$36 sps:$4 sm:$0xff]  }
  0x2d   :  { %1220 = vmatprep.mubr.bf16.mxu1 %v2316_v49  ;;  %2075 = vmatpush3.bf16.msra.mxu0 %v2322_v54  ;;  %v2393_v48 = vld [vmem:[%s3038_s0 + $0xa8] ss:$36 sps:$4 sm:$0xff]   ;;  %v2400_v54 = vld [vmem:[%s3038_s0 + $0xf0] ss:$36 sps:$4 sm:$0xff]  }
  0x2e   :  { %2139 = vmatpush3.bf16.msra.mxu1 %v2323_v55  ;;  %2076 = vmatprep.subr.bf16.mxu0 %v2330_v60  ;;  %v2395_v49 = vld [vmem:[%s3038_s0 + $0xec] ss:$36 sps:$4 sm:$0xff]   ;;  %v2402_v55 = vld [vmem:[%s3038_s0 + $0x134] ss:$36 sps:$4 sm:$0xff]   ;;  %v2409_v60 = vld [vmem:[%s3038_s0 + $0x17c] ss:$36 sps:$4 sm:$0xff]  }
  0x2f   :  { %2140 = vmatprep.subr.bf16.mxu1 %v2331_v61  ;;  %v2411_v61 = vld [vmem:[%s3038_s0 + $0x184] ss:$36 sps:$4 sm:$0xff]  }
  0x31   :  { %2077 = vmatpush3.bf16.msra.mxu0 %v2332_v62  ;;  %v2413_v62 = vld [vmem:[%s3038_s0 + $0x178] ss:$36 sps:$4 sm:$0xff]  }
  0x32   :  { %2141 = vmatpush3.bf16.msra.mxu1 %v2333_v63  ;;  %2078 = vmatprep.subr.bf16.mxu0 %v2340_v3  ;;  %v2414_v63 = vld [vmem:[%s3038_s0 + $0x180] ss:$36 sps:$4 sm:$0xff]   ;;  %v2421_v3 = vld [vmem:[%s3038_s0 + $0x1c8] ss:$36 sps:$4 sm:$0xff]  }
  0x33   :  { %1124 = vmatmul.mubr.bf16.gmra.mxu0 %v2318_v50  ;;  %2142 = vmatprep.subr.bf16.mxu1 %v2341_v5  ;;  %v2397_v50 = vld [vmem:[%s3038_s0 + $0xf4] ss:$36 sps:$4 sm:$0xff]  }
  0x34   :  { %1221 = vmatmul.mubr.bf16.gmra.mxu1 %v2319_v51  ;;  %1131 = vmatprep.mubr.bf16.mxu0 %v2324_v56  ;;  %v2415_v51 = vld [vmem:[%s3037_s1 + $0x210] sm:$0xff]   ;;  %v2404_v56 = vld [vmem:[%s3038_s0 + $0x13c] ss:$36 sps:$4 sm:$0xff]  }
  0x35   :  { %1228 = vmatprep.mubr.bf16.mxu1 %v2326_v57  ;;  %2079 = vmatpush3.bf16.msra.mxu0 %v2342_v6  ;;  %v2429_v57 = vld [vmem:[%s3037_s1 + $0x200] sm:$0xff]   ;;  %v2425_v5 = vld [vmem:[%s3038_s0 + $0x214] ss:$36 sps:$4 sm:$0xff]   ;;  %v2427_v6 = vld [vmem:[%s3038_s0 + $0x208] ss:$36 sps:$4 sm:$0xff]  }
  0x36   :  { %2143 = vmatpush3.bf16.msra.mxu1 %v2343_v7  ;;  %2080 = vmatprep.subr.bf16.mxu0 %v2350_v10  ;;  %v2428_v7 = vld [vmem:[%s3038_s0 + $0x210] ss:$36 sps:$4 sm:$0xff]   ;;  %v2432_v10 = vld [vmem:[%s3038_s0 + $0x68] ss:$36 sps:$4 sm:$0xff]  }
  0x37   :  { %2144 = vmatprep.subr.bf16.mxu1 %v2351_v11  ;;  %v2433_v11 = vld [vmem:[%s3038_s0 + $0x188] ss:$36 sps:$4 sm:$0xff]  }
  0x39   :  { %2081 = vmatpush3.bf16.msra.mxu0 %v2352_v13  ;;  %v2435_v13 = vld [vmem:[%s3038_s0 + $0x1d0] ss:$36 sps:$4 sm:$0xff]  }
  0x3a   :  { %2145 = vmatpush3.bf16.msra.mxu1 %v2353_v14  ;;  %2082 = vmatprep.subr.bf16.mxu0 %v2360_v18  ;;  %v2436_v14 = vld [vmem:[%s3038_s0 + $0xf8] ss:$36 sps:$4 sm:$0xff]  }
  0x3b   :  { %1132 = vmatmul.mubr.bf16.gmra.mxu0 %v2328_v58  ;;  %2146 = vmatprep.subr.bf16.mxu1 %v2361_v19  ;;  %v2406_v58 = vld [vmem:[%s3038_s0 + $0x130] ss:$36 sps:$4 sm:$0xff]  }
  0x3c   :  { %1229 = vmatmul.mubr.bf16.gmra.mxu1 %v2329_v59  ;;  %1139 = vmatprep.mubr.bf16.mxu0 %v2334_v0  ;;  %v2407_v59 = vld [vmem:[%s3038_s0 + $0x138] ss:$36 sps:$4 sm:$0xff]   ;;  %v2416_v0 = vld [vmem:[%s3038_s0 + $0x1c4] ss:$36 sps:$4 sm:$0xff]  }
  0x3d   :  { %1236 = vmatprep.mubr.bf16.mxu1 %v2336_v1  ;;  %2083 = vmatpush3.bf16.msra.mxu0 %v2362_v20  ;;  %v2418_v1 = vld [vmem:[%s3038_s0 + $0x1cc] ss:$36 sps:$4 sm:$0xff]  }
  0x3e   :  { %2147 = vmatpush3.bf16.msra.mxu1 %v2363_v21  ;;  %2084 = vmatprep.subr.bf16.mxu0 %v2370_v26 }
  0x3f   :  { %2148 = vmatprep.subr.bf16.mxu1 %v2371_v27 }
  0x41   :  { %2085 = vmatpush3.bf16.msra.mxu0 %v2372_v28 }
  0x42   :  { %2149 = vmatpush3.bf16.msra.mxu1 %v2373_v29  ;;  %2214 = vmatprep.subr.bf16.mxu0 %v2380_v32 }
  0x43   :  { %1140 = vmatmul.mubr.bf16.gmra.mxu0 %v2338_v2  ;;  %2246 = vmatprep.subr.bf16.mxu1 %v2380_v32  ;;  %v2420_v2 = vld [vmem:[%s3038_s0 + $0x1c0] ss:$36 sps:$4 sm:$0xff]  }
  0x44   :  { %1237 = vmatmul.mubr.bf16.gmra.mxu1 %v2339_v4  ;;  %1147 = vmatprep.mubr.bf16.mxu0 %v2344_v8  ;;  %v2423_v4 = vld [vmem:[%s3038_s0 + $0x20c] ss:$36 sps:$4 sm:$0xff]   ;;  %v2430_v8 = vld [vmem:[%s3038_s0 + $0x20] ss:$36 sps:$4 sm:$0xff]  }
  0x45   :  { %1244 = vmatprep.mubr.bf16.mxu1 %v2346_v9  ;;  %v2431_v9 = vld [vmem:[%s3038_s0 + $0x140] ss:$36 sps:$4 sm:$0xff]  }
  0x4b   :  { %1148 = vmatmul.mubr.bf16.gmra.mxu0 %v2348_v12  ;;  %v2434_v12 = vld [vmem:[%s3038_s0 + $0xb0] ss:$36 sps:$4 sm:$0xff]  }
  0x4c   :  { %1245 = vmatmul.mubr.bf16.gmra.mxu1 %v2349_v15  ;;  %1155 = vmatprep.mubr.bf16.mxu0 %v2354_v16  ;;  %v2437_v15 = vld [vmem:[%s3038_s0 + $0x218] ss:$36 sps:$4 sm:$0xff]  }
  0x4d   :  { %1252 = vmatprep.mubr.bf16.mxu1 %v2356_v17 }
  0x53   :  { %1156 = vmatmul.mubr.bf16.gmra.mxu0 %v2358_v22 }
  0x54   :  { %1253 = vmatmul.mubr.bf16.gmra.mxu1 %v2359_v23  ;;  %1163 = vmatprep.mubr.bf16.mxu0 %v2364_v24 }
  0x55   :  { %1260 = vmatprep.mubr.bf16.mxu1 %v2366_v25 }
  0x5b   :  { %1164 = vmatmul.mubr.bf16.gmra.mxu0 %v2368_v30 }
  0x5c   :  { %1261 = vmatmul.mubr.bf16.gmra.mxu1 %v2369_v31  ;;  %1301 = vmatprep.mubr.bf16.mxu0 %v2376_v33 }
  0x5d   :  { %1398 = vmatprep.mubr.bf16.mxu1 %v2379_v34 }
  0x63   :  { %1302 = vmatmul.mubr.bf16.vlgmr.msra.gmra.mxu0 %v2374_v35 }
  0x64   :  { %1399 = vmatmul.mubr.bf16.vlgmr.msra.gmra.mxu1 %v2377_v36  ;;  %2215 = vmatpush3.bf16.msra.mxu0 %v2380_v32 }
  0x65   :  { %2254 = vmatpush3.bf16.msra.mxu1 %v2380_v32  ;;  %1309 = vmatprep.mubr.bf16.mxu0 %v2381_v37 }
  0x66   :  { %1406 = vmatprep.mubr.bf16.mxu1 %v2383_v38  ;;  %2216 = vmatprep.subr.bf16.mxu0 %v2387_v39 }
  0x67   :  { %2247 = vmatprep.subr.bf16.mxu1 %v2387_v39 }
  0x68   :  { %2217 = vmatpush3.bf16.msra.mxu0 %v2387_v39 }
  0x69   :  { %2255 = vmatpush3.bf16.msra.mxu1 %v2387_v39  ;;  %2218 = vmatprep.subr.bf16.mxu0 %v2394_v40 }
  0x6a   :  { %2248 = vmatprep.subr.bf16.mxu1 %v2394_v40 }
  0x6b   :  { %1310 = vmatmul.mubr.bf16.gmra.mxu0 %v2385_v41 }
  0x6c   :  { %1407 = vmatmul.mubr.bf16.gmra.mxu1 %v2386_v42  ;;  %1317 = vmatprep.mubr.bf16.mxu0 %v2388_v43 }
  0x6d   :  { %1414 = vmatprep.mubr.bf16.mxu1 %v2390_v44  ;;  %2219 = vmatpush3.bf16.msra.mxu0 %v2394_v40 }
  0x6e   :  { %2256 = vmatpush3.bf16.msra.mxu1 %v2394_v40  ;;  %2220 = vmatprep.subr.bf16.mxu0 %v2401_v45 }
  0x6f   :  { %2249 = vmatprep.subr.bf16.mxu1 %v2401_v45 }
  0x71   :  { %2221 = vmatpush3.bf16.msra.mxu0 %v2401_v45 }
  0x72   :  { %2257 = vmatpush3.bf16.msra.mxu1 %v2401_v45  ;;  %2222 = vmatprep.subr.bf16.mxu0 %v2408_v46 }
  0x73   :  { %1318 = vmatmul.mubr.bf16.gmra.mxu0 %v2392_v47  ;;  %2250 = vmatprep.subr.bf16.mxu1 %v2408_v46 }
  0x74   :  { %1415 = vmatmul.mubr.bf16.gmra.mxu1 %v2393_v48  ;;  %1325 = vmatprep.mubr.bf16.mxu0 %v2395_v49 }
  0x75   :  { %1422 = vmatprep.mubr.bf16.mxu1 %v2397_v50  ;;  %2223 = vmatpush3.bf16.msra.mxu0 %v2408_v46 }
  0x76   :  { %2258 = vmatpush3.bf16.msra.mxu1 %v2408_v46  ;;  %2224 = vmatprep.subr.bf16.mxu0 %v2415_v51 }
  0x77   :  { %2251 = vmatprep.subr.bf16.mxu1 %v2415_v51 }
  0x79   :  { %2225 = vmatpush3.bf16.msra.mxu0 %v2415_v51 }
  0x7a   :  { %2259 = vmatpush3.bf16.msra.mxu1 %v2415_v51  ;;  %2226 = vmatprep.subr.bf16.mxu0 %v2422_v53 }
  0x7b   :  { %1326 = vmatmul.mubr.bf16.gmra.mxu0 %v2399_v52  ;;  %2252 = vmatprep.subr.bf16.mxu1 %v2422_v53 }
  0x7c   :  { %1423 = vmatmul.mubr.bf16.gmra.mxu1 %v2400_v54  ;;  %1333 = vmatprep.mubr.bf16.mxu0 %v2402_v55 }
  0x7d   :  { %1430 = vmatprep.mubr.bf16.mxu1 %v2404_v56  ;;  %2227 = vmatpush3.bf16.msra.mxu0 %v2422_v53 }
  0x7e   :  { %2260 = vmatpush3.bf16.msra.mxu1 %v2422_v53  ;;  %2228 = vmatprep.subr.bf16.mxu0 %v2429_v57 }
  0x7f   :  { %2253 = vmatprep.subr.bf16.mxu1 %v2429_v57 }
  0x81   :  { %2229 = vmatpush3.bf16.msra.mxu0 %v2429_v57 }
  0x82   :  { %2261 = vmatpush3.bf16.msra.mxu1 %v2429_v57 }
  0x83   :  { %1334 = vmatmul.mubr.bf16.gmra.mxu0 %v2406_v58 }
  0x84   :  { %1431 = vmatmul.mubr.bf16.gmra.mxu1 %v2407_v59  ;;  %1341 = vmatprep.mubr.bf16.mxu0 %v2409_v60 }
  0x85   :  { %1438 = vmatprep.mubr.bf16.mxu1 %v2411_v61 }
  0x8b   :  { %1342 = vmatmul.mubr.bf16.gmra.mxu0 %v2413_v62 }
  0x8c   :  { %1439 = vmatmul.mubr.bf16.gmra.mxu1 %v2414_v63  ;;  %1349 = vmatprep.mubr.bf16.mxu0 %v2416_v0 }
  0x8d   :  { %1446 = vmatprep.mubr.bf16.mxu1 %v2418_v1 }
  0x93   :  { %1350 = vmatmul.mubr.bf16.gmra.mxu0 %v2420_v2 }
  0x94   :  { %1447 = vmatmul.mubr.bf16.gmra.mxu1 %v2421_v3  ;;  %1357 = vmatprep.mubr.bf16.mxu0 %v2423_v4 }
  0x95   :  { %1454 = vmatprep.mubr.bf16.mxu1 %v2425_v5 }
  0x9b   :  { %1358 = vmatmul.mubr.bf16.gmra.mxu0 %v2427_v6 }
  0x9c   :  { %1455 = vmatmul.mubr.bf16.gmra.mxu1 %v2428_v7  ;;  %2230 = vmatprep.mubr.bf16.mxu0 %v2430_v8 }
  0x9d   :  { %2238 = vmatprep.mubr.bf16.mxu1 %v2431_v9 }
  0xa3   :  { %2231 = vmatmul.mubr.bf16.vlgmr.msra.gmra.mxu0 %v2432_v10 }
  0xa4   :  { %2239 = vmatmul.mubr.bf16.vlgmr.msra.gmra.mxu1 %v2433_v11  ;;  %2234 = vmatprep.mubr.bf16.mxu0 %v2434_v12 }
  0xa5   :  { %2242 = vmatprep.mubr.bf16.mxu1 %v2435_v13 }
  0xab   :  { %2235 = vmatmul.mubr.bf16.gmra.mxu0 %v2436_v14 }
  0xac   :  { %2243 = vmatmul.mubr.bf16.gmra.mxu1 %v2437_v15 }
  0xe3   :  { %v1958_v16 = vpop.f32.mrf.mxu0 }
  0xe4   :  { %v2022_v17 = vpop.f32.mrf.mxu1 }
  0xe5   :  { %v1959_v18 = vpop.f32.mrf.mxu0 }
  0xe6   :  { %v1960_v19 = vadd.f32 %v1959_v18, %v1958_v16  ;;  %v2023_v20 = vpop.f32.mrf.mxu1 }
  0xe7   :  { %v2024_v21 = vadd.f32 %v2023_v20, %v2022_v17  ;;  %v1961_v22 = vpop.f32.mrf.mxu0 }
  0xe8   :  { %v2025_v23 = vpop.f32.mrf.mxu1 }
  0xe9   :  { %v2890_v24 = vadd.f32 %v2024_v21, %v1960_v19  ;;  %v1962_v25 = vpop.f32.mrf.mxu0 }
  0xea   :  { %v1963_v26 = vadd.f32 %v1962_v25, %v1961_v22  ;;  %v2026_v27 = vpop.f32.mrf.mxu1 }
  0xeb   :  { %v2027_v28 = vadd.f32 %v2026_v27, %v2025_v23  ;;  %v1964_v29 = vpop.f32.mrf.mxu0 }
  0xec   :  { %v2028_v30 = vpop.f32.mrf.mxu1 }
  0xed   :  { %v2892_v31 = vadd.f32 %v2027_v28, %v1963_v26  ;;  %v1965_v32 = vpop.f32.mrf.mxu0 }
  0xee   :  { %v1966_v33 = vadd.f32 %v1965_v32, %v1964_v29  ;;  %v2029_v34 = vpop.f32.mrf.mxu1 }
  0xef   :  { %v2030_v35 = vadd.f32 %v2029_v34, %v2028_v30  ;;  %v1967_v36 = vpop.f32.mrf.mxu0 }
  0xf0   :  { %v2031_v37 = vpop.f32.mrf.mxu1 }
  0xf1   :  { %v2894_v38 = vadd.f32 %v2030_v35, %v1966_v33  ;;  %v1968_v39 = vpop.f32.mrf.mxu0 }
  0xf2   :  { %v1969_v40 = vadd.f32 %v1968_v39, %v1967_v36  ;;  %v2032_v41 = vpop.f32.mrf.mxu1 }
  0xf3   :  { %v2033_v42 = vadd.f32 %v2032_v41, %v2031_v37  ;;  %v1970_v43 = vpop.f32.mrf.mxu0 }
  0xf4   :  { %v2034_v44 = vpop.f32.mrf.mxu1 }
  0xf5   :  { %v2896_v45 = vadd.f32 %v2033_v42, %v1969_v40  ;;  %v1971_v46 = vpop.f32.mrf.mxu0 }
  0xf6   :  { %v1972_v47 = vadd.f32 %v1971_v46, %v1970_v43  ;;  %v2035_v48 = vpop.f32.mrf.mxu1 }
  0xf7   :  { %v2036_v49 = vadd.f32 %v2035_v48, %v2034_v44  ;;  %v1973_v50 = vpop.f32.mrf.mxu0 }
  0xf8   :  { %v2037_v51 = vpop.f32.mrf.mxu1 }
  0xf9   :  { %v2898_v52 = vadd.f32 %v2036_v49, %v1972_v47  ;;  %v1974_v53 = vpop.f32.mrf.mxu0 }
  0xfa   :  { %v1975_v54 = vadd.f32 %v1974_v53, %v1973_v50  ;;  %v2038_v55 = vpop.f32.mrf.mxu1 }
  0xfb   :  { %v2039_v56 = vadd.f32 %v2038_v55, %v2037_v51  ;;  %v1976_v57 = vpop.f32.mrf.mxu0 }
  0xfc   :  { %v2040_v58 = vpop.f32.mrf.mxu1 }
  0xfd   :  { %v2900_v59 = vadd.f32 %v2039_v56, %v1975_v54  ;;  %v1977_v60 = vpop.f32.mrf.mxu0 }
  0xfe   :  { %v1978_v61 = vadd.f32 %v1977_v60, %v1976_v57  ;;  %v2041_v62 = vpop.f32.mrf.mxu1 }
  0xff   :  { %3041 = vst [vmem:[#allocation3_spill] sm:$0xff] %v2900_v59  ;;  %v2042_v63 = vadd.f32 %v2041_v62, %v2040_v58  ;;  %v1979_v0 = vpop.f32.mrf.mxu0 }
 0x100   :  { %v2043_v1 = vpop.f32.mrf.mxu1 }
 0x101   :  { %v2902_v2 = vadd.f32 %v2042_v63, %v1978_v61  ;;  %v1980_v3 = vpop.f32.mrf.mxu0 }
 0x102   :  { %v1981_v4 = vadd.f32 %v1980_v3, %v1979_v0  ;;  %v2044_v5 = vpop.f32.mrf.mxu1 }
 0x103   :  { %v2045_v6 = vadd.f32 %v2044_v5, %v2043_v1  ;;  %v1982_v7 = vpop.f32.mrf.mxu0 }
 0x104   :  { %v2046_v8 = vpop.f32.mrf.mxu1 }
 0x105   :  { %v2904_v9 = vadd.f32 %v2045_v6, %v1981_v4  ;;  %v1983_v10 = vpop.f32.mrf.mxu0 }
 0x106   :  { %v1984_v11 = vadd.f32 %v1983_v10, %v1982_v7  ;;  %v2047_v12 = vpop.f32.mrf.mxu1 }
 0x107   :  { %3042 = vst [vmem:[#allocation4_spill] sm:$0xff] %v2904_v9  ;;  %v2048_v13 = vadd.f32 %v2047_v12, %v2046_v8  ;;  %v1985_v14 = vpop.f32.mrf.mxu0 }
 0x108   :  { %v2049_v15 = vpop.f32.mrf.mxu1 }
 0x109   :  { %v2906_v16 = vadd.f32 %v2048_v13, %v1984_v11  ;;  %v1986_v17 = vpop.f32.mrf.mxu0 }
 0x10a   :  { %v1987_v18 = vadd.f32 %v1986_v17, %v1985_v14  ;;  %v2050_v19 = vpop.f32.mrf.mxu1 }
 0x10b   :  { %v2051_v20 = vadd.f32 %v2050_v19, %v2049_v15  ;;  %v1988_v21 = vpop.f32.mrf.mxu0 }
 0x10c   :  { %v2052_v22 = vpop.f32.mrf.mxu1 }
 0x10d   :  { %v2908_v23 = vadd.f32 %v2051_v20, %v1987_v18  ;;  %v1989_v25 = vpop.f32.mrf.mxu0 }
 0x10e   :  { %v1990_v26 = vadd.f32 %v1989_v25, %v1988_v21  ;;  %v2053_v27 = vpop.f32.mrf.mxu1 }
 0x10f   :  { %3043 = vst [vmem:[#allocation5_spill] sm:$0xff] %v2908_v23  ;;  %v2054_v28 = vadd.f32 %v2053_v27, %v2052_v22  ;;  %v1991_v29 = vpop.f32.mrf.mxu0 }
 0x110   :  { %v2055_v30 = vpop.f32.mrf.mxu1 }
 0x111   :  { %v2910_v32 = vadd.f32 %v2054_v28, %v1990_v26  ;;  %v1992_v33 = vpop.f32.mrf.mxu0 }
 0x112   :  { %v1993_v34 = vadd.f32 %v1992_v33, %v1991_v29  ;;  %v2056_v35 = vpop.f32.mrf.mxu1 }
 0x113   :  { %v2057_v36 = vadd.f32 %v2056_v35, %v2055_v30  ;;  %v1994_v37 = vpop.f32.mrf.mxu0 }
 0x114   :  { %v2058_v39 = vpop.f32.mrf.mxu1 }
 0x115   :  { %v2912_v40 = vadd.f32 %v2057_v36, %v1993_v34  ;;  %v1995_v41 = vpop.f32.mrf.mxu0 }
 0x116   :  { %v1996_v42 = vadd.f32 %v1995_v41, %v1994_v37  ;;  %v2059_v43 = vpop.f32.mrf.mxu1 }
 0x117   :  { %3044 = vst [vmem:[#allocation6_spill] sm:$0xff] %v2912_v40  ;;  %v2060_v44 = vadd.f32 %v2059_v43, %v2058_v39  ;;  %v1997_v46 = vpop.f32.mrf.mxu0 }
 0x118   :  { %v2061_v47 = vpop.f32.mrf.mxu1 }
 0x119   :  { %v2914_v48 = vadd.f32 %v2060_v44, %v1996_v42  ;;  %v1998_v49 = vpop.f32.mrf.mxu0 }
 0x11a   :  { %v1999_v50 = vadd.f32 %v1998_v49, %v1997_v46  ;;  %v2062_v51 = vpop.f32.mrf.mxu1 }
 0x11b   :  { %3045 = vst [vmem:[#allocation7_spill] sm:$0xff] %v2914_v48  ;;  %v2063_v53 = vadd.f32 %v2062_v51, %v2061_v47  ;;  %v2000_v54 = vpop.f32.mrf.mxu0 }
 0x11c   :  { %v2064_v55 = vpop.f32.mrf.mxu1 }
 0x11d   :  { %v2916_v56 = vadd.f32 %v2063_v53, %v1999_v50  ;;  %v2001_v57 = vpop.f32.mrf.mxu0 }
 0x11e   :  { %v2002_v58 = vadd.f32 %v2001_v57, %v2000_v54  ;;  %v2065_v60 = vpop.f32.mrf.mxu1 }
 0x11f   :  { %3046 = vst [vmem:[#allocation8_spill] sm:$0xff] %v2916_v56  ;;  %v2066_v61 = vadd.f32 %v2065_v60, %v2064_v55  ;;  %v2003_v62 = vpop.f32.mrf.mxu0 }
 0x120   :  { %v2067_v63 = vpop.f32.mrf.mxu1 }
 0x121   :  { %v2918_v0 = vadd.f32 %v2066_v61, %v2002_v58  ;;  %v2004_v1 = vpop.f32.mrf.mxu0 }
 0x122   :  { %v2005_v3 = vadd.f32 %v2004_v1, %v2003_v62  ;;  %v2068_v4 = vpop.f32.mrf.mxu1 }
 0x123   :  { %3047 = vst [vmem:[#allocation9_spill] sm:$0xff] %v2918_v0  ;;  %v2069_v5 = vadd.f32 %v2068_v4, %v2067_v63  ;;  %v2086_v6 = vpop.f32.mrf.mxu0 }
 0x124   :  { %v2150_v7 = vpop.f32.mrf.mxu1 }
 0x125   :  { %v2920_v8 = vadd.f32 %v2069_v5, %v2005_v3  ;;  %v2087_v10 = vpop.f32.mrf.mxu0 }
 0x126   :  { %v2088_v11 = vadd.f32 %v2087_v10, %v2086_v6  ;;  %v2151_v12 = vpop.f32.mrf.mxu1 }
 0x127   :  { %3048 = vst [vmem:[#allocation10_spill] sm:$0xff] %v2920_v8  ;;  %v2089_v13 = vpop.f32.mrf.mxu0  ;;  %v2152_v15 = vadd.f32 %v2151_v12, %v2150_v7 }
 0x128   :  { %v1304_v14 = vadd.f32 %v2088_v11, %v2890_v24  ;;  %v2923_v17 = vpop.f32.mrf.mxu1 }
 0x129   :  { %v2090_v18 = vpop.f32.mrf.mxu0 }
 0x12a   :  { %v2925_v19 = vpop.f32.mrf.mxu1  ;;  %v2927_v20 = vadd.f32 %v2152_v15, %v1304_v14  ;;  %v2091_v56 = vadd.f32 %v2090_v18, %v2089_v13 }
 0x12b   :  { %v2092_v21 = vpop.f32.mrf.mxu0 }
 0x12c   :  { %3049 = vst [vmem:[#allocation11_spill] sm:$0xff] %v2927_v20  ;;  %v2156_v22 = vpop.f32.mrf.mxu1  ;;  %v1307_v40 = vadd.f32 %v2091_v56, %v2892_v31 }
 0x12d   :  { %v2093_v25 = vpop.f32.mrf.mxu0 }
 0x12e   :  { %v2157_v26 = vpop.f32.mrf.mxu1  ;;  %v2094_v20 = vadd.f32 %v2093_v25, %v2092_v21  ;;  %v2155_v21 = vadd.f32 %v2925_v19, %v2923_v17 }
 0x12f   :  { %v2095_v27 = vpop.f32.mrf.mxu0  ;;  %v2158_v25 = vadd.f32 %v2157_v26, %v2156_v22 }
 0x130   :  { %v2159_v28 = vpop.f32.mrf.mxu1 }
 0x131   :  { %v2096_v29 = vpop.f32.mrf.mxu0 }
 0x132   :  { %v2160_v30 = vpop.f32.mrf.mxu1  ;;  %v2097_v0 = vadd.f32 %v2096_v29, %v2095_v27 }
 0x133   :  { %v2098_v33 = vpop.f32.mrf.mxu0  ;;  %v2161_v27 = vadd.f32 %v2160_v30, %v2159_v28 }
 0x134   :  { %v2162_v34 = vpop.f32.mrf.mxu1 }
 0x135   :  { %v2099_v35 = vpop.f32.mrf.mxu0 }
 0x136   :  { %v2163_v24 = vpop.f32.mrf.mxu1 }
 0x137   :  { %v2101_v36 = vpop.f32.mrf.mxu0 }
 0x138   :  { %v2929_v37 = vpop.f32.mrf.mxu1 }
 0x139   :  { %v2102_v39 = vpop.f32.mrf.mxu0 }
 0x13a   :  { %v2931_v41 = vpop.f32.mrf.mxu1  ;;  %v2103_v31 = vadd.f32 %v2102_v39, %v2101_v36 }
 0x13b   :  { %v2104_v42 = vpop.f32.mrf.mxu0  ;;  %v2965_v19 = vadd.f32 %v2931_v41, %v2929_v37 }
 0x13c   :  { %v2933_v43 = vpop.f32.mrf.mxu1 }
 0x13d   :  { %v2105_v44 = vpop.f32.mrf.mxu0 }
 0x13e   :  { %v2169_v46 = vpop.f32.mrf.mxu1  ;;  %v2106_v23 = vadd.f32 %v2105_v44, %v2104_v42 }
 0x13f   :  { %v2107_v47 = vpop.f32.mrf.mxu0  ;;  %v2170_v22 = vadd.f32 %v2169_v46, %v2933_v43 }
 0x140   :  { %v2935_v49 = vpop.f32.mrf.mxu1 }
 0x141   :  { %3050 = vst [vmem:[#allocation12_spill] sm:$0xff] %v2935_v49  ;;  %v2108_v50 = vpop.f32.mrf.mxu0 }
 0x142   :  { %v2937_v51 = vpop.f32.mrf.mxu1  ;;  %v2109_v26 = vadd.f32 %v2108_v50, %v2107_v47 }
 0x143   :  { %3051 = vst [vmem:[#allocation13_spill] sm:$0xff] %v2937_v51  ;;  %v2110_v53 = vpop.f32.mrf.mxu0  ;;  %v2100_v51 = vadd.f32 %v2099_v35, %v2098_v33  ;;  %v2164_v35 = vadd.f32 %v2163_v24, %v2162_v34  ;;  %v3058_v24 = vld [vmem:[#allocation6_spill] sm:$0xff] }
 0x144   :  { %v2939_v54 = vpop.f32.mrf.mxu1 }
 0x145   :  { %3052 = vst [vmem:[#allocation14_spill] sm:$0xff] %v2939_v54  ;;  %v2111_v55 = vpop.f32.mrf.mxu0  ;;  %v1320_v13 = vadd.f32 %v2100_v51, %v2898_v52 }
 0x146   :  { %v2175_v57 = vpop.f32.mrf.mxu1  ;;  %v2112_v29 = vadd.f32 %v2111_v55, %v2110_v53 }
 0x147   :  { %v2113_v58 = vpop.f32.mrf.mxu0  ;;  %v2961_v17 = vadd.f32 %v2164_v35, %v1320_v13 }
 0x148   :  { %v2177_v60 = vpop.f32.mrf.mxu1  ;;  %v1336_v28 = vadd.f32 %v2112_v29, %v2906_v16  ;;  %v3067_v29 = vld [vmem:[#allocation7_spill] sm:$0xff] }
 0x149   :  { %v2114_v61 = vpop.f32.mrf.mxu0 }
 0x14a   :  { %v2178_v62 = vpop.f32.mrf.mxu1  ;;  %v2115_v56 = vadd.f32 %v2114_v61, %v2113_v58 }
 0x14b   :  { %v2116_v63 = vpop.f32.mrf.mxu0  ;;  %v2179_v58 = vadd.f32 %v2178_v62, %v2177_v60 }
 0x14c   :  { %v2180_v1 = vpop.f32.mrf.mxu1  ;;  %v3059_v53 = vld [vmem:[#allocation14_spill] sm:$0xff] }
 0x14d   :  { %v2117_v3 = vpop.f32.mrf.mxu0  ;;  %v2176_v55 = vadd.f32 %v2175_v57, %v3059_v53 }
 0x14e   :  { %v2181_v4 = vpop.f32.mrf.mxu1  ;;  %v2118_v18 = vadd.f32 %v2117_v3, %v2116_v63  ;;  %v3060_v3 = vld [vmem:[#allocation4_spill] sm:$0xff] }
 0x14f   :  { %v2119_v5 = vpop.f32.mrf.mxu0  ;;  %v2182_v34 = vadd.f32 %v2181_v4, %v2180_v1  ;;  %v1433_v4 = vadd.f32 %v2176_v55, %v1336_v28  ;;  %v3069_v28 = vld [vmem:[#allocation10_spill] sm:$0xff] }
 0x150   :  { %v2183_v6 = vpop.f32.mrf.mxu1  ;;  %v1344_v52 = vadd.f32 %v2118_v18, %v2910_v32 }
 0x151   :  { %v2120_v7 = vpop.f32.mrf.mxu0 }
 0x152   :  { %v2184_v10 = vpop.f32.mrf.mxu1  ;;  %v2121_v42 = vadd.f32 %v2120_v7, %v2119_v5  ;;  %v1441_v16 = vadd.f32 %v2182_v34, %v1344_v52  ;;  %v1331_v5 = vadd.f32 %v2109_v26, %v3060_v3  ;;  %v3061_v7 = vld [vmem:[#allocation12_spill] sm:$0xff] }
 0x153   :  { %v2122_v11 = vpop.f32.mrf.mxu0  ;;  %v2185_v43 = vadd.f32 %v2184_v10, %v2183_v6  ;;  %v3065_v10 = vld [vmem:[#allocation9_spill] sm:$0xff] }
 0x154   :  { %v2941_v12 = vpop.f32.mrf.mxu1  ;;  %v1347_v36 = vadd.f32 %v2121_v42, %v3058_v24 }
 0x155   :  { %3053 = vst [vmem:[#allocation15_spill] sm:$0xff] %v2941_v12  ;;  %v2123_v14 = vpop.f32.mrf.mxu0  ;;  %v1312_v12 = vadd.f32 %v2094_v20, %v2894_v38  ;;  %v1328_v38 = vadd.f32 %v2106_v23, %v2902_v2  ;;  %v3056_v23 = vld [vmem:[#allocation3_spill] sm:$0xff] }
 0x156   :  { %v2943_v15 = vpop.f32.mrf.mxu1  ;;  %v2970_v30 = vadd.f32 %v2103_v31, %v3056_v23  ;;  %v2124_v46 = vadd.f32 %v2123_v14, %v2122_v11  ;;  %v1444_v60 = vadd.f32 %v2185_v43, %v1347_v36  ;;  %v3066_v14 = vld [vmem:[#allocation11_spill] sm:$0xff]  ;;  %v3068_v31 = vld [vmem:[#allocation8_spill] sm:$0xff] }
 0x157   :  { %3054 = vst [vmem:[#allocation16_spill] sm:$0xff] %v2943_v15  ;;  %v2125_v8 = vpop.f32.mrf.mxu0  ;;  %v1315_v15 = vadd.f32 %v2097_v0, %v2896_v45  ;;  %v1404_v45 = vadd.f32 %v2155_v21, %v1307_v40  ;;  %v1409_v51 = vadd.f32 %v2158_v25, %v1312_v12  ;;  %v3057_v40 = vld [vmem:[#allocation5_spill] sm:$0xff]  ;;  %v1425_v61 = vadd.f32 %v2170_v22, %v1328_v38 }
 0x158   :  { %v2945_v48 = vpop.f32.mrf.mxu1  ;;  %v1339_v32 = vadd.f32 %v2115_v56, %v3057_v40  ;;  %v3062_v12 = vld [vmem:[#allocation13_spill] sm:$0xff]  ;;  %v1352_v35 = vadd.f32 %v2124_v46, %v3067_v29 }
 0x159   :  { %3055 = vst [vmem:[#allocation17_spill] sm:$0xff] %v2945_v48  ;;  %v2126_v49 = vpop.f32.mrf.mxu0  ;;  %v1412_v63 = vadd.f32 %v2161_v27, %v1315_v15  ;;  %v2173_v15 = vadd.f32 %v3062_v12, %v3061_v7 }
 0x15a   :  { %v2947_v9 = vpop.f32.mrf.mxu1  ;;  %v2127_v47 = vadd.f32 %v2126_v49, %v2125_v8  ;;  %v1436_v8 = vadd.f32 %v2179_v58, %v1339_v32 }
 0x15b   :  { %v2128_v54 = vpop.f32.mrf.mxu0 }
 0x15c   :  { %v2950_v59 = vpop.f32.mrf.mxu1  ;;  %v3063_v49 = vld [vmem:[#allocation15_spill] sm:$0xff]  ;;  %v1355_v56 = vadd.f32 %v2127_v47, %v3068_v31 }
 0x15d   :  { %v2129_v48 = vpop.f32.mrf.mxu0 }
 0x15e   :  { %v2193_v33 = vpop.f32.mrf.mxu1  ;;  %v2130_v37 = vadd.f32 %v2129_v48, %v2128_v54  ;;  %v2981_v48 = vld [vmem:[%s3039_s2] ss:$0 sm:$0xff]  ;;  %v3064_v62 = vld [vmem:[#allocation16_spill] sm:$0xff] }
 0x15f   :  { %v2131_v44 = vpop.f32.mrf.mxu0  ;;  %v2188_v6 = vadd.f32 %v3064_v62, %v3063_v49  ;;  %v2194_v52 = vadd.f32 %v2193_v33, %v2950_v59 }
 0x160   :  { %v2958_v20 = vpop.f32.mrf.mxu1  ;;  %v1360_v11 = vadd.f32 %v2130_v37, %v3065_v10 }
 0x161   :  { %v2132_v0 = vpop.f32.mrf.mxu0  ;;  %v1449_v46 = vadd.f32 %v2188_v6, %v1352_v35 }
 0x162   :  { %v2196_v2 = vpop.f32.mrf.mxu1  ;;  %v2133_v18 = vadd.f32 %v2132_v0, %v2131_v44  ;;  %v1457_v59 = vadd.f32 %v2194_v52, %v1360_v11 }
 0x163   :  { %v2232_v39 = vpop.f32.mrf.mxu0  ;;  %v2197_v53 = vadd.f32 %v2196_v2, %v2958_v20 }
 0x164   :  { %v2240_v41 = vpop.f32.mrf.mxu1  ;;  %v1506_v1 = vadd.f32 %v2232_v39, %v1409_v51  ;;  %v1363_v23 = vadd.f32 %v2133_v18, %v3069_v28 }
 0x165   :  { %v1497_v50 = vpop.f32.mrf.mxu0  ;;  %v1538_v54 = vadd.f32 %v2240_v41, %v1441_v16  ;;  %v1428_v16 = vadd.f32 %v2173_v15, %v1331_v5  ;;  %v1420_v5 = vadd.f32 %v2965_v19, %v2970_v30 }
 0x166   :  { %v1529_v13 = vpop.f32.mrf.mxu1  ;;  %v1498_v21 = vadd.f32 %v1497_v50, %v3066_v14  ;;  %v1620_v0 = vadd.f32 %v2981_v48, %v1506_v1  ;;  %v3070_v50 = vld [vmem:[#allocation17_spill] sm:$0xff]  ;;  %v1460_v12 = vadd.f32 %v2197_v53, %v1363_v23 }
 0x167   :  { %v2233_v57 = vpop.f32.mrf.mxu0  ;;  %v1530_v42 = vadd.f32 %v1529_v13, %v1433_v4  ;;  %v2191_v3 = vadd.f32 %v2947_v9, %v3070_v50 }
 0x168   :  { %v1509_v25 = vadd.f32 %v2233_v57, %v1412_v63  ;;  %v2241_v27 = vpop.f32.mrf.mxu1  ;;  %v1628_v63 = vadd.f32 %v2981_v48, %v1538_v54  ;;  %v1618_v24 = vadd.f32 %v2981_v48, %v1498_v21 }
 0x169   :  { %v1541_v44 = vadd.f32 %v2241_v27, %v1444_v60  ;;  %v1500_v38 = vpop.f32.mrf.mxu0  ;;  %v1452_v18 = vadd.f32 %v2191_v3, %v1355_v56 }
 0x16a   :  { %v1621_v51 = vadd.f32 %v2981_v48, %v1509_v25  ;;  %v1501_v22 = vadd.f32 %v1500_v38, %v1404_v45  ;;  %v1532_v26 = vpop.f32.mrf.mxu1  ;;  %v1626_v45 = vadd.f32 %v2981_v48, %v1530_v42 }
 0x16b   :  { %v1629_v40 = vadd.f32 %v2981_v48, %v1541_v44  ;;  %v1533_v32 = vadd.f32 %v1532_v26, %v1436_v8  ;;  %v2236_v34 = vpop.f32.mrf.mxu0 }
 0x16c   :  { %v1903_v36 = vpack.c.bf16 %v1621_v51, %v1620_v0  ;;  %v1619_v39 = vadd.f32 %v2981_v48, %v1501_v22  ;;  %v2244_v33 = vpop.f32.mrf.mxu1  ;;  %v1522_v43 = vadd.f32 %v2236_v34, %v1425_v61 }
 0x16d   :  { %v1923_v55 = vpack.c.bf16 %v1629_v40, %v1628_v63  ;;  %v1627_v58 = vadd.f32 %v2981_v48, %v1533_v32  ;;  %v1513_v37 = vpop.f32.mrf.mxu0  ;;  %v1554_v2 = vadd.f32 %v2244_v33, %v1457_v59 }
 0x16e   :  { %1935 = vst [vmem:[%s3040_s3 + $0x8] sm:$0xff] %v1903_v36   ;;  %v1898_v41 = vpack.c.bf16 %v1619_v39, %v1618_v24  ;;  %v1545_v47 = vpop.f32.mrf.mxu1  ;;  %v1514_v61 = vadd.f32 %v1513_v37, %v2961_v17  ;;  %v1624_v54 = vadd.f32 %v2981_v48, %v1522_v43 }
 0x16f   :  { %1939 = vst [vmem:[%s3040_s3 + $0x28] sm:$0xff] %v1923_v55   ;;  %v1918_v20 = vpack.c.bf16 %v1627_v58, %v1626_v45  ;;  %v2237_v7 = vpop.f32.mrf.mxu0  ;;  %v1546_v9 = vadd.f32 %v1545_v47, %v1449_v46  ;;  %v1632_v17 = vadd.f32 %v2981_v48, %v1554_v2 }
 0x170   :  { %1899 = vst [vmem:[%s3040_s3] sm:$0xff] %v1898_v41   ;;  %v1525_v1 = vadd.f32 %v2237_v7, %v1428_v16  ;;  %v2245_v4 = vpop.f32.mrf.mxu1  ;;  %v1622_v19 = vadd.f32 %v2981_v48, %v1514_v61 }
 0x171   :  { %1938 = vst [vmem:[%s3040_s3 + $0x20] sm:$0xff] %v1918_v20   ;;  %v1557_v15 = vadd.f32 %v2245_v4, %v1460_v12  ;;  %v1516_v13 = vpop.f32.mrf.mxu0  ;;  %v1630_v10 = vadd.f32 %v2981_v48, %v1546_v9 }
 0x172   :  { %v1625_v57 = vadd.f32 %v2981_v48, %v1525_v1  ;;  %v1517_v60 = vadd.f32 %v1516_v13, %v1420_v5  ;;  %v1548_v8 = vpop.f32.mrf.mxu1 }
 0x173   :  { %v1633_v49 = vadd.f32 %v2981_v48, %v1557_v15  ;;  %v1549_v62 = vadd.f32 %v1548_v8, %v1452_v18 }
 0x174   :  { %v1913_v30 = vpack.c.bf16 %v1625_v57, %v1624_v54  ;;  %v1623_v6 = vadd.f32 %v2981_v48, %v1517_v60 }
 0x175   :  { %v1933_v11 = vpack.c.bf16 %v1633_v49, %v1632_v17  ;;  %v1631_v14 = vadd.f32 %v2981_v48, %v1549_v62 }
 0x176   :  { %1937 = vst [vmem:[%s3040_s3 + $0x18] sm:$0xff] %v1913_v30   ;;  %v1908_v21 = vpack.c.bf16 %v1623_v6, %v1622_v19 }
 0x177   :  { %1941 = vst [vmem:[%s3040_s3 + $0x38] sm:$0xff] %v1933_v11   ;;  %v1928_v25 = vpack.c.bf16 %v1631_v14, %v1630_v10 }
 0x178   :  { %1936 = vst [vmem:[%s3040_s3 + $0x10] sm:$0xff] %v1908_v21  }
 0x179   :  { %1940 = vst [vmem:[%s3040_s3 + $0x30] sm:$0xff] %v1928_v25  }

// kernel: sfdet_densenet_forward.37
= control target key start
LH: loop header
LB: loop body
LE: loop exit
PB: predicated region body
PF: predicated region fallthrough
CT: control target
= control target key end

     0   :  { %12 = vsyncpa [#allocation4], 0  ;;  %s578_s0 = inlined_call_operand.vmem [shape: bf16[32,128], index: 0, kind: input, shape index: {}]   ;;  %s579_s1 = inlined_call_operand.vmem [shape: bf16[128,128], index: 1, kind: input, shape index: {}]   ;;  %s580_s2 = inlined_call_operand.vmem [shape: f32[1,128], index: 2, kind: input, shape index: {}]   ;;  %s581_s3 = inlined_call_operand.hbm [shape: f32[1,128], index: 3, kind: input, shape index: {}]   ;;  %s582_s4 = inlined_call_operand.hbm [shape: f32[1,128], index: 4, kind: input, shape index: {}]   ;;  %s583_s5 = inlined_call_operand.hbm [shape: f32[1,128], index: 5, kind: input, shape index: {}]   ;;  %s584_s6 = inlined_call_operand.hbm [shape: f32[1,128], index: 6, kind: input, shape index: {}]   ;;  %s585_s7 = inlined_call_operand.vmem [shape: bf16[32,128], index: 7, kind: output, shape index: {}]  }
   0x1   :  { %13 = vsyncpa [#allocation6], 0 }
   0x2   :  { %14 = vsyncpa [#allocation9], 0  ;;  %s483_s24 = smov [#allocation5]   ;;  %s484_s26 = smov [#allocation3]  }
   0x3   :  { %s37_s25 = sshll.u32 %s483_s24, 4  ;;  %s27_s27 = sshll.u32 %s484_s26, 4  ;;  %s38_s25 = int_to_ptr.vmem [resolvable:$true] %s37_s25  ;;  %s28_s27 = int_to_ptr.vmem [resolvable:$true] %s27_s27 }
   0x4   :  { %s405_s28 = scalar_lea.vmem %s38_s25, 16  ;;  %s409_s29 = scalar_lea.vmem %s38_s25, 32 }
   0x5   :  { %p406_p0 = scmp.ne.s32.totalorder %s38_s25, %s405_s28  ;;  %p410_p1 = scmp.lt.s32.totalorder %s38_s25, %s38_s25 }
   0x6   :  { %p411_p2 = scmp.lt.s32.totalorder %s409_s29, %s405_s28 }
   0x8   :  { %p412_p3 = por %p411_p2, %p410_p1 }
   0xa   :  { %p413_p4 = pnand %p412_p3, %p406_p0 }
   0xc   :  { %416 = shalt.err (!%p413_p4)
}
   0xd   :  { %40 = dma.hbm_to_vmem [thread:$0]  %s582_s4, 16, %s38_s25, [#allocation6]  }
   0xe   :  { %s425_s9 = scalar_lea.vmem %s28_s27, 16  ;;  %s429_s10 = scalar_lea.vmem %s28_s27, 32 }
   0xf   :  { %p426_p5 = scmp.ne.s32.totalorder %s28_s27, %s425_s9  ;;  %p430_p6 = scmp.lt.s32.totalorder %s28_s27, %s28_s27 }
  0x10   :  { %p431_p7 = scmp.lt.s32.totalorder %s429_s10, %s425_s9 }
  0x12   :  { %p432_p8 = por %p431_p7, %p430_p6 }
  0x14   :  { %p433_p9 = pnand %p432_p8, %p426_p5 }
  0x16   :  { %436 = shalt.err (!%p433_p9)
}
  0x17   :  { %30 = dma.hbm_to_vmem [thread:$0]  %s581_s3, 16, %s28_s27, [#allocation4]  }
  0x18   :  { %s485_s13 = smov [#allocation7]   ;;  %s486_s15 = smov [#allocation8]  }
  0x19   :  { %s47_s14 = sshll.u32 %s485_s13, 4  ;;  %s57_s16 = sshll.u32 %s486_s15, 4  ;;  %s48_s14 = int_to_ptr.vmem [resolvable:$true] %s47_s14  ;;  %s58_s16 = int_to_ptr.vmem [resolvable:$true] %s57_s16 }
  0x1a   :  { %s445_s17 = scalar_lea.vmem %s48_s14, 16  ;;  %s449_s4 = scalar_lea.vmem %s48_s14, 32 }
  0x1b   :  { %p446_p10 = scmp.ne.s32.totalorder %s48_s14, %s445_s17  ;;  %p450_p11 = scmp.lt.s32.totalorder %s48_s14, %s48_s14 }
  0x1c   :  { %p451_p12 = scmp.lt.s32.totalorder %s449_s4, %s445_s17 }
  0x1e   :  { %p452_p13 = por %p451_p12, %p450_p11 }
  0x20   :  { %p453_p0 = pnand %p452_p13, %p446_p10 }
  0x22   :  { %456 = shalt.err (!%p453_p0)
}
  0x23   :  { %50 = dma.hbm_to_vmem [thread:$0]  %s583_s5, 16, %s48_s14, [#allocation6]  }
  0x24   :  { %s465_s20 = scalar_lea.vmem %s58_s16, 16  ;;  %s469_s3 = scalar_lea.vmem %s58_s16, 32 }
  0x25   :  { %p466_p1 = scmp.ne.s32.totalorder %s58_s16, %s465_s20  ;;  %p470_p2 = scmp.lt.s32.totalorder %s58_s16, %s58_s16 }
  0x26   :  { %p471_p3 = scmp.lt.s32.totalorder %s469_s3, %s465_s20 }
  0x28   :  { %p472_p4 = por %p471_p3, %p470_p2 }
  0x2a   :  { %p473_p5 = pnand %p472_p4, %p466_p1 }
  0x2c   :  { %476 = shalt.err (!%p473_p5)
}
  0x2d   :  { %60 = dma.hbm_to_vmem [thread:$0]  %s584_s6, 16, %s58_s16, [#allocation9]  }
  0x2e   :  { %477 = dma.done.wait [#allocation4], 16  }
  0x2f   :  { %478 = vsyncadd [#allocation4], 4294967280 }
  0x30   :  { %479 = dma.done.wait [#allocation6], 32  }
  0x31   :  { %480 = vsyncadd [#allocation6], 4294967264 }
  0x32   :  { %481 = dma.done.wait [#allocation9], 16  }
  0x33   :  { %482 = vsyncadd [#allocation9], 4294967280  ;;  %v389_v0 = vld [vmem:[%s579_s1 + $0x38] sm:$0xff]   ;;  %v390_v1 = vld [vmem:[%s579_s1 + $0x30] sm:$0xff]  }
  0x34   :  { %365 = vmatprep.subr.bf16.mxu0 %v389_v0  ;;  %v391_v2 = vld [vmem:[%s579_s1 + $0x28] sm:$0xff]   ;;  %v392_v3 = vld [vmem:[%s579_s1 + $0x20] sm:$0xff]   ;;  %v393_v12 = vld [vmem:[%s579_s1 + $0x18] sm:$0xff]  }
  0x35   :  { %366 = vmatpush3.bf16.msra.mxu0 %v389_v0  ;;  %v336_v4 = vld [vmem:[%s578_s0] sm:$0xff]   ;;  %v353_v11 = vld [vmem:[%s578_s0 + $0x8] sm:$0xff]   ;;  %v394_v19 = vld [vmem:[%s579_s1 + $0x10] sm:$0xff]  }
  0x36   :  { %367 = vmatprep.subr.bf16.mxu0 %v390_v1  ;;  %v314_v5 = vld [vmem:[#allocation3] ss:$0 sm:$0xff]  ;;  %v337_v6 = vunpack.c.l.bf16 %v336_v4  ;;  %v338_v7 = vunpack.c.h.bf16 %v336_v4  ;;  %v315_v8 = vld [vmem:[#allocation5] ss:$0 sm:$0xff]  ;;  %v341_v15 = vunpack.c.l.bf16 %v353_v11  ;;  %v342_v16 = vunpack.c.h.bf16 %v353_v11  ;;  %v395_v23 = vld [vmem:[%s579_s1 + $0x8] sm:$0xff]  }
  0x37   :  { %v396_v26 = vld [vmem:[%s579_s1] sm:$0xff]  }
  0x38   :  { %v97_v9 = vmul.f32 %v337_v6, %v314_v5  ;;  %v98_v10 = vmul.f32 %v338_v7, %v314_v5  ;;  %v99_v21 = vmul.f32 %v341_v15, %v314_v5  ;;  %v100_v22 = vmul.f32 %v342_v16, %v314_v5  ;;  %v324_v30 = vld [vmem:[%s580_s2] ss:$0 sm:$0xff]  ;;  %v325_v32 = vld [vmem:[#allocation7] ss:$0 sm:$0xff]  ;;  %v326_v37 = vld [vmem:[#allocation8] ss:$0 sm:$0xff] }
  0x39   :  { %368 = vmatpush3.bf16.msra.mxu0 %v390_v1 }
  0x3a   :  { %369 = vmatprep.subr.bf16.mxu0 %v391_v2  ;;  %v108_v13 = vadd.f32 %v315_v8, %v97_v9  ;;  %v109_v14 = vadd.f32 %v315_v8, %v98_v10  ;;  %v110_v24 = vadd.f32 %v315_v8, %v99_v21  ;;  %v111_v25 = vadd.f32 %v315_v8, %v100_v22 }
  0x3c   :  { %v112_v17 = vmax.f32 %v108_v13, 0.0  ;;  %v113_v18 = vmax.f32 %v109_v14, 0.0  ;;  %v114_v27 = vmax.f32 %v110_v24, 0.0  ;;  %v115_v28 = vmax.f32 %v111_v25, 0.0 }
  0x3d   :  { %370 = vmatpush3.bf16.msra.mxu0 %v391_v2 }
  0x3e   :  { %371 = vmatprep.subr.bf16.mxu0 %v392_v3  ;;  %v116_v20 = vpack.c.bf16 %v113_v18, %v112_v17  ;;  %v117_v29 = vpack.c.bf16 %v115_v28, %v114_v27 }
  0x40   :  { %381 = vmatprep.mubr.bf16.mxu0 %v116_v20 }
  0x41   :  { %372 = vmatpush3.bf16.msra.mxu0 %v392_v3 }
  0x42   :  { %373 = vmatprep.subr.bf16.mxu0 %v393_v12 }
  0x45   :  { %374 = vmatpush3.bf16.msra.mxu0 %v393_v12 }
  0x46   :  { %375 = vmatprep.subr.bf16.mxu0 %v394_v19 }
  0x49   :  { %376 = vmatpush3.bf16.msra.mxu0 %v394_v19 }
  0x4a   :  { %377 = vmatprep.subr.bf16.mxu0 %v395_v23 }
  0x4d   :  { %378 = vmatpush3.bf16.msra.mxu0 %v395_v23 }
  0x4e   :  { %379 = vmatprep.subr.bf16.mxu0 %v396_v26 }
  0x51   :  { %380 = vmatpush3.bf16.msra.mxu0 %v396_v26 }
  0x54   :  { %382 = vmatmul.mubr.bf16.vlgmr.msra.gmra.mxu0 %v117_v29 }
 0x114   :  { %v383_v31 = vpop.f32.mrf.mxu0 }
 0x115   :  { %v259_v33 = vadd.f32 %v383_v31, %v324_v30 }
 0x116   :  { %v220_v34 = vpop.f32.mrf.mxu0 }
 0x117   :  { %v270_v35 = vmul.f32 %v325_v32, %v259_v33  ;;  %v257_v36 = vadd.f32 %v324_v30, %v220_v34 }
 0x118   :  { %v384_v38 = vpop.f32.mrf.mxu0 }
 0x119   :  { %v268_v39 = vmul.f32 %v325_v32, %v257_v36  ;;  %v260_v40 = vadd.f32 %v384_v38, %v324_v30  ;;  %v281_v42 = vadd.f32 %v326_v37, %v270_v35 }
 0x11a   :  { %v223_v41 = vpop.f32.mrf.mxu0 }
 0x11b   :  { %v271_v43 = vmul.f32 %v325_v32, %v260_v40  ;;  %v258_v44 = vadd.f32 %v324_v30, %v223_v41  ;;  %v279_v45 = vadd.f32 %v326_v37, %v268_v39  ;;  %v285_v48 = vmax.f32 %v281_v42, 0.0 }
 0x11d   :  { %v282_v46 = vadd.f32 %v326_v37, %v271_v43  ;;  %v269_v47 = vmul.f32 %v325_v32, %v258_v44  ;;  %v283_v51 = vmax.f32 %v279_v45, 0.0 }
 0x11f   :  { %v286_v49 = vmax.f32 %v282_v46, 0.0  ;;  %v280_v50 = vadd.f32 %v326_v37, %v269_v47 }
 0x121   :  { %v351_v52 = vpack.c.bf16 %v286_v49, %v285_v48  ;;  %v284_v53 = vmax.f32 %v280_v50, 0.0 }
 0x123   :  { %354 = vst [vmem:[%s585_s7 + $0x8] sm:$0xff] %v351_v52   ;;  %v346_v54 = vpack.c.bf16 %v284_v53, %v283_v51 }
 0x125   :  { %347 = vst [vmem:[%s585_s7] sm:$0xff] %v346_v54  }
 0x126   :  { %311 = vsyncpa [#allocation4], 1 }
 0x127   :  { %312 = vsyncpa [#allocation6], 1 }
 0x128   :  { %313 = vsyncpa [#allocation9], 1 }

// kernel: sfdet_densenet_forward.49
= control target key start
LH: loop header
LB: loop body
LE: loop exit
PB: predicated region body
PF: predicated region fallthrough
CT: control target
= control target key end

     0   :  { %s1427_s18 = smov 0   ;;  %s1429_s19 = smov 0   ;;  %s1658_s0 = inlined_call_operand.vmem [shape: bf16[32,384], index: 0, kind: input, shape index: {}]   ;;  %s1659_s1 = inlined_call_operand.vmem [shape: bf16[384,512], index: 1, kind: input, shape index: {}]   ;;  %s1660_s2 = inlined_call_operand.vmem [shape: f32[1,512], index: 2, kind: input, shape index: {}]   ;;  %s1661_s3 = inlined_call_operand.vmem [shape: f32[1,512], index: 3, kind: input, shape index: {}]   ;;  %s1662_s4 = inlined_call_operand.vmem [shape: f32[1,512], index: 4, kind: input, shape index: {}]   ;;  %s1663_s5 = inlined_call_operand.vmem [shape: bf16[32,512], index: 5, kind: output, shape index: {}]  }
   0x1   :  { %s1431_s20 = smov 0   ;;  %s1433_s21 = smov 0  }
   0x2   :  { %s1435_s22 = smov 0  }
   0x3 LB: > { %s30_s23 = sadd.s32 1, %s1391_s21  ;;  %s1161_s24 = sadd.s32 4294967295, %s1395_s22   ;;  %s1395_s22 = sphi %s1435_s22, %s15_s22   ;;  %s1391_s21 = sphi %s1433_s21, %s1668_s21   ;;  %s1387_s20 = sphi %s1431_s20, %s1667_s20   ;;  %s1383_s19 = sphi %s1429_s19, %s1666_s19   ;;  %s1379_s18 = sphi %s1427_s18, %s1665_s18  }
   0x4   : > { %p32_p0 = scmp.ge.s32.totalorder %s30_s23, 4  ;;  %p78_p1 = scmp.ne.s32.totalorder %s1383_s19, %s1379_s18 }
   0x5   : > { %p79_p2 = scmp.eq.s32.totalorder %s1395_s22, 0  ;;  %p188_p4 = scmp.eq.s32.totalorder %s1161_s24, 3 }
   0x6   : > { %s1670_s23 = smov (%p32_p0, %s30_s23), 0  ;;  %s71_s26 = sadd.s32 1, %s1383_s19 }
   0x7   : > { %p80_p3 = por %p79_p2, %p78_p1  ;;  %s67_s25 = ssub.s32 %s1391_s21, %s1670_s23 }
   0x8   : > { %p69_p5 = scmp.eq.s32.totalorder %s67_s25, 0  ;;  %p1462_p6 = por %p188_p4, %p78_p1 }
   0x9   : > { %p1165_p7 = scmp.ge.s32.totalorder %s1395_s22, 4 }
   0xa   : > { %s1467_s28 = scalar_select %p69_p5, %s1383_s19, %s71_s26  }
   0xb   : > { %225 = sbr.rel (%p1165_p7) target bundleno = 52 (0x34), region = 20 }
  0x10   : > { %228 = sbr.rel (!%p80_p3) target bundleno = 52 (0x34), region = 24  ;;  %s230_s29 = sand.u32 (%p80_p3), 1, %s1383_s19  }
  0x11   : > { %s1166_s30 = sshll.u32 (%p80_p3), %s1391_s21, 2  ;;  %s1283_s6 = smul.u32 (%p80_p3), 192, %s230_s29 }
  0x12   : > { %s1475_s9 = scalar_lea.vmem (%p80_p3), %s1659_s1, %s1166_s30 }
  0x13   : > { %v254_v0 = vld [vmem:[%s1475_s9] sm:$0xf] (%p80_p3)  ;;  %v256_v1 = vld [vmem:[%s1475_s9 + $0x10] sm:$0xf] (%p80_p3)  ;;  %s1482_s10 = scalar_lea.vmem (%p80_p3), [#allocation3], %s1283_s6 }
  0x14   : > { %v258_v2 = vld [vmem:[%s1475_s9 + $0x20] sm:$0xf] (%p80_p3)  ;;  %v260_v3 = vld [vmem:[%s1475_s9 + $0x30] sm:$0xf] (%p80_p3)  ;;  %255 = vst [vmem:[%s1482_s10] sm:$0xf] (%p80_p3), %v254_v0 }
  0x15   : > { %v262_v4 = vld [vmem:[%s1475_s9 + $0x40] sm:$0xf]  ;;  %257 = vst [vmem:[%s1482_s10 + $0x4] sm:$0xf] %v256_v1  ;;  %259 = vst [vmem:[%s1482_s10 + $0x8] sm:$0xf] %v258_v2 }
  0x16   : > { %261 = vst [vmem:[%s1482_s10 + $0xc] sm:$0xf] %v260_v3  ;;  %263 = vst [vmem:[%s1482_s10 + $0x10] sm:$0xf] %v262_v4  ;;  %v264_v5 = vld [vmem:[%s1475_s9 + $0x50] sm:$0xf] }
  0x17   : > { %v266_v6 = vld [vmem:[%s1475_s9 + $0x60] sm:$0xf]  ;;  %v268_v7 = vld [vmem:[%s1475_s9 + $0x70] sm:$0xf]  ;;  %265 = vst [vmem:[%s1482_s10 + $0x14] sm:$0xf] %v264_v5 }
  0x18   : > { %267 = vst [vmem:[%s1482_s10 + $0x18] sm:$0xf] %v266_v6  ;;  %269 = vst [vmem:[%s1482_s10 + $0x1c] sm:$0xf] %v268_v7  ;;  %v270_v8 = vld [vmem:[%s1475_s9 + $0x80] sm:$0xf] }
  0x19   : > { %v272_v9 = vld [vmem:[%s1475_s9 + $0x90] sm:$0xf]  ;;  %v274_v10 = vld [vmem:[%s1475_s9 + $0xa0] sm:$0xf]  ;;  %271 = vst [vmem:[%s1482_s10 + $0x20] sm:$0xf] %v270_v8 }
  0x1a   : > { %273 = vst [vmem:[%s1482_s10 + $0x24] sm:$0xf] %v272_v9  ;;  %275 = vst [vmem:[%s1482_s10 + $0x28] sm:$0xf] %v274_v10  ;;  %v276_v11 = vld [vmem:[%s1475_s9 + $0xb0] sm:$0xf] }
  0x1b   : > { %v278_v12 = vld [vmem:[%s1475_s9 + $0xc0] sm:$0xf]  ;;  %v280_v13 = vld [vmem:[%s1475_s9 + $0xd0] sm:$0xf]  ;;  %277 = vst [vmem:[%s1482_s10 + $0x2c] sm:$0xf] %v276_v11 }
  0x1c   : > { %279 = vst [vmem:[%s1482_s10 + $0x30] sm:$0xf] %v278_v12  ;;  %281 = vst [vmem:[%s1482_s10 + $0x34] sm:$0xf] %v280_v13  ;;  %v282_v14 = vld [vmem:[%s1475_s9 + $0xe0] sm:$0xf] }
  0x1d   : > { %v284_v15 = vld [vmem:[%s1475_s9 + $0xf0] sm:$0xf]  ;;  %v286_v16 = vld [vmem:[%s1475_s9 + $0x100] sm:$0xf]  ;;  %283 = vst [vmem:[%s1482_s10 + $0x38] sm:$0xf] %v282_v14 }
  0x1e   : > { %285 = vst [vmem:[%s1482_s10 + $0x3c] sm:$0xf] %v284_v15  ;;  %287 = vst [vmem:[%s1482_s10 + $0x40] sm:$0xf] %v286_v16  ;;  %v288_v17 = vld [vmem:[%s1475_s9 + $0x110] sm:$0xf] }
  0x1f   : > { %v290_v18 = vld [vmem:[%s1475_s9 + $0x120] sm:$0xf]  ;;  %v292_v19 = vld [vmem:[%s1475_s9 + $0x130] sm:$0xf]  ;;  %289 = vst [vmem:[%s1482_s10 + $0x44] sm:$0xf] %v288_v17 }
  0x20   : > { %291 = vst [vmem:[%s1482_s10 + $0x48] sm:$0xf] %v290_v18  ;;  %293 = vst [vmem:[%s1482_s10 + $0x4c] sm:$0xf] %v292_v19  ;;  %v294_v20 = vld [vmem:[%s1475_s9 + $0x140] sm:$0xf] }
  0x21   : > { %v296_v21 = vld [vmem:[%s1475_s9 + $0x150] sm:$0xf]  ;;  %v298_v22 = vld [vmem:[%s1475_s9 + $0x160] sm:$0xf]  ;;  %295 = vst [vmem:[%s1482_s10 + $0x50] sm:$0xf] %v294_v20 }
  0x22   : > { %297 = vst [vmem:[%s1482_s10 + $0x54] sm:$0xf] %v296_v21  ;;  %299 = vst [vmem:[%s1482_s10 + $0x58] sm:$0xf] %v298_v22  ;;  %v300_v23 = vld [vmem:[%s1475_s9 + $0x170] sm:$0xf] }
  0x23   : > { %v302_v24 = vld [vmem:[%s1475_s9 + $0x180] sm:$0xf]  ;;  %v304_v25 = vld [vmem:[%s1475_s9 + $0x190] sm:$0xf]  ;;  %301 = vst [vmem:[%s1482_s10 + $0x5c] sm:$0xf] %v300_v23 }
  0x24   : > { %303 = vst [vmem:[%s1482_s10 + $0x60] sm:$0xf] %v302_v24  ;;  %305 = vst [vmem:[%s1482_s10 + $0x64] sm:$0xf] %v304_v25  ;;  %v306_v26 = vld [vmem:[%s1475_s9 + $0x1a0] sm:$0xf] }
  0x25   : > { %v308_v27 = vld [vmem:[%s1475_s9 + $0x1b0] sm:$0xf]  ;;  %v310_v28 = vld [vmem:[%s1475_s9 + $0x1c0] sm:$0xf]  ;;  %307 = vst [vmem:[%s1482_s10 + $0x68] sm:$0xf] %v306_v26 }
  0x26   : > { %309 = vst [vmem:[%s1482_s10 + $0x6c] sm:$0xf] %v308_v27  ;;  %311 = vst [vmem:[%s1482_s10 + $0x70] sm:$0xf] %v310_v28  ;;  %v312_v29 = vld [vmem:[%s1475_s9 + $0x1d0] sm:$0xf] }
  0x27   : > { %v314_v30 = vld [vmem:[%s1475_s9 + $0x1e0] sm:$0xf]  ;;  %v316_v31 = vld [vmem:[%s1475_s9 + $0x1f0] sm:$0xf]  ;;  %313 = vst [vmem:[%s1482_s10 + $0x74] sm:$0xf] %v312_v29 }
  0x28   : > { %315 = vst [vmem:[%s1482_s10 + $0x78] sm:$0xf] %v314_v30  ;;  %317 = vst [vmem:[%s1482_s10 + $0x7c] sm:$0xf] %v316_v31  ;;  %v318_v32 = vld [vmem:[%s1475_s9 + $0x200] sm:$0xf] }
  0x29   : > { %v320_v33 = vld [vmem:[%s1475_s9 + $0x210] sm:$0xf]  ;;  %v322_v34 = vld [vmem:[%s1475_s9 + $0x220] sm:$0xf]  ;;  %319 = vst [vmem:[%s1482_s10 + $0x80] sm:$0xf] %v318_v32 }
  0x2a   : > { %321 = vst [vmem:[%s1482_s10 + $0x84] sm:$0xf] %v320_v33  ;;  %323 = vst [vmem:[%s1482_s10 + $0x88] sm:$0xf] %v322_v34  ;;  %v324_v35 = vld [vmem:[%s1475_s9 + $0x230] sm:$0xf] }
  0x2b   : > { %v326_v36 = vld [vmem:[%s1475_s9 + $0x240] sm:$0xf]  ;;  %v328_v37 = vld [vmem:[%s1475_s9 + $0x250] sm:$0xf]  ;;  %325 = vst [vmem:[%s1482_s10 + $0x8c] sm:$0xf] %v324_v35 }
  0x2c   : > { %327 = vst [vmem:[%s1482_s10 + $0x90] sm:$0xf] %v326_v36  ;;  %329 = vst [vmem:[%s1482_s10 + $0x94] sm:$0xf] %v328_v37  ;;  %v330_v38 = vld [vmem:[%s1475_s9 + $0x260] sm:$0xf] }
  0x2d   : > { %v332_v39 = vld [vmem:[%s1475_s9 + $0x270] sm:$0xf]  ;;  %v334_v40 = vld [vmem:[%s1475_s9 + $0x280] sm:$0xf]  ;;  %331 = vst [vmem:[%s1482_s10 + $0x98] sm:$0xf] %v330_v38 }
  0x2e   : > { %333 = vst [vmem:[%s1482_s10 + $0x9c] sm:$0xf] %v332_v39  ;;  %335 = vst [vmem:[%s1482_s10 + $0xa0] sm:$0xf] %v334_v40  ;;  %v336_v41 = vld [vmem:[%s1475_s9 + $0x290] sm:$0xf] }
  0x2f   : > { %v338_v42 = vld [vmem:[%s1475_s9 + $0x2a0] sm:$0xf]  ;;  %v340_v43 = vld [vmem:[%s1475_s9 + $0x2b0] sm:$0xf]  ;;  %337 = vst [vmem:[%s1482_s10 + $0xa4] sm:$0xf] %v336_v41 }
  0x30   : > { %339 = vst [vmem:[%s1482_s10 + $0xa8] sm:$0xf] %v338_v42  ;;  %341 = vst [vmem:[%s1482_s10 + $0xac] sm:$0xf] %v340_v43  ;;  %v342_v44 = vld [vmem:[%s1475_s9 + $0x2c0] sm:$0xf] }
  0x31   : > { %v344_v45 = vld [vmem:[%s1475_s9 + $0x2d0] sm:$0xf]  ;;  %v346_v46 = vld [vmem:[%s1475_s9 + $0x2e0] sm:$0xf]  ;;  %343 = vst [vmem:[%s1482_s10 + $0xb0] sm:$0xf] %v342_v44 }
  0x32   : > { %345 = vst [vmem:[%s1482_s10 + $0xb4] sm:$0xf] %v344_v45  ;;  %347 = vst [vmem:[%s1482_s10 + $0xb8] sm:$0xf] %v346_v46  ;;  %v348_v47 = vld [vmem:[%s1475_s9 + $0x2f0] sm:$0xf] }
  0x33   : > { %349 = vst [vmem:[%s1482_s10 + $0xbc] sm:$0xf] %v348_v47 }
  0x34 PF: > { %p1167_p8 = scmp.ge.s32.totalorder %s1395_s22, 1  ;;  %p486_p9 = scmp.lt.s32.totalorder %s1395_s22, 5 }
  0x36   : > { %p487_p10 = pnand %p1167_p8, %p486_p9 }
  0x37   : > { %s493_s11 = sand.u32 (!%p487_p10), 1, %s1379_s18   ;;  %p551_p11 = scmp.lt.s32.totalorder (!%p487_p10), %s1387_s20, 3 }
  0x38   : > { %490 = sbr.rel (%p487_p10) target bundleno = 325 (0x145), region = 77  ;;  %s1168_s26 = sshll.u32 (!%p487_p10), %s493_s11, 4 }
  0x39   : > { %s1284_s12 = smul.u32 (!%p487_p10), 192, %s493_s11  ;;  %s537_s29 = scalar_lea.vmem (!%p487_p10), [#allocation4], %s1168_s26 }
  0x3b   : > { %s1586_s17 = scalar_lea.vmem (!%p487_p10), [#allocation3], %s1284_s12 }
  0x3d   : > { %v1351_v48 = vld [vmem:[%s1658_s0 + $0x4] ss:$12 sps:$4 sm:$0xff]   ;;  %v1352_v49 = vld [vmem:[%s1658_s0 + $0x8] ss:$12 sps:$4 sm:$0xff]   ;;  %v1325_v50 = vld [vmem:[%s1586_s17 + $0x78] sm:$0xff]   ;;  %s552_s9 = scalar_select %p551_p11, %s1387_s20, 3 }
  0x3e   : > { %838 = vmatprep.mubr.bf16.mxu0 %v1351_v48  ;;  %1279 = vmatprep.mubr.bf16.mxu1 %v1352_v49  ;;  %v1326_v51 = vld [vmem:[%s1586_s17 + $0x38] sm:$0xff]   ;;  %v1328_v53 = vld [vmem:[%s1586_s17 + $0x70] sm:$0xff]   ;;  %v1331_v56 = vld [vmem:[%s1586_s17 + $0x68] sm:$0xff]   ;;  %s1207_s18 = sshll.u32 (%p1462_p6), %s1387_s20, 2 }
  0x3f   : > { %1225 = vmatprep.subr.bf16.mxu0 %v1325_v50  ;;  %v1327_v52 = vld [vmem:[%s1586_s17 + $0xb8] sm:$0xff]   ;;  %v1329_v54 = vld [vmem:[%s1586_s17 + $0x30] sm:$0xff]   ;;  %v1332_v57 = vld [vmem:[%s1586_s17 + $0x28] sm:$0xff]   ;;  %s553_s13 = scalar_lea.vmem %s1660_s2, %s552_s9  ;;  %s556_s16 = scalar_lea.vmem %s1661_s3, %s552_s9 }
  0x40   : > { %1226 = vmatpush3.bf16.msra.mxu0 %v1326_v51  ;;  %1263 = vmatprep.subr.bf16.mxu1 %v1327_v52  ;;  %v1330_v55 = vld [vmem:[%s1586_s17 + $0xb0] sm:$0xff]   ;;  %v1333_v58 = vld [vmem:[%s1586_s17 + $0xa8] sm:$0xff]   ;;  %v1334_v59 = vld [vmem:[%s1586_s17 + $0x60] sm:$0xff]   ;;  %s559_s25 = scalar_lea.vmem %s1662_s4, %s552_s9  ;;  %s987_s6 = scalar_lea.vmem (%p1462_p6), %s1663_s5, %s1207_s18 }
  0x41   : > { %1264 = vmatpush3.bf16.msra.mxu1 %v1327_v52  ;;  %1227 = vmatprep.subr.bf16.mxu0 %v1328_v53  ;;  %v1335_v60 = vld [vmem:[%s1586_s17 + $0x20] sm:$0xff]   ;;  %v1337_v62 = vld [vmem:[%s1586_s17 + $0x58] sm:$0xff]   ;;  %v1340_v1 = vld [vmem:[%s1586_s17 + $0x50] sm:$0xff]  }
  0x42   : > { %1265 = vmatprep.subr.bf16.mxu1 %v1330_v55  ;;  %v1336_v61 = vld [vmem:[%s1586_s17 + $0xa0] sm:$0xff]   ;;  %v1339_v63 = vld [vmem:[%s1586_s17 + $0x98] sm:$0xff]   ;;  %v1342_v2 = vld [vmem:[%s1586_s17 + $0x90] sm:$0xff]  }
  0x43   : > { %v1338_v0 = vld [vmem:[%s1586_s17 + $0x18] sm:$0xff]   ;;  %v1341_v3 = vld [vmem:[%s1586_s17 + $0x10] sm:$0xff]   ;;  %v1343_v4 = vld [vmem:[%s1586_s17 + $0x48] sm:$0xff]  }
  0x44   : > { %1228 = vmatpush3.bf16.msra.mxu0 %v1329_v54  ;;  %v1345_v5 = vld [vmem:[%s1586_s17 + $0x88] sm:$0xff]   ;;  %v1346_v7 = vld [vmem:[%s1586_s17 + $0x40] sm:$0xff]  }
  0x45   : > { %1229 = vmatprep.subr.bf16.mxu0 %v1331_v56  ;;  %1266 = vmatpush3.bf16.msra.mxu1 %v1330_v55  ;;  %v1344_v6 = vld [vmem:[%s1586_s17 + $0x8] sm:$0xff]   ;;  %v1348_v8 = vld [vmem:[%s1586_s17 + $0x80] sm:$0xff]  }
  0x46   : > { %1267 = vmatprep.subr.bf16.mxu1 %v1333_v58  ;;  %v1347_v9 = vld [vmem:[%s1586_s17] sm:$0xff]   ;;  %v1354_v11 = vld [vmem:[%s1658_s0 + $0x1c] ss:$12 sps:$4 sm:$0xff]  }
  0x47   : > { %v1349_v10 = vld [vmem:[%s1658_s0] ss:$12 sps:$4 sm:$0xff]   ;;  %v1356_v13 = vld [vmem:[%s1658_s0 + $0x18] ss:$12 sps:$4 sm:$0xff]  }
  0x48   : > { %1230 = vmatpush3.bf16.msra.mxu0 %v1332_v57  ;;  %v1353_v12 = vld [vmem:[%s1658_s0 + $0x20] ss:$12 sps:$4 sm:$0xff]  }
  0x49   : > { %1231 = vmatprep.subr.bf16.mxu0 %v1334_v59  ;;  %1268 = vmatpush3.bf16.msra.mxu1 %v1333_v58  ;;  %v1199_v20 = vld [vmem:[%s553_s13] ss:$0 sm:$0xff] }
  0x4a   : > { %1269 = vmatprep.subr.bf16.mxu1 %v1336_v61  ;;  %v1200_v30 = vld [vmem:[%s556_s16] ss:$0 sm:$0xff] }
  0x4b   : > { %v1201_v38 = vld [vmem:[%s559_s25] ss:$0 sm:$0xff] }
  0x4c   : > { %1232 = vmatpush3.bf16.msra.mxu0 %v1335_v60 }
  0x4d   : > { %1233 = vmatprep.subr.bf16.mxu0 %v1337_v62  ;;  %1270 = vmatpush3.bf16.msra.mxu1 %v1336_v61 }
  0x4e   : > { %1271 = vmatprep.subr.bf16.mxu1 %v1339_v63 }
  0x50   : > { %1234 = vmatpush3.bf16.msra.mxu0 %v1338_v0 }
  0x51   : > { %1235 = vmatprep.subr.bf16.mxu0 %v1340_v1  ;;  %1272 = vmatpush3.bf16.msra.mxu1 %v1339_v63 }
  0x52   : > { %1273 = vmatprep.subr.bf16.mxu1 %v1342_v2 }
  0x54   : > { %1236 = vmatpush3.bf16.msra.mxu0 %v1341_v3 }
  0x55   : > { %1237 = vmatprep.subr.bf16.mxu0 %v1343_v4  ;;  %1274 = vmatpush3.bf16.msra.mxu1 %v1342_v2 }
  0x56   : > { %1275 = vmatprep.subr.bf16.mxu1 %v1345_v5 }
  0x58   : > { %1238 = vmatpush3.bf16.msra.mxu0 %v1344_v6 }
  0x59   : > { %1239 = vmatprep.subr.bf16.mxu0 %v1346_v7  ;;  %1276 = vmatpush3.bf16.msra.mxu1 %v1345_v5 }
  0x5a   : > { %1277 = vmatprep.subr.bf16.mxu1 %v1348_v8 }
  0x5c   : > { %1240 = vmatpush3.bf16.msra.mxu0 %v1347_v9 }
  0x5d   : > { %1278 = vmatpush3.bf16.msra.mxu1 %v1348_v8 }
  0x5f   : > { %839 = vmatmul.mubr.bf16.vlgmr.msra.gmra.mxu0 %v1349_v10 }
  0x60   : > { %846 = vmatprep.mubr.bf16.mxu0 %v1354_v11  ;;  %1280 = vmatmul.mubr.bf16.vlgmr.msra.gmra.mxu1 %v1353_v12 }
  0x67   : > { %847 = vmatmul.mubr.bf16.gmra.mxu0 %v1356_v13 }
 0x11f   : > { %v1241_v14 = vpop.f32.mrf.mxu0 }
 0x120   : > { %v1281_v16 = vpop.f32.mrf.mxu1 }
 0x121   : > { %v1242_v15 = vpop.f32.mrf.mxu0 }
 0x122   : > { %v1243_v17 = vadd.f32 %v1242_v15, %v1241_v14  ;;  %v889_v19 = vpop.f32.mrf.mxu1 }
 0x123   : > { %v1244_v18 = vpop.f32.mrf.mxu0 }
 0x124   : > { %v890_v21 = vadd.f32 %v1243_v17, %v889_v19  ;;  %v1282_v23 = vpop.f32.mrf.mxu1 }
 0x125   : > { %v1245_v22 = vpop.f32.mrf.mxu0 }
 0x126   : > { %v926_v24 = vadd.f32 %v1199_v20, %v890_v21  ;;  %v1246_v25 = vadd.f32 %v1245_v22, %v1244_v18  ;;  %v892_v27 = vpop.f32.mrf.mxu1 }
 0x127   : > { %v1247_v26 = vpop.f32.mrf.mxu0 }
 0x128   : > { %v930_v28 = vmax.f32 %v926_v24, 0.0  ;;  %v893_v29 = vadd.f32 %v1246_v25, %v892_v27 }
 0x129   : > { %v1248_v31 = vpop.f32.mrf.mxu0 }
 0x12a   : > { %v927_v32 = vadd.f32 %v1199_v20, %v893_v29  ;;  %v1249_v33 = vadd.f32 %v1248_v31, %v1247_v26  ;;  %v941_v35 = vmul.f32 %v1200_v30, %v930_v28 }
 0x12b   : > { %v1250_v34 = vpop.f32.mrf.mxu0 }
 0x12c   : > { %v931_v36 = vmax.f32 %v927_v32, 0.0  ;;  %v898_v37 = vadd.f32 %v1281_v16, %v1249_v33  ;;  %v952_v43 = vadd.f32 %v1201_v38, %v941_v35 }
 0x12d   : > { %v1251_v39 = vpop.f32.mrf.mxu0 }
 0x12e   : > { %v942_v40 = vmul.f32 %v1200_v30, %v931_v36  ;;  %v928_v41 = vadd.f32 %v1199_v20, %v898_v37  ;;  %v1252_v42 = vadd.f32 %v1251_v39, %v1250_v34 }
 0x130   : > { %v953_v44 = vadd.f32 %v1201_v38, %v942_v40  ;;  %v932_v45 = vmax.f32 %v928_v41, 0.0  ;;  %v901_v46 = vadd.f32 %v1282_v23, %v1252_v42 }
 0x132   : > { %v1217_v47 = vpack.c.bf16 %v953_v44, %v952_v43  ;;  %v929_v48 = vadd.f32 %v1199_v20, %v901_v46  ;;  %v943_v49 = vmul.f32 %v1200_v30, %v932_v45 }
 0x134   : > { %1218 = vst [vmem:[%s537_s29] sm:$0xff] %v1217_v47   ;;  %v933_v50 = vmax.f32 %v929_v48, 0.0  ;;  %v954_v52 = vadd.f32 %v1201_v38, %v943_v49 }
 0x136   : > { %v944_v51 = vmul.f32 %v1200_v30, %v933_v50 }
 0x138   : > { %v955_v53 = vadd.f32 %v1201_v38, %v944_v51  ;;  %982 = sbr.rel (!%p1462_p6) target bundleno = 325 (0x145), region = 93 }
 0x13a   : > { %v1222_v54 = vpack.c.bf16 %v955_v53, %v954_v52 }
 0x13b   : > { %v1004_v55 = vld [vmem:[%s537_s29] sm:$0xf] (%p1462_p6)  ;;  %v1006_v56 = vld [vmem:[%s537_s29 + $0x4] sm:$0xf] (%p1462_p6) }
 0x13c   : > { %1224 = vst [vmem:[%s537_s29 + $0x8] sm:$0xff] %v1222_v54   ;;  %1005 = vst [vmem:[%s987_s6] sm:$0xf] (%p1462_p6), %v1004_v55 }
 0x13d   : > { %1007 = vst [vmem:[%s987_s6 + $0x10] sm:$0xf] %v1006_v56 }
 0x143   : > { %v1008_v57 = vld [vmem:[%s537_s29 + $0x8] sm:$0xf]  ;;  %v1010_v58 = vld [vmem:[%s537_s29 + $0xc] sm:$0xf] }
 0x144   : > { %1009 = vst [vmem:[%s987_s6 + $0x20] sm:$0xf] %v1008_v57  ;;  %1011 = vst [vmem:[%s987_s6 + $0x30] sm:$0xf] %v1010_v58 }
 0x145 PF: > { %s15_s22 = sadd.s32 1, %s1395_s22   ;;  %s1665_s18 = smov %s1383_s19 }
 0x146   : > { %p12_p12 = scmp.ge.s32.totalorder %s15_s22, 6   ;;  %s1666_s19 = smov %s1467_s28 }
 0x147   : > { %s1667_s20 = smov %s1391_s21  ;;  %s1668_s21 = smov %s1670_s23 }
 0x148   :  { %14 = sbr.rel (!%p12_p12) target bundleno = 3 (0x3), region = 177 }

// kernel: sfdet_densenet_forward.36
= control target key start
LH: loop header
LB: loop body
LE: loop exit
PB: predicated region body
PF: predicated region fallthrough
CT: control target
= control target key end

     0   :  { %s1659_s1 = inlined_call_operand.vmem [shape: bf16[1152,128], index: 1, kind: input, shape index: {}]   ;;  %s1660_s0 = inlined_call_operand.vmem [shape: bf16[32,1152], index: 0, kind: input, shape index: {}]   ;;  %s1661_s2 = inlined_call_operand.vmem [shape: f32[1,128], index: 2, kind: input, shape index: {}]   ;;  %s1662_s3 = inlined_call_operand.vmem [shape: bf16[32,128], index: 3, kind: output, shape index: {}]  }
   0x1   :  { %v1262_v0 = vld [vmem:[%s1659_s1 + $0x78] sm:$0xff]   ;;  %v1266_v4 = vld [vmem:[%s1659_s1 + $0x70] sm:$0xff]   ;;  %v1270_v8 = vld [vmem:[%s1659_s1 + $0x68] sm:$0xff]  }
   0x2   :  { %v1263_v1 = vld [vmem:[%s1659_s1 + $0xf8] sm:$0xff]   ;;  %1120 = vmatprep.subr.bf16.mxu0 %v1262_v0  ;;  %v1267_v5 = vld [vmem:[%s1659_s1 + $0xf0] sm:$0xff]   ;;  %v1271_v9 = vld [vmem:[%s1659_s1 + $0xe8] sm:$0xff]  }
   0x3   :  { %v1264_v2 = vld [vmem:[%s1659_s1 + $0x38] sm:$0xff]   ;;  %1148 = vmatprep.subr.bf16.mxu1 %v1263_v1  ;;  %v1268_v6 = vld [vmem:[%s1659_s1 + $0x30] sm:$0xff]   ;;  %v1272_v10 = vld [vmem:[%s1659_s1 + $0x28] sm:$0xff]  }
   0x4   :  { %v1265_v3 = vld [vmem:[%s1659_s1 + $0xb8] sm:$0xff]   ;;  %1121 = vmatpush3.bf16.msra.mxu0 %v1264_v2  ;;  %v1269_v7 = vld [vmem:[%s1659_s1 + $0xb0] sm:$0xff]   ;;  %v1273_v11 = vld [vmem:[%s1659_s1 + $0xa8] sm:$0xff]  }
   0x5   :  { %1149 = vmatpush3.bf16.msra.mxu1 %v1265_v3  ;;  %1122 = vmatprep.subr.bf16.mxu0 %v1266_v4  ;;  %v1274_v12 = vld [vmem:[%s1659_s1 + $0x60] sm:$0xff]   ;;  %v1278_v16 = vld [vmem:[%s1659_s1 + $0x58] sm:$0xff]   ;;  %v1282_v20 = vld [vmem:[%s1659_s1 + $0x50] sm:$0xff]  }
   0x6   :  { %1150 = vmatprep.subr.bf16.mxu1 %v1267_v5  ;;  %v1275_v13 = vld [vmem:[%s1659_s1 + $0xe0] sm:$0xff]   ;;  %v1279_v17 = vld [vmem:[%s1659_s1 + $0xd8] sm:$0xff]   ;;  %v1283_v21 = vld [vmem:[%s1659_s1 + $0xd0] sm:$0xff]  }
   0x7   :  { %v1276_v14 = vld [vmem:[%s1659_s1 + $0x20] sm:$0xff]   ;;  %v1280_v18 = vld [vmem:[%s1659_s1 + $0x18] sm:$0xff]   ;;  %v1284_v22 = vld [vmem:[%s1659_s1 + $0x10] sm:$0xff]  }
   0x8   :  { %1123 = vmatpush3.bf16.msra.mxu0 %v1268_v6  ;;  %v1277_v15 = vld [vmem:[%s1659_s1 + $0xa0] sm:$0xff]   ;;  %v1281_v19 = vld [vmem:[%s1659_s1 + $0x98] sm:$0xff]   ;;  %v1285_v23 = vld [vmem:[%s1659_s1 + $0x90] sm:$0xff]  }
   0x9   :  { %1151 = vmatpush3.bf16.msra.mxu1 %v1269_v7  ;;  %1124 = vmatprep.subr.bf16.mxu0 %v1270_v8  ;;  %v1286_v24 = vld [vmem:[%s1659_s1 + $0x48] sm:$0xff]   ;;  %v1290_v28 = vld [vmem:[%s1659_s1 + $0x40] sm:$0xff]   ;;  %v1300_v36 = vld [vmem:[%s1659_s1 + $0x178] sm:$0xff]  }
   0xa   :  { %1152 = vmatprep.subr.bf16.mxu1 %v1271_v9  ;;  %v1287_v25 = vld [vmem:[%s1659_s1 + $0xc8] sm:$0xff]   ;;  %v1291_v29 = vld [vmem:[%s1659_s1 + $0xc0] sm:$0xff]   ;;  %v1301_v37 = vld [vmem:[%s1659_s1 + $0x138] sm:$0xff]  }
   0xb   :  { %v1288_v26 = vld [vmem:[%s1659_s1 + $0x8] sm:$0xff]   ;;  %v1292_v30 = vld [vmem:[%s1659_s1] sm:$0xff]   ;;  %v1302_v38 = vld [vmem:[%s1659_s1 + $0x1f8] sm:$0xff]  }
   0xc   :  { %1125 = vmatpush3.bf16.msra.mxu0 %v1272_v10  ;;  %v1289_v27 = vld [vmem:[%s1659_s1 + $0x88] sm:$0xff]   ;;  %v1293_v31 = vld [vmem:[%s1659_s1 + $0x80] sm:$0xff]   ;;  %v1303_v39 = vld [vmem:[%s1659_s1 + $0x1b8] sm:$0xff]  }
   0xd   :  { %1153 = vmatpush3.bf16.msra.mxu1 %v1273_v11  ;;  %1126 = vmatprep.subr.bf16.mxu0 %v1274_v12  ;;  %v1294_v32 = vld [vmem:[%s1660_s0] ss:$36 sps:$4 sm:$0xff]   ;;  %v1297_v34 = vld [vmem:[%s1660_s0 + $0x8] ss:$36 sps:$4 sm:$0xff]   ;;  %v1304_v40 = vld [vmem:[%s1659_s1 + $0x170] sm:$0xff]  }
   0xe   :  { %1154 = vmatprep.subr.bf16.mxu1 %v1275_v13  ;;  %v1296_v33 = vld [vmem:[%s1660_s0 + $0x4] ss:$36 sps:$4 sm:$0xff]   ;;  %v1299_v35 = vld [vmem:[%s1660_s0 + $0xc] ss:$36 sps:$4 sm:$0xff]   ;;  %v1316_v52 = vld [vmem:[%s1659_s1 + $0x158] sm:$0xff]  }
   0xf   :  { %747 = vmatprep.mubr.bf16.mxu0 %v1296_v33  ;;  %796 = vmatprep.mubr.bf16.mxu1 %v1299_v35  ;;  %v1305_v41 = vld [vmem:[%s1659_s1 + $0x130] sm:$0xff]   ;;  %v1308_v44 = vld [vmem:[%s1659_s1 + $0x168] sm:$0xff]   ;;  %v1312_v48 = vld [vmem:[%s1659_s1 + $0x160] sm:$0xff]  }
  0x10   :  { %1127 = vmatpush3.bf16.msra.mxu0 %v1276_v14  ;;  %v1306_v42 = vld [vmem:[%s1659_s1 + $0x1f0] sm:$0xff]   ;;  %v1309_v45 = vld [vmem:[%s1659_s1 + $0x128] sm:$0xff]   ;;  %v1313_v49 = vld [vmem:[%s1659_s1 + $0x120] sm:$0xff]  }
  0x11   :  { %1155 = vmatpush3.bf16.msra.mxu1 %v1277_v15  ;;  %1128 = vmatprep.subr.bf16.mxu0 %v1278_v16  ;;  %v1307_v43 = vld [vmem:[%s1659_s1 + $0x1b0] sm:$0xff]   ;;  %v1310_v46 = vld [vmem:[%s1659_s1 + $0x1e8] sm:$0xff]   ;;  %v1314_v50 = vld [vmem:[%s1659_s1 + $0x1e0] sm:$0xff]  }
  0x12   :  { %1156 = vmatprep.subr.bf16.mxu1 %v1279_v17  ;;  %v1311_v47 = vld [vmem:[%s1659_s1 + $0x1a8] sm:$0xff]   ;;  %v1315_v51 = vld [vmem:[%s1659_s1 + $0x1a0] sm:$0xff]   ;;  %v1317_v53 = vld [vmem:[%s1659_s1 + $0x118] sm:$0xff]  }
  0x13   :  { %v1318_v54 = vld [vmem:[%s1660_s0 + $0x4c] ss:$36 sps:$4 sm:$0xff]   ;;  %v1320_v55 = vld [vmem:[%s1660_s0 + $0x54] ss:$36 sps:$4 sm:$0xff]   ;;  %v1334_v4 = vld [vmem:[%s1659_s1 + $0x140] sm:$0xff]  }
  0x14   :  { %1129 = vmatpush3.bf16.msra.mxu0 %v1280_v18  ;;  %v1322_v56 = vld [vmem:[%s1659_s1 + $0x1d8] sm:$0xff]   ;;  %v1323_v57 = vld [vmem:[%s1660_s0 + $0x48] ss:$36 sps:$4 sm:$0xff]   ;;  %v1324_v58 = vld [vmem:[%s1660_s0 + $0x50] ss:$36 sps:$4 sm:$0xff]  }
  0x15   :  { %1157 = vmatpush3.bf16.msra.mxu1 %v1281_v19  ;;  %1130 = vmatprep.subr.bf16.mxu0 %v1282_v20  ;;  %v1325_v59 = vld [vmem:[%s1659_s1 + $0x198] sm:$0xff]   ;;  %v1326_v60 = vld [vmem:[%s1659_s1 + $0x150] sm:$0xff]   ;;  %v1330_v0 = vld [vmem:[%s1659_s1 + $0x148] sm:$0xff]  }
  0x16   :  { %1158 = vmatprep.subr.bf16.mxu1 %v1283_v21  ;;  %v1327_v61 = vld [vmem:[%s1659_s1 + $0x110] sm:$0xff]   ;;  %v1331_v1 = vld [vmem:[%s1659_s1 + $0x108] sm:$0xff]   ;;  %v1335_v5 = vld [vmem:[%s1659_s1 + $0x100] sm:$0xff]  }
  0x17   :  { %v1328_v62 = vld [vmem:[%s1659_s1 + $0x1d0] sm:$0xff]   ;;  %v1332_v2 = vld [vmem:[%s1659_s1 + $0x1c8] sm:$0xff]   ;;  %v1336_v6 = vld [vmem:[%s1659_s1 + $0x1c0] sm:$0xff]  }
  0x18   :  { %1131 = vmatpush3.bf16.msra.mxu0 %v1284_v22  ;;  %v1329_v63 = vld [vmem:[%s1659_s1 + $0x190] sm:$0xff]   ;;  %v1333_v3 = vld [vmem:[%s1659_s1 + $0x188] sm:$0xff]   ;;  %v1340_v9 = vld [vmem:[%s1659_s1 + $0x180] sm:$0xff]  }
  0x19   :  { %1159 = vmatpush3.bf16.msra.mxu1 %v1285_v23  ;;  %1132 = vmatprep.subr.bf16.mxu0 %v1286_v24  ;;  %v1337_v7 = vld [vmem:[%s1660_s0 + $0x10] ss:$36 sps:$4 sm:$0xff]   ;;  %v1341_v10 = vld [vmem:[%s1659_s1 + $0x238] sm:$0xff]   ;;  %v1349_v16 = vld [vmem:[%s1659_s1 + $0x228] sm:$0xff]  }
  0x1a   :  { %1160 = vmatprep.subr.bf16.mxu1 %v1287_v25  ;;  %v1339_v8 = vld [vmem:[%s1660_s0 + $0x14] ss:$36 sps:$4 sm:$0xff]   ;;  %v1344_v12 = vld [vmem:[%s1660_s0 + $0x1c] ss:$36 sps:$4 sm:$0xff]   ;;  %v1350_v17 = vld [vmem:[%s1660_s0 + $0x64] ss:$36 sps:$4 sm:$0xff]  }
  0x1b   :  { %v1342_v11 = vld [vmem:[%s1660_s0 + $0x18] ss:$36 sps:$4 sm:$0xff]   ;;  %v1345_v13 = vld [vmem:[%s1659_s1 + $0x230] sm:$0xff]   ;;  %v1352_v18 = vld [vmem:[%s1660_s0 + $0x60] ss:$36 sps:$4 sm:$0xff]  }
  0x1c   :  { %1133 = vmatpush3.bf16.msra.mxu0 %v1288_v26  ;;  %v1346_v14 = vld [vmem:[%s1660_s0 + $0x5c] ss:$36 sps:$4 sm:$0xff]   ;;  %v1355_v22 = vld [vmem:[%s1659_s1 + $0x210] sm:$0xff]   ;;  %v1356_v23 = vld [vmem:[%s1659_s1 + $0x208] sm:$0xff]  }
  0x1d   :  { %1161 = vmatpush3.bf16.msra.mxu1 %v1289_v27  ;;  %1134 = vmatprep.subr.bf16.mxu0 %v1290_v28  ;;  %v1348_v15 = vld [vmem:[%s1660_s0 + $0x58] ss:$36 sps:$4 sm:$0xff]   ;;  %v1353_v19 = vld [vmem:[%s1659_s1 + $0x220] sm:$0xff]   ;;  %v1359_v25 = vld [vmem:[%s1660_s0 + $0x68] ss:$36 sps:$4 sm:$0xff]  }
  0x1e   :  { %1162 = vmatprep.subr.bf16.mxu1 %v1291_v29  ;;  %v1354_v20 = vld [vmem:[%s1659_s1 + $0x218] sm:$0xff]   ;;  %v1358_v21 = vld [vmem:[%s1660_s0 + $0x20] ss:$36 sps:$4 sm:$0xff]  }
  0x1f   :  { %v1357_v24 = vld [vmem:[%s1659_s1 + $0x200] sm:$0xff]  }
  0x20   :  { %1135 = vmatpush3.bf16.msra.mxu0 %v1292_v30 }
  0x21   :  { %1163 = vmatpush3.bf16.msra.mxu1 %v1293_v31  ;;  %1176 = vmatprep.subr.bf16.mxu0 %v1300_v36 }
  0x22   :  { %1204 = vmatprep.subr.bf16.mxu1 %v1302_v38 }
  0x23   :  { %748 = vmatmul.mubr.bf16.vlgmr.msra.gmra.mxu0 %v1294_v32 }
  0x24   :  { %797 = vmatmul.mubr.bf16.vlgmr.msra.gmra.mxu1 %v1297_v34  ;;  %1177 = vmatpush3.bf16.msra.mxu0 %v1301_v37 }
  0x25   :  { %1205 = vmatpush3.bf16.msra.mxu1 %v1303_v39  ;;  %1178 = vmatprep.subr.bf16.mxu0 %v1304_v40 }
  0x26   :  { %1206 = vmatprep.subr.bf16.mxu1 %v1306_v42  ;;  %755 = vmatprep.mubr.bf16.mxu0 %v1318_v54 }
  0x27   :  { %804 = vmatprep.mubr.bf16.mxu1 %v1320_v55 }
  0x28   :  { %1179 = vmatpush3.bf16.msra.mxu0 %v1305_v41 }
  0x29   :  { %1207 = vmatpush3.bf16.msra.mxu1 %v1307_v43  ;;  %1180 = vmatprep.subr.bf16.mxu0 %v1308_v44 }
  0x2a   :  { %1208 = vmatprep.subr.bf16.mxu1 %v1310_v46 }
  0x2b   :  { %756 = vmatmul.mubr.bf16.gmra.mxu0 %v1323_v57 }
  0x2c   :  { %1181 = vmatpush3.bf16.msra.mxu0 %v1309_v45  ;;  %805 = vmatmul.mubr.bf16.gmra.mxu1 %v1324_v58 }
  0x2d   :  { %1209 = vmatpush3.bf16.msra.mxu1 %v1311_v47  ;;  %1182 = vmatprep.subr.bf16.mxu0 %v1312_v48 }
  0x2e   :  { %1210 = vmatprep.subr.bf16.mxu1 %v1314_v50  ;;  %845 = vmatprep.mubr.bf16.mxu0 %v1339_v8 }
  0x2f   :  { %894 = vmatprep.mubr.bf16.mxu1 %v1344_v12 }
  0x30   :  { %1183 = vmatpush3.bf16.msra.mxu0 %v1313_v49 }
  0x31   :  { %1211 = vmatpush3.bf16.msra.mxu1 %v1315_v51  ;;  %1184 = vmatprep.subr.bf16.mxu0 %v1316_v52 }
  0x32   :  { %1212 = vmatprep.subr.bf16.mxu1 %v1322_v56 }
  0x34   :  { %1185 = vmatpush3.bf16.msra.mxu0 %v1317_v53 }
  0x35   :  { %1213 = vmatpush3.bf16.msra.mxu1 %v1325_v59  ;;  %1186 = vmatprep.subr.bf16.mxu0 %v1326_v60 }
  0x36   :  { %1214 = vmatprep.subr.bf16.mxu1 %v1328_v62 }
  0x38   :  { %1187 = vmatpush3.bf16.msra.mxu0 %v1327_v61 }
  0x39   :  { %1215 = vmatpush3.bf16.msra.mxu1 %v1329_v63  ;;  %1188 = vmatprep.subr.bf16.mxu0 %v1330_v0 }
  0x3a   :  { %1216 = vmatprep.subr.bf16.mxu1 %v1332_v2 }
  0x3c   :  { %1189 = vmatpush3.bf16.msra.mxu0 %v1331_v1 }
  0x3d   :  { %1217 = vmatpush3.bf16.msra.mxu1 %v1333_v3  ;;  %1190 = vmatprep.subr.bf16.mxu0 %v1334_v4 }
  0x3e   :  { %1218 = vmatprep.subr.bf16.mxu1 %v1336_v6 }
  0x40   :  { %1191 = vmatpush3.bf16.msra.mxu0 %v1335_v5 }
  0x41   :  { %1219 = vmatpush3.bf16.msra.mxu1 %v1340_v9  ;;  %1242 = vmatprep.subr.bf16.mxu0 %v1341_v10 }
  0x43   :  { %846 = vmatmul.mubr.bf16.vlgmr.msra.gmra.mxu0 %v1337_v7 }
  0x44   :  { %1243 = vmatpush3.bf16.msra.mxu0 %v1341_v10  ;;  %895 = vmatmul.mubr.bf16.vlgmr.msra.gmra.mxu1 %v1342_v11 }
  0x45   :  { %1244 = vmatprep.subr.bf16.mxu0 %v1345_v13  ;;  %853 = vmatprep.mubr.bf16.mxu0 %v1346_v14 }
  0x46   :  { %902 = vmatprep.mubr.bf16.mxu1 %v1350_v17 }
  0x48   :  { %1245 = vmatpush3.bf16.msra.mxu0 %v1345_v13 }
  0x49   :  { %1246 = vmatprep.subr.bf16.mxu0 %v1349_v16 }
  0x4b   :  { %854 = vmatmul.mubr.bf16.gmra.mxu0 %v1348_v15 }
  0x4c   :  { %1247 = vmatpush3.bf16.msra.mxu0 %v1349_v16  ;;  %903 = vmatmul.mubr.bf16.gmra.mxu1 %v1352_v18 }
  0x4d   :  { %1248 = vmatprep.subr.bf16.mxu0 %v1353_v19  ;;  %1258 = vmatprep.mubr.bf16.mxu0 %v1358_v21 }
  0x50   :  { %1249 = vmatpush3.bf16.msra.mxu0 %v1353_v19 }
  0x51   :  { %1250 = vmatprep.subr.bf16.mxu0 %v1354_v20 }
  0x54   :  { %1251 = vmatpush3.bf16.msra.mxu0 %v1354_v20 }
  0x55   :  { %1252 = vmatprep.subr.bf16.mxu0 %v1355_v22 }
  0x58   :  { %1253 = vmatpush3.bf16.msra.mxu0 %v1355_v22 }
  0x59   :  { %1254 = vmatprep.subr.bf16.mxu0 %v1356_v23 }
  0x5c   :  { %1255 = vmatpush3.bf16.msra.mxu0 %v1356_v23 }
  0x5d   :  { %1256 = vmatprep.subr.bf16.mxu0 %v1357_v24 }
  0x60   :  { %1257 = vmatpush3.bf16.msra.mxu0 %v1357_v24  ;;  %v1100_v24 = vld [vmem:[%s1661_s2] ss:$0 sm:$0xff] }
  0x63   :  { %1259 = vmatmul.mubr.bf16.vlgmr.msra.gmra.mxu0 %v1359_v25 }
  0xe3   :  { %v1136_v26 = vpop.f32.mrf.mxu0 }
  0xe4   :  { %v1164_v27 = vpop.f32.mrf.mxu1 }
  0xe5   :  { %v1137_v28 = vpop.f32.mrf.mxu0 }
  0xe6   :  { %v1165_v29 = vpop.f32.mrf.mxu1  ;;  %v1138_v57 = vadd.f32 %v1137_v28, %v1136_v26 }
  0xe7   :  { %v1139_v30 = vpop.f32.mrf.mxu0  ;;  %v1166_v58 = vadd.f32 %v1165_v29, %v1164_v27 }
  0xe8   :  { %v1167_v31 = vpop.f32.mrf.mxu1 }
  0xe9   :  { %v1140_v32 = vpop.f32.mrf.mxu0  ;;  %v799_v5 = vadd.f32 %v1166_v58, %v1138_v57 }
  0xea   :  { %v1168_v34 = vpop.f32.mrf.mxu1  ;;  %v1141_v0 = vadd.f32 %v1140_v32, %v1139_v30 }
  0xeb   :  { %v1142_v33 = vpop.f32.mrf.mxu0  ;;  %v1169_v1 = vadd.f32 %v1168_v34, %v1167_v31 }
  0xec   :  { %v1170_v35 = vpop.f32.mrf.mxu1 }
  0xed   :  { %v1143_v36 = vpop.f32.mrf.mxu0  ;;  %v802_v11 = vadd.f32 %v1169_v1, %v1141_v0 }
  0xee   :  { %v1171_v37 = vpop.f32.mrf.mxu1  ;;  %v1144_v55 = vadd.f32 %v1143_v36, %v1142_v33 }
  0xef   :  { %v1145_v38 = vpop.f32.mrf.mxu0  ;;  %v1172_v56 = vadd.f32 %v1171_v37, %v1170_v35 }
  0xf0   :  { %v1173_v39 = vpop.f32.mrf.mxu1 }
  0xf1   :  { %v1146_v40 = vpop.f32.mrf.mxu0  ;;  %v807_v2 = vadd.f32 %v1172_v56, %v1144_v55 }
  0xf2   :  { %v1174_v42 = vpop.f32.mrf.mxu1  ;;  %v1147_v61 = vadd.f32 %v1146_v40, %v1145_v38 }
  0xf3   :  { %v1175_v62 = vadd.f32 %v1174_v42, %v1173_v39 }
  0xf5   :  { %v810_v7 = vadd.f32 %v1175_v62, %v1147_v61 }
 0x103   :  { %v1192_v41 = vpop.f32.mrf.mxu0 }
 0x104   :  { %v1220_v44 = vpop.f32.mrf.mxu1 }
 0x105   :  { %v1193_v43 = vpop.f32.mrf.mxu0 }
 0x106   :  { %v1221_v46 = vpop.f32.mrf.mxu1  ;;  %v1194_v3 = vadd.f32 %v1193_v43, %v1192_v41 }
 0x107   :  { %v1195_v45 = vpop.f32.mrf.mxu0  ;;  %v1222_v13 = vadd.f32 %v1221_v46, %v1220_v44 }
 0x108   :  { %v1223_v48 = vpop.f32.mrf.mxu1  ;;  %v848_v12 = vadd.f32 %v1194_v3, %v799_v5 }
 0x109   :  { %v1196_v47 = vpop.f32.mrf.mxu0 }
 0x10a   :  { %v1224_v50 = vpop.f32.mrf.mxu1  ;;  %v1197_v8 = vadd.f32 %v1196_v47, %v1195_v45  ;;  %v897_v22 = vadd.f32 %v1222_v13, %v848_v12 }
 0x10b   :  { %v1198_v49 = vpop.f32.mrf.mxu0  ;;  %v1225_v18 = vadd.f32 %v1224_v50, %v1223_v48 }
 0x10c   :  { %v1226_v52 = vpop.f32.mrf.mxu1  ;;  %v851_v17 = vadd.f32 %v1197_v8, %v802_v11 }
 0x10d   :  { %v1199_v51 = vpop.f32.mrf.mxu0 }
 0x10e   :  { %v1227_v54 = vpop.f32.mrf.mxu1  ;;  %v1200_v63 = vadd.f32 %v1199_v51, %v1198_v49  ;;  %v900_v28 = vadd.f32 %v1225_v18, %v851_v17 }
 0x10f   :  { %v1201_v53 = vpop.f32.mrf.mxu0  ;;  %v1228_v10 = vadd.f32 %v1227_v54, %v1226_v52 }
 0x110   :  { %v1229_v60 = vpop.f32.mrf.mxu1  ;;  %v856_v9 = vadd.f32 %v1200_v63, %v807_v2 }
 0x111   :  { %v1202_v59 = vpop.f32.mrf.mxu0 }
 0x112   :  { %v1203_v4 = vadd.f32 %v1202_v59, %v1201_v53  ;;  %v1230_v6 = vpop.f32.mrf.mxu1  ;;  %v905_v19 = vadd.f32 %v1228_v10, %v856_v9 }
 0x113   :  { %v1231_v15 = vadd.f32 %v1230_v6, %v1229_v60 }
 0x114   :  { %v859_v14 = vadd.f32 %v1203_v4, %v810_v7 }
 0x116   :  { %v908_v23 = vadd.f32 %v1231_v15, %v859_v14 }
 0x123   :  { %v1260_v16 = vpop.f32.mrf.mxu0 }
 0x124   :  { %v954_v21 = vadd.f32 %v1260_v16, %v905_v19 }
 0x125   :  { %v945_v20 = vpop.f32.mrf.mxu0 }
 0x126   :  { %v946_v26 = vadd.f32 %v945_v20, %v897_v22  ;;  %v984_v30 = vadd.f32 %v1100_v24, %v954_v21 }
 0x127   :  { %v1261_v25 = vpop.f32.mrf.mxu0 }
 0x128   :  { %v957_v27 = vadd.f32 %v1261_v25, %v908_v23  ;;  %v982_v33 = vadd.f32 %v1100_v24, %v946_v26 }
 0x129   :  { %v948_v29 = vpop.f32.mrf.mxu0 }
 0x12a   :  { %v985_v31 = vadd.f32 %v1100_v24, %v957_v27  ;;  %v949_v32 = vadd.f32 %v948_v29, %v900_v28 }
 0x12c   :  { %v1117_v34 = vpack.c.bf16 %v985_v31, %v984_v30  ;;  %v983_v35 = vadd.f32 %v1100_v24, %v949_v32 }
 0x12e   :  { %1119 = vst [vmem:[%s1662_s3 + $0x8] sm:$0xff] %v1117_v34   ;;  %v1112_v36 = vpack.c.bf16 %v983_v35, %v982_v33 }
 0x130   :  { %1113 = vst [vmem:[%s1662_s3] sm:$0xff] %v1112_v36  }

// kernel: sfdet_densenet_forward.39
= control target key start
LH: loop header
LB: loop body
LE: loop exit
PB: predicated region body
PF: predicated region fallthrough
CT: control target
= control target key end

     0   :  { %s384_s1 = inlined_call_operand.vmem [shape: bf16[128,128], index: 1, kind: input, shape index: {}]   ;;  %s385_s0 = inlined_call_operand.vmem [shape: bf16[32,128], index: 0, kind: input, shape index: {}]   ;;  %s386_s3 = inlined_call_operand.vmem [shape: f32[1,128], index: 3, kind: input, shape index: {}]   ;;  %s387_s4 = inlined_call_operand.vmem [shape: f32[1,128], index: 4, kind: input, shape index: {}]   ;;  %s388_s2 = inlined_call_operand.vmem [shape: f32[1,128], index: 2, kind: input, shape index: {}]   ;;  %s389_s5 = inlined_call_operand.vmem [shape: bf16[32,128], index: 5, kind: output, shape index: {}]  }
   0x1   :  { %v301_v0 = vld [vmem:[%s384_s1 + $0x38] sm:$0xff]   ;;  %v302_v1 = vld [vmem:[%s384_s1 + $0x30] sm:$0xff]   ;;  %v303_v2 = vld [vmem:[%s384_s1 + $0x28] sm:$0xff]  }
   0x2   :  { %281 = vmatprep.subr.bf16.mxu0 %v301_v0  ;;  %v304_v3 = vld [vmem:[%s384_s1 + $0x20] sm:$0xff]   ;;  %v269_v9 = vld [vmem:[%s385_s0 + $0x8] sm:$0xff]   ;;  %v305_v12 = vld [vmem:[%s384_s1 + $0x18] sm:$0xff]  }
   0x3   :  { %282 = vmatpush3.bf16.msra.mxu0 %v301_v0  ;;  %v252_v4 = vld [vmem:[%s385_s0] sm:$0xff]   ;;  %v257_v15 = vunpack.c.l.bf16 %v269_v9  ;;  %v258_v16 = vunpack.c.h.bf16 %v269_v9  ;;  %v306_v19 = vld [vmem:[%s384_s1 + $0x10] sm:$0xff]   ;;  %v307_v23 = vld [vmem:[%s384_s1 + $0x8] sm:$0xff]  }
   0x4   :  { %283 = vmatprep.subr.bf16.mxu0 %v302_v1  ;;  %v232_v5 = vld [vmem:[%s386_s3] ss:$0 sm:$0xff]  ;;  %v253_v6 = vunpack.c.l.bf16 %v252_v4  ;;  %v254_v7 = vunpack.c.h.bf16 %v252_v4 }
   0x5   :  { %v233_v8 = vld [vmem:[%s387_s4] ss:$0 sm:$0xff]  ;;  %v46_v21 = vmul.f32 %v257_v15, %v232_v5  ;;  %v47_v22 = vmul.f32 %v258_v16, %v232_v5 }
   0x6   :  { %v44_v10 = vmul.f32 %v253_v6, %v232_v5  ;;  %v45_v11 = vmul.f32 %v254_v7, %v232_v5  ;;  %v308_v26 = vld [vmem:[%s384_s1] sm:$0xff]  }
   0x7   :  { %284 = vmatpush3.bf16.msra.mxu0 %v302_v1  ;;  %v57_v24 = vadd.f32 %v233_v8, %v46_v21  ;;  %v58_v25 = vadd.f32 %v233_v8, %v47_v22  ;;  %v242_v31 = vld [vmem:[%s388_s2] ss:$0 sm:$0xff] }
   0x8   :  { %285 = vmatprep.subr.bf16.mxu0 %v303_v2  ;;  %v55_v13 = vadd.f32 %v233_v8, %v44_v10  ;;  %v56_v14 = vadd.f32 %v233_v8, %v45_v11 }
   0x9   :  { %v61_v27 = vmax.f32 %v57_v24, 0.0  ;;  %v62_v28 = vmax.f32 %v58_v25, 0.0 }
   0xa   :  { %v59_v17 = vmax.f32 %v55_v13, 0.0  ;;  %v60_v18 = vmax.f32 %v56_v14, 0.0 }
   0xb   :  { %286 = vmatpush3.bf16.msra.mxu0 %v303_v2  ;;  %v64_v29 = vpack.c.bf16 %v62_v28, %v61_v27 }
   0xc   :  { %287 = vmatprep.subr.bf16.mxu0 %v304_v3  ;;  %v63_v20 = vpack.c.bf16 %v60_v18, %v59_v17 }
   0xe   :  { %297 = vmatprep.mubr.bf16.mxu0 %v63_v20 }
   0xf   :  { %288 = vmatpush3.bf16.msra.mxu0 %v304_v3 }
  0x10   :  { %289 = vmatprep.subr.bf16.mxu0 %v305_v12 }
  0x13   :  { %290 = vmatpush3.bf16.msra.mxu0 %v305_v12 }
  0x14   :  { %291 = vmatprep.subr.bf16.mxu0 %v306_v19 }
  0x17   :  { %292 = vmatpush3.bf16.msra.mxu0 %v306_v19 }
  0x18   :  { %293 = vmatprep.subr.bf16.mxu0 %v307_v23 }
  0x1b   :  { %294 = vmatpush3.bf16.msra.mxu0 %v307_v23 }
  0x1c   :  { %295 = vmatprep.subr.bf16.mxu0 %v308_v26 }
  0x1f   :  { %296 = vmatpush3.bf16.msra.mxu0 %v308_v26 }
  0x22   :  { %298 = vmatmul.mubr.bf16.vlgmr.msra.gmra.mxu0 %v64_v29 }
  0xe2   :  { %v299_v30 = vpop.f32.mrf.mxu0 }
  0xe3   :  { %v206_v34 = vadd.f32 %v299_v30, %v242_v31 }
  0xe4   :  { %v167_v32 = vpop.f32.mrf.mxu0 }
  0xe5   :  { %v204_v37 = vadd.f32 %v242_v31, %v167_v32 }
  0xe6   :  { %v300_v33 = vpop.f32.mrf.mxu0 }
  0xe7   :  { %v207_v35 = vadd.f32 %v300_v33, %v242_v31 }
  0xe8   :  { %v170_v36 = vpop.f32.mrf.mxu0 }
  0xe9   :  { %v267_v38 = vpack.c.bf16 %v207_v35, %v206_v34  ;;  %v205_v39 = vadd.f32 %v242_v31, %v170_v36 }
  0xeb   :  { %270 = vst [vmem:[%s389_s5 + $0x8] sm:$0xff] %v267_v38   ;;  %v262_v40 = vpack.c.bf16 %v205_v39, %v204_v37 }
  0xed   :  { %263 = vst [vmem:[%s389_s5] sm:$0xff] %v262_v40  }

// kernel: sfdet_densenet_forward.40
= control target key start
LH: loop header
LB: loop body
LE: loop exit
PB: predicated region body
PF: predicated region fallthrough
CT: control target
= control target key end

     0   :  { %v282_v0 = vmov 0.0   ;;  %vm283_vm0 = vmmov 0   ;;  %s369_s1 = inlined_call_operand.vmem [shape: bf16[128,128], index: 1, kind: input, shape index: {}]   ;;  %s370_s0 = inlined_call_operand.vmem [shape: bf16[16,128], index: 0, kind: input, shape index: {}]   ;;  %s371_s3 = inlined_call_operand.vmem [shape: f32[1,128], index: 3, kind: input, shape index: {}]   ;;  %s372_s4 = inlined_call_operand.vmem [shape: f32[1,128], index: 4, kind: input, shape index: {}]   ;;  %s373_s2 = inlined_call_operand.vmem [shape: f32[1,128], index: 2, kind: input, shape index: {}]   ;;  %s374_s5 = inlined_call_operand.vmem [shape: f32[1,128], index: 5, kind: input, shape index: {}]   ;;  %s375_s6 = inlined_call_operand.vmem [shape: f32[1,128], index: 6, kind: input, shape index: {}]   ;;  %s376_s7 = inlined_call_operand.vmem [shape: bf16[16,128], index: 7, kind: output, shape index: {}]  }
   0x1   :  { %252 = vmatprep.subr.bf16.mxu0 %v282_v0  ;;  %v274_v1 = vld [vmem:[%s369_s1 + $0x38] sm:$0xff]   ;;  %268 = vmatprep.mubr.msk.bf16.mxu0 %vm283_vm0, %v282_v0  ;;  %v275_v2 = vld [vmem:[%s369_s1 + $0x30] sm:$0xff]   ;;  %v276_v3 = vld [vmem:[%s369_s1 + $0x28] sm:$0xff]  }
   0x2   :  { %253 = vmatpush3.bf16.msra.mxu0 %v274_v1  ;;  %v277_v4 = vld [vmem:[%s369_s1 + $0x20] sm:$0xff]   ;;  %v278_v8 = vld [vmem:[%s369_s1 + $0x18] sm:$0xff]   ;;  %v279_v12 = vld [vmem:[%s369_s1 + $0x10] sm:$0xff]  }
   0x3   :  { %254 = vmatprep.subr.bf16.mxu0 %v282_v0  ;;  %v235_v5 = vld [vmem:[%s370_s0] sm:$0xff]   ;;  %v280_v16 = vld [vmem:[%s369_s1 + $0x8] sm:$0xff]  }
   0x4   :  { %v236_v6 = vunpack.c.l.bf16 %v235_v5  ;;  %v237_v7 = vunpack.c.h.bf16 %v235_v5  ;;  %v217_v9 = vld [vmem:[%s371_s3] ss:$0 sm:$0xff] }
   0x5   :  { %v218_v13 = vld [vmem:[%s372_s4] ss:$0 sm:$0xff] }
   0x6   :  { %255 = vmatpush3.bf16.msra.mxu0 %v275_v2  ;;  %v44_v10 = vmul.f32 %v236_v6, %v217_v9  ;;  %v45_v11 = vmul.f32 %v237_v7, %v217_v9  ;;  %v281_v19 = vld [vmem:[%s369_s1] sm:$0xff]  }
   0x7   :  { %256 = vmatprep.subr.bf16.mxu0 %v282_v0  ;;  %v227_v21 = vld [vmem:[%s373_s2] ss:$0 sm:$0xff] }
   0x8   :  { %v53_v14 = vadd.f32 %v218_v13, %v44_v10  ;;  %v54_v15 = vadd.f32 %v218_v13, %v45_v11  ;;  %v228_v23 = vld [vmem:[%s374_s5] ss:$0 sm:$0xff] }
   0x9   :  { %v229_v27 = vld [vmem:[%s375_s6] ss:$0 sm:$0xff] }
   0xa   :  { %257 = vmatpush3.bf16.msra.mxu0 %v276_v3  ;;  %v55_v17 = vmax.f32 %v53_v14, 0.0  ;;  %v56_v18 = vmax.f32 %v54_v15, 0.0 }
   0xb   :  { %258 = vmatprep.subr.bf16.mxu0 %v282_v0 }
   0xc   :  { %v57_v20 = vpack.c.bf16 %v56_v18, %v55_v17 }
   0xe   :  { %259 = vmatpush3.bf16.msra.mxu0 %v277_v4 }
   0xf   :  { %260 = vmatprep.subr.bf16.mxu0 %v282_v0 }
  0x12   :  { %261 = vmatpush3.bf16.msra.mxu0 %v278_v8 }
  0x13   :  { %262 = vmatprep.subr.bf16.mxu0 %v282_v0 }
  0x16   :  { %263 = vmatpush3.bf16.msra.mxu0 %v279_v12 }
  0x17   :  { %264 = vmatprep.subr.bf16.mxu0 %v282_v0 }
  0x1a   :  { %265 = vmatpush3.bf16.msra.mxu0 %v280_v16 }
  0x1b   :  { %266 = vmatprep.subr.bf16.mxu0 %v282_v0 }
  0x1e   :  { %267 = vmatpush3.bf16.msra.mxu0 %v281_v19 }
  0x21   :  { %269 = vmatmul.mubr.bf16.vlgmr.msra.gmra.mxu0 %v57_v20 }
  0xe1   :  { %v158_v22 = vpop.f32.mrf.mxu0 }
  0xe2   :  { %v181_v24 = vadd.f32 %v227_v21, %v158_v22 }
  0xe3   :  { %v270_v25 = vpop.f32.mrf.mxu0 }
  0xe4   :  { %v190_v26 = vmul.f32 %v228_v23, %v181_v24 }
  0xe5   :  { %v161_v28 = vpop.f32.mrf.mxu0 }
  0xe6   :  { %v182_v29 = vadd.f32 %v227_v21, %v161_v28  ;;  %v199_v31 = vadd.f32 %v229_v27, %v190_v26 }
  0xe7   :  { %v271_v30 = vpop.f32.mrf.mxu0 }
  0xe8   :  { %v191_v32 = vmul.f32 %v228_v23, %v182_v29  ;;  %v201_v34 = vmax.f32 %v199_v31, 0.0 }
  0xea   :  { %v200_v33 = vadd.f32 %v229_v27, %v191_v32 }
  0xec   :  { %v202_v35 = vmax.f32 %v200_v33, 0.0 }
  0xee   :  { %v241_v36 = vpack.c.bf16 %v202_v35, %v201_v34 }
  0xf0   :  { %242 = vst [vmem:[%s376_s7] sm:$0xff] %v241_v36  }

// kernel: sfdet_densenet_forward.41
= control target key start
LH: loop header
LB: loop body
LE: loop exit
PB: predicated region body
PF: predicated region fallthrough
CT: control target
= control target key end

     0   :  { %vm1188_vm0 = vmmov 0   ;;  %s1458_s1 = inlined_call_operand.vmem [shape: bf16[1152,128], index: 1, kind: input, shape index: {}]   ;;  %s1459_s0 = inlined_call_operand.vmem [shape: bf16[16,1152], index: 0, kind: input, shape index: {}]   ;;  %s1460_s2 = inlined_call_operand.vmem [shape: f32[1,128], index: 2, kind: input, shape index: {}]   ;;  %s1461_s3 = inlined_call_operand.vmem [shape: bf16[16,128], index: 3, kind: output, shape index: {}]  }
   0x1   :  { %v1102_v0 = vld [vmem:[%s1458_s1 + $0x78] sm:$0xff]   ;;  %v1106_v4 = vld [vmem:[%s1458_s1 + $0x70] sm:$0xff]   ;;  %v1110_v8 = vld [vmem:[%s1458_s1 + $0x68] sm:$0xff]  }
   0x2   :  { %v1103_v1 = vld [vmem:[%s1458_s1 + $0xf8] sm:$0xff]   ;;  %983 = vmatprep.subr.bf16.mxu0 %v1102_v0  ;;  %v1107_v5 = vld [vmem:[%s1458_s1 + $0xf0] sm:$0xff]   ;;  %v1111_v9 = vld [vmem:[%s1458_s1 + $0xe8] sm:$0xff]  }
   0x3   :  { %v1104_v2 = vld [vmem:[%s1458_s1 + $0x38] sm:$0xff]   ;;  %1005 = vmatprep.subr.bf16.mxu1 %v1103_v1  ;;  %v1108_v6 = vld [vmem:[%s1458_s1 + $0x30] sm:$0xff]   ;;  %v1112_v10 = vld [vmem:[%s1458_s1 + $0x28] sm:$0xff]  }
   0x4   :  { %v1105_v3 = vld [vmem:[%s1458_s1 + $0xb8] sm:$0xff]   ;;  %984 = vmatpush3.bf16.msra.mxu0 %v1104_v2  ;;  %v1109_v7 = vld [vmem:[%s1458_s1 + $0xb0] sm:$0xff]   ;;  %v1113_v11 = vld [vmem:[%s1458_s1 + $0xa8] sm:$0xff]  }
   0x5   :  { %1006 = vmatpush3.bf16.msra.mxu1 %v1105_v3  ;;  %985 = vmatprep.subr.bf16.mxu0 %v1106_v4  ;;  %v1114_v12 = vld [vmem:[%s1458_s1 + $0x60] sm:$0xff]   ;;  %v1118_v16 = vld [vmem:[%s1458_s1 + $0x58] sm:$0xff]   ;;  %v1122_v20 = vld [vmem:[%s1458_s1 + $0x50] sm:$0xff]  }
   0x6   :  { %1007 = vmatprep.subr.bf16.mxu1 %v1107_v5  ;;  %v1115_v13 = vld [vmem:[%s1458_s1 + $0xe0] sm:$0xff]   ;;  %v1119_v17 = vld [vmem:[%s1458_s1 + $0xd8] sm:$0xff]   ;;  %v1123_v21 = vld [vmem:[%s1458_s1 + $0xd0] sm:$0xff]  }
   0x7   :  { %v1116_v14 = vld [vmem:[%s1458_s1 + $0x20] sm:$0xff]   ;;  %v1120_v18 = vld [vmem:[%s1458_s1 + $0x18] sm:$0xff]   ;;  %v1124_v22 = vld [vmem:[%s1458_s1 + $0x10] sm:$0xff]  }
   0x8   :  { %986 = vmatpush3.bf16.msra.mxu0 %v1108_v6  ;;  %v1117_v15 = vld [vmem:[%s1458_s1 + $0xa0] sm:$0xff]   ;;  %v1121_v19 = vld [vmem:[%s1458_s1 + $0x98] sm:$0xff]   ;;  %v1125_v23 = vld [vmem:[%s1458_s1 + $0x90] sm:$0xff]   ;;  %v1187_v6 = vmov 0.0  }
   0x9   :  { %1008 = vmatpush3.bf16.msra.mxu1 %v1109_v7  ;;  %987 = vmatprep.subr.bf16.mxu0 %v1110_v8  ;;  %v1126_v24 = vld [vmem:[%s1458_s1 + $0x48] sm:$0xff]   ;;  %v1130_v28 = vld [vmem:[%s1458_s1 + $0x40] sm:$0xff]   ;;  %v1140_v36 = vld [vmem:[%s1458_s1 + $0x178] sm:$0xff]  }
   0xa   :  { %1009 = vmatprep.subr.bf16.mxu1 %v1111_v9  ;;  %v1127_v25 = vld [vmem:[%s1458_s1 + $0xc8] sm:$0xff]   ;;  %v1131_v29 = vld [vmem:[%s1458_s1 + $0xc0] sm:$0xff]   ;;  %v1141_v37 = vld [vmem:[%s1458_s1 + $0x138] sm:$0xff]  }
   0xb   :  { %v1128_v26 = vld [vmem:[%s1458_s1 + $0x8] sm:$0xff]   ;;  %v1132_v30 = vld [vmem:[%s1458_s1] sm:$0xff]   ;;  %v1142_v38 = vld [vmem:[%s1458_s1 + $0x1f8] sm:$0xff]  }
   0xc   :  { %988 = vmatpush3.bf16.msra.mxu0 %v1112_v10  ;;  %v1129_v27 = vld [vmem:[%s1458_s1 + $0x88] sm:$0xff]   ;;  %v1133_v31 = vld [vmem:[%s1458_s1 + $0x80] sm:$0xff]   ;;  %v1143_v39 = vld [vmem:[%s1458_s1 + $0x1b8] sm:$0xff]  }
   0xd   :  { %1010 = vmatpush3.bf16.msra.mxu1 %v1113_v11  ;;  %989 = vmatprep.subr.bf16.mxu0 %v1114_v12  ;;  %v1134_v32 = vld [vmem:[%s1459_s0] ss:$36 sps:$4 sm:$0xff]   ;;  %v1137_v34 = vld [vmem:[%s1459_s0 + $0x8] ss:$36 sps:$4 sm:$0xff]   ;;  %v1144_v40 = vld [vmem:[%s1458_s1 + $0x170] sm:$0xff]  }
   0xe   :  { %1011 = vmatprep.subr.bf16.mxu1 %v1115_v13  ;;  %v1136_v33 = vld [vmem:[%s1459_s0 + $0x4] ss:$36 sps:$4 sm:$0xff]   ;;  %v1139_v35 = vld [vmem:[%s1459_s0 + $0xc] ss:$36 sps:$4 sm:$0xff]   ;;  %v1156_v52 = vld [vmem:[%s1458_s1 + $0x158] sm:$0xff]  }
   0xf   :  { %687 = vmatprep.mubr.bf16.mxu0 %v1136_v33  ;;  %728 = vmatprep.mubr.bf16.mxu1 %v1139_v35  ;;  %v1145_v41 = vld [vmem:[%s1458_s1 + $0x130] sm:$0xff]   ;;  %v1148_v44 = vld [vmem:[%s1458_s1 + $0x168] sm:$0xff]   ;;  %v1152_v48 = vld [vmem:[%s1458_s1 + $0x160] sm:$0xff]  }
  0x10   :  { %990 = vmatpush3.bf16.msra.mxu0 %v1116_v14  ;;  %v1146_v42 = vld [vmem:[%s1458_s1 + $0x1f0] sm:$0xff]   ;;  %v1149_v45 = vld [vmem:[%s1458_s1 + $0x128] sm:$0xff]   ;;  %v1153_v49 = vld [vmem:[%s1458_s1 + $0x120] sm:$0xff]  }
  0x11   :  { %1012 = vmatpush3.bf16.msra.mxu1 %v1117_v15  ;;  %991 = vmatprep.subr.bf16.mxu0 %v1118_v16  ;;  %v1147_v43 = vld [vmem:[%s1458_s1 + $0x1b0] sm:$0xff]   ;;  %v1150_v46 = vld [vmem:[%s1458_s1 + $0x1e8] sm:$0xff]   ;;  %v1154_v50 = vld [vmem:[%s1458_s1 + $0x1e0] sm:$0xff]  }
  0x12   :  { %1013 = vmatprep.subr.bf16.mxu1 %v1119_v17  ;;  %v1151_v47 = vld [vmem:[%s1458_s1 + $0x1a8] sm:$0xff]   ;;  %v1155_v51 = vld [vmem:[%s1458_s1 + $0x1a0] sm:$0xff]   ;;  %v1157_v53 = vld [vmem:[%s1458_s1 + $0x118] sm:$0xff]  }
  0x13   :  { %v1158_v54 = vld [vmem:[%s1458_s1 + $0x1d8] sm:$0xff]   ;;  %v1160_v56 = vld [vmem:[%s1458_s1 + $0x150] sm:$0xff]   ;;  %v1164_v60 = vld [vmem:[%s1458_s1 + $0x148] sm:$0xff]  }
  0x14   :  { %992 = vmatpush3.bf16.msra.mxu0 %v1120_v18  ;;  %v1159_v55 = vld [vmem:[%s1458_s1 + $0x198] sm:$0xff]   ;;  %v1161_v57 = vld [vmem:[%s1458_s1 + $0x110] sm:$0xff]   ;;  %v1165_v61 = vld [vmem:[%s1458_s1 + $0x108] sm:$0xff]  }
  0x15   :  { %1014 = vmatpush3.bf16.msra.mxu1 %v1121_v19  ;;  %993 = vmatprep.subr.bf16.mxu0 %v1122_v20  ;;  %v1162_v58 = vld [vmem:[%s1458_s1 + $0x1d0] sm:$0xff]   ;;  %v1166_v62 = vld [vmem:[%s1458_s1 + $0x1c8] sm:$0xff]   ;;  %v1168_v0 = vld [vmem:[%s1458_s1 + $0x140] sm:$0xff]  }
  0x16   :  { %1015 = vmatprep.subr.bf16.mxu1 %v1123_v21  ;;  %v1163_v59 = vld [vmem:[%s1458_s1 + $0x190] sm:$0xff]   ;;  %v1167_v63 = vld [vmem:[%s1458_s1 + $0x188] sm:$0xff]   ;;  %v1169_v1 = vld [vmem:[%s1458_s1 + $0x100] sm:$0xff]  }
  0x17   :  { %v1170_v2 = vld [vmem:[%s1458_s1 + $0x1c0] sm:$0xff]   ;;  %v1171_v3 = vld [vmem:[%s1459_s0 + $0x10] ss:$36 sps:$4 sm:$0xff]   ;;  %v1175_v7 = vld [vmem:[%s1459_s0 + $0x18] ss:$36 sps:$4 sm:$0xff]  }
  0x18   :  { %994 = vmatpush3.bf16.msra.mxu0 %v1124_v22  ;;  %v1173_v4 = vld [vmem:[%s1459_s0 + $0x14] ss:$36 sps:$4 sm:$0xff]   ;;  %v1174_v5 = vld [vmem:[%s1458_s1 + $0x180] sm:$0xff]   ;;  %v1180_v11 = vld [vmem:[%s1458_s1 + $0x228] sm:$0xff]  }
  0x19   :  { %1016 = vmatpush3.bf16.msra.mxu1 %v1125_v23  ;;  %995 = vmatprep.subr.bf16.mxu0 %v1126_v24  ;;  %v1177_v8 = vld [vmem:[%s1459_s0 + $0x1c] ss:$36 sps:$4 sm:$0xff]   ;;  %v1179_v10 = vld [vmem:[%s1458_s1 + $0x230] sm:$0xff]   ;;  %v1184_v15 = vld [vmem:[%s1458_s1 + $0x208] sm:$0xff]  }
  0x1a   :  { %1017 = vmatprep.subr.bf16.mxu1 %v1127_v25  ;;  %v1178_v9 = vld [vmem:[%s1458_s1 + $0x238] sm:$0xff]   ;;  %v1181_v12 = vld [vmem:[%s1458_s1 + $0x220] sm:$0xff]   ;;  %v1183_v14 = vld [vmem:[%s1458_s1 + $0x210] sm:$0xff]  }
  0x1b   :  { %v1182_v13 = vld [vmem:[%s1458_s1 + $0x218] sm:$0xff]   ;;  %v1185_v16 = vld [vmem:[%s1458_s1 + $0x200] sm:$0xff]  }
  0x1c   :  { %996 = vmatpush3.bf16.msra.mxu0 %v1128_v26  ;;  %v1186_v17 = vld [vmem:[%s1459_s0 + $0x20] ss:$36 sps:$4 sm:$0xff]  }
  0x1d   :  { %1018 = vmatpush3.bf16.msra.mxu1 %v1129_v27  ;;  %997 = vmatprep.subr.bf16.mxu0 %v1130_v28 }
  0x1e   :  { %1019 = vmatprep.subr.bf16.mxu1 %v1131_v29 }
  0x20   :  { %998 = vmatpush3.bf16.msra.mxu0 %v1132_v30 }
  0x21   :  { %1020 = vmatpush3.bf16.msra.mxu1 %v1133_v31  ;;  %1027 = vmatprep.subr.bf16.mxu0 %v1140_v36 }
  0x22   :  { %1049 = vmatprep.subr.bf16.mxu1 %v1142_v38 }
  0x23   :  { %688 = vmatmul.mubr.bf16.vlgmr.msra.gmra.mxu0 %v1134_v32 }
  0x24   :  { %729 = vmatmul.mubr.bf16.vlgmr.msra.gmra.mxu1 %v1137_v34  ;;  %1028 = vmatpush3.bf16.msra.mxu0 %v1141_v37 }
  0x25   :  { %1050 = vmatpush3.bf16.msra.mxu1 %v1143_v39  ;;  %1029 = vmatprep.subr.bf16.mxu0 %v1144_v40 }
  0x26   :  { %1051 = vmatprep.subr.bf16.mxu1 %v1146_v42  ;;  %769 = vmatprep.mubr.bf16.mxu0 %v1173_v4 }
  0x27   :  { %810 = vmatprep.mubr.bf16.mxu1 %v1177_v8 }
  0x28   :  { %1030 = vmatpush3.bf16.msra.mxu0 %v1145_v41 }
  0x29   :  { %1052 = vmatpush3.bf16.msra.mxu1 %v1147_v43  ;;  %1031 = vmatprep.subr.bf16.mxu0 %v1148_v44 }
  0x2a   :  { %1053 = vmatprep.subr.bf16.mxu1 %v1150_v46 }
  0x2c   :  { %1032 = vmatpush3.bf16.msra.mxu0 %v1149_v45 }
  0x2d   :  { %1054 = vmatpush3.bf16.msra.mxu1 %v1151_v47  ;;  %1033 = vmatprep.subr.bf16.mxu0 %v1152_v48 }
  0x2e   :  { %1055 = vmatprep.subr.bf16.mxu1 %v1154_v50 }
  0x30   :  { %1034 = vmatpush3.bf16.msra.mxu0 %v1153_v49 }
  0x31   :  { %1056 = vmatpush3.bf16.msra.mxu1 %v1155_v51  ;;  %1035 = vmatprep.subr.bf16.mxu0 %v1156_v52  ;;  %v973_v51 = vld [vmem:[%s1460_s2] ss:$0 sm:$0xff] }
  0x32   :  { %1057 = vmatprep.subr.bf16.mxu1 %v1158_v54 }
  0x34   :  { %1036 = vmatpush3.bf16.msra.mxu0 %v1157_v53 }
  0x35   :  { %1058 = vmatpush3.bf16.msra.mxu1 %v1159_v55  ;;  %1037 = vmatprep.subr.bf16.mxu0 %v1160_v56 }
  0x36   :  { %1059 = vmatprep.subr.bf16.mxu1 %v1162_v58 }
  0x38   :  { %1038 = vmatpush3.bf16.msra.mxu0 %v1161_v57 }
  0x39   :  { %1060 = vmatpush3.bf16.msra.mxu1 %v1163_v59  ;;  %1039 = vmatprep.subr.bf16.mxu0 %v1164_v60 }
  0x3a   :  { %1061 = vmatprep.subr.bf16.mxu1 %v1166_v62 }
  0x3c   :  { %1040 = vmatpush3.bf16.msra.mxu0 %v1165_v61 }
  0x3d   :  { %1062 = vmatpush3.bf16.msra.mxu1 %v1167_v63  ;;  %1041 = vmatprep.subr.bf16.mxu0 %v1168_v0 }
  0x3e   :  { %1063 = vmatprep.subr.bf16.mxu1 %v1170_v2 }
  0x40   :  { %1042 = vmatpush3.bf16.msra.mxu0 %v1169_v1 }
  0x41   :  { %1080 = vmatprep.subr.bf16.mxu0 %v1187_v6  ;;  %1064 = vmatpush3.bf16.msra.mxu1 %v1174_v5 }
  0x43   :  { %770 = vmatmul.mubr.bf16.vlgmr.msra.gmra.mxu0 %v1171_v3 }
  0x44   :  { %1096 = vmatprep.mubr.msk.bf16.mxu0 %vm1188_vm0, %v1187_v6  ;;  %1081 = vmatpush3.bf16.msra.mxu0 %v1178_v9 }
  0x45   :  { %811 = vmatmul.mubr.bf16.vlgmr.msra.gmra.mxu1 %v1175_v7  ;;  %1082 = vmatprep.subr.bf16.mxu0 %v1187_v6 }
  0x48   :  { %1083 = vmatpush3.bf16.msra.mxu0 %v1179_v10 }
  0x49   :  { %1084 = vmatprep.subr.bf16.mxu0 %v1187_v6 }
  0x4c   :  { %1085 = vmatpush3.bf16.msra.mxu0 %v1180_v11 }
  0x4d   :  { %1086 = vmatprep.subr.bf16.mxu0 %v1187_v6 }
  0x50   :  { %1087 = vmatpush3.bf16.msra.mxu0 %v1181_v12 }
  0x51   :  { %1088 = vmatprep.subr.bf16.mxu0 %v1187_v6 }
  0x54   :  { %1089 = vmatpush3.bf16.msra.mxu0 %v1182_v13 }
  0x55   :  { %1090 = vmatprep.subr.bf16.mxu0 %v1187_v6 }
  0x58   :  { %1091 = vmatpush3.bf16.msra.mxu0 %v1183_v14 }
  0x59   :  { %1092 = vmatprep.subr.bf16.mxu0 %v1187_v6 }
  0x5c   :  { %1093 = vmatpush3.bf16.msra.mxu0 %v1184_v15 }
  0x5d   :  { %1094 = vmatprep.subr.bf16.mxu0 %v1187_v6 }
  0x60   :  { %1095 = vmatpush3.bf16.msra.mxu0 %v1185_v16 }
  0x63   :  { %1097 = vmatmul.mubr.bf16.vlgmr.msra.gmra.mxu0 %v1186_v17 }
  0xe3   :  { %v999_v18 = vpop.f32.mrf.mxu0 }
  0xe4   :  { %v1021_v19 = vpop.f32.mrf.mxu1 }
  0xe5   :  { %v1000_v20 = vpop.f32.mrf.mxu0 }
  0xe6   :  { %v1022_v21 = vpop.f32.mrf.mxu1  ;;  %v1001_v31 = vadd.f32 %v1000_v20, %v999_v18 }
  0xe7   :  { %v1002_v22 = vpop.f32.mrf.mxu0  ;;  %v1023_v32 = vadd.f32 %v1022_v21, %v1021_v19 }
  0xe8   :  { %v1024_v23 = vpop.f32.mrf.mxu1 }
  0xe9   :  { %v1003_v24 = vpop.f32.mrf.mxu0  ;;  %v731_v38 = vadd.f32 %v1023_v32, %v1001_v31 }
  0xea   :  { %v1025_v26 = vpop.f32.mrf.mxu1  ;;  %v1004_v35 = vadd.f32 %v1003_v24, %v1002_v22 }
  0xeb   :  { %v1026_v36 = vadd.f32 %v1025_v26, %v1024_v23 }
  0xed   :  { %v734_v41 = vadd.f32 %v1026_v36, %v1004_v35 }
 0x103   :  { %v1043_v25 = vpop.f32.mrf.mxu0 }
 0x105   :  { %v1044_v27 = vpop.f32.mrf.mxu0  ;;  %v1065_v28 = vpop.f32.mrf.mxu1 }
 0x106   :  { %v1045_v37 = vadd.f32 %v1044_v27, %v1043_v25 }
 0x107   :  { %v1046_v29 = vpop.f32.mrf.mxu0  ;;  %v1066_v30 = vpop.f32.mrf.mxu1 }
 0x108   :  { %v772_v42 = vadd.f32 %v1045_v37, %v731_v38  ;;  %v1067_v43 = vadd.f32 %v1066_v30, %v1065_v28 }
 0x109   :  { %v1047_v33 = vpop.f32.mrf.mxu0  ;;  %v1068_v34 = vpop.f32.mrf.mxu1 }
 0x10a   :  { %v1048_v39 = vadd.f32 %v1047_v33, %v1046_v29  ;;  %v813_v47 = vadd.f32 %v1067_v43, %v772_v42 }
 0x10b   :  { %v1069_v40 = vpop.f32.mrf.mxu1 }
 0x10c   :  { %v775_v44 = vadd.f32 %v1048_v39, %v734_v41  ;;  %v1070_v45 = vadd.f32 %v1069_v40, %v1068_v34 }
 0x10e   :  { %v816_v50 = vadd.f32 %v1070_v45, %v775_v44 }
 0x123   :  { %v853_v46 = vpop.f32.mrf.mxu0 }
 0x124   :  { %v854_v49 = vadd.f32 %v853_v46, %v813_v47 }
 0x125   :  { %v1098_v48 = vpop.f32.mrf.mxu0 }
 0x126   :  { %v876_v55 = vadd.f32 %v973_v51, %v854_v49 }
 0x127   :  { %v856_v52 = vpop.f32.mrf.mxu0 }
 0x128   :  { %v857_v53 = vadd.f32 %v856_v52, %v816_v50 }
 0x129   :  { %v1099_v54 = vpop.f32.mrf.mxu0 }
 0x12a   :  { %v877_v56 = vadd.f32 %v973_v51, %v857_v53 }
 0x12c   :  { %v981_v57 = vpack.c.bf16 %v877_v56, %v876_v55 }
 0x12e   :  { %982 = vst [vmem:[%s1461_s3] sm:$0xff] %v981_v57  }

// kernel: sfdet_densenet_forward.50
= control target key start
LH: loop header
LB: loop body
LE: loop exit
PB: predicated region body
PF: predicated region fallthrough
CT: control target
= control target key end

     0   :  { %v495_v0 = vmov 0.0   ;;  %vm496_vm0 = vmmov 0   ;;  %s620_s1 = inlined_call_operand.vmem [shape: bf16[384,128], index: 1, kind: input, shape index: {}]   ;;  %s621_s0 = inlined_call_operand.vmem [shape: bf16[16,384], index: 0, kind: input, shape index: {}]   ;;  %s622_s2 = inlined_call_operand.vmem [shape: f32[1,128], index: 2, kind: input, shape index: {}]   ;;  %s623_s3 = inlined_call_operand.vmem [shape: f32[1,128], index: 3, kind: input, shape index: {}]   ;;  %s624_s4 = inlined_call_operand.vmem [shape: f32[1,128], index: 4, kind: input, shape index: {}]   ;;  %s625_s5 = inlined_call_operand.vmem [shape: bf16[16,128], index: 5, kind: output, shape index: {}]  }
   0x1   :  { %445 = vmatprep.subr.bf16.mxu1 %v495_v0  ;;  %v467_v1 = vld [vmem:[%s620_s1 + $0x78] sm:$0xff]   ;;  %461 = vmatprep.mubr.msk.bf16.mxu1 %vm496_vm0, %v495_v0  ;;  %v470_v4 = vld [vmem:[%s620_s1 + $0x70] sm:$0xff]   ;;  %v473_v7 = vld [vmem:[%s620_s1 + $0x68] sm:$0xff]  }
   0x2   :  { %v468_v2 = vld [vmem:[%s620_s1 + $0xb8] sm:$0xff]   ;;  %414 = vmatprep.subr.bf16.mxu0 %v467_v1  ;;  %v471_v5 = vld [vmem:[%s620_s1 + $0xb0] sm:$0xff]   ;;  %v474_v8 = vld [vmem:[%s620_s1 + $0xa8] sm:$0xff]  }
   0x3   :  { %v469_v3 = vld [vmem:[%s620_s1 + $0x38] sm:$0xff]   ;;  %446 = vmatpush3.bf16.msra.mxu1 %v468_v2  ;;  %v472_v6 = vld [vmem:[%s620_s1 + $0x30] sm:$0xff]   ;;  %v475_v9 = vld [vmem:[%s620_s1 + $0x28] sm:$0xff]  }
   0x4   :  { %415 = vmatpush3.bf16.msra.mxu0 %v469_v3  ;;  %447 = vmatprep.subr.bf16.mxu1 %v495_v0  ;;  %v476_v10 = vld [vmem:[%s620_s1 + $0x60] sm:$0xff]   ;;  %v479_v13 = vld [vmem:[%s620_s1 + $0x58] sm:$0xff]   ;;  %v482_v16 = vld [vmem:[%s620_s1 + $0x50] sm:$0xff]  }
   0x5   :  { %416 = vmatprep.subr.bf16.mxu0 %v470_v4  ;;  %v477_v11 = vld [vmem:[%s620_s1 + $0xa0] sm:$0xff]   ;;  %v480_v14 = vld [vmem:[%s620_s1 + $0x98] sm:$0xff]   ;;  %v483_v17 = vld [vmem:[%s620_s1 + $0x90] sm:$0xff]  }
   0x6   :  { %v478_v12 = vld [vmem:[%s620_s1 + $0x20] sm:$0xff]   ;;  %v481_v15 = vld [vmem:[%s620_s1 + $0x18] sm:$0xff]   ;;  %v484_v18 = vld [vmem:[%s620_s1 + $0x10] sm:$0xff]  }
   0x7   :  { %448 = vmatpush3.bf16.msra.mxu1 %v471_v5  ;;  %v485_v19 = vld [vmem:[%s620_s1 + $0x48] sm:$0xff]   ;;  %v488_v22 = vld [vmem:[%s620_s1 + $0x40] sm:$0xff]  }
   0x8   :  { %417 = vmatpush3.bf16.msra.mxu0 %v472_v6  ;;  %449 = vmatprep.subr.bf16.mxu1 %v495_v0  ;;  %v486_v20 = vld [vmem:[%s620_s1 + $0x88] sm:$0xff]   ;;  %v493_v23 = vld [vmem:[%s621_s0 + $0x4] ss:$12 sps:$4 sm:$0xff]   ;;  %v402_v34 = vld [vmem:[%s622_s2] ss:$0 sm:$0xff] }
   0x9   :  { %418 = vmatprep.subr.bf16.mxu0 %v473_v7  ;;  %v487_v21 = vld [vmem:[%s620_s1 + $0x8] sm:$0xff]   ;;  %v489_v24 = vld [vmem:[%s620_s1 + $0x80] sm:$0xff]   ;;  %273 = vmatprep.mubr.bf16.mxu0 %v493_v23 }
   0xa   :  { %v490_v25 = vld [vmem:[%s620_s1] sm:$0xff]   ;;  %v494_v26 = vld [vmem:[%s621_s0 + $0x8] ss:$12 sps:$4 sm:$0xff]  }
   0xb   :  { %450 = vmatpush3.bf16.msra.mxu1 %v474_v8  ;;  %v491_v27 = vld [vmem:[%s621_s0] ss:$12 sps:$4 sm:$0xff]  }
   0xc   :  { %419 = vmatpush3.bf16.msra.mxu0 %v475_v9  ;;  %451 = vmatprep.subr.bf16.mxu1 %v495_v0  ;;  %v403_v43 = vld [vmem:[%s623_s3] ss:$0 sm:$0xff] }
   0xd   :  { %420 = vmatprep.subr.bf16.mxu0 %v476_v10  ;;  %v404_v47 = vld [vmem:[%s624_s4] ss:$0 sm:$0xff] }
   0xf   :  { %452 = vmatpush3.bf16.msra.mxu1 %v477_v11 }
  0x10   :  { %421 = vmatpush3.bf16.msra.mxu0 %v478_v12  ;;  %453 = vmatprep.subr.bf16.mxu1 %v495_v0 }
  0x11   :  { %422 = vmatprep.subr.bf16.mxu0 %v479_v13 }
  0x13   :  { %454 = vmatpush3.bf16.msra.mxu1 %v480_v14 }
  0x14   :  { %423 = vmatpush3.bf16.msra.mxu0 %v481_v15  ;;  %455 = vmatprep.subr.bf16.mxu1 %v495_v0 }
  0x15   :  { %424 = vmatprep.subr.bf16.mxu0 %v482_v16 }
  0x17   :  { %456 = vmatpush3.bf16.msra.mxu1 %v483_v17 }
  0x18   :  { %425 = vmatpush3.bf16.msra.mxu0 %v484_v18  ;;  %457 = vmatprep.subr.bf16.mxu1 %v495_v0 }
  0x19   :  { %426 = vmatprep.subr.bf16.mxu0 %v485_v19 }
  0x1b   :  { %458 = vmatpush3.bf16.msra.mxu1 %v486_v20 }
  0x1c   :  { %427 = vmatpush3.bf16.msra.mxu0 %v487_v21  ;;  %459 = vmatprep.subr.bf16.mxu1 %v495_v0 }
  0x1d   :  { %428 = vmatprep.subr.bf16.mxu0 %v488_v22 }
  0x1f   :  { %460 = vmatpush3.bf16.msra.mxu1 %v489_v24 }
  0x20   :  { %429 = vmatpush3.bf16.msra.mxu0 %v490_v25 }
  0x22   :  { %462 = vmatmul.mubr.bf16.vlgmr.msra.gmra.mxu1 %v494_v26 }
  0x23   :  { %274 = vmatmul.mubr.bf16.vlgmr.msra.gmra.mxu0 %v491_v27 }
  0xe2   :  { %v316_v28 = vpop.f32.mrf.mxu1 }
  0xe3   :  { %v430_v29 = vpop.f32.mrf.mxu0 }
  0xe4   :  { %v463_v30 = vpop.f32.mrf.mxu1 }
  0xe5   :  { %v431_v31 = vpop.f32.mrf.mxu0 }
  0xe6   :  { %v432_v32 = vadd.f32 %v431_v31, %v430_v29  ;;  %v319_v33 = vpop.f32.mrf.mxu1 }
  0xe7   :  { %v433_v35 = vpop.f32.mrf.mxu0 }
  0xe8   :  { %v317_v36 = vadd.f32 %v432_v32, %v316_v28  ;;  %v464_v37 = vpop.f32.mrf.mxu1 }
  0xe9   :  { %v434_v38 = vpop.f32.mrf.mxu0 }
  0xea   :  { %v339_v39 = vadd.f32 %v402_v34, %v317_v36  ;;  %v435_v40 = vadd.f32 %v434_v38, %v433_v35 }
  0xec   :  { %v341_v41 = vmax.f32 %v339_v39, 0.0  ;;  %v320_v42 = vadd.f32 %v435_v40, %v319_v33 }
  0xee   :  { %v340_v44 = vadd.f32 %v402_v34, %v320_v42  ;;  %v350_v45 = vmul.f32 %v403_v43, %v341_v41 }
  0xf0   :  { %v342_v46 = vmax.f32 %v340_v44, 0.0  ;;  %v359_v49 = vadd.f32 %v404_v47, %v350_v45 }
  0xf2   :  { %v351_v48 = vmul.f32 %v403_v43, %v342_v46 }
  0xf4   :  { %v360_v50 = vadd.f32 %v404_v47, %v351_v48 }
  0xf6   :  { %v412_v51 = vpack.c.bf16 %v360_v50, %v359_v49 }
  0xf8   :  { %413 = vst [vmem:[%s625_s5] sm:$0xff] %v412_v51  }

// kernel: sfdet_densenet_forward.44
= control target key start
LH: loop header
LB: loop body
LE: loop exit
PB: predicated region body
PF: predicated region fallthrough
CT: control target
= control target key end

     0   :  { %v254_v0 = vmov 0.0   ;;  %vm255_vm0 = vmmov 0   ;;  %s325_s1 = inlined_call_operand.vmem [shape: bf16[128,128], index: 1, kind: input, shape index: {}]   ;;  %s326_s0 = inlined_call_operand.vmem [shape: bf16[16,128], index: 0, kind: input, shape index: {}]   ;;  %s327_s3 = inlined_call_operand.vmem [shape: f32[1,128], index: 3, kind: input, shape index: {}]   ;;  %s328_s4 = inlined_call_operand.vmem [shape: f32[1,128], index: 4, kind: input, shape index: {}]   ;;  %s329_s2 = inlined_call_operand.vmem [shape: f32[1,128], index: 2, kind: input, shape index: {}]   ;;  %s330_s5 = inlined_call_operand.vmem [shape: bf16[16,128], index: 5, kind: output, shape index: {}]  }
   0x1   :  { %224 = vmatprep.subr.bf16.mxu0 %v254_v0  ;;  %v246_v1 = vld [vmem:[%s325_s1 + $0x38] sm:$0xff]   ;;  %240 = vmatprep.mubr.msk.bf16.mxu0 %vm255_vm0, %v254_v0  ;;  %v247_v2 = vld [vmem:[%s325_s1 + $0x30] sm:$0xff]   ;;  %v248_v3 = vld [vmem:[%s325_s1 + $0x28] sm:$0xff]  }
   0x2   :  { %225 = vmatpush3.bf16.msra.mxu0 %v246_v1  ;;  %v249_v4 = vld [vmem:[%s325_s1 + $0x20] sm:$0xff]   ;;  %v250_v8 = vld [vmem:[%s325_s1 + $0x18] sm:$0xff]   ;;  %v251_v12 = vld [vmem:[%s325_s1 + $0x10] sm:$0xff]  }
   0x3   :  { %226 = vmatprep.subr.bf16.mxu0 %v254_v0  ;;  %v207_v5 = vld [vmem:[%s326_s0] sm:$0xff]   ;;  %v252_v16 = vld [vmem:[%s325_s1 + $0x8] sm:$0xff]  }
   0x4   :  { %v208_v6 = vunpack.c.l.bf16 %v207_v5  ;;  %v209_v7 = vunpack.c.h.bf16 %v207_v5  ;;  %v191_v9 = vld [vmem:[%s327_s3] ss:$0 sm:$0xff] }
   0x5   :  { %v192_v13 = vld [vmem:[%s328_s4] ss:$0 sm:$0xff] }
   0x6   :  { %227 = vmatpush3.bf16.msra.mxu0 %v247_v2  ;;  %v38_v10 = vmul.f32 %v208_v6, %v191_v9  ;;  %v39_v11 = vmul.f32 %v209_v7, %v191_v9  ;;  %v253_v19 = vld [vmem:[%s325_s1] sm:$0xff]  }
   0x7   :  { %228 = vmatprep.subr.bf16.mxu0 %v254_v0  ;;  %v201_v22 = vld [vmem:[%s329_s2] ss:$0 sm:$0xff] }
   0x8   :  { %v47_v14 = vadd.f32 %v192_v13, %v38_v10  ;;  %v48_v15 = vadd.f32 %v192_v13, %v39_v11 }
   0xa   :  { %229 = vmatpush3.bf16.msra.mxu0 %v248_v3  ;;  %v49_v17 = vmax.f32 %v47_v14, 0.0  ;;  %v50_v18 = vmax.f32 %v48_v15, 0.0 }
   0xb   :  { %230 = vmatprep.subr.bf16.mxu0 %v254_v0 }
   0xc   :  { %v51_v20 = vpack.c.bf16 %v50_v18, %v49_v17 }
   0xe   :  { %231 = vmatpush3.bf16.msra.mxu0 %v249_v4 }
   0xf   :  { %232 = vmatprep.subr.bf16.mxu0 %v254_v0 }
  0x12   :  { %233 = vmatpush3.bf16.msra.mxu0 %v250_v8 }
  0x13   :  { %234 = vmatprep.subr.bf16.mxu0 %v254_v0 }
  0x16   :  { %235 = vmatpush3.bf16.msra.mxu0 %v251_v12 }
  0x17   :  { %236 = vmatprep.subr.bf16.mxu0 %v254_v0 }
  0x1a   :  { %237 = vmatpush3.bf16.msra.mxu0 %v252_v16 }
  0x1b   :  { %238 = vmatprep.subr.bf16.mxu0 %v254_v0 }
  0x1e   :  { %239 = vmatpush3.bf16.msra.mxu0 %v253_v19 }
  0x21   :  { %241 = vmatmul.mubr.bf16.vlgmr.msra.gmra.mxu0 %v51_v20 }
  0xe1   :  { %v152_v21 = vpop.f32.mrf.mxu0 }
  0xe2   :  { %v175_v25 = vadd.f32 %v201_v22, %v152_v21 }
  0xe3   :  { %v242_v23 = vpop.f32.mrf.mxu0 }
  0xe5   :  { %v155_v24 = vpop.f32.mrf.mxu0 }
  0xe6   :  { %v176_v26 = vadd.f32 %v201_v22, %v155_v24 }
  0xe7   :  { %v243_v27 = vpop.f32.mrf.mxu0 }
  0xe8   :  { %v213_v28 = vpack.c.bf16 %v176_v26, %v175_v25 }
  0xea   :  { %214 = vst [vmem:[%s330_s5] sm:$0xff] %v213_v28  }

// kernel: sfdet_densenet_forward.52
= control target key start
LH: loop header
LB: loop body
LE: loop exit
PB: predicated region body
PF: predicated region fallthrough
CT: control target
= control target key end

     0   :  { %s4903_s0 = inlined_call_operand.vmem [shape: bf16[32,6144], index: 0, kind: input, shape index: {}]   ;;  %s4904_s1 = inlined_call_operand.vmem [shape: bf16[6144,256], index: 1, kind: input, shape index: {}]   ;;  %s4905_s2 = inlined_call_operand.vmem [shape: f32[1,256], index: 2, kind: input, shape index: {}]   ;;  %s4906_s3 = inlined_call_operand.vmem [shape: bf16[32,256], index: 3, kind: output, shape index: {}]  }
   0x1   :  { %4908 = sst [smem:[#allocation7_spill]] %s4903_s0 }
   0x2   :  { %4909 = sst [smem:[#allocation8_spill]] %s4904_s1 }
   0x3   :  { %s3974_s12 = smov 0   ;;  %s3976_s13 = smov 0  }
   0x4   :  { %s3978_s14 = smov 0   ;;  %s3980_s15 = smov 0  }
   0x5   :  { %s3982_s16 = smov 0   ;;  %s3984_s17 = smov 0  }
   0x6   :  { %s3986_s18 = smov 0   ;;  %s3988_s19 = smov 0  }
   0x7   :  { %s3990_s20 = smov 0   ;;  %s3992_s21 = smov 0  }
   0x8   :  { %s3994_s22 = smov 0  }
   0x9 LB: > { %s3221_s23 = sadd.s32 4294967295, %s3951_s22   ;;  %s25_s24 = sadd.s32 1, %s3943_s20  ;;  %s3951_s22 = sphi %s3994_s22, %s13_s22   ;;  %s3947_s21 = sphi %s3992_s21, %s4926_s21   ;;  %s3943_s20 = sphi %s3990_s20, %s4925_s20   ;;  %s3939_s19 = sphi %s3988_s19, %s4924_s19   ;;  %s3935_s18 = sphi %s3986_s18, %s4923_s18   ;;  %s3931_s17 = sphi %s3984_s17, %s4922_s17   ;;  %s3927_s16 = sphi %s3982_s16, %s4921_s16   ;;  %s3923_s15 = sphi %s3980_s15, %s4920_s15   ;;  %s3919_s14 = sphi %s3978_s14, %s4919_s14   ;;  %s3915_s13 = sphi %s3976_s13, %s4918_s13   ;;  %s3911_s12 = sphi %s3974_s12, %s4917_s12  }
   0xa   : > { %p26_p0 = scmp.ge.s32.totalorder %s25_s24, 3  ;;  %s28_s25 = sadd.s32 1, %s3947_s21 }
   0xb   : > { %s41_s26 = sadd.s32 1, %s3931_s17  ;;  %p48_p1 = scmp.ne.s32.totalorder %s3931_s17, %s3927_s16 }
   0xc   : > { %s4928_s24 = smov (%p26_p0, %s25_s24), 0  ;;  %s4930_s25 = smov (!%p26_p0, %s28_s25), %s3947_s21 }
   0xd   : > { %s37_s27 = ssub.s32 %s3943_s20, %s4928_s24  ;;  %p49_p2 = scmp.eq.s32.totalorder %s3951_s22, 0 }
   0xe   : > { %p30_p3 = scmp.ge.s32.totalorder %s4930_s25, 2  ;;  %p39_p4 = scmp.eq.s32.totalorder %s37_s27, 0 }
   0xf   : > { %p4041_p5 = por %p49_p2, %p48_p1  ;;  %s69_s29 = sadd.s32 1, %s3923_s15 }
  0x10   : > { %s4932_s25 = smov (%p30_p3, %s4930_s25), 0  ;;  %p76_p6 = scmp.ne.s32.totalorder %s3923_s15, %s3919_s14 }
  0x11   : > { %4911 = sst [smem:[#allocation6_spill]] %s4932_s25  ;;  %s65_s4 = ssub.s32 %s3947_s21, %s4932_s25 }
  0x12   : > { %s4049_s30 = scalar_select %p39_p4, %s3931_s17, %s41_s26  }
  0x13   : > { %s66_s5 = sor.u32 %s65_s4, %s37_s27  ;;  %p121_p7 = scmp.eq.s32.totalorder %s65_s4, 0 }
  0x14   : > { %p67_p8 = scmp.eq.s32.totalorder %s66_s5, 0  ;;  %p4055_p9 = por %p76_p6, %p49_p2 }
  0x15   : > { %s123_s7 = sadd.s32 1, %s3915_s13  ;;  %p133_p10 = scmp.ne.s32.totalorder %s3915_s13, %s3911_s12 }
  0x16   : > { %s4063_s8 = scalar_select %p67_p8, %s3923_s15, %s69_s29  }
  0x17   : > { %s4066_s9 = scalar_select %p121_p7, %s3915_s13, %s123_s7  }
  0x18   : > { %p134_p11 = scmp.eq.s32.totalorder %s3221_s23, 5  ;;  %p3224_p13 = scmp.ge.s32.totalorder %s3951_s22, 6 }
  0x1a   : > { %p4068_p12 = por %p134_p11, %p133_p10  ;;  %156 = sbr.rel (%p3224_p13) target bundleno = 237 (0xed), region = 16 }
  0x1f   : > { %159 = sbr.rel (!%p4041_p5) target bundleno = 57 (0x39), region = 20  ;;  %s161_s11 = sand.u32 (%p4041_p5), 1, %s3931_s17  }
  0x20   : > { %s3407_s26 = sshll.u32 (%p4041_p5), %s3943_s20, 6  ;;  %s3225_s27 = sshll.u32 (%p4041_p5), %s161_s11, 8 }
  0x21   : > { %s4914_s0 = sld [smem:[#allocation7_spill]] (%p4041_p5)  ;;  %s4085_s23 = scalar_lea.vmem (%p4041_p5), [#allocation3], %s3225_s27 }
  0x27   : > { %s4080_s5 = scalar_lea.vmem %s4914_s0, %s3407_s26 }
  0x28   : > { %v182_v0 = vld [vmem:[%s4080_s5] sm:$0xff]  ;;  %v184_v1 = vld [vmem:[%s4080_s5 + $0x8] sm:$0xff]  ;;  %v186_v2 = vld [vmem:[%s4080_s5 + $0x10] sm:$0xff] }
  0x29   : > { %183 = vst [vmem:[%s4085_s23] sm:$0xff] %v182_v0  ;;  %185 = vst [vmem:[%s4085_s23 + $0x8] sm:$0xff] %v184_v1  ;;  %v188_v3 = vld [vmem:[%s4080_s5 + $0x18] sm:$0xff]  ;;  %v190_v4 = vld [vmem:[%s4080_s5 + $0x20] sm:$0xff] }
  0x2a   : > { %187 = vst [vmem:[%s4085_s23 + $0x10] sm:$0xff] %v186_v2  ;;  %v192_v5 = vld [vmem:[%s4080_s5 + $0x28] sm:$0xff]  ;;  %189 = vst [vmem:[%s4085_s23 + $0x18] sm:$0xff] %v188_v3  ;;  %v194_v6 = vld [vmem:[%s4080_s5 + $0x30] sm:$0xff] }
  0x2b   : > { %191 = vst [vmem:[%s4085_s23 + $0x20] sm:$0xff] %v190_v4  ;;  %193 = vst [vmem:[%s4085_s23 + $0x28] sm:$0xff] %v192_v5  ;;  %v196_v7 = vld [vmem:[%s4080_s5 + $0x38] sm:$0xff]  ;;  %v198_v8 = vld [vmem:[%s4080_s5 + $0xc0] sm:$0xff] }
  0x2c   : > { %195 = vst [vmem:[%s4085_s23 + $0x30] sm:$0xff] %v194_v6  ;;  %197 = vst [vmem:[%s4085_s23 + $0x38] sm:$0xff] %v196_v7  ;;  %v200_v9 = vld [vmem:[%s4080_s5 + $0xc8] sm:$0xff]  ;;  %v202_v10 = vld [vmem:[%s4080_s5 + $0xd0] sm:$0xff] }
  0x2d   : > { %199 = vst [vmem:[%s4085_s23 + $0x40] sm:$0xff] %v198_v8  ;;  %v204_v11 = vld [vmem:[%s4080_s5 + $0xd8] sm:$0xff]  ;;  %201 = vst [vmem:[%s4085_s23 + $0x48] sm:$0xff] %v200_v9  ;;  %v206_v12 = vld [vmem:[%s4080_s5 + $0xe0] sm:$0xff] }
  0x2e   : > { %203 = vst [vmem:[%s4085_s23 + $0x50] sm:$0xff] %v202_v10  ;;  %205 = vst [vmem:[%s4085_s23 + $0x58] sm:$0xff] %v204_v11  ;;  %v208_v13 = vld [vmem:[%s4080_s5 + $0xe8] sm:$0xff]  ;;  %v210_v14 = vld [vmem:[%s4080_s5 + $0xf0] sm:$0xff] }
  0x2f   : > { %207 = vst [vmem:[%s4085_s23 + $0x60] sm:$0xff] %v206_v12  ;;  %209 = vst [vmem:[%s4085_s23 + $0x68] sm:$0xff] %v208_v13  ;;  %v212_v15 = vld [vmem:[%s4080_s5 + $0xf8] sm:$0xff]  ;;  %v214_v16 = vld [vmem:[%s4080_s5 + $0x180] sm:$0xff] }
  0x30   : > { %211 = vst [vmem:[%s4085_s23 + $0x70] sm:$0xff] %v210_v14  ;;  %v216_v17 = vld [vmem:[%s4080_s5 + $0x188] sm:$0xff]  ;;  %213 = vst [vmem:[%s4085_s23 + $0x78] sm:$0xff] %v212_v15  ;;  %v218_v18 = vld [vmem:[%s4080_s5 + $0x190] sm:$0xff] }
  0x31   : > { %215 = vst [vmem:[%s4085_s23 + $0x80] sm:$0xff] %v214_v16  ;;  %217 = vst [vmem:[%s4085_s23 + $0x88] sm:$0xff] %v216_v17  ;;  %v220_v19 = vld [vmem:[%s4080_s5 + $0x198] sm:$0xff]  ;;  %v222_v20 = vld [vmem:[%s4080_s5 + $0x1a0] sm:$0xff] }
  0x32   : > { %219 = vst [vmem:[%s4085_s23 + $0x90] sm:$0xff] %v218_v18  ;;  %221 = vst [vmem:[%s4085_s23 + $0x98] sm:$0xff] %v220_v19  ;;  %v224_v21 = vld [vmem:[%s4080_s5 + $0x1a8] sm:$0xff]  ;;  %v226_v22 = vld [vmem:[%s4080_s5 + $0x1b0] sm:$0xff] }
  0x33   : > { %223 = vst [vmem:[%s4085_s23 + $0xa0] sm:$0xff] %v222_v20  ;;  %v228_v23 = vld [vmem:[%s4080_s5 + $0x1b8] sm:$0xff]  ;;  %225 = vst [vmem:[%s4085_s23 + $0xa8] sm:$0xff] %v224_v21  ;;  %v230_v24 = vld [vmem:[%s4080_s5 + $0x240] sm:$0xff] }
  0x34   : > { %227 = vst [vmem:[%s4085_s23 + $0xb0] sm:$0xff] %v226_v22  ;;  %229 = vst [vmem:[%s4085_s23 + $0xb8] sm:$0xff] %v228_v23  ;;  %v232_v25 = vld [vmem:[%s4080_s5 + $0x248] sm:$0xff]  ;;  %v234_v26 = vld [vmem:[%s4080_s5 + $0x250] sm:$0xff] }
  0x35   : > { %231 = vst [vmem:[%s4085_s23 + $0xc0] sm:$0xff] %v230_v24  ;;  %233 = vst [vmem:[%s4085_s23 + $0xc8] sm:$0xff] %v232_v25  ;;  %v236_v27 = vld [vmem:[%s4080_s5 + $0x258] sm:$0xff]  ;;  %v238_v28 = vld [vmem:[%s4080_s5 + $0x260] sm:$0xff] }
  0x36   : > { %235 = vst [vmem:[%s4085_s23 + $0xd0] sm:$0xff] %v234_v26  ;;  %v240_v29 = vld [vmem:[%s4080_s5 + $0x268] sm:$0xff]  ;;  %237 = vst [vmem:[%s4085_s23 + $0xd8] sm:$0xff] %v236_v27  ;;  %v242_v30 = vld [vmem:[%s4080_s5 + $0x270] sm:$0xff] }
  0x37   : > { %239 = vst [vmem:[%s4085_s23 + $0xe0] sm:$0xff] %v238_v28  ;;  %241 = vst [vmem:[%s4085_s23 + $0xe8] sm:$0xff] %v240_v29  ;;  %v244_v31 = vld [vmem:[%s4080_s5 + $0x278] sm:$0xff] }
  0x38   : > { %243 = vst [vmem:[%s4085_s23 + $0xf0] sm:$0xff] %v242_v30  ;;  %245 = vst [vmem:[%s4085_s23 + $0xf8] sm:$0xff] %v244_v31 }
  0x39 PF: > { %251 = sbr.rel (!%p4055_p9) target bundleno = 237 (0xed), region = 43  ;;  %s253_s28 = sand.u32 (%p4055_p9), 1, %s3923_s15  }
  0x3a   : > { %s3408_s7 = sshll.u32 (%p4055_p9), %s3943_s20, 9  ;;  %s3228_s11 = sshll.u32 (%p4055_p9), %s253_s28, 10 }
  0x3b   : > { %s258_s26 = sadd.s32 (%p4055_p9), %s3947_s21, %s3408_s7  ;;  %s4915_s1 = sld [smem:[#allocation8_spill]] (%p4055_p9) }
  0x3c   : > { %s3231_s27 = sshll.u32 (%p4055_p9), %s258_s26, 2  ;;  %s4161_s6 = scalar_lea.vmem (%p4055_p9), [#allocation4], %s3228_s11 }
  0x41   : > { %s4156_s0 = scalar_lea.vmem %s4915_s1, %s3231_s27 }
  0x42   : > { %v277_v32 = vld [vmem:[%s4156_s0] sm:$0xf]  ;;  %v279_v33 = vld [vmem:[%s4156_s0 + $0x8] sm:$0xf]  ;;  %v281_v34 = vld [vmem:[%s4156_s0 + $0x10] sm:$0xf] }
  0x43   : > { %278 = vst [vmem:[%s4161_s6] sm:$0xf] %v277_v32  ;;  %280 = vst [vmem:[%s4161_s6 + $0x4] sm:$0xf] %v279_v33  ;;  %v283_v35 = vld [vmem:[%s4156_s0 + $0x18] sm:$0xf] }
  0x44   : > { %282 = vst [vmem:[%s4161_s6 + $0x8] sm:$0xf] %v281_v34  ;;  %v285_v36 = vld [vmem:[%s4156_s0 + $0x20] sm:$0xf]  ;;  %v287_v37 = vld [vmem:[%s4156_s0 + $0x28] sm:$0xf] }
  0x45   : > { %284 = vst [vmem:[%s4161_s6 + $0xc] sm:$0xf] %v283_v35  ;;  %286 = vst [vmem:[%s4161_s6 + $0x10] sm:$0xf] %v285_v36  ;;  %v289_v38 = vld [vmem:[%s4156_s0 + $0x30] sm:$0xf] }
  0x46   : > { %288 = vst [vmem:[%s4161_s6 + $0x14] sm:$0xf] %v287_v37  ;;  %v291_v39 = vld [vmem:[%s4156_s0 + $0x38] sm:$0xf]  ;;  %v293_v40 = vld [vmem:[%s4156_s0 + $0x40] sm:$0xf] }
  0x47   : > { %290 = vst [vmem:[%s4161_s6 + $0x18] sm:$0xf] %v289_v38  ;;  %292 = vst [vmem:[%s4161_s6 + $0x1c] sm:$0xf] %v291_v39  ;;  %v295_v41 = vld [vmem:[%s4156_s0 + $0x48] sm:$0xf] }
  0x48   : > { %294 = vst [vmem:[%s4161_s6 + $0x20] sm:$0xf] %v293_v40  ;;  %v297_v42 = vld [vmem:[%s4156_s0 + $0x50] sm:$0xf]  ;;  %v299_v43 = vld [vmem:[%s4156_s0 + $0x58] sm:$0xf] }
  0x49   : > { %296 = vst [vmem:[%s4161_s6 + $0x24] sm:$0xf] %v295_v41  ;;  %298 = vst [vmem:[%s4161_s6 + $0x28] sm:$0xf] %v297_v42  ;;  %v301_v44 = vld [vmem:[%s4156_s0 + $0x60] sm:$0xf] }
  0x4a   : > { %300 = vst [vmem:[%s4161_s6 + $0x2c] sm:$0xf] %v299_v43  ;;  %v303_v45 = vld [vmem:[%s4156_s0 + $0x68] sm:$0xf]  ;;  %v305_v46 = vld [vmem:[%s4156_s0 + $0x70] sm:$0xf] }
  0x4b   : > { %302 = vst [vmem:[%s4161_s6 + $0x30] sm:$0xf] %v301_v44  ;;  %304 = vst [vmem:[%s4161_s6 + $0x34] sm:$0xf] %v303_v45  ;;  %v307_v47 = vld [vmem:[%s4156_s0 + $0x78] sm:$0xf] }
  0x4c   : > { %306 = vst [vmem:[%s4161_s6 + $0x38] sm:$0xf] %v305_v46  ;;  %v309_v48 = vld [vmem:[%s4156_s0 + $0x80] sm:$0xf]  ;;  %v311_v49 = vld [vmem:[%s4156_s0 + $0x88] sm:$0xf] }
  0x4d   : > { %308 = vst [vmem:[%s4161_s6 + $0x3c] sm:$0xf] %v307_v47  ;;  %310 = vst [vmem:[%s4161_s6 + $0x40] sm:$0xf] %v309_v48  ;;  %v313_v50 = vld [vmem:[%s4156_s0 + $0x90] sm:$0xf] }
  0x4e   : > { %312 = vst [vmem:[%s4161_s6 + $0x44] sm:$0xf] %v311_v49  ;;  %v315_v51 = vld [vmem:[%s4156_s0 + $0x98] sm:$0xf]  ;;  %v317_v52 = vld [vmem:[%s4156_s0 + $0xa0] sm:$0xf] }
  0x4f   : > { %314 = vst [vmem:[%s4161_s6 + $0x48] sm:$0xf] %v313_v50  ;;  %316 = vst [vmem:[%s4161_s6 + $0x4c] sm:$0xf] %v315_v51  ;;  %v319_v53 = vld [vmem:[%s4156_s0 + $0xa8] sm:$0xf] }
  0x50   : > { %318 = vst [vmem:[%s4161_s6 + $0x50] sm:$0xf] %v317_v52  ;;  %v321_v54 = vld [vmem:[%s4156_s0 + $0xb0] sm:$0xf]  ;;  %v323_v55 = vld [vmem:[%s4156_s0 + $0xb8] sm:$0xf] }
  0x51   : > { %320 = vst [vmem:[%s4161_s6 + $0x54] sm:$0xf] %v319_v53  ;;  %322 = vst [vmem:[%s4161_s6 + $0x58] sm:$0xf] %v321_v54  ;;  %v325_v56 = vld [vmem:[%s4156_s0 + $0xc0] sm:$0xf] }
  0x52   : > { %324 = vst [vmem:[%s4161_s6 + $0x5c] sm:$0xf] %v323_v55  ;;  %v327_v57 = vld [vmem:[%s4156_s0 + $0xc8] sm:$0xf]  ;;  %v329_v58 = vld [vmem:[%s4156_s0 + $0xd0] sm:$0xf] }
  0x53   : > { %326 = vst [vmem:[%s4161_s6 + $0x60] sm:$0xf] %v325_v56  ;;  %328 = vst [vmem:[%s4161_s6 + $0x64] sm:$0xf] %v327_v57  ;;  %v331_v59 = vld [vmem:[%s4156_s0 + $0xd8] sm:$0xf] }
  0x54   : > { %330 = vst [vmem:[%s4161_s6 + $0x68] sm:$0xf] %v329_v58  ;;  %v333_v60 = vld [vmem:[%s4156_s0 + $0xe0] sm:$0xf]  ;;  %v335_v61 = vld [vmem:[%s4156_s0 + $0xe8] sm:$0xf] }
  0x55   : > { %332 = vst [vmem:[%s4161_s6 + $0x6c] sm:$0xf] %v331_v59  ;;  %334 = vst [vmem:[%s4161_s6 + $0x70] sm:$0xf] %v333_v60  ;;  %v337_v62 = vld [vmem:[%s4156_s0 + $0xf0] sm:$0xf] }
  0x56   : > { %336 = vst [vmem:[%s4161_s6 + $0x74] sm:$0xf] %v335_v61  ;;  %v339_v63 = vld [vmem:[%s4156_s0 + $0xf8] sm:$0xf]  ;;  %v341_v0 = vld [vmem:[%s4156_s0 + $0x100] sm:$0xf] }
  0x57   : > { %338 = vst [vmem:[%s4161_s6 + $0x78] sm:$0xf] %v337_v62  ;;  %340 = vst [vmem:[%s4161_s6 + $0x7c] sm:$0xf] %v339_v63  ;;  %v343_v1 = vld [vmem:[%s4156_s0 + $0x108] sm:$0xf] }
  0x58   : > { %342 = vst [vmem:[%s4161_s6 + $0x80] sm:$0xf] %v341_v0  ;;  %v345_v2 = vld [vmem:[%s4156_s0 + $0x110] sm:$0xf]  ;;  %v347_v3 = vld [vmem:[%s4156_s0 + $0x118] sm:$0xf] }
  0x59   : > { %344 = vst [vmem:[%s4161_s6 + $0x84] sm:$0xf] %v343_v1  ;;  %346 = vst [vmem:[%s4161_s6 + $0x88] sm:$0xf] %v345_v2  ;;  %v349_v4 = vld [vmem:[%s4156_s0 + $0x120] sm:$0xf] }
  0x5a   : > { %348 = vst [vmem:[%s4161_s6 + $0x8c] sm:$0xf] %v347_v3  ;;  %v351_v5 = vld [vmem:[%s4156_s0 + $0x128] sm:$0xf]  ;;  %v353_v6 = vld [vmem:[%s4156_s0 + $0x130] sm:$0xf] }
  0x5b   : > { %350 = vst [vmem:[%s4161_s6 + $0x90] sm:$0xf] %v349_v4  ;;  %352 = vst [vmem:[%s4161_s6 + $0x94] sm:$0xf] %v351_v5  ;;  %v355_v7 = vld [vmem:[%s4156_s0 + $0x138] sm:$0xf] }
  0x5c   : > { %354 = vst [vmem:[%s4161_s6 + $0x98] sm:$0xf] %v353_v6  ;;  %v357_v8 = vld [vmem:[%s4156_s0 + $0x140] sm:$0xf]  ;;  %v359_v9 = vld [vmem:[%s4156_s0 + $0x148] sm:$0xf] }
  0x5d   : > { %356 = vst [vmem:[%s4161_s6 + $0x9c] sm:$0xf] %v355_v7  ;;  %358 = vst [vmem:[%s4161_s6 + $0xa0] sm:$0xf] %v357_v8  ;;  %v361_v10 = vld [vmem:[%s4156_s0 + $0x150] sm:$0xf] }
  0x5e   : > { %360 = vst [vmem:[%s4161_s6 + $0xa4] sm:$0xf] %v359_v9  ;;  %v363_v11 = vld [vmem:[%s4156_s0 + $0x158] sm:$0xf]  ;;  %v365_v12 = vld [vmem:[%s4156_s0 + $0x160] sm:$0xf] }
  0x5f   : > { %362 = vst [vmem:[%s4161_s6 + $0xa8] sm:$0xf] %v361_v10  ;;  %364 = vst [vmem:[%s4161_s6 + $0xac] sm:$0xf] %v363_v11  ;;  %v367_v13 = vld [vmem:[%s4156_s0 + $0x168] sm:$0xf] }
  0x60   : > { %366 = vst [vmem:[%s4161_s6 + $0xb0] sm:$0xf] %v365_v12  ;;  %v369_v14 = vld [vmem:[%s4156_s0 + $0x170] sm:$0xf]  ;;  %v371_v15 = vld [vmem:[%s4156_s0 + $0x178] sm:$0xf] }
  0x61   : > { %368 = vst [vmem:[%s4161_s6 + $0xb4] sm:$0xf] %v367_v13  ;;  %370 = vst [vmem:[%s4161_s6 + $0xb8] sm:$0xf] %v369_v14  ;;  %v373_v16 = vld [vmem:[%s4156_s0 + $0x180] sm:$0xf] }
  0x62   : > { %372 = vst [vmem:[%s4161_s6 + $0xbc] sm:$0xf] %v371_v15  ;;  %v375_v17 = vld [vmem:[%s4156_s0 + $0x188] sm:$0xf]  ;;  %v377_v18 = vld [vmem:[%s4156_s0 + $0x190] sm:$0xf] }
  0x63   : > { %374 = vst [vmem:[%s4161_s6 + $0xc0] sm:$0xf] %v373_v16  ;;  %376 = vst [vmem:[%s4161_s6 + $0xc4] sm:$0xf] %v375_v17  ;;  %v379_v19 = vld [vmem:[%s4156_s0 + $0x198] sm:$0xf] }
  0x64   : > { %378 = vst [vmem:[%s4161_s6 + $0xc8] sm:$0xf] %v377_v18  ;;  %v381_v20 = vld [vmem:[%s4156_s0 + $0x1a0] sm:$0xf]  ;;  %v383_v21 = vld [vmem:[%s4156_s0 + $0x1a8] sm:$0xf] }
  0x65   : > { %380 = vst [vmem:[%s4161_s6 + $0xcc] sm:$0xf] %v379_v19  ;;  %382 = vst [vmem:[%s4161_s6 + $0xd0] sm:$0xf] %v381_v20  ;;  %v385_v22 = vld [vmem:[%s4156_s0 + $0x1b0] sm:$0xf] }
  0x66   : > { %384 = vst [vmem:[%s4161_s6 + $0xd4] sm:$0xf] %v383_v21  ;;  %v387_v23 = vld [vmem:[%s4156_s0 + $0x1b8] sm:$0xf]  ;;  %v389_v24 = vld [vmem:[%s4156_s0 + $0x1c0] sm:$0xf] }
  0x67   : > { %386 = vst [vmem:[%s4161_s6 + $0xd8] sm:$0xf] %v385_v22  ;;  %388 = vst [vmem:[%s4161_s6 + $0xdc] sm:$0xf] %v387_v23  ;;  %v391_v25 = vld [vmem:[%s4156_s0 + $0x1c8] sm:$0xf] }
  0x68   : > { %390 = vst [vmem:[%s4161_s6 + $0xe0] sm:$0xf] %v389_v24  ;;  %v393_v26 = vld [vmem:[%s4156_s0 + $0x1d0] sm:$0xf]  ;;  %v395_v27 = vld [vmem:[%s4156_s0 + $0x1d8] sm:$0xf] }
  0x69   : > { %392 = vst [vmem:[%s4161_s6 + $0xe4] sm:$0xf] %v391_v25  ;;  %394 = vst [vmem:[%s4161_s6 + $0xe8] sm:$0xf] %v393_v26  ;;  %v397_v28 = vld [vmem:[%s4156_s0 + $0x1e0] sm:$0xf] }
  0x6a   : > { %396 = vst [vmem:[%s4161_s6 + $0xec] sm:$0xf] %v395_v27  ;;  %v399_v29 = vld [vmem:[%s4156_s0 + $0x1e8] sm:$0xf]  ;;  %v401_v30 = vld [vmem:[%s4156_s0 + $0x1f0] sm:$0xf] }
  0x6b   : > { %398 = vst [vmem:[%s4161_s6 + $0xf0] sm:$0xf] %v397_v28  ;;  %400 = vst [vmem:[%s4161_s6 + $0xf4] sm:$0xf] %v399_v29  ;;  %v403_v31 = vld [vmem:[%s4156_s0 + $0x1f8] sm:$0xf] }
  0x6c   : > { %402 = vst [vmem:[%s4161_s6 + $0xf8] sm:$0xf] %v401_v30  ;;  %v405_v32 = vld [vmem:[%s4156_s0 + $0x200] sm:$0xf]  ;;  %v407_v33 = vld [vmem:[%s4156_s0 + $0x208] sm:$0xf] }
  0x6d   : > { %404 = vst [vmem:[%s4161_s6 + $0xfc] sm:$0xf] %v403_v31  ;;  %406 = vst [vmem:[%s4161_s6 + $0x100] sm:$0xf] %v405_v32  ;;  %v409_v34 = vld [vmem:[%s4156_s0 + $0x210] sm:$0xf] }
  0x6e   : > { %408 = vst [vmem:[%s4161_s6 + $0x104] sm:$0xf] %v407_v33  ;;  %v411_v35 = vld [vmem:[%s4156_s0 + $0x218] sm:$0xf]  ;;  %v413_v36 = vld [vmem:[%s4156_s0 + $0x220] sm:$0xf] }
  0x6f   : > { %410 = vst [vmem:[%s4161_s6 + $0x108] sm:$0xf] %v409_v34  ;;  %412 = vst [vmem:[%s4161_s6 + $0x10c] sm:$0xf] %v411_v35  ;;  %v415_v37 = vld [vmem:[%s4156_s0 + $0x228] sm:$0xf] }
  0x70   : > { %414 = vst [vmem:[%s4161_s6 + $0x110] sm:$0xf] %v413_v36  ;;  %v417_v38 = vld [vmem:[%s4156_s0 + $0x230] sm:$0xf]  ;;  %v419_v39 = vld [vmem:[%s4156_s0 + $0x238] sm:$0xf] }
  0x71   : > { %416 = vst [vmem:[%s4161_s6 + $0x114] sm:$0xf] %v415_v37  ;;  %418 = vst [vmem:[%s4161_s6 + $0x118] sm:$0xf] %v417_v38  ;;  %v421_v40 = vld [vmem:[%s4156_s0 + $0x240] sm:$0xf] }
  0x72   : > { %420 = vst [vmem:[%s4161_s6 + $0x11c] sm:$0xf] %v419_v39  ;;  %v423_v41 = vld [vmem:[%s4156_s0 + $0x248] sm:$0xf]  ;;  %v425_v42 = vld [vmem:[%s4156_s0 + $0x250] sm:$0xf] }
  0x73   : > { %422 = vst [vmem:[%s4161_s6 + $0x120] sm:$0xf] %v421_v40  ;;  %424 = vst [vmem:[%s4161_s6 + $0x124] sm:$0xf] %v423_v41  ;;  %v427_v43 = vld [vmem:[%s4156_s0 + $0x258] sm:$0xf] }
  0x74   : > { %426 = vst [vmem:[%s4161_s6 + $0x128] sm:$0xf] %v425_v42  ;;  %v429_v44 = vld [vmem:[%s4156_s0 + $0x260] sm:$0xf]  ;;  %v431_v45 = vld [vmem:[%s4156_s0 + $0x268] sm:$0xf] }
  0x75   : > { %428 = vst [vmem:[%s4161_s6 + $0x12c] sm:$0xf] %v427_v43  ;;  %430 = vst [vmem:[%s4161_s6 + $0x130] sm:$0xf] %v429_v44  ;;  %v433_v46 = vld [vmem:[%s4156_s0 + $0x270] sm:$0xf] }
  0x76   : > { %432 = vst [vmem:[%s4161_s6 + $0x134] sm:$0xf] %v431_v45  ;;  %v435_v47 = vld [vmem:[%s4156_s0 + $0x278] sm:$0xf]  ;;  %v437_v48 = vld [vmem:[%s4156_s0 + $0x280] sm:$0xf] }
  0x77   : > { %434 = vst [vmem:[%s4161_s6 + $0x138] sm:$0xf] %v433_v46  ;;  %436 = vst [vmem:[%s4161_s6 + $0x13c] sm:$0xf] %v435_v47  ;;  %v439_v49 = vld [vmem:[%s4156_s0 + $0x288] sm:$0xf] }
  0x78   : > { %438 = vst [vmem:[%s4161_s6 + $0x140] sm:$0xf] %v437_v48  ;;  %v441_v50 = vld [vmem:[%s4156_s0 + $0x290] sm:$0xf]  ;;  %v443_v51 = vld [vmem:[%s4156_s0 + $0x298] sm:$0xf] }
  0x79   : > { %440 = vst [vmem:[%s4161_s6 + $0x144] sm:$0xf] %v439_v49  ;;  %442 = vst [vmem:[%s4161_s6 + $0x148] sm:$0xf] %v441_v50  ;;  %v445_v52 = vld [vmem:[%s4156_s0 + $0x2a0] sm:$0xf] }
  0x7a   : > { %444 = vst [vmem:[%s4161_s6 + $0x14c] sm:$0xf] %v443_v51  ;;  %v447_v53 = vld [vmem:[%s4156_s0 + $0x2a8] sm:$0xf]  ;;  %v449_v54 = vld [vmem:[%s4156_s0 + $0x2b0] sm:$0xf] }
  0x7b   : > { %446 = vst [vmem:[%s4161_s6 + $0x150] sm:$0xf] %v445_v52  ;;  %448 = vst [vmem:[%s4161_s6 + $0x154] sm:$0xf] %v447_v53  ;;  %v451_v55 = vld [vmem:[%s4156_s0 + $0x2b8] sm:$0xf] }
  0x7c   : > { %450 = vst [vmem:[%s4161_s6 + $0x158] sm:$0xf] %v449_v54  ;;  %v453_v56 = vld [vmem:[%s4156_s0 + $0x2c0] sm:$0xf]  ;;  %v455_v57 = vld [vmem:[%s4156_s0 + $0x2c8] sm:$0xf] }
  0x7d   : > { %452 = vst [vmem:[%s4161_s6 + $0x15c] sm:$0xf] %v451_v55  ;;  %454 = vst [vmem:[%s4161_s6 + $0x160] sm:$0xf] %v453_v56  ;;  %v457_v58 = vld [vmem:[%s4156_s0 + $0x2d0] sm:$0xf] }
  0x7e   : > { %456 = vst [vmem:[%s4161_s6 + $0x164] sm:$0xf] %v455_v57  ;;  %v459_v59 = vld [vmem:[%s4156_s0 + $0x2d8] sm:$0xf]  ;;  %v461_v60 = vld [vmem:[%s4156_s0 + $0x2e0] sm:$0xf] }
  0x7f   : > { %458 = vst [vmem:[%s4161_s6 + $0x168] sm:$0xf] %v457_v58  ;;  %460 = vst [vmem:[%s4161_s6 + $0x16c] sm:$0xf] %v459_v59  ;;  %v463_v61 = vld [vmem:[%s4156_s0 + $0x2e8] sm:$0xf] }
  0x80   : > { %462 = vst [vmem:[%s4161_s6 + $0x170] sm:$0xf] %v461_v60  ;;  %v465_v62 = vld [vmem:[%s4156_s0 + $0x2f0] sm:$0xf]  ;;  %v467_v63 = vld [vmem:[%s4156_s0 + $0x2f8] sm:$0xf] }
  0x81   : > { %464 = vst [vmem:[%s4161_s6 + $0x174] sm:$0xf] %v463_v61  ;;  %466 = vst [vmem:[%s4161_s6 + $0x178] sm:$0xf] %v465_v62  ;;  %v469_v0 = vld [vmem:[%s4156_s0 + $0x300] sm:$0xf] }
  0x82   : > { %468 = vst [vmem:[%s4161_s6 + $0x17c] sm:$0xf] %v467_v63  ;;  %v471_v1 = vld [vmem:[%s4156_s0 + $0x308] sm:$0xf]  ;;  %v473_v2 = vld [vmem:[%s4156_s0 + $0x310] sm:$0xf] }
  0x83   : > { %470 = vst [vmem:[%s4161_s6 + $0x180] sm:$0xf] %v469_v0  ;;  %472 = vst [vmem:[%s4161_s6 + $0x184] sm:$0xf] %v471_v1  ;;  %v475_v3 = vld [vmem:[%s4156_s0 + $0x318] sm:$0xf] }
  0x84   : > { %474 = vst [vmem:[%s4161_s6 + $0x188] sm:$0xf] %v473_v2  ;;  %v477_v4 = vld [vmem:[%s4156_s0 + $0x320] sm:$0xf]  ;;  %v479_v5 = vld [vmem:[%s4156_s0 + $0x328] sm:$0xf] }
  0x85   : > { %476 = vst [vmem:[%s4161_s6 + $0x18c] sm:$0xf] %v475_v3  ;;  %478 = vst [vmem:[%s4161_s6 + $0x190] sm:$0xf] %v477_v4  ;;  %v481_v6 = vld [vmem:[%s4156_s0 + $0x330] sm:$0xf] }
  0x86   : > { %480 = vst [vmem:[%s4161_s6 + $0x194] sm:$0xf] %v479_v5  ;;  %v483_v7 = vld [vmem:[%s4156_s0 + $0x338] sm:$0xf]  ;;  %v485_v8 = vld [vmem:[%s4156_s0 + $0x340] sm:$0xf] }
  0x87   : > { %482 = vst [vmem:[%s4161_s6 + $0x198] sm:$0xf] %v481_v6  ;;  %484 = vst [vmem:[%s4161_s6 + $0x19c] sm:$0xf] %v483_v7  ;;  %v487_v9 = vld [vmem:[%s4156_s0 + $0x348] sm:$0xf] }
  0x88   : > { %486 = vst [vmem:[%s4161_s6 + $0x1a0] sm:$0xf] %v485_v8  ;;  %v489_v10 = vld [vmem:[%s4156_s0 + $0x350] sm:$0xf]  ;;  %v491_v11 = vld [vmem:[%s4156_s0 + $0x358] sm:$0xf] }
  0x89   : > { %488 = vst [vmem:[%s4161_s6 + $0x1a4] sm:$0xf] %v487_v9  ;;  %490 = vst [vmem:[%s4161_s6 + $0x1a8] sm:$0xf] %v489_v10  ;;  %v493_v12 = vld [vmem:[%s4156_s0 + $0x360] sm:$0xf] }
  0x8a   : > { %492 = vst [vmem:[%s4161_s6 + $0x1ac] sm:$0xf] %v491_v11  ;;  %v495_v13 = vld [vmem:[%s4156_s0 + $0x368] sm:$0xf]  ;;  %v497_v14 = vld [vmem:[%s4156_s0 + $0x370] sm:$0xf] }
  0x8b   : > { %494 = vst [vmem:[%s4161_s6 + $0x1b0] sm:$0xf] %v493_v12  ;;  %496 = vst [vmem:[%s4161_s6 + $0x1b4] sm:$0xf] %v495_v13  ;;  %v499_v15 = vld [vmem:[%s4156_s0 + $0x378] sm:$0xf] }
  0x8c   : > { %498 = vst [vmem:[%s4161_s6 + $0x1b8] sm:$0xf] %v497_v14  ;;  %v501_v16 = vld [vmem:[%s4156_s0 + $0x380] sm:$0xf]  ;;  %v503_v17 = vld [vmem:[%s4156_s0 + $0x388] sm:$0xf] }
  0x8d   : > { %500 = vst [vmem:[%s4161_s6 + $0x1bc] sm:$0xf] %v499_v15  ;;  %502 = vst [vmem:[%s4161_s6 + $0x1c0] sm:$0xf] %v501_v16  ;;  %v505_v18 = vld [vmem:[%s4156_s0 + $0x390] sm:$0xf] }
  0x8e   : > { %504 = vst [vmem:[%s4161_s6 + $0x1c4] sm:$0xf] %v503_v17  ;;  %v507_v19 = vld [vmem:[%s4156_s0 + $0x398] sm:$0xf]  ;;  %v509_v20 = vld [vmem:[%s4156_s0 + $0x3a0] sm:$0xf] }
  0x8f   : > { %506 = vst [vmem:[%s4161_s6 + $0x1c8] sm:$0xf] %v505_v18  ;;  %508 = vst [vmem:[%s4161_s6 + $0x1cc] sm:$0xf] %v507_v19  ;;  %v511_v21 = vld [vmem:[%s4156_s0 + $0x3a8] sm:$0xf] }
  0x90   : > { %510 = vst [vmem:[%s4161_s6 + $0x1d0] sm:$0xf] %v509_v20  ;;  %v513_v22 = vld [vmem:[%s4156_s0 + $0x3b0] sm:$0xf]  ;;  %v515_v23 = vld [vmem:[%s4156_s0 + $0x3b8] sm:$0xf] }
  0x91   : > { %512 = vst [vmem:[%s4161_s6 + $0x1d4] sm:$0xf] %v511_v21  ;;  %514 = vst [vmem:[%s4161_s6 + $0x1d8] sm:$0xf] %v513_v22  ;;  %v517_v24 = vld [vmem:[%s4156_s0 + $0x3c0] sm:$0xf] }
  0x92   : > { %516 = vst [vmem:[%s4161_s6 + $0x1dc] sm:$0xf] %v515_v23  ;;  %v519_v25 = vld [vmem:[%s4156_s0 + $0x3c8] sm:$0xf]  ;;  %v521_v26 = vld [vmem:[%s4156_s0 + $0x3d0] sm:$0xf] }
  0x93   : > { %518 = vst [vmem:[%s4161_s6 + $0x1e0] sm:$0xf] %v517_v24  ;;  %520 = vst [vmem:[%s4161_s6 + $0x1e4] sm:$0xf] %v519_v25  ;;  %v523_v27 = vld [vmem:[%s4156_s0 + $0x3d8] sm:$0xf] }
  0x94   : > { %522 = vst [vmem:[%s4161_s6 + $0x1e8] sm:$0xf] %v521_v26  ;;  %v525_v28 = vld [vmem:[%s4156_s0 + $0x3e0] sm:$0xf]  ;;  %v527_v29 = vld [vmem:[%s4156_s0 + $0x3e8] sm:$0xf] }
  0x95   : > { %524 = vst [vmem:[%s4161_s6 + $0x1ec] sm:$0xf] %v523_v27  ;;  %526 = vst [vmem:[%s4161_s6 + $0x1f0] sm:$0xf] %v525_v28  ;;  %v529_v30 = vld [vmem:[%s4156_s0 + $0x3f0] sm:$0xf] }
  0x96   : > { %528 = vst [vmem:[%s4161_s6 + $0x1f4] sm:$0xf] %v527_v29  ;;  %v531_v31 = vld [vmem:[%s4156_s0 + $0x3f8] sm:$0xf]  ;;  %v533_v32 = vld [vmem:[%s4156_s0 + $0x400] sm:$0xf] }
  0x97   : > { %530 = vst [vmem:[%s4161_s6 + $0x1f8] sm:$0xf] %v529_v30  ;;  %532 = vst [vmem:[%s4161_s6 + $0x1fc] sm:$0xf] %v531_v31  ;;  %v535_v33 = vld [vmem:[%s4156_s0 + $0x408] sm:$0xf] }
  0x98   : > { %534 = vst [vmem:[%s4161_s6 + $0x200] sm:$0xf] %v533_v32  ;;  %v537_v34 = vld [vmem:[%s4156_s0 + $0x410] sm:$0xf]  ;;  %v539_v35 = vld [vmem:[%s4156_s0 + $0x418] sm:$0xf] }
  0x99   : > { %536 = vst [vmem:[%s4161_s6 + $0x204] sm:$0xf] %v535_v33  ;;  %538 = vst [vmem:[%s4161_s6 + $0x208] sm:$0xf] %v537_v34  ;;  %v541_v36 = vld [vmem:[%s4156_s0 + $0x420] sm:$0xf] }
  0x9a   : > { %540 = vst [vmem:[%s4161_s6 + $0x20c] sm:$0xf] %v539_v35  ;;  %v543_v37 = vld [vmem:[%s4156_s0 + $0x428] sm:$0xf]  ;;  %v545_v38 = vld [vmem:[%s4156_s0 + $0x430] sm:$0xf] }
  0x9b   : > { %542 = vst [vmem:[%s4161_s6 + $0x210] sm:$0xf] %v541_v36  ;;  %544 = vst [vmem:[%s4161_s6 + $0x214] sm:$0xf] %v543_v37  ;;  %v547_v39 = vld [vmem:[%s4156_s0 + $0x438] sm:$0xf] }
  0x9c   : > { %546 = vst [vmem:[%s4161_s6 + $0x218] sm:$0xf] %v545_v38  ;;  %v549_v40 = vld [vmem:[%s4156_s0 + $0x440] sm:$0xf]  ;;  %v551_v41 = vld [vmem:[%s4156_s0 + $0x448] sm:$0xf] }
  0x9d   : > { %548 = vst [vmem:[%s4161_s6 + $0x21c] sm:$0xf] %v547_v39  ;;  %550 = vst [vmem:[%s4161_s6 + $0x220] sm:$0xf] %v549_v40  ;;  %v553_v42 = vld [vmem:[%s4156_s0 + $0x450] sm:$0xf] }
  0x9e   : > { %552 = vst [vmem:[%s4161_s6 + $0x224] sm:$0xf] %v551_v41  ;;  %v555_v43 = vld [vmem:[%s4156_s0 + $0x458] sm:$0xf]  ;;  %v557_v44 = vld [vmem:[%s4156_s0 + $0x460] sm:$0xf] }
  0x9f   : > { %554 = vst [vmem:[%s4161_s6 + $0x228] sm:$0xf] %v553_v42  ;;  %556 = vst [vmem:[%s4161_s6 + $0x22c] sm:$0xf] %v555_v43  ;;  %v559_v45 = vld [vmem:[%s4156_s0 + $0x468] sm:$0xf] }
  0xa0   : > { %558 = vst [vmem:[%s4161_s6 + $0x230] sm:$0xf] %v557_v44  ;;  %v561_v46 = vld [vmem:[%s4156_s0 + $0x470] sm:$0xf]  ;;  %v563_v47 = vld [vmem:[%s4156_s0 + $0x478] sm:$0xf] }
  0xa1   : > { %560 = vst [vmem:[%s4161_s6 + $0x234] sm:$0xf] %v559_v45  ;;  %562 = vst [vmem:[%s4161_s6 + $0x238] sm:$0xf] %v561_v46  ;;  %v565_v48 = vld [vmem:[%s4156_s0 + $0x480] sm:$0xf] }
  0xa2   : > { %564 = vst [vmem:[%s4161_s6 + $0x23c] sm:$0xf] %v563_v47  ;;  %v567_v49 = vld [vmem:[%s4156_s0 + $0x488] sm:$0xf]  ;;  %v569_v50 = vld [vmem:[%s4156_s0 + $0x490] sm:$0xf] }
  0xa3   : > { %566 = vst [vmem:[%s4161_s6 + $0x240] sm:$0xf] %v565_v48  ;;  %568 = vst [vmem:[%s4161_s6 + $0x244] sm:$0xf] %v567_v49  ;;  %v571_v51 = vld [vmem:[%s4156_s0 + $0x498] sm:$0xf] }
  0xa4   : > { %570 = vst [vmem:[%s4161_s6 + $0x248] sm:$0xf] %v569_v50  ;;  %v573_v52 = vld [vmem:[%s4156_s0 + $0x4a0] sm:$0xf]  ;;  %v575_v53 = vld [vmem:[%s4156_s0 + $0x4a8] sm:$0xf] }
  0xa5   : > { %572 = vst [vmem:[%s4161_s6 + $0x24c] sm:$0xf] %v571_v51  ;;  %574 = vst [vmem:[%s4161_s6 + $0x250] sm:$0xf] %v573_v52  ;;  %v577_v54 = vld [vmem:[%s4156_s0 + $0x4b0] sm:$0xf] }
  0xa6   : > { %576 = vst [vmem:[%s4161_s6 + $0x254] sm:$0xf] %v575_v53  ;;  %v579_v55 = vld [vmem:[%s4156_s0 + $0x4b8] sm:$0xf]  ;;  %v581_v56 = vld [vmem:[%s4156_s0 + $0x4c0] sm:$0xf] }
  0xa7   : > { %578 = vst [vmem:[%s4161_s6 + $0x258] sm:$0xf] %v577_v54  ;;  %580 = vst [vmem:[%s4161_s6 + $0x25c] sm:$0xf] %v579_v55  ;;  %v583_v57 = vld [vmem:[%s4156_s0 + $0x4c8] sm:$0xf] }
  0xa8   : > { %582 = vst [vmem:[%s4161_s6 + $0x260] sm:$0xf] %v581_v56  ;;  %v585_v58 = vld [vmem:[%s4156_s0 + $0x4d0] sm:$0xf]  ;;  %v587_v59 = vld [vmem:[%s4156_s0 + $0x4d8] sm:$0xf] }
  0xa9   : > { %584 = vst [vmem:[%s4161_s6 + $0x264] sm:$0xf] %v583_v57  ;;  %586 = vst [vmem:[%s4161_s6 + $0x268] sm:$0xf] %v585_v58  ;;  %v589_v60 = vld [vmem:[%s4156_s0 + $0x4e0] sm:$0xf] }
  0xaa   : > { %588 = vst [vmem:[%s4161_s6 + $0x26c] sm:$0xf] %v587_v59  ;;  %v591_v61 = vld [vmem:[%s4156_s0 + $0x4e8] sm:$0xf]  ;;  %v593_v62 = vld [vmem:[%s4156_s0 + $0x4f0] sm:$0xf] }
  0xab   : > { %590 = vst [vmem:[%s4161_s6 + $0x270] sm:$0xf] %v589_v60  ;;  %592 = vst [vmem:[%s4161_s6 + $0x274] sm:$0xf] %v591_v61  ;;  %v595_v63 = vld [vmem:[%s4156_s0 + $0x4f8] sm:$0xf] }
  0xac   : > { %594 = vst [vmem:[%s4161_s6 + $0x278] sm:$0xf] %v593_v62  ;;  %v597_v0 = vld [vmem:[%s4156_s0 + $0x500] sm:$0xf]  ;;  %v599_v1 = vld [vmem:[%s4156_s0 + $0x508] sm:$0xf] }
  0xad   : > { %596 = vst [vmem:[%s4161_s6 + $0x27c] sm:$0xf] %v595_v63  ;;  %598 = vst [vmem:[%s4161_s6 + $0x280] sm:$0xf] %v597_v0  ;;  %v601_v2 = vld [vmem:[%s4156_s0 + $0x510] sm:$0xf] }
  0xae   : > { %600 = vst [vmem:[%s4161_s6 + $0x284] sm:$0xf] %v599_v1  ;;  %v603_v3 = vld [vmem:[%s4156_s0 + $0x518] sm:$0xf]  ;;  %v605_v4 = vld [vmem:[%s4156_s0 + $0x520] sm:$0xf] }
  0xaf   : > { %602 = vst [vmem:[%s4161_s6 + $0x288] sm:$0xf] %v601_v2  ;;  %604 = vst [vmem:[%s4161_s6 + $0x28c] sm:$0xf] %v603_v3  ;;  %v607_v5 = vld [vmem:[%s4156_s0 + $0x528] sm:$0xf] }
  0xb0   : > { %606 = vst [vmem:[%s4161_s6 + $0x290] sm:$0xf] %v605_v4  ;;  %v609_v6 = vld [vmem:[%s4156_s0 + $0x530] sm:$0xf]  ;;  %v611_v7 = vld [vmem:[%s4156_s0 + $0x538] sm:$0xf] }
  0xb1   : > { %608 = vst [vmem:[%s4161_s6 + $0x294] sm:$0xf] %v607_v5  ;;  %610 = vst [vmem:[%s4161_s6 + $0x298] sm:$0xf] %v609_v6  ;;  %v613_v8 = vld [vmem:[%s4156_s0 + $0x540] sm:$0xf] }
  0xb2   : > { %612 = vst [vmem:[%s4161_s6 + $0x29c] sm:$0xf] %v611_v7  ;;  %v615_v9 = vld [vmem:[%s4156_s0 + $0x548] sm:$0xf]  ;;  %v617_v10 = vld [vmem:[%s4156_s0 + $0x550] sm:$0xf] }
  0xb3   : > { %614 = vst [vmem:[%s4161_s6 + $0x2a0] sm:$0xf] %v613_v8  ;;  %616 = vst [vmem:[%s4161_s6 + $0x2a4] sm:$0xf] %v615_v9  ;;  %v619_v11 = vld [vmem:[%s4156_s0 + $0x558] sm:$0xf] }
  0xb4   : > { %618 = vst [vmem:[%s4161_s6 + $0x2a8] sm:$0xf] %v617_v10  ;;  %v621_v12 = vld [vmem:[%s4156_s0 + $0x560] sm:$0xf]  ;;  %v623_v13 = vld [vmem:[%s4156_s0 + $0x568] sm:$0xf] }
  0xb5   : > { %620 = vst [vmem:[%s4161_s6 + $0x2ac] sm:$0xf] %v619_v11  ;;  %622 = vst [vmem:[%s4161_s6 + $0x2b0] sm:$0xf] %v621_v12  ;;  %v625_v14 = vld [vmem:[%s4156_s0 + $0x570] sm:$0xf] }
  0xb6   : > { %624 = vst [vmem:[%s4161_s6 + $0x2b4] sm:$0xf] %v623_v13  ;;  %v627_v15 = vld [vmem:[%s4156_s0 + $0x578] sm:$0xf]  ;;  %v629_v16 = vld [vmem:[%s4156_s0 + $0x580] sm:$0xf] }
  0xb7   : > { %626 = vst [vmem:[%s4161_s6 + $0x2b8] sm:$0xf] %v625_v14  ;;  %628 = vst [vmem:[%s4161_s6 + $0x2bc] sm:$0xf] %v627_v15  ;;  %v631_v17 = vld [vmem:[%s4156_s0 + $0x588] sm:$0xf] }
  0xb8   : > { %630 = vst [vmem:[%s4161_s6 + $0x2c0] sm:$0xf] %v629_v16  ;;  %v633_v18 = vld [vmem:[%s4156_s0 + $0x590] sm:$0xf]  ;;  %v635_v19 = vld [vmem:[%s4156_s0 + $0x598] sm:$0xf] }
  0xb9   : > { %632 = vst [vmem:[%s4161_s6 + $0x2c4] sm:$0xf] %v631_v17  ;;  %634 = vst [vmem:[%s4161_s6 + $0x2c8] sm:$0xf] %v633_v18  ;;  %v637_v20 = vld [vmem:[%s4156_s0 + $0x5a0] sm:$0xf] }
  0xba   : > { %636 = vst [vmem:[%s4161_s6 + $0x2cc] sm:$0xf] %v635_v19  ;;  %v639_v21 = vld [vmem:[%s4156_s0 + $0x5a8] sm:$0xf]  ;;  %v641_v22 = vld [vmem:[%s4156_s0 + $0x5b0] sm:$0xf] }
  0xbb   : > { %638 = vst [vmem:[%s4161_s6 + $0x2d0] sm:$0xf] %v637_v20  ;;  %640 = vst [vmem:[%s4161_s6 + $0x2d4] sm:$0xf] %v639_v21  ;;  %v643_v23 = vld [vmem:[%s4156_s0 + $0x5b8] sm:$0xf] }
  0xbc   : > { %642 = vst [vmem:[%s4161_s6 + $0x2d8] sm:$0xf] %v641_v22  ;;  %v645_v24 = vld [vmem:[%s4156_s0 + $0x5c0] sm:$0xf]  ;;  %v647_v25 = vld [vmem:[%s4156_s0 + $0x5c8] sm:$0xf] }
  0xbd   : > { %644 = vst [vmem:[%s4161_s6 + $0x2dc] sm:$0xf] %v643_v23  ;;  %646 = vst [vmem:[%s4161_s6 + $0x2e0] sm:$0xf] %v645_v24  ;;  %v649_v26 = vld [vmem:[%s4156_s0 + $0x5d0] sm:$0xf] }
  0xbe   : > { %648 = vst [vmem:[%s4161_s6 + $0x2e4] sm:$0xf] %v647_v25  ;;  %v651_v27 = vld [vmem:[%s4156_s0 + $0x5d8] sm:$0xf]  ;;  %v653_v28 = vld [vmem:[%s4156_s0 + $0x5e0] sm:$0xf] }
  0xbf   : > { %650 = vst [vmem:[%s4161_s6 + $0x2e8] sm:$0xf] %v649_v26  ;;  %652 = vst [vmem:[%s4161_s6 + $0x2ec] sm:$0xf] %v651_v27  ;;  %v655_v29 = vld [vmem:[%s4156_s0 + $0x5e8] sm:$0xf] }
  0xc0   : > { %654 = vst [vmem:[%s4161_s6 + $0x2f0] sm:$0xf] %v653_v28  ;;  %v657_v30 = vld [vmem:[%s4156_s0 + $0x5f0] sm:$0xf]  ;;  %v659_v31 = vld [vmem:[%s4156_s0 + $0x5f8] sm:$0xf] }
  0xc1   : > { %656 = vst [vmem:[%s4161_s6 + $0x2f4] sm:$0xf] %v655_v29  ;;  %658 = vst [vmem:[%s4161_s6 + $0x2f8] sm:$0xf] %v657_v30  ;;  %v661_v32 = vld [vmem:[%s4156_s0 + $0x600] sm:$0xf] }
  0xc2   : > { %660 = vst [vmem:[%s4161_s6 + $0x2fc] sm:$0xf] %v659_v31  ;;  %v663_v33 = vld [vmem:[%s4156_s0 + $0x608] sm:$0xf]  ;;  %v665_v34 = vld [vmem:[%s4156_s0 + $0x610] sm:$0xf] }
  0xc3   : > { %662 = vst [vmem:[%s4161_s6 + $0x300] sm:$0xf] %v661_v32  ;;  %664 = vst [vmem:[%s4161_s6 + $0x304] sm:$0xf] %v663_v33  ;;  %v667_v35 = vld [vmem:[%s4156_s0 + $0x618] sm:$0xf] }
  0xc4   : > { %666 = vst [vmem:[%s4161_s6 + $0x308] sm:$0xf] %v665_v34  ;;  %v669_v36 = vld [vmem:[%s4156_s0 + $0x620] sm:$0xf]  ;;  %v671_v37 = vld [vmem:[%s4156_s0 + $0x628] sm:$0xf] }
  0xc5   : > { %668 = vst [vmem:[%s4161_s6 + $0x30c] sm:$0xf] %v667_v35  ;;  %670 = vst [vmem:[%s4161_s6 + $0x310] sm:$0xf] %v669_v36  ;;  %v673_v38 = vld [vmem:[%s4156_s0 + $0x630] sm:$0xf] }
  0xc6   : > { %672 = vst [vmem:[%s4161_s6 + $0x314] sm:$0xf] %v671_v37  ;;  %v675_v39 = vld [vmem:[%s4156_s0 + $0x638] sm:$0xf]  ;;  %v677_v40 = vld [vmem:[%s4156_s0 + $0x640] sm:$0xf] }
  0xc7   : > { %674 = vst [vmem:[%s4161_s6 + $0x318] sm:$0xf] %v673_v38  ;;  %676 = vst [vmem:[%s4161_s6 + $0x31c] sm:$0xf] %v675_v39  ;;  %v679_v41 = vld [vmem:[%s4156_s0 + $0x648] sm:$0xf] }
  0xc8   : > { %678 = vst [vmem:[%s4161_s6 + $0x320] sm:$0xf] %v677_v40  ;;  %v681_v42 = vld [vmem:[%s4156_s0 + $0x650] sm:$0xf]  ;;  %v683_v43 = vld [vmem:[%s4156_s0 + $0x658] sm:$0xf] }
  0xc9   : > { %680 = vst [vmem:[%s4161_s6 + $0x324] sm:$0xf] %v679_v41  ;;  %682 = vst [vmem:[%s4161_s6 + $0x328] sm:$0xf] %v681_v42  ;;  %v685_v44 = vld [vmem:[%s4156_s0 + $0x660] sm:$0xf] }
  0xca   : > { %684 = vst [vmem:[%s4161_s6 + $0x32c] sm:$0xf] %v683_v43  ;;  %v687_v45 = vld [vmem:[%s4156_s0 + $0x668] sm:$0xf]  ;;  %v689_v46 = vld [vmem:[%s4156_s0 + $0x670] sm:$0xf] }
  0xcb   : > { %686 = vst [vmem:[%s4161_s6 + $0x330] sm:$0xf] %v685_v44  ;;  %688 = vst [vmem:[%s4161_s6 + $0x334] sm:$0xf] %v687_v45  ;;  %v691_v47 = vld [vmem:[%s4156_s0 + $0x678] sm:$0xf] }
  0xcc   : > { %690 = vst [vmem:[%s4161_s6 + $0x338] sm:$0xf] %v689_v46  ;;  %v693_v48 = vld [vmem:[%s4156_s0 + $0x680] sm:$0xf]  ;;  %v695_v49 = vld [vmem:[%s4156_s0 + $0x688] sm:$0xf] }
  0xcd   : > { %692 = vst [vmem:[%s4161_s6 + $0x33c] sm:$0xf] %v691_v47  ;;  %694 = vst [vmem:[%s4161_s6 + $0x340] sm:$0xf] %v693_v48  ;;  %v697_v50 = vld [vmem:[%s4156_s0 + $0x690] sm:$0xf] }
  0xce   : > { %696 = vst [vmem:[%s4161_s6 + $0x344] sm:$0xf] %v695_v49  ;;  %v699_v51 = vld [vmem:[%s4156_s0 + $0x698] sm:$0xf]  ;;  %v701_v52 = vld [vmem:[%s4156_s0 + $0x6a0] sm:$0xf] }
  0xcf   : > { %698 = vst [vmem:[%s4161_s6 + $0x348] sm:$0xf] %v697_v50  ;;  %700 = vst [vmem:[%s4161_s6 + $0x34c] sm:$0xf] %v699_v51  ;;  %v703_v53 = vld [vmem:[%s4156_s0 + $0x6a8] sm:$0xf] }
  0xd0   : > { %702 = vst [vmem:[%s4161_s6 + $0x350] sm:$0xf] %v701_v52  ;;  %v705_v54 = vld [vmem:[%s4156_s0 + $0x6b0] sm:$0xf]  ;;  %v707_v55 = vld [vmem:[%s4156_s0 + $0x6b8] sm:$0xf] }
  0xd1   : > { %704 = vst [vmem:[%s4161_s6 + $0x354] sm:$0xf] %v703_v53  ;;  %706 = vst [vmem:[%s4161_s6 + $0x358] sm:$0xf] %v705_v54  ;;  %v709_v56 = vld [vmem:[%s4156_s0 + $0x6c0] sm:$0xf] }
  0xd2   : > { %708 = vst [vmem:[%s4161_s6 + $0x35c] sm:$0xf] %v707_v55  ;;  %v711_v57 = vld [vmem:[%s4156_s0 + $0x6c8] sm:$0xf]  ;;  %v713_v58 = vld [vmem:[%s4156_s0 + $0x6d0] sm:$0xf] }
  0xd3   : > { %710 = vst [vmem:[%s4161_s6 + $0x360] sm:$0xf] %v709_v56  ;;  %712 = vst [vmem:[%s4161_s6 + $0x364] sm:$0xf] %v711_v57  ;;  %v715_v59 = vld [vmem:[%s4156_s0 + $0x6d8] sm:$0xf] }
  0xd4   : > { %714 = vst [vmem:[%s4161_s6 + $0x368] sm:$0xf] %v713_v58  ;;  %v717_v60 = vld [vmem:[%s4156_s0 + $0x6e0] sm:$0xf]  ;;  %v719_v61 = vld [vmem:[%s4156_s0 + $0x6e8] sm:$0xf] }
  0xd5   : > { %716 = vst [vmem:[%s4161_s6 + $0x36c] sm:$0xf] %v715_v59  ;;  %718 = vst [vmem:[%s4161_s6 + $0x370] sm:$0xf] %v717_v60  ;;  %v721_v62 = vld [vmem:[%s4156_s0 + $0x6f0] sm:$0xf] }
  0xd6   : > { %720 = vst [vmem:[%s4161_s6 + $0x374] sm:$0xf] %v719_v61  ;;  %v723_v63 = vld [vmem:[%s4156_s0 + $0x6f8] sm:$0xf]  ;;  %v725_v0 = vld [vmem:[%s4156_s0 + $0x700] sm:$0xf] }
  0xd7   : > { %722 = vst [vmem:[%s4161_s6 + $0x378] sm:$0xf] %v721_v62  ;;  %724 = vst [vmem:[%s4161_s6 + $0x37c] sm:$0xf] %v723_v63  ;;  %v727_v1 = vld [vmem:[%s4156_s0 + $0x708] sm:$0xf] }
  0xd8   : > { %726 = vst [vmem:[%s4161_s6 + $0x380] sm:$0xf] %v725_v0  ;;  %v729_v2 = vld [vmem:[%s4156_s0 + $0x710] sm:$0xf]  ;;  %v731_v3 = vld [vmem:[%s4156_s0 + $0x718] sm:$0xf] }
  0xd9   : > { %728 = vst [vmem:[%s4161_s6 + $0x384] sm:$0xf] %v727_v1  ;;  %730 = vst [vmem:[%s4161_s6 + $0x388] sm:$0xf] %v729_v2  ;;  %v733_v4 = vld [vmem:[%s4156_s0 + $0x720] sm:$0xf] }
  0xda   : > { %732 = vst [vmem:[%s4161_s6 + $0x38c] sm:$0xf] %v731_v3  ;;  %v735_v5 = vld [vmem:[%s4156_s0 + $0x728] sm:$0xf]  ;;  %v737_v6 = vld [vmem:[%s4156_s0 + $0x730] sm:$0xf] }
  0xdb   : > { %734 = vst [vmem:[%s4161_s6 + $0x390] sm:$0xf] %v733_v4  ;;  %736 = vst [vmem:[%s4161_s6 + $0x394] sm:$0xf] %v735_v5  ;;  %v739_v7 = vld [vmem:[%s4156_s0 + $0x738] sm:$0xf] }
  0xdc   : > { %738 = vst [vmem:[%s4161_s6 + $0x398] sm:$0xf] %v737_v6  ;;  %v741_v8 = vld [vmem:[%s4156_s0 + $0x740] sm:$0xf]  ;;  %v743_v9 = vld [vmem:[%s4156_s0 + $0x748] sm:$0xf] }
  0xdd   : > { %740 = vst [vmem:[%s4161_s6 + $0x39c] sm:$0xf] %v739_v7  ;;  %742 = vst [vmem:[%s4161_s6 + $0x3a0] sm:$0xf] %v741_v8  ;;  %v745_v10 = vld [vmem:[%s4156_s0 + $0x750] sm:$0xf] }
  0xde   : > { %744 = vst [vmem:[%s4161_s6 + $0x3a4] sm:$0xf] %v743_v9  ;;  %v747_v11 = vld [vmem:[%s4156_s0 + $0x758] sm:$0xf]  ;;  %v749_v12 = vld [vmem:[%s4156_s0 + $0x760] sm:$0xf] }
  0xdf   : > { %746 = vst [vmem:[%s4161_s6 + $0x3a8] sm:$0xf] %v745_v10  ;;  %748 = vst [vmem:[%s4161_s6 + $0x3ac] sm:$0xf] %v747_v11  ;;  %v751_v13 = vld [vmem:[%s4156_s0 + $0x768] sm:$0xf] }
  0xe0   : > { %750 = vst [vmem:[%s4161_s6 + $0x3b0] sm:$0xf] %v749_v12  ;;  %v753_v14 = vld [vmem:[%s4156_s0 + $0x770] sm:$0xf]  ;;  %v755_v15 = vld [vmem:[%s4156_s0 + $0x778] sm:$0xf] }
  0xe1   : > { %752 = vst [vmem:[%s4161_s6 + $0x3b4] sm:$0xf] %v751_v13  ;;  %754 = vst [vmem:[%s4161_s6 + $0x3b8] sm:$0xf] %v753_v14  ;;  %v757_v16 = vld [vmem:[%s4156_s0 + $0x780] sm:$0xf] }
  0xe2   : > { %756 = vst [vmem:[%s4161_s6 + $0x3bc] sm:$0xf] %v755_v15  ;;  %v759_v17 = vld [vmem:[%s4156_s0 + $0x788] sm:$0xf]  ;;  %v761_v18 = vld [vmem:[%s4156_s0 + $0x790] sm:$0xf] }
  0xe3   : > { %758 = vst [vmem:[%s4161_s6 + $0x3c0] sm:$0xf] %v757_v16  ;;  %760 = vst [vmem:[%s4161_s6 + $0x3c4] sm:$0xf] %v759_v17  ;;  %v763_v19 = vld [vmem:[%s4156_s0 + $0x798] sm:$0xf] }
  0xe4   : > { %762 = vst [vmem:[%s4161_s6 + $0x3c8] sm:$0xf] %v761_v18  ;;  %v765_v20 = vld [vmem:[%s4156_s0 + $0x7a0] sm:$0xf]  ;;  %v767_v21 = vld [vmem:[%s4156_s0 + $0x7a8] sm:$0xf] }
  0xe5   : > { %764 = vst [vmem:[%s4161_s6 + $0x3cc] sm:$0xf] %v763_v19  ;;  %766 = vst [vmem:[%s4161_s6 + $0x3d0] sm:$0xf] %v765_v20  ;;  %v769_v22 = vld [vmem:[%s4156_s0 + $0x7b0] sm:$0xf] }
  0xe6   : > { %768 = vst [vmem:[%s4161_s6 + $0x3d4] sm:$0xf] %v767_v21  ;;  %v771_v23 = vld [vmem:[%s4156_s0 + $0x7b8] sm:$0xf]  ;;  %v773_v24 = vld [vmem:[%s4156_s0 + $0x7c0] sm:$0xf] }
  0xe7   : > { %770 = vst [vmem:[%s4161_s6 + $0x3d8] sm:$0xf] %v769_v22  ;;  %772 = vst [vmem:[%s4161_s6 + $0x3dc] sm:$0xf] %v771_v23  ;;  %v775_v25 = vld [vmem:[%s4156_s0 + $0x7c8] sm:$0xf] }
  0xe8   : > { %774 = vst [vmem:[%s4161_s6 + $0x3e0] sm:$0xf] %v773_v24  ;;  %v777_v26 = vld [vmem:[%s4156_s0 + $0x7d0] sm:$0xf]  ;;  %v779_v27 = vld [vmem:[%s4156_s0 + $0x7d8] sm:$0xf] }
  0xe9   : > { %776 = vst [vmem:[%s4161_s6 + $0x3e4] sm:$0xf] %v775_v25  ;;  %778 = vst [vmem:[%s4161_s6 + $0x3e8] sm:$0xf] %v777_v26  ;;  %v781_v28 = vld [vmem:[%s4156_s0 + $0x7e0] sm:$0xf] }
  0xea   : > { %780 = vst [vmem:[%s4161_s6 + $0x3ec] sm:$0xf] %v779_v27  ;;  %v783_v29 = vld [vmem:[%s4156_s0 + $0x7e8] sm:$0xf]  ;;  %v785_v30 = vld [vmem:[%s4156_s0 + $0x7f0] sm:$0xf] }
  0xeb   : > { %782 = vst [vmem:[%s4161_s6 + $0x3f0] sm:$0xf] %v781_v28  ;;  %784 = vst [vmem:[%s4161_s6 + $0x3f4] sm:$0xf] %v783_v29  ;;  %v787_v31 = vld [vmem:[%s4156_s0 + $0x7f8] sm:$0xf] }
  0xec   : > { %786 = vst [vmem:[%s4161_s6 + $0x3f8] sm:$0xf] %v785_v30  ;;  %788 = vst [vmem:[%s4161_s6 + $0x3fc] sm:$0xf] %v787_v31 }
  0xed PF: > { %p3232_p0 = scmp.ge.s32.totalorder %s3951_s22, 1  ;;  %p1329_p1 = scmp.lt.s32.totalorder %s3951_s22, 7 }
  0xef   : > { %p1330_p2 = pnand %p3232_p0, %p1329_p1 }
  0xf0   : > { %s1336_s5 = sand.u32 (!%p1330_p2), 1, %s3927_s16   ;;  %s1343_s23 = sand.u32 (!%p1330_p2), 1, %s3919_s14  }
  0xf1   : > { %1333 = sbr.rel (%p1330_p2) target bundleno = 623 (0x26f), region = 88  ;;  %s3233_s28 = sshll.u32 (!%p1330_p2), %s1336_s5, 8 }
  0xf2   : > { %s3234_s7 = sshll.u32 (!%p1330_p2), %s1343_s23, 10  ;;  %s1369_s11 = sand.u32 (!%p1330_p2), 1, %s3911_s12  }
  0xf3   : > { %p1375_p3 = scmp.lt.s32.totalorder (!%p1330_p2), %s3939_s19, 1  ;;  %s3235_s0 = sshll.u32 (!%p1330_p2), %s1369_s11, 4 }
  0xf4   : > { %s4685_s6 = scalar_lea.vmem (!%p1330_p2), [#allocation3], %s3233_s28  ;;  %s4687_s1 = scalar_lea.vmem (!%p1330_p2), [#allocation4], %s3234_s7 }
  0xf5   : > { %s4689_s25 = scalar_lea.vmem (!%p1330_p2), [#allocation5], %s3235_s0  ;;  %p3236_p4 = scmp.ne.s32.totalorder (!%p1330_p2), %s3935_s18, 0 }
  0xf6   : > { %s4679_s26 = scalar_select %p1375_p3, %s3939_s19, 1 }
  0xf7   : > { %1383 = sbr.rel (%p3236_p4) target bundleno = 255 (0xff), region = 100 }
  0xf8   : > { %s1377_s4 = scalar_lea.vmem %s4905_s2, %s4679_s26 }
  0xfc   : > { %v3953_v32 = vmov 0.0  }
  0xfd   : > { %1384 = vst [vmem:[#allocation2 + $0x10] sm:$0xff] %v3953_v32  ;;  %1385 = vst [vmem:[#allocation2] sm:$0xff] %v3953_v32 }
  0xfe   : > { %1386 = vst [vmem:[#allocation2 + $0x18] sm:$0xff] %v3953_v32  ;;  %1387 = vst [vmem:[#allocation2 + $0x8] sm:$0xff] %v3953_v32 }
  0xff PF: > { %v3737_v33 = vld [vmem:[%s4687_s1 + $0x78] sm:$0xff]   ;;  %v3741_v37 = vld [vmem:[%s4687_s1 + $0x70] sm:$0xff]   ;;  %v3745_v41 = vld [vmem:[%s4687_s1 + $0x68] sm:$0xff]   ;;  %p3397_p5 = scmp.ne.s32.totalorder %s3935_s18, 2 }
 0x100   : > { %v3738_v34 = vld [vmem:[%s4687_s1 + $0xf8] sm:$0xff]   ;;  %3424 = vmatprep.subr.bf16.mxu0 %v3737_v33  ;;  %v3742_v38 = vld [vmem:[%s4687_s1 + $0xf0] sm:$0xff]   ;;  %v3746_v42 = vld [vmem:[%s4687_s1 + $0xe8] sm:$0xff]  }
 0x101   : > { %v3739_v35 = vld [vmem:[%s4687_s1 + $0x38] sm:$0xff]   ;;  %3452 = vmatprep.subr.bf16.mxu1 %v3738_v34  ;;  %v3743_v39 = vld [vmem:[%s4687_s1 + $0x30] sm:$0xff]   ;;  %v3747_v43 = vld [vmem:[%s4687_s1 + $0x28] sm:$0xff]  }
 0x102   : > { %v3740_v36 = vld [vmem:[%s4687_s1 + $0xb8] sm:$0xff]   ;;  %3425 = vmatpush3.bf16.msra.mxu0 %v3739_v35  ;;  %v3744_v40 = vld [vmem:[%s4687_s1 + $0xb0] sm:$0xff]   ;;  %v3748_v44 = vld [vmem:[%s4687_s1 + $0xa8] sm:$0xff]  }
 0x103   : > { %3453 = vmatpush3.bf16.msra.mxu1 %v3740_v36  ;;  %3426 = vmatprep.subr.bf16.mxu0 %v3741_v37  ;;  %v3749_v45 = vld [vmem:[%s4687_s1 + $0x60] sm:$0xff]   ;;  %v3753_v49 = vld [vmem:[%s4687_s1 + $0x58] sm:$0xff]   ;;  %v3757_v53 = vld [vmem:[%s4687_s1 + $0x50] sm:$0xff]  }
 0x104   : > { %3454 = vmatprep.subr.bf16.mxu1 %v3742_v38  ;;  %v3750_v46 = vld [vmem:[%s4687_s1 + $0xe0] sm:$0xff]   ;;  %v3754_v50 = vld [vmem:[%s4687_s1 + $0xd8] sm:$0xff]   ;;  %v3758_v54 = vld [vmem:[%s4687_s1 + $0xd0] sm:$0xff]  }
 0x105   : > { %v3751_v47 = vld [vmem:[%s4687_s1 + $0x20] sm:$0xff]   ;;  %v3755_v51 = vld [vmem:[%s4687_s1 + $0x18] sm:$0xff]   ;;  %v3759_v55 = vld [vmem:[%s4687_s1 + $0x10] sm:$0xff]  }
 0x106   : > { %3427 = vmatpush3.bf16.msra.mxu0 %v3743_v39  ;;  %v3752_v48 = vld [vmem:[%s4687_s1 + $0xa0] sm:$0xff]   ;;  %v3756_v52 = vld [vmem:[%s4687_s1 + $0x98] sm:$0xff]   ;;  %v3760_v56 = vld [vmem:[%s4687_s1 + $0x90] sm:$0xff]  }
 0x107   : > { %3455 = vmatpush3.bf16.msra.mxu1 %v3744_v40  ;;  %3428 = vmatprep.subr.bf16.mxu0 %v3745_v41  ;;  %v3761_v57 = vld [vmem:[%s4687_s1 + $0x48] sm:$0xff]   ;;  %v3765_v61 = vld [vmem:[%s4687_s1 + $0x40] sm:$0xff]   ;;  %v3769_v9 = vld [vmem:[%s4687_s1 + $0x178] sm:$0xff]  }
 0x108   : > { %3456 = vmatprep.subr.bf16.mxu1 %v3746_v42  ;;  %v3762_v58 = vld [vmem:[%s4687_s1 + $0xc8] sm:$0xff]   ;;  %v3766_v62 = vld [vmem:[%s4687_s1 + $0xc0] sm:$0xff]   ;;  %v3770_v10 = vld [vmem:[%s4687_s1 + $0x1f8] sm:$0xff]  }
 0x109   : > { %v3763_v59 = vld [vmem:[%s4687_s1 + $0x8] sm:$0xff]   ;;  %v3767_v63 = vld [vmem:[%s4687_s1] sm:$0xff]   ;;  %v3771_v11 = vld [vmem:[%s4687_s1 + $0x138] sm:$0xff]  }
 0x10a   : > { %3429 = vmatpush3.bf16.msra.mxu0 %v3747_v43  ;;  %v3764_v60 = vld [vmem:[%s4687_s1 + $0x88] sm:$0xff]   ;;  %v3768_v0 = vld [vmem:[%s4687_s1 + $0x80] sm:$0xff]   ;;  %v3772_v12 = vld [vmem:[%s4687_s1 + $0x1b8] sm:$0xff]  }
 0x10b   : > { %3457 = vmatpush3.bf16.msra.mxu1 %v3748_v44  ;;  %3430 = vmatprep.subr.bf16.mxu0 %v3749_v45  ;;  %v1388_v1 = vld [vmem:[%s4685_s6] sm:$0xff]  ;;  %v1389_v3 = vld [vmem:[%s4685_s6 + $0x8] sm:$0xff]  ;;  %v3773_v13 = vld [vmem:[%s4687_s1 + $0x170] sm:$0xff]  }
 0x10c   : > { %3458 = vmatprep.subr.bf16.mxu1 %v3750_v46  ;;  %v1396_v2 = vld [vmem:[%s4685_s6 + $0x40] sm:$0xff]  ;;  %v1397_v6 = vld [vmem:[%s4685_s6 + $0x48] sm:$0xff]  ;;  %v3774_v14 = vld [vmem:[%s4687_s1 + $0x1f0] sm:$0xff]  }
 0x10d   : > { %v3237_v4 = vcombine.low %v1388_v1, %v1396_v2  ;;  %v3238_v5 = vcombine.high %v1388_v1, %v1396_v2  ;;  %v3239_v7 = vcombine.low %v1389_v3, %v1397_v6  ;;  %v3240_v8 = vcombine.high %v1389_v3, %v1397_v6  ;;  %v3775_v15 = vld [vmem:[%s4687_s1 + $0x130] sm:$0xff]   ;;  %v3777_v17 = vld [vmem:[%s4687_s1 + $0x168] sm:$0xff]   ;;  %v3781_v21 = vld [vmem:[%s4687_s1 + $0x160] sm:$0xff]  }
 0x10e   : > { %3431 = vmatpush3.bf16.msra.mxu0 %v3751_v47  ;;  %v3776_v16 = vld [vmem:[%s4687_s1 + $0x1b0] sm:$0xff]   ;;  %v3778_v18 = vld [vmem:[%s4687_s1 + $0x1e8] sm:$0xff]   ;;  %v3782_v22 = vld [vmem:[%s4687_s1 + $0x1e0] sm:$0xff]  }
 0x10f   : > { %3459 = vmatpush3.bf16.msra.mxu1 %v3752_v48  ;;  %3432 = vmatprep.subr.bf16.mxu0 %v3753_v49  ;;  %v3779_v19 = vld [vmem:[%s4687_s1 + $0x128] sm:$0xff]   ;;  %v3783_v23 = vld [vmem:[%s4687_s1 + $0x120] sm:$0xff]   ;;  %v3785_v25 = vld [vmem:[%s4687_s1 + $0x158] sm:$0xff]  }
 0x110   : > { %3460 = vmatprep.subr.bf16.mxu1 %v3754_v50  ;;  %2640 = vmatprep.mubr.bf16.mxu0 %v3238_v5  ;;  %v3780_v20 = vld [vmem:[%s4687_s1 + $0x1a8] sm:$0xff]   ;;  %v3784_v24 = vld [vmem:[%s4687_s1 + $0x1a0] sm:$0xff]   ;;  %v3786_v26 = vld [vmem:[%s4687_s1 + $0x1d8] sm:$0xff]  }
 0x111   : > { %2689 = vmatprep.mubr.bf16.mxu1 %v3240_v8  ;;  %v3787_v27 = vld [vmem:[%s4687_s1 + $0x118] sm:$0xff]   ;;  %v1404_v29 = vld [vmem:[%s4685_s6 + $0x80] sm:$0xff]  ;;  %v1405_v32 = vld [vmem:[%s4685_s6 + $0x88] sm:$0xff] }
 0x112   : > { %3433 = vmatpush3.bf16.msra.mxu0 %v3755_v51  ;;  %v3788_v28 = vld [vmem:[%s4687_s1 + $0x198] sm:$0xff]   ;;  %v1412_v30 = vld [vmem:[%s4685_s6 + $0xc0] sm:$0xff]  ;;  %v1413_v33 = vld [vmem:[%s4685_s6 + $0xc8] sm:$0xff] }
 0x113   : > { %3461 = vmatpush3.bf16.msra.mxu1 %v3756_v52  ;;  %3434 = vmatprep.subr.bf16.mxu0 %v3757_v53  ;;  %v3254_v31 = vcombine.high %v1404_v29, %v1412_v30  ;;  %v3253_v34 = vcombine.low %v1404_v29, %v1412_v30  ;;  %v3256_v35 = vcombine.high %v1405_v32, %v1413_v33  ;;  %v3789_v37 = vld [vmem:[%s4687_s1 + $0x150] sm:$0xff]   ;;  %v3793_v41 = vld [vmem:[%s4687_s1 + $0x148] sm:$0xff]   ;;  %v3797_v45 = vld [vmem:[%s4687_s1 + $0x140] sm:$0xff]  }
 0x114   : > { %3462 = vmatprep.subr.bf16.mxu1 %v3758_v54  ;;  %v3255_v36 = vcombine.low %v1405_v32, %v1413_v33  ;;  %v3790_v38 = vld [vmem:[%s4687_s1 + $0x1d0] sm:$0xff]   ;;  %v3794_v42 = vld [vmem:[%s4687_s1 + $0x1c8] sm:$0xff]   ;;  %v3798_v46 = vld [vmem:[%s4687_s1 + $0x1c0] sm:$0xff]  }
 0x115   : > { %v3791_v39 = vld [vmem:[%s4687_s1 + $0x110] sm:$0xff]   ;;  %v3795_v43 = vld [vmem:[%s4687_s1 + $0x108] sm:$0xff]   ;;  %v3799_v47 = vld [vmem:[%s4687_s1 + $0x100] sm:$0xff]  }
 0x116   : > { %3435 = vmatpush3.bf16.msra.mxu0 %v3759_v55  ;;  %v3792_v40 = vld [vmem:[%s4687_s1 + $0x190] sm:$0xff]   ;;  %v3796_v44 = vld [vmem:[%s4687_s1 + $0x188] sm:$0xff]   ;;  %v3800_v48 = vld [vmem:[%s4687_s1 + $0x180] sm:$0xff]  }
 0x117   : > { %3463 = vmatpush3.bf16.msra.mxu1 %v3760_v56  ;;  %3436 = vmatprep.subr.bf16.mxu0 %v3761_v57  ;;  %v1390_v49 = vld [vmem:[%s4685_s6 + $0x10] sm:$0xff]  ;;  %v1391_v51 = vld [vmem:[%s4685_s6 + $0x18] sm:$0xff]  ;;  %v3809_v5 = vld [vmem:[%s4687_s1 + $0x268] sm:$0xff]  }
 0x118   : > { %3464 = vmatprep.subr.bf16.mxu1 %v3762_v58  ;;  %v1398_v50 = vld [vmem:[%s4685_s6 + $0x50] sm:$0xff]  ;;  %v1399_v52 = vld [vmem:[%s4685_s6 + $0x58] sm:$0xff]  ;;  %v3810_v6 = vld [vmem:[%s4687_s1 + $0x2e8] sm:$0xff]  }
 0x119   : > { %v3241_v53 = vcombine.low %v1390_v49, %v1398_v50  ;;  %v3242_v54 = vcombine.high %v1390_v49, %v1398_v50  ;;  %v3243_v55 = vcombine.low %v1391_v51, %v1399_v52  ;;  %v3244_v56 = vcombine.high %v1391_v51, %v1399_v52  ;;  %v3801_v57 = vld [vmem:[%s4687_s1 + $0x278] sm:$0xff]   ;;  %v1406_v1 = vld [vmem:[%s4685_s6 + $0x90] sm:$0xff]  ;;  %v3829_v29 = vld [vmem:[%s4687_s1 + $0x240] sm:$0xff]  }
 0x11a   : > { %3437 = vmatpush3.bf16.msra.mxu0 %v3763_v59  ;;  %v3802_v58 = vld [vmem:[%s4687_s1 + $0x2f8] sm:$0xff]   ;;  %v1414_v2 = vld [vmem:[%s4685_s6 + $0xd0] sm:$0xff]  ;;  %v3830_v30 = vld [vmem:[%s4687_s1 + $0x2c0] sm:$0xff]  }
 0x11b   : > { %3465 = vmatpush3.bf16.msra.mxu1 %v3764_v60  ;;  %3438 = vmatprep.subr.bf16.mxu0 %v3765_v61  ;;  %v3803_v59 = vld [vmem:[%s4687_s1 + $0x238] sm:$0xff]   ;;  %v3805_v61 = vld [vmem:[%s4687_s1 + $0x270] sm:$0xff]   ;;  %v3258_v3 = vcombine.high %v1406_v1, %v1414_v2  ;;  %v3832_v32 = vld [vmem:[%s4687_s1 + $0x280] sm:$0xff]  }
 0x11c   : > { %3466 = vmatprep.subr.bf16.mxu1 %v3766_v62  ;;  %v3804_v60 = vld [vmem:[%s4687_s1 + $0x2b8] sm:$0xff]   ;;  %v3806_v62 = vld [vmem:[%s4687_s1 + $0x2f0] sm:$0xff]   ;;  %v1392_v33 = vld [vmem:[%s4685_s6 + $0x20] sm:$0xff] }
 0x11d   : > { %v1415_v8 = vld [vmem:[%s4685_s6 + $0xd8] sm:$0xff]  ;;  %v1408_v49 = vld [vmem:[%s4685_s6 + $0xa0] sm:$0xff] }
 0x11e   : > { %3439 = vmatpush3.bf16.msra.mxu0 %v3767_v63  ;;  %v3807_v63 = vld [vmem:[%s4687_s1 + $0x230] sm:$0xff]   ;;  %v1416_v50 = vld [vmem:[%s4685_s6 + $0xe0] sm:$0xff] }
 0x11f   : > { %3467 = vmatpush3.bf16.msra.mxu1 %v3768_v0  ;;  %3480 = vmatprep.subr.bf16.mxu0 %v3769_v9  ;;  %v3808_v0 = vld [vmem:[%s4687_s1 + $0x2b0] sm:$0xff]   ;;  %v3262_v51 = vcombine.high %v1408_v49, %v1416_v50  ;;  %v3261_v52 = vcombine.low %v1408_v49, %v1416_v50 }
 0x120   : > { %3508 = vmatprep.subr.bf16.mxu1 %v3770_v10  ;;  %v3811_v10 = vld [vmem:[%s4687_s1 + $0x228] sm:$0xff]  }
 0x121   : > { %2641 = vmatmul.mubr.bf16.vlgmr.msra.gmra.mxu0 %v3237_v4  ;;  %v3257_v4 = vcombine.low %v1406_v1, %v1414_v2  ;;  %v3849_v1 = vld [vmem:[%s4687_s1 + $0x358] sm:$0xff]  }
 0x122   : > { %2690 = vmatmul.mubr.bf16.vlgmr.msra.gmra.mxu1 %v3239_v7  ;;  %3481 = vmatpush3.bf16.msra.mxu0 %v3771_v11  ;;  %v1407_v7 = vld [vmem:[%s4685_s6 + $0x98] sm:$0xff] }
 0x123   : > { %3509 = vmatpush3.bf16.msra.mxu1 %v3772_v12  ;;  %3482 = vmatprep.subr.bf16.mxu0 %v3773_v13  ;;  %v3260_v9 = vcombine.high %v1407_v7, %v1415_v8  ;;  %v3259_v11 = vcombine.low %v1407_v7, %v1415_v8  ;;  %v3812_v12 = vld [vmem:[%s4687_s1 + $0x2a8] sm:$0xff]   ;;  %v3813_v13 = vld [vmem:[%s4687_s1 + $0x260] sm:$0xff]   ;;  %v3850_v2 = vld [vmem:[%s4687_s1 + $0x3d8] sm:$0xff]  }
 0x124   : > { %3510 = vmatprep.subr.bf16.mxu1 %v3774_v14  ;;  %2648 = vmatprep.mubr.bf16.mxu0 %v3254_v31  ;;  %v3814_v14 = vld [vmem:[%s4687_s1 + $0x2e0] sm:$0xff]   ;;  %v3855_v7 = vld [vmem:[%s4687_s1 + $0x310] sm:$0xff]  }
 0x125   : > { %2697 = vmatprep.mubr.bf16.mxu1 %v3256_v35  ;;  %v3831_v31 = vld [vmem:[%s4687_s1 + $0x200] sm:$0xff]   ;;  %v3856_v8 = vld [vmem:[%s4687_s1 + $0x390] sm:$0xff]  }
 0x126   : > { %3483 = vmatpush3.bf16.msra.mxu0 %v3775_v15  ;;  %v3815_v15 = vld [vmem:[%s4687_s1 + $0x220] sm:$0xff]  }
 0x127   : > { %3511 = vmatpush3.bf16.msra.mxu1 %v3776_v16  ;;  %3484 = vmatprep.subr.bf16.mxu0 %v3777_v17  ;;  %v3816_v16 = vld [vmem:[%s4687_s1 + $0x2a0] sm:$0xff]   ;;  %v3817_v17 = vld [vmem:[%s4687_s1 + $0x258] sm:$0xff]  }
 0x128   : > { %3512 = vmatprep.subr.bf16.mxu1 %v3778_v18  ;;  %v3818_v18 = vld [vmem:[%s4687_s1 + $0x2d8] sm:$0xff]  }
 0x129   : > { %2649 = vmatmul.mubr.bf16.gmra.mxu0 %v3253_v34  ;;  %v1400_v34 = vld [vmem:[%s4685_s6 + $0x60] sm:$0xff] }
 0x12a   : > { %3485 = vmatpush3.bf16.msra.mxu0 %v3779_v19  ;;  %2698 = vmatmul.mubr.bf16.gmra.mxu1 %v3255_v36  ;;  %v3819_v19 = vld [vmem:[%s4687_s1 + $0x218] sm:$0xff]   ;;  %v3245_v35 = vcombine.low %v1392_v33, %v1400_v34  ;;  %v3246_v36 = vcombine.high %v1392_v33, %v1400_v34 }
 0x12b   : > { %3513 = vmatpush3.bf16.msra.mxu1 %v3780_v20  ;;  %3486 = vmatprep.subr.bf16.mxu0 %v3781_v21  ;;  %v3820_v20 = vld [vmem:[%s4687_s1 + $0x298] sm:$0xff]   ;;  %v3821_v21 = vld [vmem:[%s4687_s1 + $0x250] sm:$0xff]  }
 0x12c   : > { %3514 = vmatprep.subr.bf16.mxu1 %v3782_v22  ;;  %2738 = vmatprep.mubr.bf16.mxu0 %v3242_v54  ;;  %v3822_v22 = vld [vmem:[%s4687_s1 + $0x2d0] sm:$0xff]   ;;  %v3842_v54 = vld [vmem:[%s4687_s1 + $0x3e8] sm:$0xff]  }
 0x12d   : > { %2787 = vmatprep.mubr.bf16.mxu1 %v3244_v56  ;;  %v1417_v56 = vld [vmem:[%s4685_s6 + $0xe8] sm:$0xff] }
 0x12e   : > { %3487 = vmatpush3.bf16.msra.mxu0 %v3783_v23  ;;  %v3823_v23 = vld [vmem:[%s4687_s1 + $0x210] sm:$0xff]  }
 0x12f   : > { %3515 = vmatpush3.bf16.msra.mxu1 %v3784_v24  ;;  %3488 = vmatprep.subr.bf16.mxu0 %v3785_v25  ;;  %v3824_v24 = vld [vmem:[%s4687_s1 + $0x290] sm:$0xff]   ;;  %v3825_v25 = vld [vmem:[%s4687_s1 + $0x248] sm:$0xff]  }
 0x130   : > { %3516 = vmatprep.subr.bf16.mxu1 %v3786_v26  ;;  %v3826_v26 = vld [vmem:[%s4687_s1 + $0x2c8] sm:$0xff]  }
 0x132   : > { %3489 = vmatpush3.bf16.msra.mxu0 %v3787_v27  ;;  %v3827_v27 = vld [vmem:[%s4687_s1 + $0x208] sm:$0xff]  }
 0x133   : > { %3517 = vmatpush3.bf16.msra.mxu1 %v3788_v28  ;;  %3490 = vmatprep.subr.bf16.mxu0 %v3789_v37  ;;  %v3828_v28 = vld [vmem:[%s4687_s1 + $0x288] sm:$0xff]  }
 0x134   : > { %3518 = vmatprep.subr.bf16.mxu1 %v3790_v38  ;;  %v1393_v37 = vld [vmem:[%s4685_s6 + $0x28] sm:$0xff] }
 0x135   : > { %v1401_v38 = vld [vmem:[%s4685_s6 + $0x68] sm:$0xff] }
 0x136   : > { %3491 = vmatpush3.bf16.msra.mxu0 %v3791_v39  ;;  %v3247_v39 = vcombine.low %v1393_v37, %v1401_v38 }
 0x137   : > { %3519 = vmatpush3.bf16.msra.mxu1 %v3792_v40  ;;  %3492 = vmatprep.subr.bf16.mxu0 %v3793_v41  ;;  %v3248_v40 = vcombine.high %v1393_v37, %v1401_v38  ;;  %v3833_v41 = vld [vmem:[%s4687_s1 + $0x378] sm:$0xff]  }
 0x138   : > { %3520 = vmatprep.subr.bf16.mxu1 %v3794_v42  ;;  %v3834_v42 = vld [vmem:[%s4687_s1 + $0x3f8] sm:$0xff]  }
 0x13a   : > { %3493 = vmatpush3.bf16.msra.mxu0 %v3795_v43  ;;  %v3835_v43 = vld [vmem:[%s4687_s1 + $0x338] sm:$0xff]  }
 0x13b   : > { %3521 = vmatpush3.bf16.msra.mxu1 %v3796_v44  ;;  %3494 = vmatprep.subr.bf16.mxu0 %v3797_v45  ;;  %v3836_v44 = vld [vmem:[%s4687_s1 + $0x3b8] sm:$0xff]   ;;  %v3837_v45 = vld [vmem:[%s4687_s1 + $0x370] sm:$0xff]  }
 0x13c   : > { %3522 = vmatprep.subr.bf16.mxu1 %v3798_v46  ;;  %v3838_v46 = vld [vmem:[%s4687_s1 + $0x3f0] sm:$0xff]  }
 0x13e   : > { %3495 = vmatpush3.bf16.msra.mxu0 %v3799_v47  ;;  %v3839_v47 = vld [vmem:[%s4687_s1 + $0x330] sm:$0xff]  }
 0x13f   : > { %3523 = vmatpush3.bf16.msra.mxu1 %v3800_v48  ;;  %3536 = vmatprep.subr.bf16.mxu0 %v3801_v57  ;;  %v3840_v48 = vld [vmem:[%s4687_s1 + $0x3b0] sm:$0xff]  }
 0x140   : > { %3564 = vmatprep.subr.bf16.mxu1 %v3802_v58  ;;  %v3843_v58 = vld [vmem:[%s4687_s1 + $0x328] sm:$0xff]  }
 0x141   : > { %2739 = vmatmul.mubr.bf16.vlgmr.msra.gmra.mxu0 %v3241_v53  ;;  %v3841_v53 = vld [vmem:[%s4687_s1 + $0x368] sm:$0xff]  }
 0x142   : > { %2788 = vmatmul.mubr.bf16.vlgmr.msra.gmra.mxu1 %v3243_v55  ;;  %3537 = vmatpush3.bf16.msra.mxu0 %v3803_v59  ;;  %v1409_v55 = vld [vmem:[%s4685_s6 + $0xa8] sm:$0xff] }
 0x143   : > { %3565 = vmatpush3.bf16.msra.mxu1 %v3804_v60  ;;  %3538 = vmatprep.subr.bf16.mxu0 %v3805_v61  ;;  %v3264_v57 = vcombine.high %v1409_v55, %v1417_v56  ;;  %v3263_v59 = vcombine.low %v1409_v55, %v1417_v56  ;;  %v3844_v60 = vld [vmem:[%s4687_s1 + $0x3a8] sm:$0xff]   ;;  %v3845_v61 = vld [vmem:[%s4687_s1 + $0x360] sm:$0xff]  }
 0x144   : > { %3566 = vmatprep.subr.bf16.mxu1 %v3806_v62  ;;  %2746 = vmatprep.mubr.bf16.mxu0 %v3258_v3  ;;  %v3846_v62 = vld [vmem:[%s4687_s1 + $0x3e0] sm:$0xff]   ;;  %v3851_v3 = vld [vmem:[%s4687_s1 + $0x318] sm:$0xff]  }
 0x145   : > { %2795 = vmatprep.mubr.bf16.mxu1 %v3260_v9  ;;  %v3857_v9 = vld [vmem:[%s4687_s1 + $0x348] sm:$0xff]  }
 0x146   : > { %3539 = vmatpush3.bf16.msra.mxu0 %v3807_v63  ;;  %v3847_v63 = vld [vmem:[%s4687_s1 + $0x320] sm:$0xff]  }
 0x147   : > { %3567 = vmatpush3.bf16.msra.mxu1 %v3808_v0  ;;  %3540 = vmatprep.subr.bf16.mxu0 %v3809_v5  ;;  %v3848_v0 = vld [vmem:[%s4687_s1 + $0x3a0] sm:$0xff]   ;;  %v3853_v5 = vld [vmem:[%s4687_s1 + $0x350] sm:$0xff]  }
 0x148   : > { %3568 = vmatprep.subr.bf16.mxu1 %v3810_v6  ;;  %v3854_v6 = vld [vmem:[%s4687_s1 + $0x3d0] sm:$0xff]  }
 0x149   : > { %2747 = vmatmul.mubr.bf16.gmra.mxu0 %v3257_v4  ;;  %v3852_v4 = vld [vmem:[%s4687_s1 + $0x398] sm:$0xff]  }
 0x14a   : > { %3541 = vmatpush3.bf16.msra.mxu0 %v3811_v10  ;;  %2796 = vmatmul.mubr.bf16.gmra.mxu1 %v3259_v11  ;;  %v3858_v10 = vld [vmem:[%s4687_s1 + $0x3c8] sm:$0xff]  }
 0x14b   : > { %3569 = vmatpush3.bf16.msra.mxu1 %v3812_v12  ;;  %3542 = vmatprep.subr.bf16.mxu0 %v3813_v13  ;;  %v3859_v11 = vld [vmem:[%s4687_s1 + $0x308] sm:$0xff]   ;;  %v3861_v13 = vld [vmem:[%s4687_s1 + $0x340] sm:$0xff]  }
 0x14c   : > { %3570 = vmatprep.subr.bf16.mxu1 %v3814_v14  ;;  %2836 = vmatprep.mubr.bf16.mxu0 %v3246_v36  ;;  %v3860_v12 = vld [vmem:[%s4687_s1 + $0x388] sm:$0xff]   ;;  %v3862_v14 = vld [vmem:[%s4687_s1 + $0x3c0] sm:$0xff]  }
 0x14d   : > { %2885 = vmatprep.mubr.bf16.mxu1 %v3248_v40 }
 0x14e   : > { %3543 = vmatpush3.bf16.msra.mxu0 %v3815_v15  ;;  %v3863_v15 = vld [vmem:[%s4687_s1 + $0x300] sm:$0xff]  }
 0x14f   : > { %3571 = vmatpush3.bf16.msra.mxu1 %v3816_v16  ;;  %3544 = vmatprep.subr.bf16.mxu0 %v3817_v17  ;;  %v3864_v16 = vld [vmem:[%s4687_s1 + $0x380] sm:$0xff]   ;;  %v1394_v17 = vld [vmem:[%s4685_s6 + $0x30] sm:$0xff] }
 0x150   : > { %3572 = vmatprep.subr.bf16.mxu1 %v3818_v18  ;;  %v1402_v18 = vld [vmem:[%s4685_s6 + $0x70] sm:$0xff] }
 0x152   : > { %3545 = vmatpush3.bf16.msra.mxu0 %v3819_v19  ;;  %v1395_v19 = vld [vmem:[%s4685_s6 + $0x38] sm:$0xff] }
 0x153   : > { %3573 = vmatpush3.bf16.msra.mxu1 %v3820_v20  ;;  %3546 = vmatprep.subr.bf16.mxu0 %v3821_v21  ;;  %v3249_v20 = vcombine.low %v1394_v17, %v1402_v18  ;;  %v3250_v21 = vcombine.high %v1394_v17, %v1402_v18 }
 0x154   : > { %3574 = vmatprep.subr.bf16.mxu1 %v3822_v22  ;;  %v1403_v22 = vld [vmem:[%s4685_s6 + $0x78] sm:$0xff] }
 0x156   : > { %3547 = vmatpush3.bf16.msra.mxu0 %v3823_v23  ;;  %v1410_v23 = vld [vmem:[%s4685_s6 + $0xb0] sm:$0xff] }
 0x157   : > { %3575 = vmatpush3.bf16.msra.mxu1 %v3824_v24  ;;  %3548 = vmatprep.subr.bf16.mxu0 %v3825_v25  ;;  %v1418_v24 = vld [vmem:[%s4685_s6 + $0xf0] sm:$0xff]  ;;  %v3251_v25 = vcombine.low %v1395_v19, %v1403_v22 }
 0x158   : > { %3576 = vmatprep.subr.bf16.mxu1 %v3826_v26  ;;  %v3252_v26 = vcombine.high %v1395_v19, %v1403_v22 }
 0x15a   : > { %3549 = vmatpush3.bf16.msra.mxu0 %v3827_v27  ;;  %v3266_v27 = vcombine.high %v1410_v23, %v1418_v24 }
 0x15b   : > { %3577 = vmatpush3.bf16.msra.mxu1 %v3828_v28  ;;  %3550 = vmatprep.subr.bf16.mxu0 %v3829_v29  ;;  %v1411_v28 = vld [vmem:[%s4685_s6 + $0xb8] sm:$0xff] }
 0x15c   : > { %3578 = vmatprep.subr.bf16.mxu1 %v3830_v30  ;;  %v1419_v29 = vld [vmem:[%s4685_s6 + $0xf8] sm:$0xff] }
 0x15d   : > { %v3268_v30 = vcombine.high %v1411_v28, %v1419_v29 }
 0x15e   : > { %3551 = vmatpush3.bf16.msra.mxu0 %v3831_v31  ;;  %v3265_v31 = vcombine.low %v1410_v23, %v1418_v24 }
 0x15f   : > { %3579 = vmatpush3.bf16.msra.mxu1 %v3832_v32  ;;  %3592 = vmatprep.subr.bf16.mxu0 %v3833_v41  ;;  %v3267_v32 = vcombine.low %v1411_v28, %v1419_v29 }
 0x160   : > { %3620 = vmatprep.subr.bf16.mxu1 %v3834_v42 }
 0x161   : > { %2837 = vmatmul.mubr.bf16.vlgmr.msra.gmra.mxu0 %v3245_v35 }
 0x162   : > { %2886 = vmatmul.mubr.bf16.vlgmr.msra.gmra.mxu1 %v3247_v39  ;;  %3593 = vmatpush3.bf16.msra.mxu0 %v3835_v43 }
 0x163   : > { %3621 = vmatpush3.bf16.msra.mxu1 %v3836_v44  ;;  %3594 = vmatprep.subr.bf16.mxu0 %v3837_v45 }
 0x164   : > { %3622 = vmatprep.subr.bf16.mxu1 %v3838_v46  ;;  %2844 = vmatprep.mubr.bf16.mxu0 %v3262_v51 }
 0x165   : > { %2893 = vmatprep.mubr.bf16.mxu1 %v3264_v57 }
 0x166   : > { %3595 = vmatpush3.bf16.msra.mxu0 %v3839_v47 }
 0x167   : > { %3623 = vmatpush3.bf16.msra.mxu1 %v3840_v48  ;;  %3596 = vmatprep.subr.bf16.mxu0 %v3841_v53 }
 0x168   : > { %3624 = vmatprep.subr.bf16.mxu1 %v3842_v54 }
 0x169   : > { %2845 = vmatmul.mubr.bf16.gmra.mxu0 %v3261_v52 }
 0x16a   : > { %3597 = vmatpush3.bf16.msra.mxu0 %v3843_v58  ;;  %2894 = vmatmul.mubr.bf16.gmra.mxu1 %v3263_v59 }
 0x16b   : > { %3625 = vmatpush3.bf16.msra.mxu1 %v3844_v60  ;;  %3598 = vmatprep.subr.bf16.mxu0 %v3845_v61 }
 0x16c   : > { %3626 = vmatprep.subr.bf16.mxu1 %v3846_v62  ;;  %2934 = vmatprep.mubr.bf16.mxu0 %v3250_v21 }
 0x16d   : > { %2983 = vmatprep.mubr.bf16.mxu1 %v3252_v26 }
 0x16e   : > { %3599 = vmatpush3.bf16.msra.mxu0 %v3847_v63 }
 0x16f   : > { %3627 = vmatpush3.bf16.msra.mxu1 %v3848_v0  ;;  %3600 = vmatprep.subr.bf16.mxu0 %v3849_v1 }
 0x170   : > { %3628 = vmatprep.subr.bf16.mxu1 %v3850_v2 }
 0x172   : > { %3601 = vmatpush3.bf16.msra.mxu0 %v3851_v3 }
 0x173   : > { %3629 = vmatpush3.bf16.msra.mxu1 %v3852_v4  ;;  %3602 = vmatprep.subr.bf16.mxu0 %v3853_v5 }
 0x174   : > { %3630 = vmatprep.subr.bf16.mxu1 %v3854_v6 }
 0x176   : > { %3603 = vmatpush3.bf16.msra.mxu0 %v3855_v7 }
 0x177   : > { %3631 = vmatpush3.bf16.msra.mxu1 %v3856_v8  ;;  %3604 = vmatprep.subr.bf16.mxu0 %v3857_v9 }
 0x178   : > { %3632 = vmatprep.subr.bf16.mxu1 %v3858_v10 }
 0x17a   : > { %3605 = vmatpush3.bf16.msra.mxu0 %v3859_v11 }
 0x17b   : > { %3633 = vmatpush3.bf16.msra.mxu1 %v3860_v12  ;;  %3606 = vmatprep.subr.bf16.mxu0 %v3861_v13 }
 0x17c   : > { %3634 = vmatprep.subr.bf16.mxu1 %v3862_v14 }
 0x17e   : > { %3607 = vmatpush3.bf16.msra.mxu0 %v3863_v15 }
 0x17f   : > { %3635 = vmatpush3.bf16.msra.mxu1 %v3864_v16 }
 0x181   : > { %2935 = vmatmul.mubr.bf16.vlgmr.msra.gmra.mxu0 %v3249_v20 }
 0x182   : > { %2984 = vmatmul.mubr.bf16.vlgmr.msra.gmra.mxu1 %v3251_v25  ;;  %2942 = vmatprep.mubr.bf16.mxu0 %v3266_v27 }
 0x183   : > { %2991 = vmatprep.mubr.bf16.mxu1 %v3268_v30 }
 0x189   : > { %2943 = vmatmul.mubr.bf16.gmra.mxu0 %v3265_v31 }
 0x18a   : > { %2992 = vmatmul.mubr.bf16.gmra.mxu1 %v3267_v32 }
 0x1e1   : > { %v3440_v33 = vpop.f32.mrf.mxu0 }
 0x1e2   : > { %v3468_v35 = vpop.f32.mrf.mxu1 }
 0x1e3   : > { %v3441_v34 = vpop.f32.mrf.mxu0 }
 0x1e4   : > { %v3469_v37 = vpop.f32.mrf.mxu1  ;;  %v3442_v10 = vadd.f32 %v3441_v34, %v3440_v33 }
 0x1e5   : > { %v3443_v36 = vpop.f32.mrf.mxu0  ;;  %v3470_v11 = vadd.f32 %v3469_v37, %v3468_v35 }
 0x1e6   : > { %v3471_v39 = vpop.f32.mrf.mxu1 }
 0x1e7   : > { %v3444_v38 = vpop.f32.mrf.mxu0  ;;  %v2692_v15 = vadd.f32 %v3470_v11, %v3442_v10 }
 0x1e8   : > { %v3472_v41 = vpop.f32.mrf.mxu1  ;;  %v3445_v16 = vadd.f32 %v3444_v38, %v3443_v36 }
 0x1e9   : > { %v3446_v40 = vpop.f32.mrf.mxu0  ;;  %v3473_v17 = vadd.f32 %v3472_v41, %v3471_v39 }
 0x1ea   : > { %v3474_v43 = vpop.f32.mrf.mxu1 }
 0x1eb   : > { %v3447_v42 = vpop.f32.mrf.mxu0  ;;  %v2695_v25 = vadd.f32 %v3473_v17, %v3445_v16 }
 0x1ec   : > { %v3475_v45 = vpop.f32.mrf.mxu1  ;;  %v3448_v22 = vadd.f32 %v3447_v42, %v3446_v40 }
 0x1ed   : > { %v3449_v44 = vpop.f32.mrf.mxu0  ;;  %v3476_v23 = vadd.f32 %v3475_v45, %v3474_v43 }
 0x1ee   : > { %v3477_v47 = vpop.f32.mrf.mxu1 }
 0x1ef   : > { %v3450_v46 = vpop.f32.mrf.mxu0  ;;  %v2700_v31 = vadd.f32 %v3476_v23, %v3448_v22 }
 0x1f0   : > { %v3478_v49 = vpop.f32.mrf.mxu1  ;;  %v3451_v32 = vadd.f32 %v3450_v46, %v3449_v44 }
 0x1f1   : > { %v3479_v33 = vadd.f32 %v3478_v49, %v3477_v47 }
 0x201   : > { %v3496_v48 = vpop.f32.mrf.mxu0 }
 0x202   : > { %v3524_v51 = vpop.f32.mrf.mxu1 }
 0x203   : > { %v3497_v50 = vpop.f32.mrf.mxu0 }
 0x204   : > { %v3525_v53 = vpop.f32.mrf.mxu1  ;;  %v3498_v13 = vadd.f32 %v3497_v50, %v3496_v48  ;;  %v2703_v50 = vadd.f32 %v3479_v33, %v3451_v32 }
 0x205   : > { %v3499_v52 = vpop.f32.mrf.mxu0  ;;  %v3526_v20 = vadd.f32 %v3525_v53, %v3524_v51 }
 0x206   : > { %v3527_v55 = vpop.f32.mrf.mxu1  ;;  %v2741_v19 = vadd.f32 %v3498_v13, %v2692_v15 }
 0x207   : > { %v3500_v54 = vpop.f32.mrf.mxu0 }
 0x208   : > { %v3528_v57 = vpop.f32.mrf.mxu1  ;;  %v3501_v21 = vadd.f32 %v3500_v54, %v3499_v52  ;;  %v2790_v29 = vadd.f32 %v3526_v20, %v2741_v19 }
 0x209   : > { %v3502_v56 = vpop.f32.mrf.mxu0  ;;  %v3529_v35 = vadd.f32 %v3528_v57, %v3527_v55 }
 0x20a   : > { %v3530_v58 = vpop.f32.mrf.mxu1  ;;  %v2744_v30 = vadd.f32 %v3501_v21, %v2695_v25  ;;  %v1422_v25 = vld [vmem:[#allocation2 + $0x18] sm:$0xff] }
 0x20b   : > { %v3503_v59 = vpop.f32.mrf.mxu0 }
 0x20c   : > { %v3531_v60 = vpop.f32.mrf.mxu1  ;;  %v3504_v28 = vadd.f32 %v3503_v59, %v3502_v56  ;;  %v2793_v43 = vadd.f32 %v3529_v35, %v2744_v30 }
 0x20d   : > { %v3505_v61 = vpop.f32.mrf.mxu0  ;;  %v3532_v48 = vadd.f32 %v3531_v60, %v3530_v58 }
 0x20e   : > { %v3533_v62 = vpop.f32.mrf.mxu1  ;;  %v2749_v41 = vadd.f32 %v3504_v28, %v2700_v31 }
 0x20f   : > { %v3506_v63 = vpop.f32.mrf.mxu0 }
 0x210   : > { %v3534_v1 = vpop.f32.mrf.mxu1  ;;  %v3507_v40 = vadd.f32 %v3506_v63, %v3505_v61  ;;  %v2798_v46 = vadd.f32 %v3532_v48, %v2749_v41  ;;  %v1420_v61 = vld [vmem:[#allocation2 + $0x10] sm:$0xff] }
 0x211   : > { %v3535_v55 = vadd.f32 %v3534_v1, %v3533_v62  ;;  %v1421_v1 = vld [vmem:[#allocation2] sm:$0xff] }
 0x212   : > { %v2752_v47 = vadd.f32 %v3507_v40, %v2703_v50 }
 0x214   : > { %v2801_v11 = vadd.f32 %v3535_v55, %v2752_v47 }
 0x221   : > { %v3552_v0 = vpop.f32.mrf.mxu0 }
 0x222   : > { %v3580_v2 = vpop.f32.mrf.mxu1 }
 0x223   : > { %v3553_v3 = vpop.f32.mrf.mxu0 }
 0x224   : > { %v3581_v4 = vpop.f32.mrf.mxu1  ;;  %v3554_v26 = vadd.f32 %v3553_v3, %v3552_v0 }
 0x225   : > { %v3555_v5 = vpop.f32.mrf.mxu0  ;;  %v3582_v37 = vadd.f32 %v3581_v4, %v3580_v2 }
 0x226   : > { %v3583_v6 = vpop.f32.mrf.mxu1  ;;  %v2839_v36 = vadd.f32 %v3554_v26, %v2790_v29 }
 0x227   : > { %v3556_v7 = vpop.f32.mrf.mxu0 }
 0x228   : > { %v3584_v8 = vpop.f32.mrf.mxu1  ;;  %v3557_v38 = vadd.f32 %v3556_v7, %v3555_v5  ;;  %v2888_v53 = vadd.f32 %v3582_v37, %v2839_v36 }
 0x229   : > { %v3558_v9 = vpop.f32.mrf.mxu0  ;;  %v3585_v57 = vadd.f32 %v3584_v8, %v3583_v6 }
 0x22a   : > { %v3586_v12 = vpop.f32.mrf.mxu1  ;;  %v2842_v54 = vadd.f32 %v3557_v38, %v2793_v43 }
 0x22b   : > { %v3559_v14 = vpop.f32.mrf.mxu0 }
 0x22c   : > { %v3587_v18 = vpop.f32.mrf.mxu1  ;;  %v3560_v51 = vadd.f32 %v3559_v14, %v3558_v9  ;;  %v2891_v3 = vadd.f32 %v3585_v57, %v2842_v54 }
 0x22d   : > { %v3561_v24 = vpop.f32.mrf.mxu0  ;;  %v3588_v60 = vadd.f32 %v3587_v18, %v3586_v12 }
 0x22e   : > { %v3589_v27 = vpop.f32.mrf.mxu1  ;;  %v2847_v58 = vadd.f32 %v3560_v51, %v2798_v46 }
 0x22f   : > { %v3562_v34 = vpop.f32.mrf.mxu0 }
 0x230   : > { %v3590_v39 = vpop.f32.mrf.mxu1  ;;  %v3563_v4 = vadd.f32 %v3562_v34, %v3561_v24  ;;  %v2896_v62 = vadd.f32 %v3588_v60, %v2847_v58 }
 0x231   : > { %v3591_v17 = vadd.f32 %v3590_v39, %v3589_v27  ;;  %v1423_v27 = vld [vmem:[#allocation2 + $0x8] sm:$0xff] }
 0x232   : > { %v2850_v8 = vadd.f32 %v3563_v4, %v2801_v11 }
 0x234   : > { %v2899_v28 = vadd.f32 %v3591_v17, %v2850_v8 }
 0x241   : > { %v3608_v42 = vpop.f32.mrf.mxu0 }
 0x242   : > { %v3636_v45 = vpop.f32.mrf.mxu1 }
 0x243   : > { %v3609_v52 = vpop.f32.mrf.mxu0 }
 0x244   : > { %v3610_v56 = vadd.f32 %v3609_v52, %v3608_v42  ;;  %v3637_v44 = vpop.f32.mrf.mxu1 }
 0x245   : > { %v3611_v49 = vpop.f32.mrf.mxu0  ;;  %v3638_v0 = vadd.f32 %v3637_v44, %v3636_v45 }
 0x246   : > { %v2937_v59 = vadd.f32 %v3610_v56, %v2888_v53  ;;  %v3639_v2 = vpop.f32.mrf.mxu1 }
 0x247   : > { %v3612_v63 = vpop.f32.mrf.mxu0 }
 0x248   : > { %v2986_v5 = vadd.f32 %v3638_v0, %v2937_v59  ;;  %v3613_v7 = vadd.f32 %v3612_v63, %v3611_v49  ;;  %v3640_v9 = vpop.f32.mrf.mxu1 }
 0x249   : > { %v3614_v10 = vpop.f32.mrf.mxu0  ;;  %v3641_v15 = vadd.f32 %v3640_v9, %v3639_v2 }
 0x24a   : > { %v3000_v13 = vadd.f32 %v2986_v5, %v1420_v61  ;;  %v2940_v14 = vadd.f32 %v3613_v7, %v2891_v3  ;;  %v3642_v16 = vpop.f32.mrf.mxu1 }
 0x24b   : > { %v3615_v6 = vpop.f32.mrf.mxu0 }
 0x24c   : > { %3004 = vst [vmem:[#allocation2 + $0x10] sm:$0xff] %v3000_v13  ;;  %v2989_v12 = vadd.f32 %v3641_v15, %v2940_v14  ;;  %v3616_v18 = vadd.f32 %v3615_v6, %v3614_v10  ;;  %v3643_v19 = vpop.f32.mrf.mxu1 }
 0x24d   : > { %v3617_v20 = vpop.f32.mrf.mxu0  ;;  %v3644_v23 = vadd.f32 %v3643_v19, %v3642_v16 }
 0x24e   : > { %v3001_v21 = vadd.f32 %v2989_v12, %v1421_v1  ;;  %v2945_v22 = vadd.f32 %v3616_v18, %v2896_v62  ;;  %v3645_v24 = vpop.f32.mrf.mxu1 }
 0x24f   : > { %v3618_v26 = vpop.f32.mrf.mxu0 }
 0x250   : > { %3005 = vst [vmem:[#allocation2] sm:$0xff] %v3001_v21  ;;  %v2994_v29 = vadd.f32 %v3644_v23, %v2945_v22  ;;  %v3619_v30 = vadd.f32 %v3618_v26, %v3617_v20  ;;  %v3646_v31 = vpop.f32.mrf.mxu1 }
 0x251   : > { %v3647_v34 = vadd.f32 %v3646_v31, %v3645_v24 }
 0x252   : > { %v3002_v32 = vadd.f32 %v2994_v29, %v1422_v25  ;;  %v2948_v33 = vadd.f32 %v3619_v30, %v2899_v28 }
 0x254   : > { %3006 = vst [vmem:[#allocation2 + $0x18] sm:$0xff] %v3002_v32  ;;  %v2997_v35 = vadd.f32 %v3647_v34, %v2948_v33  ;;  %3011 = sbr.rel (%p3397_p5) target bundleno = 615 (0x267), region = 104 }
 0x256   : > { %v3003_v36 = vadd.f32 %v2997_v35, %v1423_v27 }
 0x258   : > { %3007 = vst [vmem:[#allocation2 + $0x8] sm:$0xff] %v3003_v36 }
 0x259   : > { %v3012_v37 = vld [vmem:[#allocation2 + $0x10] sm:$0xff]  ;;  %v3013_v38 = vld [vmem:[#allocation2] sm:$0xff] }
 0x25a   : > { %v3398_v39 = vld [vmem:[%s1377_s4] ss:$0 sm:$0xff] }
 0x25b   : > { %v3023_v41 = vadd.f32 %v3398_v39, %v3012_v37  ;;  %v3024_v48 = vadd.f32 %v3398_v39, %v3013_v38  ;;  %v3014_v40 = vld [vmem:[#allocation2 + $0x18] sm:$0xff] }
 0x25c   : > { %v3025_v43 = vadd.f32 %v3398_v39, %v3014_v40 }
 0x25d   : > { %v3027_v50 = vmax.f32 %v3023_v41, 0.0  ;;  %v3028_v51 = vmax.f32 %v3024_v48, 0.0 }
 0x25e   : > { %v3029_v52 = vmax.f32 %v3025_v43, 0.0 }
 0x25f   : > { %v3015_v42 = vld [vmem:[#allocation2 + $0x8] sm:$0xff]  ;;  %v3416_v54 = vpack.c.bf16 %v3028_v51, %v3027_v50 }
 0x260   : > { %v3026_v45 = vadd.f32 %v3398_v39, %v3015_v42 }
 0x261   : > { %3417 = vst [vmem:[%s4689_s25] sm:$0xff] %v3416_v54  }
 0x262   : > { %v3030_v53 = vmax.f32 %v3026_v45, 0.0 }
 0x264   : > { %v3421_v56 = vpack.c.bf16 %v3030_v53, %v3029_v52 }
 0x266   : > { %3423 = vst [vmem:[%s4689_s25 + $0x8] sm:$0xff] %v3421_v56  }
 0x267 PF: > { %3057 = sbr.rel (!%p4068_p12) target bundleno = 623 (0x26f), region = 108  ;;  %s3404_s14 = sshll.u32 (%p4068_p12), %s3939_s19, 2 }
 0x268   : > { %v3079_v44 = vld [vmem:[%s4689_s25] sm:$0xf] (%p4068_p12)  ;;  %v3081_v46 = vld [vmem:[%s4689_s25 + $0x4] sm:$0xf] (%p4068_p12)  ;;  %s3062_s5 = scalar_lea.vmem (%p4068_p12), %s4906_s3, %s3404_s14 }
 0x269   : > { %3080 = vst [vmem:[%s3062_s5] sm:$0xf] (%p4068_p12), %v3079_v44  ;;  %3082 = vst [vmem:[%s3062_s5 + $0x8] sm:$0xf] (%p4068_p12), %v3081_v46 }
 0x26d   : > { %v3083_v47 = vld [vmem:[%s4689_s25 + $0x8] sm:$0xf]  ;;  %v3085_v49 = vld [vmem:[%s4689_s25 + $0xc] sm:$0xf] }
 0x26e   : > { %3084 = vst [vmem:[%s3062_s5 + $0x10] sm:$0xf] %v3083_v47  ;;  %3086 = vst [vmem:[%s3062_s5 + $0x18] sm:$0xf] %v3085_v49 }
 0x26f PF: > { %s13_s22 = sadd.s32 1, %s3951_s22   ;;  %s4916_s10 = sld [smem:[#allocation6_spill]] }
 0x270   : > { %p10_p6 = scmp.ge.s32.totalorder %s13_s22, 8   ;;  %s4917_s12 = smov %s3915_s13 }
 0x271   : > { %s4918_s13 = smov %s4066_s9  ;;  %s4919_s14 = smov %s3923_s15 }
 0x272   : > { %s4920_s15 = smov %s4063_s8  ;;  %s4921_s16 = smov %s3931_s17 }
 0x273   : > { %s4922_s17 = smov %s4049_s30  ;;  %s4923_s18 = smov %s3943_s20 }
 0x274   : > { %s4924_s19 = smov %s3947_s21  ;;  %s4925_s20 = smov %s4928_s24 }
 0x275   : > { %s4926_s21 = smov %s4916_s10  ;;  %12 = sbr.rel (!%p10_p6) target bundleno = 9 (0x9), region = 191 }

// kernel: sfdet_densenet_forward.55
= control target key start
LH: loop header
LB: loop body
LE: loop exit
PB: predicated region body
PF: predicated region fallthrough
CT: control target
= control target key end

     0   :  { %s1870_s12 = smov 0   ;;  %s1872_s13 = smov 0   ;;  %s2090_s0 = inlined_call_operand.vmem [shape: bf16[32,2304], index: 0, kind: input, shape index: {}]   ;;  %s2091_s1 = inlined_call_operand.vmem [shape: bf16[2304,128], index: 1, kind: input, shape index: {}]   ;;  %s2092_s2 = inlined_call_operand.vmem [shape: f32[1,128], index: 2, kind: input, shape index: {}]   ;;  %s2093_s3 = inlined_call_operand.vmem [shape: f32[32,128], index: 3, kind: output, shape index: {}]  }
   0x1   :  { %s1874_s14 = smov 0   ;;  %s1876_s15 = smov 0  }
   0x2   :  { %s1878_s16 = smov 0  }
   0x3 LB: > { %s25_s17 = sadd.s32 1, %s1843_s15  ;;  %p48_p1 = scmp.ne.s32.totalorder %s1835_s13, %s1831_s12  ;;  %s1847_s16 = sphi %s1878_s16, %s13_s16   ;;  %s1843_s15 = sphi %s1876_s15, %s2097_s15   ;;  %s1839_s14 = sphi %s1874_s14, %s2096_s14   ;;  %s1835_s13 = sphi %s1872_s13, %s2095_s13   ;;  %s1831_s12 = sphi %s1870_s12, %s2094_s12  }
   0x4   : > { %p26_p0 = scmp.ge.s32.totalorder %s25_s17, 2  ;;  %p49_p2 = scmp.eq.s32.totalorder %s1847_s16, 0 }
   0x5   : > { %s41_s19 = sadd.s32 1, %s1835_s13  ;;  %p1416_p5 = scmp.ge.s32.totalorder %s1847_s16, 2 }
   0x6   : > { %s2099_s17 = smov (%p26_p0, %s25_s17), 0  ;;  %p50_p3 = por %p49_p2, %p48_p1 }
   0x7   : > { %s37_s18 = ssub.s32 %s1843_s15, %s2099_s17  ;;  %162 = sbr.rel (%p1416_p5) target bundleno = 27 (0x1b), region = 20 }
   0x8   : > { %p39_p4 = scmp.eq.s32.totalorder %s37_s18, 0 }
   0xa   : > { %s1905_s20 = scalar_select %p39_p4, %s1835_s13, %s41_s19  }
   0xc   : > { %165 = sbr.rel (!%p50_p3) target bundleno = 27 (0x1b), region = 24  ;;  %s167_s21 = sand.u32 (%p50_p3), 1, %s1835_s13  }
   0xd   : > { %s1525_s22 = smul.u32 (%p50_p3), 36, %s1843_s15 }
   0xe   : > { %s1668_s23 = smul.u32 (%p50_p3), 144, %s167_s21 }
   0xf   : > { %s1913_s26 = scalar_lea.vmem (%p50_p3), %s2090_s0, %s1525_s22 }
  0x10   : > { %v190_v0 = vld [vmem:[%s1913_s26] sm:$0xff] (%p50_p3)  ;;  %v192_v1 = vld [vmem:[%s1913_s26 + $0x8] sm:$0xff] (%p50_p3)  ;;  %v194_v2 = vld [vmem:[%s1913_s26 + $0x10] sm:$0xff] (%p50_p3)  ;;  %s1918_s27 = scalar_lea.vmem (%p50_p3), [#allocation3], %s1668_s23 }
  0x11   : > { %191 = vst [vmem:[%s1918_s27] sm:$0xff] %v190_v0  ;;  %193 = vst [vmem:[%s1918_s27 + $0x8] sm:$0xff] %v192_v1  ;;  %v196_v3 = vld [vmem:[%s1913_s26 + $0x18] sm:$0xff]  ;;  %v198_v4 = vld [vmem:[%s1913_s26 + $0x48] sm:$0xff] }
  0x12   : > { %195 = vst [vmem:[%s1918_s27 + $0x10] sm:$0xff] %v194_v2  ;;  %v200_v5 = vld [vmem:[%s1913_s26 + $0x50] sm:$0xff]  ;;  %197 = vst [vmem:[%s1918_s27 + $0x18] sm:$0xff] %v196_v3  ;;  %v202_v6 = vld [vmem:[%s1913_s26 + $0x58] sm:$0xff] }
  0x13   : > { %199 = vst [vmem:[%s1918_s27 + $0x24] sm:$0xff] %v198_v4  ;;  %201 = vst [vmem:[%s1918_s27 + $0x2c] sm:$0xff] %v200_v5  ;;  %v204_v7 = vld [vmem:[%s1913_s26 + $0x60] sm:$0xff]  ;;  %v206_v8 = vld [vmem:[%s1913_s26 + $0x90] sm:$0xff] }
  0x14   : > { %203 = vst [vmem:[%s1918_s27 + $0x34] sm:$0xff] %v202_v6  ;;  %205 = vst [vmem:[%s1918_s27 + $0x3c] sm:$0xff] %v204_v7  ;;  %v208_v9 = vld [vmem:[%s1913_s26 + $0x98] sm:$0xff]  ;;  %v210_v10 = vld [vmem:[%s1913_s26 + $0xa0] sm:$0xff] }
  0x15   : > { %207 = vst [vmem:[%s1918_s27 + $0x48] sm:$0xff] %v206_v8  ;;  %v212_v11 = vld [vmem:[%s1913_s26 + $0xa8] sm:$0xff]  ;;  %209 = vst [vmem:[%s1918_s27 + $0x50] sm:$0xff] %v208_v9  ;;  %v214_v12 = vld [vmem:[%s1913_s26 + $0xd8] sm:$0xff] }
  0x16   : > { %211 = vst [vmem:[%s1918_s27 + $0x58] sm:$0xff] %v210_v10  ;;  %213 = vst [vmem:[%s1918_s27 + $0x60] sm:$0xff] %v212_v11  ;;  %v216_v13 = vld [vmem:[%s1913_s26 + $0xe0] sm:$0xff]  ;;  %v218_v14 = vld [vmem:[%s1913_s26 + $0xe8] sm:$0xff] }
  0x17   : > { %215 = vst [vmem:[%s1918_s27 + $0x6c] sm:$0xff] %v214_v12  ;;  %217 = vst [vmem:[%s1918_s27 + $0x74] sm:$0xff] %v216_v13  ;;  %v220_v15 = vld [vmem:[%s1913_s26 + $0xf0] sm:$0xff]  ;;  %v1418_v16 = vld [vmem:[%s1913_s26 + $0x20] sm:$0xf] }
  0x18   : > { %219 = vst [vmem:[%s1918_s27 + $0x7c] sm:$0xff] %v218_v14  ;;  %v1420_v17 = vld [vmem:[%s1913_s26 + $0x68] sm:$0xf]  ;;  %221 = vst [vmem:[%s1918_s27 + $0x84] sm:$0xff] %v220_v15  ;;  %v1422_v18 = vld [vmem:[%s1913_s26 + $0xb0] sm:$0xf] }
  0x19   : > { %1419 = vst [vmem:[%s1918_s27 + $0x20] sm:$0xf] %v1418_v16  ;;  %1421 = vst [vmem:[%s1918_s27 + $0x44] sm:$0xf] %v1420_v17  ;;  %v1424_v19 = vld [vmem:[%s1913_s26 + $0xf8] sm:$0xf] }
  0x1a   : > { %1423 = vst [vmem:[%s1918_s27 + $0x68] sm:$0xf] %v1422_v18  ;;  %1425 = vst [vmem:[%s1918_s27 + $0x8c] sm:$0xf] %v1424_v19 }
  0x1b PF: > { %p1426_p6 = scmp.ge.s32.totalorder %s1847_s16, 1  ;;  %p254_p7 = scmp.lt.s32.totalorder %s1847_s16, 3 }
  0x1d   : > { %p255_p8 = pnand %p1426_p6, %p254_p7 }
  0x1e   : > { %s261_s28 = sand.u32 (!%p255_p8), 1, %s1831_s12   ;;  %s300_s29 = smul.u32 (!%p255_p8), 144, %s1839_s14 }
  0x1f   : > { %258 = sbr.rel (%p255_p8) target bundleno = 356 (0x164), region = 54  ;;  %p1428_p10 = scmp.ne.s32.totalorder (!%p255_p8), %s1839_s14, 0 }
  0x20   : > { %s1669_s30 = smul.u32 (!%p255_p8), 144, %s261_s28  ;;  %p301_p9 = scmp.lt.s32.totalorder (!%p255_p8), %s300_s29, 287 }
  0x22   : > { %s1966_s8 = scalar_lea.vmem (!%p255_p8), [#allocation3], %s1669_s30 }
  0x24   : > { %s2101_s29 = smov (!%p301_p9, %s300_s29), 287  ;;  %325 = sbr.rel (%p1428_p10) target bundleno = 44 (0x2c), region = 62 }
  0x25   : > { %s1427_s4 = sshll.u32 %s2101_s29, 2 }
  0x26   : > { %s1964_s7 = scalar_lea.vmem %s2091_s1, %s1427_s4 }
  0x29   : > { %v1849_v20 = vmov 0.0  }
  0x2a   : > { %326 = vst [vmem:[#allocation2 + $0x10] sm:$0xff] %v1849_v20  ;;  %327 = vst [vmem:[#allocation2] sm:$0xff] %v1849_v20 }
  0x2b   : > { %328 = vst [vmem:[#allocation2 + $0x18] sm:$0xff] %v1849_v20  ;;  %329 = vst [vmem:[#allocation2 + $0x8] sm:$0xff] %v1849_v20 }
  0x2c PF: > { %v1711_v21 = vld [vmem:[%s1964_s7 + $0x78] sm:$0xff]   ;;  %v1715_v25 = vld [vmem:[%s1964_s7 + $0x70] sm:$0xff]   ;;  %v1719_v29 = vld [vmem:[%s1964_s7 + $0x68] sm:$0xff]   ;;  %p1519_p11 = scmp.ne.s32.totalorder %s1839_s14, 1 }
  0x2d   : > { %v1712_v22 = vld [vmem:[%s1964_s7 + $0xf8] sm:$0xff]   ;;  %1526 = vmatprep.subr.bf16.mxu0 %v1711_v21  ;;  %v1716_v26 = vld [vmem:[%s1964_s7 + $0xf0] sm:$0xff]   ;;  %v1720_v30 = vld [vmem:[%s1964_s7 + $0xe8] sm:$0xff]  }
  0x2e   : > { %v1713_v23 = vld [vmem:[%s1964_s7 + $0x38] sm:$0xff]   ;;  %1554 = vmatprep.subr.bf16.mxu1 %v1712_v22  ;;  %v1717_v27 = vld [vmem:[%s1964_s7 + $0x30] sm:$0xff]   ;;  %v1721_v31 = vld [vmem:[%s1964_s7 + $0x28] sm:$0xff]  }
  0x2f   : > { %v1714_v24 = vld [vmem:[%s1964_s7 + $0xb8] sm:$0xff]   ;;  %1527 = vmatpush3.bf16.msra.mxu0 %v1713_v23  ;;  %v1718_v28 = vld [vmem:[%s1964_s7 + $0xb0] sm:$0xff]   ;;  %v1722_v32 = vld [vmem:[%s1964_s7 + $0xa8] sm:$0xff]  }
  0x30   : > { %1555 = vmatpush3.bf16.msra.mxu1 %v1714_v24  ;;  %1528 = vmatprep.subr.bf16.mxu0 %v1715_v25  ;;  %v1723_v33 = vld [vmem:[%s1964_s7 + $0x60] sm:$0xff]   ;;  %v1727_v37 = vld [vmem:[%s1964_s7 + $0x58] sm:$0xff]   ;;  %v1731_v41 = vld [vmem:[%s1964_s7 + $0x50] sm:$0xff]  }
  0x31   : > { %1556 = vmatprep.subr.bf16.mxu1 %v1716_v26  ;;  %v1724_v34 = vld [vmem:[%s1964_s7 + $0xe0] sm:$0xff]   ;;  %v1728_v38 = vld [vmem:[%s1964_s7 + $0xd8] sm:$0xff]   ;;  %v1732_v42 = vld [vmem:[%s1964_s7 + $0xd0] sm:$0xff]  }
  0x32   : > { %v1725_v35 = vld [vmem:[%s1964_s7 + $0x20] sm:$0xff]   ;;  %v1729_v39 = vld [vmem:[%s1964_s7 + $0x18] sm:$0xff]   ;;  %v1733_v43 = vld [vmem:[%s1964_s7 + $0x10] sm:$0xff]  }
  0x33   : > { %1529 = vmatpush3.bf16.msra.mxu0 %v1717_v27  ;;  %v1726_v36 = vld [vmem:[%s1964_s7 + $0xa0] sm:$0xff]   ;;  %v1730_v40 = vld [vmem:[%s1964_s7 + $0x98] sm:$0xff]   ;;  %v1734_v44 = vld [vmem:[%s1964_s7 + $0x90] sm:$0xff]  }
  0x34   : > { %1557 = vmatpush3.bf16.msra.mxu1 %v1718_v28  ;;  %1530 = vmatprep.subr.bf16.mxu0 %v1719_v29  ;;  %v1735_v45 = vld [vmem:[%s1964_s7 + $0x48] sm:$0xff]   ;;  %v1739_v49 = vld [vmem:[%s1964_s7 + $0x40] sm:$0xff]   ;;  %v1749_v57 = vld [vmem:[%s1964_s7 + $0x178] sm:$0xff]  }
  0x35   : > { %1558 = vmatprep.subr.bf16.mxu1 %v1720_v30  ;;  %v1736_v46 = vld [vmem:[%s1964_s7 + $0xc8] sm:$0xff]   ;;  %v1740_v50 = vld [vmem:[%s1964_s7 + $0xc0] sm:$0xff]   ;;  %v1750_v58 = vld [vmem:[%s1964_s7 + $0x138] sm:$0xff]  }
  0x36   : > { %v1737_v47 = vld [vmem:[%s1964_s7 + $0x8] sm:$0xff]   ;;  %v1741_v51 = vld [vmem:[%s1964_s7] sm:$0xff]   ;;  %v1751_v59 = vld [vmem:[%s1964_s7 + $0x1f8] sm:$0xff]  }
  0x37   : > { %1531 = vmatpush3.bf16.msra.mxu0 %v1721_v31  ;;  %v1738_v48 = vld [vmem:[%s1964_s7 + $0x88] sm:$0xff]   ;;  %v1742_v52 = vld [vmem:[%s1964_s7 + $0x80] sm:$0xff]   ;;  %v1752_v60 = vld [vmem:[%s1964_s7 + $0x1b8] sm:$0xff]  }
  0x38   : > { %1559 = vmatpush3.bf16.msra.mxu1 %v1722_v32  ;;  %1532 = vmatprep.subr.bf16.mxu0 %v1723_v33  ;;  %v1743_v53 = vld [vmem:[%s1966_s8] ss:$36 sps:$4 sm:$0xff]   ;;  %v1746_v55 = vld [vmem:[%s1966_s8 + $0x8] ss:$36 sps:$4 sm:$0xff]   ;;  %v1769_v12 = vld [vmem:[%s1966_s8 + $0x54] ss:$36 sps:$4 sm:$0xff]  }
  0x39   : > { %1560 = vmatprep.subr.bf16.mxu1 %v1724_v34  ;;  %v1745_v54 = vld [vmem:[%s1966_s8 + $0x4] ss:$36 sps:$4 sm:$0xff]   ;;  %v1748_v56 = vld [vmem:[%s1966_s8 + $0xc] ss:$36 sps:$4 sm:$0xff]   ;;  %v1788_v29 = vld [vmem:[%s1966_s8 + $0x14] ss:$36 sps:$4 sm:$0xff]  }
  0x3a   : > { %1054 = vmatprep.mubr.bf16.mxu0 %v1745_v54  ;;  %1103 = vmatprep.mubr.bf16.mxu1 %v1748_v56  ;;  %v1753_v61 = vld [vmem:[%s1964_s7 + $0x170] sm:$0xff]   ;;  %v1757_v1 = vld [vmem:[%s1964_s7 + $0x168] sm:$0xff]   ;;  %v1761_v5 = vld [vmem:[%s1964_s7 + $0x160] sm:$0xff]  }
  0x3b   : > { %1533 = vmatpush3.bf16.msra.mxu0 %v1725_v35  ;;  %v1754_v62 = vld [vmem:[%s1964_s7 + $0x130] sm:$0xff]   ;;  %v1758_v2 = vld [vmem:[%s1964_s7 + $0x128] sm:$0xff]   ;;  %v1762_v6 = vld [vmem:[%s1964_s7 + $0x120] sm:$0xff]  }
  0x3c   : > { %1561 = vmatpush3.bf16.msra.mxu1 %v1726_v36  ;;  %1534 = vmatprep.subr.bf16.mxu0 %v1727_v37  ;;  %v1755_v63 = vld [vmem:[%s1964_s7 + $0x1f0] sm:$0xff]   ;;  %v1759_v3 = vld [vmem:[%s1964_s7 + $0x1e8] sm:$0xff]   ;;  %v1763_v7 = vld [vmem:[%s1964_s7 + $0x1e0] sm:$0xff]  }
  0x3d   : > { %1562 = vmatprep.subr.bf16.mxu1 %v1728_v38  ;;  %v1756_v0 = vld [vmem:[%s1964_s7 + $0x1b0] sm:$0xff]   ;;  %v1760_v4 = vld [vmem:[%s1964_s7 + $0x1a8] sm:$0xff]   ;;  %v1764_v8 = vld [vmem:[%s1964_s7 + $0x1a0] sm:$0xff]  }
  0x3e   : > { %v1765_v9 = vld [vmem:[%s1964_s7 + $0x158] sm:$0xff]   ;;  %v1773_v15 = vld [vmem:[%s1966_s8 + $0x50] ss:$36 sps:$4 sm:$0xff]   ;;  %v1779_v21 = vld [vmem:[%s1964_s7 + $0x148] sm:$0xff]  }
  0x3f   : > { %1535 = vmatpush3.bf16.msra.mxu0 %v1729_v39  ;;  %v1766_v10 = vld [vmem:[%s1964_s7 + $0x118] sm:$0xff]   ;;  %v1775_v17 = vld [vmem:[%s1964_s7 + $0x150] sm:$0xff]   ;;  %v1780_v22 = vld [vmem:[%s1964_s7 + $0x108] sm:$0xff]  }
  0x40   : > { %1563 = vmatpush3.bf16.msra.mxu1 %v1730_v40  ;;  %1536 = vmatprep.subr.bf16.mxu0 %v1731_v41  ;;  %v1767_v11 = vld [vmem:[%s1966_s8 + $0x4c] ss:$36 sps:$4 sm:$0xff]   ;;  %v1791_v32 = vld [vmem:[%s1966_s8 + $0x18] ss:$36 sps:$4 sm:$0xff]   ;;  %v1799_v38 = vld [vmem:[%s1966_s8 + $0x64] ss:$36 sps:$4 sm:$0xff]  }
  0x41   : > { %1564 = vmatprep.subr.bf16.mxu1 %v1732_v42  ;;  %v1771_v13 = vld [vmem:[%s1964_s7 + $0x1d8] sm:$0xff]   ;;  %v1776_v18 = vld [vmem:[%s1964_s7 + $0x110] sm:$0xff]   ;;  %v1781_v23 = vld [vmem:[%s1964_s7 + $0x1c8] sm:$0xff]  }
  0x42   : > { %v1772_v14 = vld [vmem:[%s1966_s8 + $0x48] ss:$36 sps:$4 sm:$0xff]   ;;  %v1777_v19 = vld [vmem:[%s1964_s7 + $0x1d0] sm:$0xff]   ;;  %v1783_v25 = vld [vmem:[%s1964_s7 + $0x140] sm:$0xff]  }
  0x43   : > { %1537 = vmatpush3.bf16.msra.mxu0 %v1733_v43  ;;  %v1774_v16 = vld [vmem:[%s1964_s7 + $0x198] sm:$0xff]   ;;  %v1778_v20 = vld [vmem:[%s1964_s7 + $0x190] sm:$0xff]   ;;  %v1782_v24 = vld [vmem:[%s1964_s7 + $0x188] sm:$0xff]  }
  0x44   : > { %1565 = vmatpush3.bf16.msra.mxu1 %v1734_v44  ;;  %1538 = vmatprep.subr.bf16.mxu0 %v1735_v45  ;;  %v1784_v26 = vld [vmem:[%s1964_s7 + $0x100] sm:$0xff]   ;;  %v1790_v31 = vld [vmem:[%s1964_s7 + $0x238] sm:$0xff]   ;;  %v1794_v34 = vld [vmem:[%s1964_s7 + $0x230] sm:$0xff]  }
  0x45   : > { %1566 = vmatprep.subr.bf16.mxu1 %v1736_v46  ;;  %v1785_v27 = vld [vmem:[%s1964_s7 + $0x1c0] sm:$0xff]   ;;  %v1797_v36 = vld [vmem:[%s1966_s8 + $0x58] ss:$36 sps:$4 sm:$0xff]   ;;  %v1804_v43 = vld [vmem:[%s1964_s7 + $0x210] sm:$0xff]  }
  0x46   : > { %v1786_v28 = vld [vmem:[%s1966_s8 + $0x10] ss:$36 sps:$4 sm:$0xff]   ;;  %v1793_v33 = vld [vmem:[%s1966_s8 + $0x1c] ss:$36 sps:$4 sm:$0xff]   ;;  %v1808_v46 = vld [vmem:[%s1966_s8 + $0x68] ss:$36 sps:$4 sm:$0xff]  }
  0x47   : > { %1539 = vmatpush3.bf16.msra.mxu0 %v1737_v47  ;;  %v1789_v30 = vld [vmem:[%s1964_s7 + $0x180] sm:$0xff]   ;;  %v1798_v37 = vld [vmem:[%s1964_s7 + $0x228] sm:$0xff]   ;;  %v1803_v41 = vld [vmem:[%s1964_s7 + $0x218] sm:$0xff]  }
  0x48   : > { %1567 = vmatpush3.bf16.msra.mxu1 %v1738_v48  ;;  %1540 = vmatprep.subr.bf16.mxu0 %v1739_v49  ;;  %v1795_v35 = vld [vmem:[%s1966_s8 + $0x5c] ss:$36 sps:$4 sm:$0xff]  }
  0x49   : > { %1568 = vmatprep.subr.bf16.mxu1 %v1740_v50  ;;  %v1801_v39 = vld [vmem:[%s1966_s8 + $0x60] ss:$36 sps:$4 sm:$0xff]   ;;  %v1805_v44 = vld [vmem:[%s1964_s7 + $0x208] sm:$0xff]  }
  0x4a   : > { %v1802_v40 = vld [vmem:[%s1964_s7 + $0x220] sm:$0xff]  }
  0x4b   : > { %1541 = vmatpush3.bf16.msra.mxu0 %v1741_v51  ;;  %v1807_v42 = vld [vmem:[%s1966_s8 + $0x20] ss:$36 sps:$4 sm:$0xff]  }
  0x4c   : > { %1569 = vmatpush3.bf16.msra.mxu1 %v1742_v52  ;;  %1582 = vmatprep.subr.bf16.mxu0 %v1749_v57  ;;  %v1806_v45 = vld [vmem:[%s1964_s7 + $0x200] sm:$0xff]  }
  0x4d   : > { %1610 = vmatprep.subr.bf16.mxu1 %v1751_v59 }
  0x4e   : > { %1055 = vmatmul.mubr.bf16.vlgmr.msra.gmra.mxu0 %v1743_v53 }
  0x4f   : > { %1104 = vmatmul.mubr.bf16.vlgmr.msra.gmra.mxu1 %v1746_v55  ;;  %1583 = vmatpush3.bf16.msra.mxu0 %v1750_v58 }
  0x50   : > { %1611 = vmatpush3.bf16.msra.mxu1 %v1752_v60  ;;  %1584 = vmatprep.subr.bf16.mxu0 %v1753_v61 }
  0x51   : > { %1612 = vmatprep.subr.bf16.mxu1 %v1755_v63  ;;  %1062 = vmatprep.mubr.bf16.mxu0 %v1767_v11 }
  0x52   : > { %1111 = vmatprep.mubr.bf16.mxu1 %v1769_v12 }
  0x53   : > { %1585 = vmatpush3.bf16.msra.mxu0 %v1754_v62 }
  0x54   : > { %1613 = vmatpush3.bf16.msra.mxu1 %v1756_v0  ;;  %1586 = vmatprep.subr.bf16.mxu0 %v1757_v1 }
  0x55   : > { %1614 = vmatprep.subr.bf16.mxu1 %v1759_v3 }
  0x56   : > { %1063 = vmatmul.mubr.bf16.gmra.mxu0 %v1772_v14 }
  0x57   : > { %1587 = vmatpush3.bf16.msra.mxu0 %v1758_v2  ;;  %1112 = vmatmul.mubr.bf16.gmra.mxu1 %v1773_v15 }
  0x58   : > { %1615 = vmatpush3.bf16.msra.mxu1 %v1760_v4  ;;  %1588 = vmatprep.subr.bf16.mxu0 %v1761_v5 }
  0x59   : > { %1616 = vmatprep.subr.bf16.mxu1 %v1763_v7  ;;  %1152 = vmatprep.mubr.bf16.mxu0 %v1788_v29 }
  0x5a   : > { %1201 = vmatprep.mubr.bf16.mxu1 %v1793_v33 }
  0x5b   : > { %1589 = vmatpush3.bf16.msra.mxu0 %v1762_v6 }
  0x5c   : > { %1617 = vmatpush3.bf16.msra.mxu1 %v1764_v8  ;;  %1590 = vmatprep.subr.bf16.mxu0 %v1765_v9 }
  0x5d   : > { %1618 = vmatprep.subr.bf16.mxu1 %v1771_v13 }
  0x5f   : > { %1591 = vmatpush3.bf16.msra.mxu0 %v1766_v10 }
  0x60   : > { %1619 = vmatpush3.bf16.msra.mxu1 %v1774_v16  ;;  %1592 = vmatprep.subr.bf16.mxu0 %v1775_v17 }
  0x61   : > { %1620 = vmatprep.subr.bf16.mxu1 %v1777_v19 }
  0x63   : > { %1593 = vmatpush3.bf16.msra.mxu0 %v1776_v18 }
  0x64   : > { %1621 = vmatpush3.bf16.msra.mxu1 %v1778_v20  ;;  %1594 = vmatprep.subr.bf16.mxu0 %v1779_v21 }
  0x65   : > { %1622 = vmatprep.subr.bf16.mxu1 %v1781_v23 }
  0x67   : > { %1595 = vmatpush3.bf16.msra.mxu0 %v1780_v22 }
  0x68   : > { %1623 = vmatpush3.bf16.msra.mxu1 %v1782_v24  ;;  %1596 = vmatprep.subr.bf16.mxu0 %v1783_v25 }
  0x69   : > { %1624 = vmatprep.subr.bf16.mxu1 %v1785_v27 }
  0x6b   : > { %1597 = vmatpush3.bf16.msra.mxu0 %v1784_v26 }
  0x6c   : > { %1625 = vmatpush3.bf16.msra.mxu1 %v1789_v30  ;;  %1648 = vmatprep.subr.bf16.mxu0 %v1790_v31 }
  0x6e   : > { %1153 = vmatmul.mubr.bf16.vlgmr.msra.gmra.mxu0 %v1786_v28 }
  0x6f   : > { %1649 = vmatpush3.bf16.msra.mxu0 %v1790_v31  ;;  %1202 = vmatmul.mubr.bf16.vlgmr.msra.gmra.mxu1 %v1791_v32 }
  0x70   : > { %1650 = vmatprep.subr.bf16.mxu0 %v1794_v34  ;;  %1160 = vmatprep.mubr.bf16.mxu0 %v1795_v35 }
  0x71   : > { %1209 = vmatprep.mubr.bf16.mxu1 %v1799_v38  ;;  %v352_v38 = vld [vmem:[#allocation2 + $0x18] sm:$0xff] }
  0x73   : > { %1651 = vmatpush3.bf16.msra.mxu0 %v1794_v34 }
  0x74   : > { %1652 = vmatprep.subr.bf16.mxu0 %v1798_v37 }
  0x76   : > { %1161 = vmatmul.mubr.bf16.gmra.mxu0 %v1797_v36 }
  0x77   : > { %1653 = vmatpush3.bf16.msra.mxu0 %v1798_v37  ;;  %1210 = vmatmul.mubr.bf16.gmra.mxu1 %v1801_v39 }
  0x78   : > { %1654 = vmatprep.subr.bf16.mxu0 %v1802_v40  ;;  %1664 = vmatprep.mubr.bf16.mxu0 %v1807_v42 }
  0x7b   : > { %1655 = vmatpush3.bf16.msra.mxu0 %v1802_v40 }
  0x7c   : > { %1656 = vmatprep.subr.bf16.mxu0 %v1803_v41 }
  0x7f   : > { %1657 = vmatpush3.bf16.msra.mxu0 %v1803_v41 }
  0x80   : > { %1658 = vmatprep.subr.bf16.mxu0 %v1804_v43 }
  0x83   : > { %1659 = vmatpush3.bf16.msra.mxu0 %v1804_v43 }
  0x84   : > { %1660 = vmatprep.subr.bf16.mxu0 %v1805_v44 }
  0x87   : > { %1661 = vmatpush3.bf16.msra.mxu0 %v1805_v44  ;;  %v350_v44 = vld [vmem:[#allocation2 + $0x10] sm:$0xff] }
  0x88   : > { %1662 = vmatprep.subr.bf16.mxu0 %v1806_v45 }
  0x8b   : > { %1663 = vmatpush3.bf16.msra.mxu0 %v1806_v45 }
  0x8e   : > { %1665 = vmatmul.mubr.bf16.vlgmr.msra.gmra.mxu0 %v1808_v46 }
 0x10e   : > { %v1542_v47 = vpop.f32.mrf.mxu0 }
 0x10f   : > { %v1570_v48 = vpop.f32.mrf.mxu1 }
 0x110   : > { %v1543_v49 = vpop.f32.mrf.mxu0 }
 0x111   : > { %v1571_v50 = vpop.f32.mrf.mxu1  ;;  %v1544_v14 = vadd.f32 %v1543_v49, %v1542_v47  ;;  %v353_v49 = vld [vmem:[#allocation2 + $0x8] sm:$0xff] }
 0x112   : > { %v1545_v51 = vpop.f32.mrf.mxu0  ;;  %v1572_v15 = vadd.f32 %v1571_v50, %v1570_v48 }
 0x113   : > { %v1573_v52 = vpop.f32.mrf.mxu1 }
 0x114   : > { %v1546_v53 = vpop.f32.mrf.mxu0  ;;  %v1106_v23 = vadd.f32 %v1572_v15, %v1544_v14 }
 0x115   : > { %v1574_v55 = vpop.f32.mrf.mxu1  ;;  %v1547_v24 = vadd.f32 %v1546_v53, %v1545_v51 }
 0x116   : > { %v1548_v54 = vpop.f32.mrf.mxu0  ;;  %v1575_v25 = vadd.f32 %v1574_v55, %v1573_v52 }
 0x117   : > { %v1576_v56 = vpop.f32.mrf.mxu1 }
 0x118   : > { %v1549_v57 = vpop.f32.mrf.mxu0  ;;  %v1109_v34 = vadd.f32 %v1575_v25, %v1547_v24 }
 0x119   : > { %v1577_v58 = vpop.f32.mrf.mxu1  ;;  %v1550_v12 = vadd.f32 %v1549_v57, %v1548_v54  ;;  %v351_v54 = vld [vmem:[#allocation2] sm:$0xff] }
 0x11a   : > { %v1551_v59 = vpop.f32.mrf.mxu0  ;;  %v1578_v13 = vadd.f32 %v1577_v58, %v1576_v56 }
 0x11b   : > { %v1579_v60 = vpop.f32.mrf.mxu1 }
 0x11c   : > { %v1552_v61 = vpop.f32.mrf.mxu0  ;;  %v1114_v19 = vadd.f32 %v1578_v13, %v1550_v12 }
 0x11d   : > { %v1580_v63 = vpop.f32.mrf.mxu1  ;;  %v1553_v20 = vadd.f32 %v1552_v61, %v1551_v59 }
 0x11e   : > { %v1581_v21 = vadd.f32 %v1580_v63, %v1579_v60 }
 0x120   : > { %v1117_v30 = vadd.f32 %v1581_v21, %v1553_v20 }
 0x12e   : > { %v1598_v62 = vpop.f32.mrf.mxu0 }
 0x12f   : > { %v1626_v1 = vpop.f32.mrf.mxu1 }
 0x130   : > { %v1599_v0 = vpop.f32.mrf.mxu0 }
 0x131   : > { %v1627_v3 = vpop.f32.mrf.mxu1  ;;  %v1600_v22 = vadd.f32 %v1599_v0, %v1598_v62 }
 0x132   : > { %v1601_v2 = vpop.f32.mrf.mxu0  ;;  %v1628_v32 = vadd.f32 %v1627_v3, %v1626_v1 }
 0x133   : > { %v1629_v5 = vpop.f32.mrf.mxu1  ;;  %v1155_v31 = vadd.f32 %v1600_v22, %v1106_v23 }
 0x134   : > { %v1602_v4 = vpop.f32.mrf.mxu0 }
 0x135   : > { %v1630_v7 = vpop.f32.mrf.mxu1  ;;  %v1603_v33 = vadd.f32 %v1602_v4, %v1601_v2  ;;  %v1204_v43 = vadd.f32 %v1628_v32, %v1155_v31 }
 0x136   : > { %v1604_v6 = vpop.f32.mrf.mxu0  ;;  %v1631_v41 = vadd.f32 %v1630_v7, %v1629_v5 }
 0x137   : > { %v1632_v9 = vpop.f32.mrf.mxu1  ;;  %v1158_v40 = vadd.f32 %v1603_v33, %v1109_v34 }
 0x138   : > { %v1605_v8 = vpop.f32.mrf.mxu0 }
 0x139   : > { %v1633_v11 = vpop.f32.mrf.mxu1  ;;  %v1606_v16 = vadd.f32 %v1605_v8, %v1604_v6  ;;  %v1207_v53 = vadd.f32 %v1631_v41, %v1158_v40 }
 0x13a   : > { %v1607_v10 = vpop.f32.mrf.mxu0  ;;  %v1634_v27 = vadd.f32 %v1633_v11, %v1632_v9 }
 0x13b   : > { %v1635_v18 = vpop.f32.mrf.mxu1  ;;  %v1163_v26 = vadd.f32 %v1606_v16, %v1114_v19 }
 0x13c   : > { %v1608_v17 = vpop.f32.mrf.mxu0 }
 0x13d   : > { %v1609_v28 = vadd.f32 %v1608_v17, %v1607_v10  ;;  %v1636_v29 = vpop.f32.mrf.mxu1  ;;  %v1212_v37 = vadd.f32 %v1634_v27, %v1163_v26 }
 0x13e   : > { %v1637_v36 = vadd.f32 %v1636_v29, %v1635_v18 }
 0x13f   : > { %v1166_v35 = vadd.f32 %v1609_v28, %v1117_v30 }
 0x141   : > { %v1215_v48 = vadd.f32 %v1637_v36, %v1166_v35 }
 0x14e   : > { %v1666_v39 = vpop.f32.mrf.mxu0 }
 0x14f   : > { %v1261_v42 = vadd.f32 %v1666_v39, %v1212_v37 }
 0x150   : > { %v1252_v45 = vpop.f32.mrf.mxu0 }
 0x151   : > { %v1269_v46 = vadd.f32 %v1261_v42, %v352_v38  ;;  %v1253_v47 = vadd.f32 %v1252_v45, %v1204_v43 }
 0x152   : > { %v1667_v50 = vpop.f32.mrf.mxu0 }
 0x153   : > { %1273 = vst [vmem:[#allocation2 + $0x18] sm:$0xff] %v1269_v46  ;;  %v1267_v51 = vadd.f32 %v1253_v47, %v350_v44  ;;  %v1264_v52 = vadd.f32 %v1667_v50, %v1215_v48 }
 0x154   : > { %v1255_v55 = vpop.f32.mrf.mxu0 }
 0x155   : > { %1271 = vst [vmem:[#allocation2 + $0x10] sm:$0xff] %v1267_v51  ;;  %v1270_v56 = vadd.f32 %v1264_v52, %v353_v49  ;;  %v1256_v57 = vadd.f32 %v1255_v55, %v1207_v53  ;;  %1278 = sbr.rel (%p1519_p11) target bundleno = 356 (0x164), region = 66 }
 0x157   : > { %1274 = vst [vmem:[#allocation2 + $0x8] sm:$0xff] %v1270_v56  ;;  %v1268_v58 = vadd.f32 %v1256_v57, %v351_v54 }
 0x159   : > { %1272 = vst [vmem:[#allocation2] sm:$0xff] %v1268_v58 }
 0x15a   : > { %v1520_v60 = vld [vmem:[%s2092_s2] ss:$0 sm:$0xff]  ;;  %v1281_v0 = vld [vmem:[#allocation2 + $0x18] sm:$0xff] }
 0x15b   : > { %v1292_v2 = vadd.f32 %v1520_v60, %v1281_v0 }
 0x15c   : > { %v1279_v59 = vld [vmem:[#allocation2 + $0x10] sm:$0xff] }
 0x15d   : > { %v1290_v62 = vadd.f32 %v1520_v60, %v1279_v59  ;;  %1296 = vst [vmem:[%s2093_s3 + $0x10] sm:$0xff] %v1292_v2 }
 0x15e   : > { %v1282_v1 = vld [vmem:[#allocation2 + $0x8] sm:$0xff] }
 0x15f   : > { %v1293_v3 = vadd.f32 %v1520_v60, %v1282_v1  ;;  %1294 = vst [vmem:[%s2093_s3] sm:$0xff] %v1290_v62 }
 0x160   : > { %v1280_v61 = vld [vmem:[#allocation2] sm:$0xff] }
 0x161   : > { %v1291_v63 = vadd.f32 %v1520_v60, %v1280_v61  ;;  %1297 = vst [vmem:[%s2093_s3 + $0x18] sm:$0xff] %v1293_v3 }
 0x163   : > { %1295 = vst [vmem:[%s2093_s3 + $0x8] sm:$0xff] %v1291_v63 }
 0x164 PF: > { %s13_s16 = sadd.s32 1, %s1847_s16   ;;  %s2094_s12 = smov %s1835_s13 }
 0x165   : > { %p10_p12 = scmp.ge.s32.totalorder %s13_s16, 4   ;;  %s2095_s13 = smov %s1905_s20 }
 0x166   : > { %s2096_s14 = smov %s1843_s15  ;;  %s2097_s15 = smov %s2099_s17 }
 0x167   :  { %12 = sbr.rel (!%p10_p12) target bundleno = 3 (0x3), region = 113 }

// kernel: sfdet_densenet_forward.56
= control target key start
LH: loop header
LB: loop body
LE: loop exit
PB: predicated region body
PF: predicated region fallthrough
CT: control target
= control target key end

     0   :  { %s1693_s12 = smov 0   ;;  %s1695_s13 = smov 0   ;;  %s1854_s0 = inlined_call_operand.vmem [shape: bf16[16,2304], index: 0, kind: input, shape index: {}]   ;;  %s1855_s1 = inlined_call_operand.vmem [shape: bf16[2304,128], index: 1, kind: input, shape index: {}]   ;;  %s1856_s2 = inlined_call_operand.vmem [shape: f32[1,128], index: 2, kind: input, shape index: {}]   ;;  %s1857_s3 = inlined_call_operand.vmem [shape: f32[16,128], index: 3, kind: output, shape index: {}]  }
   0x1   :  { %s1697_s14 = smov 0   ;;  %s1699_s15 = smov 0  }
   0x2   :  { %s1701_s16 = smov 0  }
   0x3 LB: > { %s25_s17 = sadd.s32 1, %s1664_s15  ;;  %p48_p1 = scmp.ne.s32.totalorder %s1656_s13, %s1652_s12  ;;  %s1668_s16 = sphi %s1701_s16, %s13_s16   ;;  %s1664_s15 = sphi %s1699_s15, %s1861_s15   ;;  %s1660_s14 = sphi %s1697_s14, %s1860_s14   ;;  %s1656_s13 = sphi %s1695_s13, %s1859_s13   ;;  %s1652_s12 = sphi %s1693_s12, %s1858_s12  }
   0x4   : > { %p26_p0 = scmp.ge.s32.totalorder %s25_s17, 2  ;;  %p49_p2 = scmp.eq.s32.totalorder %s1668_s16, 0 }
   0x5   : > { %s41_s19 = sadd.s32 1, %s1656_s13  ;;  %p1286_p5 = scmp.ge.s32.totalorder %s1668_s16, 2 }
   0x6   : > { %s1863_s17 = smov (%p26_p0, %s25_s17), 0  ;;  %p50_p3 = por %p49_p2, %p48_p1 }
   0x7   : > { %s37_s18 = ssub.s32 %s1664_s15, %s1863_s17  ;;  %162 = sbr.rel (%p1286_p5) target bundleno = 22 (0x16), region = 20 }
   0x8   : > { %p39_p4 = scmp.eq.s32.totalorder %s37_s18, 0 }
   0xa   : > { %s1728_s20 = scalar_select %p39_p4, %s1656_s13, %s41_s19  }
   0xc   : > { %165 = sbr.rel (!%p50_p3) target bundleno = 22 (0x16), region = 24  ;;  %s167_s21 = sand.u32 (%p50_p3), 1, %s1656_s13  }
   0xd   : > { %s1382_s22 = smul.u32 (%p50_p3), 36, %s1664_s15 }
   0xe   : > { %s1500_s23 = smul.u32 (%p50_p3), 72, %s167_s21 }
   0xf   : > { %s175_s26 = scalar_lea.vmem (%p50_p3), %s1854_s0, %s1382_s22 }
  0x10   : > { %v190_v0 = vld [vmem:[%s175_s26] sm:$0xff] (%p50_p3)  ;;  %v192_v1 = vld [vmem:[%s175_s26 + $0x8] sm:$0xff] (%p50_p3)  ;;  %v194_v2 = vld [vmem:[%s175_s26 + $0x10] sm:$0xff] (%p50_p3)  ;;  %s169_s27 = scalar_lea.vmem (%p50_p3), [#allocation3], %s1500_s23 }
  0x11   : > { %191 = vst [vmem:[%s169_s27] sm:$0xff] %v190_v0  ;;  %193 = vst [vmem:[%s169_s27 + $0x8] sm:$0xff] %v192_v1  ;;  %v196_v3 = vld [vmem:[%s175_s26 + $0x18] sm:$0xff]  ;;  %v198_v4 = vld [vmem:[%s175_s26 + $0x48] sm:$0xff] }
  0x12   : > { %195 = vst [vmem:[%s169_s27 + $0x10] sm:$0xff] %v194_v2  ;;  %v200_v5 = vld [vmem:[%s175_s26 + $0x50] sm:$0xff]  ;;  %197 = vst [vmem:[%s169_s27 + $0x18] sm:$0xff] %v196_v3  ;;  %v202_v6 = vld [vmem:[%s175_s26 + $0x58] sm:$0xff] }
  0x13   : > { %199 = vst [vmem:[%s169_s27 + $0x24] sm:$0xff] %v198_v4  ;;  %201 = vst [vmem:[%s169_s27 + $0x2c] sm:$0xff] %v200_v5  ;;  %v204_v7 = vld [vmem:[%s175_s26 + $0x60] sm:$0xff]  ;;  %v1290_v9 = vld [vmem:[%s175_s26 + $0x68] sm:$0xf] }
  0x14   : > { %v1288_v8 = vld [vmem:[%s175_s26 + $0x20] sm:$0xf]  ;;  %203 = vst [vmem:[%s169_s27 + $0x34] sm:$0xff] %v202_v6  ;;  %205 = vst [vmem:[%s169_s27 + $0x3c] sm:$0xff] %v204_v7 }
  0x15   : > { %1289 = vst [vmem:[%s169_s27 + $0x20] sm:$0xf] %v1288_v8  ;;  %1291 = vst [vmem:[%s169_s27 + $0x44] sm:$0xf] %v1290_v9 }
  0x16 PF: > { %p1292_p6 = scmp.ge.s32.totalorder %s1668_s16, 1  ;;  %p234_p7 = scmp.lt.s32.totalorder %s1668_s16, 3 }
  0x18   : > { %p235_p8 = pnand %p1292_p6, %p234_p7 }
  0x19   : > { %s241_s28 = sand.u32 (!%p235_p8), 1, %s1652_s12   ;;  %s280_s29 = smul.u32 (!%p235_p8), 144, %s1660_s14 }
  0x1a   : > { %238 = sbr.rel (%p235_p8) target bundleno = 348 (0x15c), region = 54  ;;  %p1294_p10 = scmp.ne.s32.totalorder (!%p235_p8), %s1660_s14, 0 }
  0x1b   : > { %s1501_s30 = smul.u32 (!%p235_p8), 72, %s241_s28  ;;  %p281_p9 = scmp.lt.s32.totalorder (!%p235_p8), %s280_s29, 287 }
  0x1d   : > { %s1745_s8 = scalar_lea.vmem (!%p235_p8), [#allocation3], %s1501_s30 }
  0x1f   : > { %s1865_s29 = smov (!%p281_p9, %s280_s29), 287  ;;  %305 = sbr.rel (%p1294_p10) target bundleno = 38 (0x26), region = 62 }
  0x20   : > { %s1293_s4 = sshll.u32 %s1865_s29, 2 }
  0x21   : > { %s1743_s7 = scalar_lea.vmem %s1855_s1, %s1293_s4 }
  0x24   : > { %v1670_v10 = vmov 0.0  }
  0x25   : > { %306 = vst [vmem:[#allocation2] sm:$0xff] %v1670_v10  ;;  %307 = vst [vmem:[#allocation2 + $0x8] sm:$0xff] %v1670_v10 }
  0x26 PF: > { %v1545_v11 = vld [vmem:[%s1743_s7 + $0x78] sm:$0xff]   ;;  %v1549_v15 = vld [vmem:[%s1743_s7 + $0x70] sm:$0xff]   ;;  %v1553_v19 = vld [vmem:[%s1743_s7 + $0x68] sm:$0xff]   ;;  %vm1672_vm0 = vmmov 0   ;;  %p1376_p11 = scmp.ne.s32.totalorder %s1660_s14, 1 }
  0x27   : > { %v1546_v12 = vld [vmem:[%s1743_s7 + $0xf8] sm:$0xff]   ;;  %1383 = vmatprep.subr.bf16.mxu0 %v1545_v11  ;;  %v1550_v16 = vld [vmem:[%s1743_s7 + $0xf0] sm:$0xff]   ;;  %v1554_v20 = vld [vmem:[%s1743_s7 + $0xe8] sm:$0xff]  }
  0x28   : > { %v1547_v13 = vld [vmem:[%s1743_s7 + $0x38] sm:$0xff]   ;;  %1405 = vmatprep.subr.bf16.mxu1 %v1546_v12  ;;  %v1551_v17 = vld [vmem:[%s1743_s7 + $0x30] sm:$0xff]   ;;  %v1555_v21 = vld [vmem:[%s1743_s7 + $0x28] sm:$0xff]  }
  0x29   : > { %v1548_v14 = vld [vmem:[%s1743_s7 + $0xb8] sm:$0xff]   ;;  %1384 = vmatpush3.bf16.msra.mxu0 %v1547_v13  ;;  %v1552_v18 = vld [vmem:[%s1743_s7 + $0xb0] sm:$0xff]   ;;  %v1556_v22 = vld [vmem:[%s1743_s7 + $0xa8] sm:$0xff]  }
  0x2a   : > { %1406 = vmatpush3.bf16.msra.mxu1 %v1548_v14  ;;  %1385 = vmatprep.subr.bf16.mxu0 %v1549_v15  ;;  %v1557_v23 = vld [vmem:[%s1743_s7 + $0x60] sm:$0xff]   ;;  %v1561_v27 = vld [vmem:[%s1743_s7 + $0x58] sm:$0xff]   ;;  %v1565_v31 = vld [vmem:[%s1743_s7 + $0x50] sm:$0xff]  }
  0x2b   : > { %1407 = vmatprep.subr.bf16.mxu1 %v1550_v16  ;;  %v1558_v24 = vld [vmem:[%s1743_s7 + $0xe0] sm:$0xff]   ;;  %v1562_v28 = vld [vmem:[%s1743_s7 + $0xd8] sm:$0xff]   ;;  %v1566_v32 = vld [vmem:[%s1743_s7 + $0xd0] sm:$0xff]  }
  0x2c   : > { %v1559_v25 = vld [vmem:[%s1743_s7 + $0x20] sm:$0xff]   ;;  %v1563_v29 = vld [vmem:[%s1743_s7 + $0x18] sm:$0xff]   ;;  %v1567_v33 = vld [vmem:[%s1743_s7 + $0x10] sm:$0xff]  }
  0x2d   : > { %1386 = vmatpush3.bf16.msra.mxu0 %v1551_v17  ;;  %v1560_v26 = vld [vmem:[%s1743_s7 + $0xa0] sm:$0xff]   ;;  %v1564_v30 = vld [vmem:[%s1743_s7 + $0x98] sm:$0xff]   ;;  %v1568_v34 = vld [vmem:[%s1743_s7 + $0x90] sm:$0xff]   ;;  %v1671_v17 = vmov 0.0  }
  0x2e   : > { %1408 = vmatpush3.bf16.msra.mxu1 %v1552_v18  ;;  %1387 = vmatprep.subr.bf16.mxu0 %v1553_v19  ;;  %v1569_v35 = vld [vmem:[%s1743_s7 + $0x48] sm:$0xff]   ;;  %v1573_v39 = vld [vmem:[%s1743_s7 + $0x40] sm:$0xff]   ;;  %v1577_v43 = vld [vmem:[%s1745_s8] ss:$36 sps:$4 sm:$0xff]  }
  0x2f   : > { %1409 = vmatprep.subr.bf16.mxu1 %v1554_v20  ;;  %v1570_v36 = vld [vmem:[%s1743_s7 + $0xc8] sm:$0xff]   ;;  %v1574_v40 = vld [vmem:[%s1743_s7 + $0xc0] sm:$0xff]   ;;  %v1583_v47 = vld [vmem:[%s1743_s7 + $0x178] sm:$0xff]  }
  0x30   : > { %v1571_v37 = vld [vmem:[%s1743_s7 + $0x8] sm:$0xff]   ;;  %v1575_v41 = vld [vmem:[%s1743_s7] sm:$0xff]   ;;  %v1584_v48 = vld [vmem:[%s1743_s7 + $0x138] sm:$0xff]  }
  0x31   : > { %1388 = vmatpush3.bf16.msra.mxu0 %v1555_v21  ;;  %v1572_v38 = vld [vmem:[%s1743_s7 + $0x88] sm:$0xff]   ;;  %v1576_v42 = vld [vmem:[%s1743_s7 + $0x80] sm:$0xff]   ;;  %v1585_v49 = vld [vmem:[%s1743_s7 + $0x1f8] sm:$0xff]  }
  0x32   : > { %1410 = vmatpush3.bf16.msra.mxu1 %v1556_v22  ;;  %1389 = vmatprep.subr.bf16.mxu0 %v1557_v23  ;;  %v1579_v44 = vld [vmem:[%s1745_s8 + $0x4] ss:$36 sps:$4 sm:$0xff]   ;;  %v1582_v46 = vld [vmem:[%s1745_s8 + $0xc] ss:$36 sps:$4 sm:$0xff]   ;;  %v1616_v15 = vld [vmem:[%s1745_s8 + $0x14] ss:$36 sps:$4 sm:$0xff]  }
  0x33   : > { %1411 = vmatprep.subr.bf16.mxu1 %v1558_v24  ;;  %v1580_v45 = vld [vmem:[%s1745_s8 + $0x8] ss:$36 sps:$4 sm:$0xff]   ;;  %974 = vmatprep.mubr.bf16.mxu0 %v1579_v44  ;;  %v1587_v51 = vld [vmem:[%s1743_s7 + $0x170] sm:$0xff]   ;;  %v1591_v55 = vld [vmem:[%s1743_s7 + $0x168] sm:$0xff]  }
  0x34   : > { %1015 = vmatprep.mubr.bf16.mxu1 %v1582_v46  ;;  %v1586_v50 = vld [vmem:[%s1743_s7 + $0x1b8] sm:$0xff]   ;;  %v1588_v52 = vld [vmem:[%s1743_s7 + $0x130] sm:$0xff]   ;;  %v1592_v56 = vld [vmem:[%s1743_s7 + $0x128] sm:$0xff]  }
  0x35   : > { %1390 = vmatpush3.bf16.msra.mxu0 %v1559_v25  ;;  %v1589_v53 = vld [vmem:[%s1743_s7 + $0x1f0] sm:$0xff]   ;;  %v1593_v57 = vld [vmem:[%s1743_s7 + $0x1e8] sm:$0xff]   ;;  %v1595_v59 = vld [vmem:[%s1743_s7 + $0x160] sm:$0xff]  }
  0x36   : > { %1412 = vmatpush3.bf16.msra.mxu1 %v1560_v26  ;;  %1391 = vmatprep.subr.bf16.mxu0 %v1561_v27  ;;  %v1590_v54 = vld [vmem:[%s1743_s7 + $0x1b0] sm:$0xff]   ;;  %v1594_v58 = vld [vmem:[%s1743_s7 + $0x1a8] sm:$0xff]   ;;  %v1596_v60 = vld [vmem:[%s1743_s7 + $0x120] sm:$0xff]  }
  0x37   : > { %1413 = vmatprep.subr.bf16.mxu1 %v1562_v28  ;;  %v1597_v61 = vld [vmem:[%s1743_s7 + $0x1e0] sm:$0xff]   ;;  %v1599_v63 = vld [vmem:[%s1743_s7 + $0x158] sm:$0xff]   ;;  %v1603_v3 = vld [vmem:[%s1743_s7 + $0x150] sm:$0xff]  }
  0x38   : > { %v1598_v62 = vld [vmem:[%s1743_s7 + $0x1a0] sm:$0xff]   ;;  %v1600_v0 = vld [vmem:[%s1743_s7 + $0x118] sm:$0xff]   ;;  %v1604_v4 = vld [vmem:[%s1743_s7 + $0x110] sm:$0xff]  }
  0x39   : > { %1392 = vmatpush3.bf16.msra.mxu0 %v1563_v29  ;;  %v1601_v1 = vld [vmem:[%s1743_s7 + $0x1d8] sm:$0xff]   ;;  %v1605_v5 = vld [vmem:[%s1743_s7 + $0x1d0] sm:$0xff]   ;;  %v1607_v7 = vld [vmem:[%s1743_s7 + $0x148] sm:$0xff]  }
  0x3a   : > { %1414 = vmatpush3.bf16.msra.mxu1 %v1564_v30  ;;  %1393 = vmatprep.subr.bf16.mxu0 %v1565_v31  ;;  %v1602_v2 = vld [vmem:[%s1743_s7 + $0x198] sm:$0xff]   ;;  %v1606_v6 = vld [vmem:[%s1743_s7 + $0x190] sm:$0xff]   ;;  %v1608_v8 = vld [vmem:[%s1743_s7 + $0x108] sm:$0xff]  }
  0x3b   : > { %1415 = vmatprep.subr.bf16.mxu1 %v1566_v32  ;;  %v1609_v9 = vld [vmem:[%s1743_s7 + $0x1c8] sm:$0xff]   ;;  %v1611_v11 = vld [vmem:[%s1743_s7 + $0x140] sm:$0xff]   ;;  %v1621_v20 = vld [vmem:[%s1743_s7 + $0x238] sm:$0xff]  }
  0x3c   : > { %v1610_v10 = vld [vmem:[%s1743_s7 + $0x188] sm:$0xff]   ;;  %v1612_v12 = vld [vmem:[%s1743_s7 + $0x100] sm:$0xff]   ;;  %v1622_v21 = vld [vmem:[%s1743_s7 + $0x230] sm:$0xff]  }
  0x3d   : > { %1394 = vmatpush3.bf16.msra.mxu0 %v1567_v33  ;;  %v1613_v13 = vld [vmem:[%s1743_s7 + $0x1c0] sm:$0xff]   ;;  %v1618_v18 = vld [vmem:[%s1745_s8 + $0x18] ss:$36 sps:$4 sm:$0xff]   ;;  %v1625_v24 = vld [vmem:[%s1743_s7 + $0x218] sm:$0xff]  }
  0x3e   : > { %1416 = vmatpush3.bf16.msra.mxu1 %v1568_v34  ;;  %1395 = vmatprep.subr.bf16.mxu0 %v1569_v35  ;;  %v1614_v14 = vld [vmem:[%s1745_s8 + $0x10] ss:$36 sps:$4 sm:$0xff]   ;;  %v1620_v19 = vld [vmem:[%s1745_s8 + $0x1c] ss:$36 sps:$4 sm:$0xff]  }
  0x3f   : > { %1417 = vmatprep.subr.bf16.mxu1 %v1570_v36  ;;  %v1617_v16 = vld [vmem:[%s1743_s7 + $0x180] sm:$0xff]   ;;  %v1623_v22 = vld [vmem:[%s1743_s7 + $0x228] sm:$0xff]   ;;  %v1626_v25 = vld [vmem:[%s1743_s7 + $0x210] sm:$0xff]  }
  0x40   : > { %v1624_v23 = vld [vmem:[%s1743_s7 + $0x220] sm:$0xff]   ;;  %v1627_v26 = vld [vmem:[%s1743_s7 + $0x208] sm:$0xff]   ;;  %v1629_v28 = vld [vmem:[%s1745_s8 + $0x20] ss:$36 sps:$4 sm:$0xff]  }
  0x41   : > { %1396 = vmatpush3.bf16.msra.mxu0 %v1571_v37  ;;  %v1628_v27 = vld [vmem:[%s1743_s7 + $0x200] sm:$0xff]  }
  0x42   : > { %1418 = vmatpush3.bf16.msra.mxu1 %v1572_v38  ;;  %1397 = vmatprep.subr.bf16.mxu0 %v1573_v39 }
  0x43   : > { %1419 = vmatprep.subr.bf16.mxu1 %v1574_v40 }
  0x45   : > { %1398 = vmatpush3.bf16.msra.mxu0 %v1575_v41 }
  0x46   : > { %1420 = vmatpush3.bf16.msra.mxu1 %v1576_v42  ;;  %1427 = vmatprep.subr.bf16.mxu0 %v1583_v47 }
  0x47   : > { %1449 = vmatprep.subr.bf16.mxu1 %v1585_v49 }
  0x48   : > { %975 = vmatmul.mubr.bf16.vlgmr.msra.gmra.mxu0 %v1577_v43 }
  0x49   : > { %1016 = vmatmul.mubr.bf16.vlgmr.msra.gmra.mxu1 %v1580_v45  ;;  %1428 = vmatpush3.bf16.msra.mxu0 %v1584_v48 }
  0x4a   : > { %1450 = vmatpush3.bf16.msra.mxu1 %v1586_v50  ;;  %1429 = vmatprep.subr.bf16.mxu0 %v1587_v51 }
  0x4b   : > { %1451 = vmatprep.subr.bf16.mxu1 %v1589_v53  ;;  %1056 = vmatprep.mubr.bf16.mxu0 %v1616_v15 }
  0x4c   : > { %1097 = vmatprep.mubr.bf16.mxu1 %v1620_v19 }
  0x4d   : > { %1430 = vmatpush3.bf16.msra.mxu0 %v1588_v52 }
  0x4e   : > { %1452 = vmatpush3.bf16.msra.mxu1 %v1590_v54  ;;  %1431 = vmatprep.subr.bf16.mxu0 %v1591_v55 }
  0x4f   : > { %1453 = vmatprep.subr.bf16.mxu1 %v1593_v57 }
  0x51   : > { %1432 = vmatpush3.bf16.msra.mxu0 %v1592_v56 }
  0x52   : > { %1454 = vmatpush3.bf16.msra.mxu1 %v1594_v58  ;;  %1433 = vmatprep.subr.bf16.mxu0 %v1595_v59  ;;  %v318_v58 = vld [vmem:[#allocation2] sm:$0xff] }
  0x53   : > { %1455 = vmatprep.subr.bf16.mxu1 %v1597_v61 }
  0x55   : > { %1434 = vmatpush3.bf16.msra.mxu0 %v1596_v60 }
  0x56   : > { %1456 = vmatpush3.bf16.msra.mxu1 %v1598_v62  ;;  %1435 = vmatprep.subr.bf16.mxu0 %v1599_v63 }
  0x57   : > { %1457 = vmatprep.subr.bf16.mxu1 %v1601_v1 }
  0x59   : > { %1436 = vmatpush3.bf16.msra.mxu0 %v1600_v0  ;;  %v319_v0 = vld [vmem:[#allocation2 + $0x8] sm:$0xff] }
  0x5a   : > { %1458 = vmatpush3.bf16.msra.mxu1 %v1602_v2  ;;  %1437 = vmatprep.subr.bf16.mxu0 %v1603_v3 }
  0x5b   : > { %1459 = vmatprep.subr.bf16.mxu1 %v1605_v5 }
  0x5d   : > { %1438 = vmatpush3.bf16.msra.mxu0 %v1604_v4 }
  0x5e   : > { %1460 = vmatpush3.bf16.msra.mxu1 %v1606_v6  ;;  %1439 = vmatprep.subr.bf16.mxu0 %v1607_v7 }
  0x5f   : > { %1461 = vmatprep.subr.bf16.mxu1 %v1609_v9 }
  0x61   : > { %1440 = vmatpush3.bf16.msra.mxu0 %v1608_v8 }
  0x62   : > { %1462 = vmatpush3.bf16.msra.mxu1 %v1610_v10  ;;  %1441 = vmatprep.subr.bf16.mxu0 %v1611_v11 }
  0x63   : > { %1463 = vmatprep.subr.bf16.mxu1 %v1613_v13 }
  0x65   : > { %1442 = vmatpush3.bf16.msra.mxu0 %v1612_v12 }
  0x66   : > { %1480 = vmatprep.subr.bf16.mxu0 %v1671_v17  ;;  %1464 = vmatpush3.bf16.msra.mxu1 %v1617_v16 }
  0x68   : > { %1057 = vmatmul.mubr.bf16.vlgmr.msra.gmra.mxu0 %v1614_v14 }
  0x69   : > { %1496 = vmatprep.mubr.msk.bf16.mxu0 %vm1672_vm0, %v1671_v17  ;;  %1481 = vmatpush3.bf16.msra.mxu0 %v1621_v20 }
  0x6a   : > { %1098 = vmatmul.mubr.bf16.vlgmr.msra.gmra.mxu1 %v1618_v18  ;;  %1482 = vmatprep.subr.bf16.mxu0 %v1671_v17 }
  0x6d   : > { %1483 = vmatpush3.bf16.msra.mxu0 %v1622_v21 }
  0x6e   : > { %1484 = vmatprep.subr.bf16.mxu0 %v1671_v17 }
  0x71   : > { %1485 = vmatpush3.bf16.msra.mxu0 %v1623_v22 }
  0x72   : > { %1486 = vmatprep.subr.bf16.mxu0 %v1671_v17 }
  0x75   : > { %1487 = vmatpush3.bf16.msra.mxu0 %v1624_v23 }
  0x76   : > { %1488 = vmatprep.subr.bf16.mxu0 %v1671_v17 }
  0x79   : > { %1489 = vmatpush3.bf16.msra.mxu0 %v1625_v24 }
  0x7a   : > { %1490 = vmatprep.subr.bf16.mxu0 %v1671_v17 }
  0x7d   : > { %1491 = vmatpush3.bf16.msra.mxu0 %v1626_v25 }
  0x7e   : > { %1492 = vmatprep.subr.bf16.mxu0 %v1671_v17 }
  0x81   : > { %1493 = vmatpush3.bf16.msra.mxu0 %v1627_v26 }
  0x82   : > { %1494 = vmatprep.subr.bf16.mxu0 %v1671_v17 }
  0x85   : > { %1495 = vmatpush3.bf16.msra.mxu0 %v1628_v27 }
  0x88   : > { %1497 = vmatmul.mubr.bf16.vlgmr.msra.gmra.mxu0 %v1629_v28 }
 0x108   : > { %v1399_v29 = vpop.f32.mrf.mxu0 }
 0x109   : > { %v1421_v30 = vpop.f32.mrf.mxu1 }
 0x10a   : > { %v1400_v31 = vpop.f32.mrf.mxu0 }
 0x10b   : > { %v1422_v32 = vpop.f32.mrf.mxu1  ;;  %v1401_v42 = vadd.f32 %v1400_v31, %v1399_v29 }
 0x10c   : > { %v1402_v33 = vpop.f32.mrf.mxu0  ;;  %v1423_v43 = vadd.f32 %v1422_v32, %v1421_v30 }
 0x10d   : > { %v1424_v34 = vpop.f32.mrf.mxu1 }
 0x10e   : > { %v1403_v35 = vpop.f32.mrf.mxu0  ;;  %v1018_v47 = vadd.f32 %v1423_v43, %v1401_v42 }
 0x10f   : > { %v1425_v37 = vpop.f32.mrf.mxu1  ;;  %v1404_v48 = vadd.f32 %v1403_v35, %v1402_v33 }
 0x110   : > { %v1426_v49 = vadd.f32 %v1425_v37, %v1424_v34 }
 0x112   : > { %v1021_v54 = vadd.f32 %v1426_v49, %v1404_v48 }
 0x128   : > { %v1443_v36 = vpop.f32.mrf.mxu0 }
 0x12a   : > { %v1444_v38 = vpop.f32.mrf.mxu0  ;;  %v1465_v39 = vpop.f32.mrf.mxu1 }
 0x12b   : > { %v1445_v44 = vadd.f32 %v1444_v38, %v1443_v36 }
 0x12c   : > { %v1446_v40 = vpop.f32.mrf.mxu0  ;;  %v1466_v41 = vpop.f32.mrf.mxu1 }
 0x12d   : > { %v1059_v50 = vadd.f32 %v1445_v44, %v1018_v47  ;;  %v1467_v51 = vadd.f32 %v1466_v41, %v1465_v39 }
 0x12e   : > { %v1447_v45 = vpop.f32.mrf.mxu0  ;;  %v1468_v46 = vpop.f32.mrf.mxu1 }
 0x12f   : > { %v1448_v52 = vadd.f32 %v1447_v45, %v1446_v40  ;;  %v1100_v57 = vadd.f32 %v1467_v51, %v1059_v50 }
 0x130   : > { %v1469_v53 = vpop.f32.mrf.mxu1 }
 0x131   : > { %v1062_v55 = vadd.f32 %v1448_v52, %v1021_v54  ;;  %v1470_v56 = vadd.f32 %v1469_v53, %v1468_v46 }
 0x133   : > { %v1103_v63 = vadd.f32 %v1470_v56, %v1062_v55 }
 0x148   : > { %v1140_v59 = vpop.f32.mrf.mxu0 }
 0x149   : > { %v1141_v60 = vadd.f32 %v1140_v59, %v1100_v57 }
 0x14a   : > { %v1498_v61 = vpop.f32.mrf.mxu0 }
 0x14b   : > { %v1147_v62 = vadd.f32 %v1141_v60, %v318_v58 }
 0x14c   : > { %v1143_v1 = vpop.f32.mrf.mxu0 }
 0x14d   : > { %1149 = vst [vmem:[#allocation2] sm:$0xff] %v1147_v62  ;;  %v1144_v2 = vadd.f32 %v1143_v1, %v1103_v63  ;;  %1154 = sbr.rel (%p1376_p11) target bundleno = 348 (0x15c), region = 66 }
 0x14e   : > { %v1499_v3 = vpop.f32.mrf.mxu0 }
 0x14f   : > { %v1148_v4 = vadd.f32 %v1144_v2, %v319_v0 }
 0x151   : > { %1150 = vst [vmem:[#allocation2 + $0x8] sm:$0xff] %v1148_v4 }
 0x152   : > { %v1377_v6 = vld [vmem:[%s1856_s2] ss:$0 sm:$0xff] }
 0x154   : > { %v1155_v5 = vld [vmem:[#allocation2] sm:$0xff] }
 0x155   : > { %v1164_v8 = vadd.f32 %v1377_v6, %v1155_v5 }
 0x157   : > { %1166 = vst [vmem:[%s1857_s3] sm:$0xff] %v1164_v8 }
 0x158   : > { %v1156_v7 = vld [vmem:[#allocation2 + $0x8] sm:$0xff] }
 0x159   : > { %v1165_v9 = vadd.f32 %v1377_v6, %v1156_v7 }
 0x15b   : > { %1167 = vst [vmem:[%s1857_s3 + $0x8] sm:$0xff] %v1165_v9 }
 0x15c PF: > { %s13_s16 = sadd.s32 1, %s1668_s16   ;;  %s1858_s12 = smov %s1656_s13 }
 0x15d   : > { %p10_p12 = scmp.ge.s32.totalorder %s13_s16, 4   ;;  %s1859_s13 = smov %s1728_s20 }
 0x15e   : > { %s1860_s14 = smov %s1664_s15  ;;  %s1861_s15 = smov %s1863_s17 }
 0x15f   :  { %12 = sbr.rel (!%p10_p12) target bundleno = 3 (0x3), region = 113 }

// kernel: sfdet_densenet_forward.53
= control target key start
LH: loop header
LB: loop body
LE: loop exit
PB: predicated region body
PF: predicated region fallthrough
CT: control target
= control target key end

     0   :  { %s3015_s0 = inlined_call_operand.vmem [shape: bf16[16,2304], index: 0, kind: input, shape index: {}]   ;;  %s3016_s1 = inlined_call_operand.vmem [shape: bf16[2304,256], index: 1, kind: input, shape index: {}]   ;;  %s3017_s2 = inlined_call_operand.vmem [shape: f32[1,256], index: 2, kind: input, shape index: {}]   ;;  %s3018_s3 = inlined_call_operand.vmem [shape: bf16[16,256], index: 3, kind: output, shape index: {}]  }
   0x1   :  { %3020 = sst [smem:[#allocation7_spill]] %s3015_s0 }
   0x2   :  { %3021 = sst [smem:[#allocation8_spill]] %s3016_s1 }
   0x3   :  { %s2460_s12 = smov 0   ;;  %s2462_s13 = smov 0  }
   0x4   :  { %s2464_s14 = smov 0   ;;  %s2466_s15 = smov 0  }
   0x5   :  { %s2468_s16 = smov 0   ;;  %s2470_s17 = smov 0  }
   0x6   :  { %s2472_s18 = smov 0   ;;  %s2474_s19 = smov 0  }
   0x7   :  { %s2476_s20 = smov 0   ;;  %s2478_s21 = smov 0  }
   0x8   :  { %s2480_s22 = smov 0  }
   0x9 LB: > { %s1940_s23 = sadd.s32 4294967295, %s2435_s22   ;;  %s25_s24 = sadd.s32 1, %s2427_s20  ;;  %s2435_s22 = sphi %s2480_s22, %s13_s22   ;;  %s2431_s21 = sphi %s2478_s21, %s3038_s21   ;;  %s2427_s20 = sphi %s2476_s20, %s3037_s20   ;;  %s2423_s19 = sphi %s2474_s19, %s3036_s19   ;;  %s2419_s18 = sphi %s2472_s18, %s3035_s18   ;;  %s2415_s17 = sphi %s2470_s17, %s3034_s17   ;;  %s2411_s16 = sphi %s2468_s16, %s3033_s16   ;;  %s2407_s15 = sphi %s2466_s15, %s3032_s15   ;;  %s2403_s14 = sphi %s2464_s14, %s3031_s14   ;;  %s2399_s13 = sphi %s2462_s13, %s3030_s13   ;;  %s2395_s12 = sphi %s2460_s12, %s3029_s12  }
   0xa   : > { %p26_p0 = scmp.ge.s32.totalorder %s25_s24, 2  ;;  %s28_s25 = sadd.s32 1, %s2431_s21 }
   0xb   : > { %s41_s26 = sadd.s32 1, %s2415_s17  ;;  %p48_p1 = scmp.ne.s32.totalorder %s2415_s17, %s2411_s16 }
   0xc   : > { %s3040_s24 = smov (%p26_p0, %s25_s24), 0  ;;  %s3042_s25 = smov (!%p26_p0, %s28_s25), %s2431_s21 }
   0xd   : > { %s37_s27 = ssub.s32 %s2427_s20, %s3040_s24  ;;  %p49_p2 = scmp.eq.s32.totalorder %s2435_s22, 0 }
   0xe   : > { %p30_p3 = scmp.ge.s32.totalorder %s3042_s25, 2  ;;  %p39_p4 = scmp.eq.s32.totalorder %s37_s27, 0 }
   0xf   : > { %p2527_p5 = por %p49_p2, %p48_p1  ;;  %s69_s29 = sadd.s32 1, %s2407_s15 }
  0x10   : > { %s3044_s25 = smov (%p30_p3, %s3042_s25), 0  ;;  %p76_p6 = scmp.ne.s32.totalorder %s2407_s15, %s2403_s14 }
  0x11   : > { %3023 = sst [smem:[#allocation6_spill]] %s3044_s25  ;;  %s65_s4 = ssub.s32 %s2431_s21, %s3044_s25 }
  0x12   : > { %s2535_s30 = scalar_select %p39_p4, %s2415_s17, %s41_s26  }
  0x13   : > { %s66_s5 = sor.u32 %s65_s4, %s37_s27  ;;  %p121_p7 = scmp.eq.s32.totalorder %s65_s4, 0 }
  0x14   : > { %p67_p8 = scmp.eq.s32.totalorder %s66_s5, 0  ;;  %p2541_p9 = por %p76_p6, %p49_p2 }
  0x15   : > { %s123_s7 = sadd.s32 1, %s2399_s13  ;;  %p133_p10 = scmp.ne.s32.totalorder %s2399_s13, %s2395_s12 }
  0x16   : > { %s2549_s8 = scalar_select %p67_p8, %s2407_s15, %s69_s29  }
  0x17   : > { %s2552_s9 = scalar_select %p121_p7, %s2399_s13, %s123_s7  }
  0x18   : > { %p134_p11 = scmp.eq.s32.totalorder %s1940_s23, 3  ;;  %p1943_p13 = scmp.ge.s32.totalorder %s2435_s22, 4 }
  0x1a   : > { %p2554_p12 = por %p134_p11, %p133_p10  ;;  %156 = sbr.rel (%p1943_p13) target bundleno = 150 (0x96), region = 16 }
  0x1f   : > { %159 = sbr.rel (!%p2527_p5) target bundleno = 45 (0x2d), region = 20  ;;  %s161_s11 = sand.u32 (%p2527_p5), 1, %s2415_s17  }
  0x20   : > { %s2043_s26 = smul.u32 (%p2527_p5), 36, %s2427_s20  ;;  %s3026_s0 = sld [smem:[#allocation7_spill]] (%p2527_p5) }
  0x21   : > { %s2169_s27 = smul.u32 (%p2527_p5), 72, %s161_s11 }
  0x23   : > { %s163_s23 = scalar_lea.vmem (%p2527_p5), [#allocation3], %s2169_s27 }
  0x26   : > { %s169_s5 = scalar_lea.vmem %s3026_s0, %s2043_s26 }
  0x27   : > { %v184_v0 = vld [vmem:[%s169_s5] sm:$0xff]  ;;  %v186_v1 = vld [vmem:[%s169_s5 + $0x8] sm:$0xff]  ;;  %v188_v2 = vld [vmem:[%s169_s5 + $0x10] sm:$0xff] }
  0x28   : > { %185 = vst [vmem:[%s163_s23] sm:$0xff] %v184_v0  ;;  %187 = vst [vmem:[%s163_s23 + $0x8] sm:$0xff] %v186_v1  ;;  %v190_v3 = vld [vmem:[%s169_s5 + $0x18] sm:$0xff]  ;;  %v192_v4 = vld [vmem:[%s169_s5 + $0x48] sm:$0xff] }
  0x29   : > { %189 = vst [vmem:[%s163_s23 + $0x10] sm:$0xff] %v188_v2  ;;  %v194_v5 = vld [vmem:[%s169_s5 + $0x50] sm:$0xff]  ;;  %191 = vst [vmem:[%s163_s23 + $0x18] sm:$0xff] %v190_v3  ;;  %v196_v6 = vld [vmem:[%s169_s5 + $0x58] sm:$0xff] }
  0x2a   : > { %193 = vst [vmem:[%s163_s23 + $0x24] sm:$0xff] %v192_v4  ;;  %195 = vst [vmem:[%s163_s23 + $0x2c] sm:$0xff] %v194_v5  ;;  %v198_v7 = vld [vmem:[%s169_s5 + $0x60] sm:$0xff]  ;;  %v1947_v9 = vld [vmem:[%s169_s5 + $0x68] sm:$0xf] }
  0x2b   : > { %v1945_v8 = vld [vmem:[%s169_s5 + $0x20] sm:$0xf]  ;;  %197 = vst [vmem:[%s163_s23 + $0x34] sm:$0xff] %v196_v6  ;;  %199 = vst [vmem:[%s163_s23 + $0x3c] sm:$0xff] %v198_v7 }
  0x2c   : > { %1946 = vst [vmem:[%s163_s23 + $0x20] sm:$0xf] %v1945_v8  ;;  %1948 = vst [vmem:[%s163_s23 + $0x44] sm:$0xf] %v1947_v9 }
  0x2d PF: > { %217 = sbr.rel (!%p2541_p9) target bundleno = 150 (0x96), region = 46  ;;  %s219_s28 = sand.u32 (%p2541_p9), 1, %s2407_s15  }
  0x2e   : > { %s2044_s7 = smul.u32 (%p2541_p9), 288, %s2427_s20  ;;  %s3027_s1 = sld [smem:[#allocation8_spill]] (%p2541_p9) }
  0x2f   : > { %s2170_s11 = smul.u32 (%p2541_p9), 576, %s219_s28 }
  0x30   : > { %s224_s26 = sadd.s32 (%p2541_p9), %s2431_s21, %s2044_s7 }
  0x31   : > { %s1950_s27 = sshll.u32 (%p2541_p9), %s224_s26, 2  ;;  %s2579_s6 = scalar_lea.vmem (%p2541_p9), [#allocation4], %s2170_s11 }
  0x34   : > { %s2574_s0 = scalar_lea.vmem %s3027_s1, %s1950_s27 }
  0x35   : > { %v243_v10 = vld [vmem:[%s2574_s0] sm:$0xf]  ;;  %v245_v11 = vld [vmem:[%s2574_s0 + $0x8] sm:$0xf]  ;;  %v247_v12 = vld [vmem:[%s2574_s0 + $0x10] sm:$0xf] }
  0x36   : > { %244 = vst [vmem:[%s2579_s6] sm:$0xf] %v243_v10  ;;  %246 = vst [vmem:[%s2579_s6 + $0x4] sm:$0xf] %v245_v11  ;;  %v249_v13 = vld [vmem:[%s2574_s0 + $0x18] sm:$0xf] }
  0x37   : > { %248 = vst [vmem:[%s2579_s6 + $0x8] sm:$0xf] %v247_v12  ;;  %v251_v14 = vld [vmem:[%s2574_s0 + $0x20] sm:$0xf]  ;;  %v253_v15 = vld [vmem:[%s2574_s0 + $0x28] sm:$0xf] }
  0x38   : > { %250 = vst [vmem:[%s2579_s6 + $0xc] sm:$0xf] %v249_v13  ;;  %252 = vst [vmem:[%s2579_s6 + $0x10] sm:$0xf] %v251_v14  ;;  %v255_v16 = vld [vmem:[%s2574_s0 + $0x30] sm:$0xf] }
  0x39   : > { %254 = vst [vmem:[%s2579_s6 + $0x14] sm:$0xf] %v253_v15  ;;  %v257_v17 = vld [vmem:[%s2574_s0 + $0x38] sm:$0xf]  ;;  %v259_v18 = vld [vmem:[%s2574_s0 + $0x40] sm:$0xf] }
  0x3a   : > { %256 = vst [vmem:[%s2579_s6 + $0x18] sm:$0xf] %v255_v16  ;;  %258 = vst [vmem:[%s2579_s6 + $0x1c] sm:$0xf] %v257_v17  ;;  %v261_v19 = vld [vmem:[%s2574_s0 + $0x48] sm:$0xf] }
  0x3b   : > { %260 = vst [vmem:[%s2579_s6 + $0x20] sm:$0xf] %v259_v18  ;;  %v263_v20 = vld [vmem:[%s2574_s0 + $0x50] sm:$0xf]  ;;  %v265_v21 = vld [vmem:[%s2574_s0 + $0x58] sm:$0xf] }
  0x3c   : > { %262 = vst [vmem:[%s2579_s6 + $0x24] sm:$0xf] %v261_v19  ;;  %264 = vst [vmem:[%s2579_s6 + $0x28] sm:$0xf] %v263_v20  ;;  %v267_v22 = vld [vmem:[%s2574_s0 + $0x60] sm:$0xf] }
  0x3d   : > { %266 = vst [vmem:[%s2579_s6 + $0x2c] sm:$0xf] %v265_v21  ;;  %v269_v23 = vld [vmem:[%s2574_s0 + $0x68] sm:$0xf]  ;;  %v271_v24 = vld [vmem:[%s2574_s0 + $0x70] sm:$0xf] }
  0x3e   : > { %268 = vst [vmem:[%s2579_s6 + $0x30] sm:$0xf] %v267_v22  ;;  %270 = vst [vmem:[%s2579_s6 + $0x34] sm:$0xf] %v269_v23  ;;  %v273_v25 = vld [vmem:[%s2574_s0 + $0x78] sm:$0xf] }
  0x3f   : > { %272 = vst [vmem:[%s2579_s6 + $0x38] sm:$0xf] %v271_v24  ;;  %v275_v26 = vld [vmem:[%s2574_s0 + $0x80] sm:$0xf]  ;;  %v277_v27 = vld [vmem:[%s2574_s0 + $0x88] sm:$0xf] }
  0x40   : > { %274 = vst [vmem:[%s2579_s6 + $0x3c] sm:$0xf] %v273_v25  ;;  %276 = vst [vmem:[%s2579_s6 + $0x40] sm:$0xf] %v275_v26  ;;  %v279_v28 = vld [vmem:[%s2574_s0 + $0x90] sm:$0xf] }
  0x41   : > { %278 = vst [vmem:[%s2579_s6 + $0x44] sm:$0xf] %v277_v27  ;;  %v281_v29 = vld [vmem:[%s2574_s0 + $0x98] sm:$0xf]  ;;  %v283_v30 = vld [vmem:[%s2574_s0 + $0xa0] sm:$0xf] }
  0x42   : > { %280 = vst [vmem:[%s2579_s6 + $0x48] sm:$0xf] %v279_v28  ;;  %282 = vst [vmem:[%s2579_s6 + $0x4c] sm:$0xf] %v281_v29  ;;  %v285_v31 = vld [vmem:[%s2574_s0 + $0xa8] sm:$0xf] }
  0x43   : > { %284 = vst [vmem:[%s2579_s6 + $0x50] sm:$0xf] %v283_v30  ;;  %v287_v32 = vld [vmem:[%s2574_s0 + $0xb0] sm:$0xf]  ;;  %v289_v33 = vld [vmem:[%s2574_s0 + $0xb8] sm:$0xf] }
  0x44   : > { %286 = vst [vmem:[%s2579_s6 + $0x54] sm:$0xf] %v285_v31  ;;  %288 = vst [vmem:[%s2579_s6 + $0x58] sm:$0xf] %v287_v32  ;;  %v291_v34 = vld [vmem:[%s2574_s0 + $0xc0] sm:$0xf] }
  0x45   : > { %290 = vst [vmem:[%s2579_s6 + $0x5c] sm:$0xf] %v289_v33  ;;  %v293_v35 = vld [vmem:[%s2574_s0 + $0xc8] sm:$0xf]  ;;  %v295_v36 = vld [vmem:[%s2574_s0 + $0xd0] sm:$0xf] }
  0x46   : > { %292 = vst [vmem:[%s2579_s6 + $0x60] sm:$0xf] %v291_v34  ;;  %294 = vst [vmem:[%s2579_s6 + $0x64] sm:$0xf] %v293_v35  ;;  %v297_v37 = vld [vmem:[%s2574_s0 + $0xd8] sm:$0xf] }
  0x47   : > { %296 = vst [vmem:[%s2579_s6 + $0x68] sm:$0xf] %v295_v36  ;;  %v299_v38 = vld [vmem:[%s2574_s0 + $0xe0] sm:$0xf]  ;;  %v301_v39 = vld [vmem:[%s2574_s0 + $0xe8] sm:$0xf] }
  0x48   : > { %298 = vst [vmem:[%s2579_s6 + $0x6c] sm:$0xf] %v297_v37  ;;  %300 = vst [vmem:[%s2579_s6 + $0x70] sm:$0xf] %v299_v38  ;;  %v303_v40 = vld [vmem:[%s2574_s0 + $0xf0] sm:$0xf] }
  0x49   : > { %302 = vst [vmem:[%s2579_s6 + $0x74] sm:$0xf] %v301_v39  ;;  %v305_v41 = vld [vmem:[%s2574_s0 + $0xf8] sm:$0xf]  ;;  %v307_v42 = vld [vmem:[%s2574_s0 + $0x100] sm:$0xf] }
  0x4a   : > { %304 = vst [vmem:[%s2579_s6 + $0x78] sm:$0xf] %v303_v40  ;;  %306 = vst [vmem:[%s2579_s6 + $0x7c] sm:$0xf] %v305_v41  ;;  %v309_v43 = vld [vmem:[%s2574_s0 + $0x108] sm:$0xf] }
  0x4b   : > { %308 = vst [vmem:[%s2579_s6 + $0x80] sm:$0xf] %v307_v42  ;;  %v311_v44 = vld [vmem:[%s2574_s0 + $0x110] sm:$0xf]  ;;  %v313_v45 = vld [vmem:[%s2574_s0 + $0x118] sm:$0xf] }
  0x4c   : > { %310 = vst [vmem:[%s2579_s6 + $0x84] sm:$0xf] %v309_v43  ;;  %312 = vst [vmem:[%s2579_s6 + $0x88] sm:$0xf] %v311_v44  ;;  %v315_v46 = vld [vmem:[%s2574_s0 + $0x120] sm:$0xf] }
  0x4d   : > { %314 = vst [vmem:[%s2579_s6 + $0x8c] sm:$0xf] %v313_v45  ;;  %v317_v47 = vld [vmem:[%s2574_s0 + $0x128] sm:$0xf]  ;;  %v319_v48 = vld [vmem:[%s2574_s0 + $0x130] sm:$0xf] }
  0x4e   : > { %316 = vst [vmem:[%s2579_s6 + $0x90] sm:$0xf] %v315_v46  ;;  %318 = vst [vmem:[%s2579_s6 + $0x94] sm:$0xf] %v317_v47  ;;  %v321_v49 = vld [vmem:[%s2574_s0 + $0x138] sm:$0xf] }
  0x4f   : > { %320 = vst [vmem:[%s2579_s6 + $0x98] sm:$0xf] %v319_v48  ;;  %v323_v50 = vld [vmem:[%s2574_s0 + $0x140] sm:$0xf]  ;;  %v325_v51 = vld [vmem:[%s2574_s0 + $0x148] sm:$0xf] }
  0x50   : > { %322 = vst [vmem:[%s2579_s6 + $0x9c] sm:$0xf] %v321_v49  ;;  %324 = vst [vmem:[%s2579_s6 + $0xa0] sm:$0xf] %v323_v50  ;;  %v327_v52 = vld [vmem:[%s2574_s0 + $0x150] sm:$0xf] }
  0x51   : > { %326 = vst [vmem:[%s2579_s6 + $0xa4] sm:$0xf] %v325_v51  ;;  %v329_v53 = vld [vmem:[%s2574_s0 + $0x158] sm:$0xf]  ;;  %v331_v54 = vld [vmem:[%s2574_s0 + $0x160] sm:$0xf] }
  0x52   : > { %328 = vst [vmem:[%s2579_s6 + $0xa8] sm:$0xf] %v327_v52  ;;  %330 = vst [vmem:[%s2579_s6 + $0xac] sm:$0xf] %v329_v53  ;;  %v333_v55 = vld [vmem:[%s2574_s0 + $0x168] sm:$0xf] }
  0x53   : > { %332 = vst [vmem:[%s2579_s6 + $0xb0] sm:$0xf] %v331_v54  ;;  %v335_v56 = vld [vmem:[%s2574_s0 + $0x170] sm:$0xf]  ;;  %v337_v57 = vld [vmem:[%s2574_s0 + $0x178] sm:$0xf] }
  0x54   : > { %334 = vst [vmem:[%s2579_s6 + $0xb4] sm:$0xf] %v333_v55  ;;  %336 = vst [vmem:[%s2579_s6 + $0xb8] sm:$0xf] %v335_v56  ;;  %v339_v58 = vld [vmem:[%s2574_s0 + $0x180] sm:$0xf] }
  0x55   : > { %338 = vst [vmem:[%s2579_s6 + $0xbc] sm:$0xf] %v337_v57  ;;  %v341_v59 = vld [vmem:[%s2574_s0 + $0x188] sm:$0xf]  ;;  %v343_v60 = vld [vmem:[%s2574_s0 + $0x190] sm:$0xf] }
  0x56   : > { %340 = vst [vmem:[%s2579_s6 + $0xc0] sm:$0xf] %v339_v58  ;;  %342 = vst [vmem:[%s2579_s6 + $0xc4] sm:$0xf] %v341_v59  ;;  %v345_v61 = vld [vmem:[%s2574_s0 + $0x198] sm:$0xf] }
  0x57   : > { %344 = vst [vmem:[%s2579_s6 + $0xc8] sm:$0xf] %v343_v60  ;;  %v347_v62 = vld [vmem:[%s2574_s0 + $0x1a0] sm:$0xf]  ;;  %v349_v63 = vld [vmem:[%s2574_s0 + $0x1a8] sm:$0xf] }
  0x58   : > { %346 = vst [vmem:[%s2579_s6 + $0xcc] sm:$0xf] %v345_v61  ;;  %348 = vst [vmem:[%s2579_s6 + $0xd0] sm:$0xf] %v347_v62  ;;  %v351_v0 = vld [vmem:[%s2574_s0 + $0x1b0] sm:$0xf] }
  0x59   : > { %350 = vst [vmem:[%s2579_s6 + $0xd4] sm:$0xf] %v349_v63  ;;  %v353_v1 = vld [vmem:[%s2574_s0 + $0x1b8] sm:$0xf]  ;;  %v355_v2 = vld [vmem:[%s2574_s0 + $0x1c0] sm:$0xf] }
  0x5a   : > { %352 = vst [vmem:[%s2579_s6 + $0xd8] sm:$0xf] %v351_v0  ;;  %354 = vst [vmem:[%s2579_s6 + $0xdc] sm:$0xf] %v353_v1  ;;  %v357_v3 = vld [vmem:[%s2574_s0 + $0x1c8] sm:$0xf] }
  0x5b   : > { %356 = vst [vmem:[%s2579_s6 + $0xe0] sm:$0xf] %v355_v2  ;;  %v359_v4 = vld [vmem:[%s2574_s0 + $0x1d0] sm:$0xf]  ;;  %v361_v5 = vld [vmem:[%s2574_s0 + $0x1d8] sm:$0xf] }
  0x5c   : > { %358 = vst [vmem:[%s2579_s6 + $0xe4] sm:$0xf] %v357_v3  ;;  %360 = vst [vmem:[%s2579_s6 + $0xe8] sm:$0xf] %v359_v4  ;;  %v363_v6 = vld [vmem:[%s2574_s0 + $0x1e0] sm:$0xf] }
  0x5d   : > { %362 = vst [vmem:[%s2579_s6 + $0xec] sm:$0xf] %v361_v5  ;;  %v365_v7 = vld [vmem:[%s2574_s0 + $0x1e8] sm:$0xf]  ;;  %v367_v8 = vld [vmem:[%s2574_s0 + $0x1f0] sm:$0xf] }
  0x5e   : > { %364 = vst [vmem:[%s2579_s6 + $0xf0] sm:$0xf] %v363_v6  ;;  %366 = vst [vmem:[%s2579_s6 + $0xf4] sm:$0xf] %v365_v7  ;;  %v369_v9 = vld [vmem:[%s2574_s0 + $0x1f8] sm:$0xf] }
  0x5f   : > { %368 = vst [vmem:[%s2579_s6 + $0xf8] sm:$0xf] %v367_v8  ;;  %v371_v10 = vld [vmem:[%s2574_s0 + $0x200] sm:$0xf]  ;;  %v373_v11 = vld [vmem:[%s2574_s0 + $0x208] sm:$0xf] }
  0x60   : > { %370 = vst [vmem:[%s2579_s6 + $0xfc] sm:$0xf] %v369_v9  ;;  %372 = vst [vmem:[%s2579_s6 + $0x100] sm:$0xf] %v371_v10  ;;  %v375_v12 = vld [vmem:[%s2574_s0 + $0x210] sm:$0xf] }
  0x61   : > { %374 = vst [vmem:[%s2579_s6 + $0x104] sm:$0xf] %v373_v11  ;;  %v377_v13 = vld [vmem:[%s2574_s0 + $0x218] sm:$0xf]  ;;  %v379_v14 = vld [vmem:[%s2574_s0 + $0x220] sm:$0xf] }
  0x62   : > { %376 = vst [vmem:[%s2579_s6 + $0x108] sm:$0xf] %v375_v12  ;;  %378 = vst [vmem:[%s2579_s6 + $0x10c] sm:$0xf] %v377_v13  ;;  %v381_v15 = vld [vmem:[%s2574_s0 + $0x228] sm:$0xf] }
  0x63   : > { %380 = vst [vmem:[%s2579_s6 + $0x110] sm:$0xf] %v379_v14  ;;  %v383_v16 = vld [vmem:[%s2574_s0 + $0x230] sm:$0xf]  ;;  %v385_v17 = vld [vmem:[%s2574_s0 + $0x238] sm:$0xf] }
  0x64   : > { %382 = vst [vmem:[%s2579_s6 + $0x114] sm:$0xf] %v381_v15  ;;  %384 = vst [vmem:[%s2579_s6 + $0x118] sm:$0xf] %v383_v16  ;;  %v387_v18 = vld [vmem:[%s2574_s0 + $0x240] sm:$0xf] }
  0x65   : > { %386 = vst [vmem:[%s2579_s6 + $0x11c] sm:$0xf] %v385_v17  ;;  %v389_v19 = vld [vmem:[%s2574_s0 + $0x248] sm:$0xf]  ;;  %v391_v20 = vld [vmem:[%s2574_s0 + $0x250] sm:$0xf] }
  0x66   : > { %388 = vst [vmem:[%s2579_s6 + $0x120] sm:$0xf] %v387_v18  ;;  %390 = vst [vmem:[%s2579_s6 + $0x124] sm:$0xf] %v389_v19  ;;  %v393_v21 = vld [vmem:[%s2574_s0 + $0x258] sm:$0xf] }
  0x67   : > { %392 = vst [vmem:[%s2579_s6 + $0x128] sm:$0xf] %v391_v20  ;;  %v395_v22 = vld [vmem:[%s2574_s0 + $0x260] sm:$0xf]  ;;  %v397_v23 = vld [vmem:[%s2574_s0 + $0x268] sm:$0xf] }
  0x68   : > { %394 = vst [vmem:[%s2579_s6 + $0x12c] sm:$0xf] %v393_v21  ;;  %396 = vst [vmem:[%s2579_s6 + $0x130] sm:$0xf] %v395_v22  ;;  %v399_v24 = vld [vmem:[%s2574_s0 + $0x270] sm:$0xf] }
  0x69   : > { %398 = vst [vmem:[%s2579_s6 + $0x134] sm:$0xf] %v397_v23  ;;  %v401_v25 = vld [vmem:[%s2574_s0 + $0x278] sm:$0xf]  ;;  %v403_v26 = vld [vmem:[%s2574_s0 + $0x280] sm:$0xf] }
  0x6a   : > { %400 = vst [vmem:[%s2579_s6 + $0x138] sm:$0xf] %v399_v24  ;;  %402 = vst [vmem:[%s2579_s6 + $0x13c] sm:$0xf] %v401_v25  ;;  %v405_v27 = vld [vmem:[%s2574_s0 + $0x288] sm:$0xf] }
  0x6b   : > { %404 = vst [vmem:[%s2579_s6 + $0x140] sm:$0xf] %v403_v26  ;;  %v407_v28 = vld [vmem:[%s2574_s0 + $0x290] sm:$0xf]  ;;  %v409_v29 = vld [vmem:[%s2574_s0 + $0x298] sm:$0xf] }
  0x6c   : > { %406 = vst [vmem:[%s2579_s6 + $0x144] sm:$0xf] %v405_v27  ;;  %408 = vst [vmem:[%s2579_s6 + $0x148] sm:$0xf] %v407_v28  ;;  %v411_v30 = vld [vmem:[%s2574_s0 + $0x2a0] sm:$0xf] }
  0x6d   : > { %410 = vst [vmem:[%s2579_s6 + $0x14c] sm:$0xf] %v409_v29  ;;  %v413_v31 = vld [vmem:[%s2574_s0 + $0x2a8] sm:$0xf]  ;;  %v415_v32 = vld [vmem:[%s2574_s0 + $0x2b0] sm:$0xf] }
  0x6e   : > { %412 = vst [vmem:[%s2579_s6 + $0x150] sm:$0xf] %v411_v30  ;;  %414 = vst [vmem:[%s2579_s6 + $0x154] sm:$0xf] %v413_v31  ;;  %v417_v33 = vld [vmem:[%s2574_s0 + $0x2b8] sm:$0xf] }
  0x6f   : > { %416 = vst [vmem:[%s2579_s6 + $0x158] sm:$0xf] %v415_v32  ;;  %v419_v34 = vld [vmem:[%s2574_s0 + $0x2c0] sm:$0xf]  ;;  %v421_v35 = vld [vmem:[%s2574_s0 + $0x2c8] sm:$0xf] }
  0x70   : > { %418 = vst [vmem:[%s2579_s6 + $0x15c] sm:$0xf] %v417_v33  ;;  %420 = vst [vmem:[%s2579_s6 + $0x160] sm:$0xf] %v419_v34  ;;  %v423_v36 = vld [vmem:[%s2574_s0 + $0x2d0] sm:$0xf] }
  0x71   : > { %422 = vst [vmem:[%s2579_s6 + $0x164] sm:$0xf] %v421_v35  ;;  %v425_v37 = vld [vmem:[%s2574_s0 + $0x2d8] sm:$0xf]  ;;  %v427_v38 = vld [vmem:[%s2574_s0 + $0x2e0] sm:$0xf] }
  0x72   : > { %424 = vst [vmem:[%s2579_s6 + $0x168] sm:$0xf] %v423_v36  ;;  %426 = vst [vmem:[%s2579_s6 + $0x16c] sm:$0xf] %v425_v37  ;;  %v429_v39 = vld [vmem:[%s2574_s0 + $0x2e8] sm:$0xf] }
  0x73   : > { %428 = vst [vmem:[%s2579_s6 + $0x170] sm:$0xf] %v427_v38  ;;  %v431_v40 = vld [vmem:[%s2574_s0 + $0x2f0] sm:$0xf]  ;;  %v433_v41 = vld [vmem:[%s2574_s0 + $0x2f8] sm:$0xf] }
  0x74   : > { %430 = vst [vmem:[%s2579_s6 + $0x174] sm:$0xf] %v429_v39  ;;  %432 = vst [vmem:[%s2579_s6 + $0x178] sm:$0xf] %v431_v40  ;;  %v435_v42 = vld [vmem:[%s2574_s0 + $0x300] sm:$0xf] }
  0x75   : > { %434 = vst [vmem:[%s2579_s6 + $0x17c] sm:$0xf] %v433_v41  ;;  %v437_v43 = vld [vmem:[%s2574_s0 + $0x308] sm:$0xf]  ;;  %v439_v44 = vld [vmem:[%s2574_s0 + $0x310] sm:$0xf] }
  0x76   : > { %436 = vst [vmem:[%s2579_s6 + $0x180] sm:$0xf] %v435_v42  ;;  %438 = vst [vmem:[%s2579_s6 + $0x184] sm:$0xf] %v437_v43  ;;  %v441_v45 = vld [vmem:[%s2574_s0 + $0x318] sm:$0xf] }
  0x77   : > { %440 = vst [vmem:[%s2579_s6 + $0x188] sm:$0xf] %v439_v44  ;;  %v443_v46 = vld [vmem:[%s2574_s0 + $0x320] sm:$0xf]  ;;  %v445_v47 = vld [vmem:[%s2574_s0 + $0x328] sm:$0xf] }
  0x78   : > { %442 = vst [vmem:[%s2579_s6 + $0x18c] sm:$0xf] %v441_v45  ;;  %444 = vst [vmem:[%s2579_s6 + $0x190] sm:$0xf] %v443_v46  ;;  %v447_v48 = vld [vmem:[%s2574_s0 + $0x330] sm:$0xf] }
  0x79   : > { %446 = vst [vmem:[%s2579_s6 + $0x194] sm:$0xf] %v445_v47  ;;  %v449_v49 = vld [vmem:[%s2574_s0 + $0x338] sm:$0xf]  ;;  %v451_v50 = vld [vmem:[%s2574_s0 + $0x340] sm:$0xf] }
  0x7a   : > { %448 = vst [vmem:[%s2579_s6 + $0x198] sm:$0xf] %v447_v48  ;;  %450 = vst [vmem:[%s2579_s6 + $0x19c] sm:$0xf] %v449_v49  ;;  %v453_v51 = vld [vmem:[%s2574_s0 + $0x348] sm:$0xf] }
  0x7b   : > { %452 = vst [vmem:[%s2579_s6 + $0x1a0] sm:$0xf] %v451_v50  ;;  %v455_v52 = vld [vmem:[%s2574_s0 + $0x350] sm:$0xf]  ;;  %v457_v53 = vld [vmem:[%s2574_s0 + $0x358] sm:$0xf] }
  0x7c   : > { %454 = vst [vmem:[%s2579_s6 + $0x1a4] sm:$0xf] %v453_v51  ;;  %456 = vst [vmem:[%s2579_s6 + $0x1a8] sm:$0xf] %v455_v52  ;;  %v459_v54 = vld [vmem:[%s2574_s0 + $0x360] sm:$0xf] }
  0x7d   : > { %458 = vst [vmem:[%s2579_s6 + $0x1ac] sm:$0xf] %v457_v53  ;;  %v461_v55 = vld [vmem:[%s2574_s0 + $0x368] sm:$0xf]  ;;  %v463_v56 = vld [vmem:[%s2574_s0 + $0x370] sm:$0xf] }
  0x7e   : > { %460 = vst [vmem:[%s2579_s6 + $0x1b0] sm:$0xf] %v459_v54  ;;  %462 = vst [vmem:[%s2579_s6 + $0x1b4] sm:$0xf] %v461_v55  ;;  %v465_v57 = vld [vmem:[%s2574_s0 + $0x378] sm:$0xf] }
  0x7f   : > { %464 = vst [vmem:[%s2579_s6 + $0x1b8] sm:$0xf] %v463_v56  ;;  %v467_v58 = vld [vmem:[%s2574_s0 + $0x380] sm:$0xf]  ;;  %v469_v59 = vld [vmem:[%s2574_s0 + $0x388] sm:$0xf] }
  0x80   : > { %466 = vst [vmem:[%s2579_s6 + $0x1bc] sm:$0xf] %v465_v57  ;;  %468 = vst [vmem:[%s2579_s6 + $0x1c0] sm:$0xf] %v467_v58  ;;  %v471_v60 = vld [vmem:[%s2574_s0 + $0x390] sm:$0xf] }
  0x81   : > { %470 = vst [vmem:[%s2579_s6 + $0x1c4] sm:$0xf] %v469_v59  ;;  %v473_v61 = vld [vmem:[%s2574_s0 + $0x398] sm:$0xf]  ;;  %v475_v62 = vld [vmem:[%s2574_s0 + $0x3a0] sm:$0xf] }
  0x82   : > { %472 = vst [vmem:[%s2579_s6 + $0x1c8] sm:$0xf] %v471_v60  ;;  %474 = vst [vmem:[%s2579_s6 + $0x1cc] sm:$0xf] %v473_v61  ;;  %v477_v63 = vld [vmem:[%s2574_s0 + $0x3a8] sm:$0xf] }
  0x83   : > { %476 = vst [vmem:[%s2579_s6 + $0x1d0] sm:$0xf] %v475_v62  ;;  %v479_v0 = vld [vmem:[%s2574_s0 + $0x3b0] sm:$0xf]  ;;  %v481_v1 = vld [vmem:[%s2574_s0 + $0x3b8] sm:$0xf] }
  0x84   : > { %478 = vst [vmem:[%s2579_s6 + $0x1d4] sm:$0xf] %v477_v63  ;;  %480 = vst [vmem:[%s2579_s6 + $0x1d8] sm:$0xf] %v479_v0  ;;  %v483_v2 = vld [vmem:[%s2574_s0 + $0x3c0] sm:$0xf] }
  0x85   : > { %482 = vst [vmem:[%s2579_s6 + $0x1dc] sm:$0xf] %v481_v1  ;;  %v485_v3 = vld [vmem:[%s2574_s0 + $0x3c8] sm:$0xf]  ;;  %v487_v4 = vld [vmem:[%s2574_s0 + $0x3d0] sm:$0xf] }
  0x86   : > { %484 = vst [vmem:[%s2579_s6 + $0x1e0] sm:$0xf] %v483_v2  ;;  %486 = vst [vmem:[%s2579_s6 + $0x1e4] sm:$0xf] %v485_v3  ;;  %v489_v5 = vld [vmem:[%s2574_s0 + $0x3d8] sm:$0xf] }
  0x87   : > { %488 = vst [vmem:[%s2579_s6 + $0x1e8] sm:$0xf] %v487_v4  ;;  %v491_v6 = vld [vmem:[%s2574_s0 + $0x3e0] sm:$0xf]  ;;  %v493_v7 = vld [vmem:[%s2574_s0 + $0x3e8] sm:$0xf] }
  0x88   : > { %490 = vst [vmem:[%s2579_s6 + $0x1ec] sm:$0xf] %v489_v5  ;;  %492 = vst [vmem:[%s2579_s6 + $0x1f0] sm:$0xf] %v491_v6  ;;  %v495_v8 = vld [vmem:[%s2574_s0 + $0x3f0] sm:$0xf] }
  0x89   : > { %494 = vst [vmem:[%s2579_s6 + $0x1f4] sm:$0xf] %v493_v7  ;;  %v497_v9 = vld [vmem:[%s2574_s0 + $0x3f8] sm:$0xf]  ;;  %v499_v10 = vld [vmem:[%s2574_s0 + $0x400] sm:$0xf] }
  0x8a   : > { %496 = vst [vmem:[%s2579_s6 + $0x1f8] sm:$0xf] %v495_v8  ;;  %498 = vst [vmem:[%s2579_s6 + $0x1fc] sm:$0xf] %v497_v9  ;;  %v501_v11 = vld [vmem:[%s2574_s0 + $0x408] sm:$0xf] }
  0x8b   : > { %500 = vst [vmem:[%s2579_s6 + $0x200] sm:$0xf] %v499_v10  ;;  %v503_v12 = vld [vmem:[%s2574_s0 + $0x410] sm:$0xf]  ;;  %v505_v13 = vld [vmem:[%s2574_s0 + $0x418] sm:$0xf] }
  0x8c   : > { %502 = vst [vmem:[%s2579_s6 + $0x204] sm:$0xf] %v501_v11  ;;  %504 = vst [vmem:[%s2579_s6 + $0x208] sm:$0xf] %v503_v12  ;;  %v507_v14 = vld [vmem:[%s2574_s0 + $0x420] sm:$0xf] }
  0x8d   : > { %506 = vst [vmem:[%s2579_s6 + $0x20c] sm:$0xf] %v505_v13  ;;  %v509_v15 = vld [vmem:[%s2574_s0 + $0x428] sm:$0xf]  ;;  %v511_v16 = vld [vmem:[%s2574_s0 + $0x430] sm:$0xf] }
  0x8e   : > { %508 = vst [vmem:[%s2579_s6 + $0x210] sm:$0xf] %v507_v14  ;;  %510 = vst [vmem:[%s2579_s6 + $0x214] sm:$0xf] %v509_v15  ;;  %v513_v17 = vld [vmem:[%s2574_s0 + $0x438] sm:$0xf] }
  0x8f   : > { %512 = vst [vmem:[%s2579_s6 + $0x218] sm:$0xf] %v511_v16  ;;  %v515_v18 = vld [vmem:[%s2574_s0 + $0x440] sm:$0xf]  ;;  %v517_v19 = vld [vmem:[%s2574_s0 + $0x448] sm:$0xf] }
  0x90   : > { %514 = vst [vmem:[%s2579_s6 + $0x21c] sm:$0xf] %v513_v17  ;;  %516 = vst [vmem:[%s2579_s6 + $0x220] sm:$0xf] %v515_v18  ;;  %v519_v20 = vld [vmem:[%s2574_s0 + $0x450] sm:$0xf] }
  0x91   : > { %518 = vst [vmem:[%s2579_s6 + $0x224] sm:$0xf] %v517_v19  ;;  %v521_v21 = vld [vmem:[%s2574_s0 + $0x458] sm:$0xf]  ;;  %v523_v22 = vld [vmem:[%s2574_s0 + $0x460] sm:$0xf] }
  0x92   : > { %520 = vst [vmem:[%s2579_s6 + $0x228] sm:$0xf] %v519_v20  ;;  %522 = vst [vmem:[%s2579_s6 + $0x22c] sm:$0xf] %v521_v21  ;;  %v525_v23 = vld [vmem:[%s2574_s0 + $0x468] sm:$0xf] }
  0x93   : > { %524 = vst [vmem:[%s2579_s6 + $0x230] sm:$0xf] %v523_v22  ;;  %v527_v24 = vld [vmem:[%s2574_s0 + $0x470] sm:$0xf]  ;;  %v529_v25 = vld [vmem:[%s2574_s0 + $0x478] sm:$0xf] }
  0x94   : > { %526 = vst [vmem:[%s2579_s6 + $0x234] sm:$0xf] %v525_v23  ;;  %528 = vst [vmem:[%s2579_s6 + $0x238] sm:$0xf] %v527_v24 }
  0x95   : > { %530 = vst [vmem:[%s2579_s6 + $0x23c] sm:$0xf] %v529_v25 }
  0x96 PF: > { %p1951_p0 = scmp.ge.s32.totalorder %s2435_s22, 1  ;;  %p847_p1 = scmp.lt.s32.totalorder %s2435_s22, 5 }
  0x98   : > { %p848_p2 = pnand %p1951_p0, %p847_p1 }
  0x99   : > { %s854_s5 = sand.u32 (!%p848_p2), 1, %s2411_s16   ;;  %s861_s23 = sand.u32 (!%p848_p2), 1, %s2403_s14  }
  0x9a   : > { %851 = sbr.rel (%p848_p2) target bundleno = 489 (0x1e9), region = 91  ;;  %s887_s0 = sand.u32 (!%p848_p2), 1, %s2395_s12  }
  0x9b   : > { %s2171_s28 = smul.u32 (!%p848_p2), 72, %s854_s5  ;;  %s1952_s11 = sshll.u32 (!%p848_p2), %s887_s0, 3 }
  0x9c   : > { %s2172_s7 = smul.u32 (!%p848_p2), 576, %s861_s23  ;;  %p893_p3 = scmp.lt.s32.totalorder (!%p848_p2), %s2423_s19, 1 }
  0x9d   : > { %s2879_s6 = scalar_lea.vmem (!%p848_p2), [#allocation3], %s2171_s28  ;;  %s2883_s25 = scalar_lea.vmem (!%p848_p2), [#allocation5], %s1952_s11 }
  0x9e   : > { %s2881_s1 = scalar_lea.vmem (!%p848_p2), [#allocation4], %s2172_s7  ;;  %p1953_p4 = scmp.ne.s32.totalorder (!%p848_p2), %s2419_s18, 0 }
  0x9f   : > { %s2873_s26 = scalar_select %p893_p3, %s2423_s19, 1 }
  0xa0   : > { %901 = sbr.rel (%p1953_p4) target bundleno = 167 (0xa7), region = 103 }
  0xa1   : > { %s895_s4 = scalar_lea.vmem %s3017_s2, %s2873_s26 }
  0xa5   : > { %v2437_v26 = vmov 0.0  }
  0xa6   : > { %902 = vst [vmem:[#allocation2] sm:$0xff] %v2437_v26  ;;  %903 = vst [vmem:[#allocation2 + $0x8] sm:$0xff] %v2437_v26 }
  0xa7 PF: > { %v2264_v27 = vld [vmem:[%s2881_s1 + $0x78] sm:$0xff]   ;;  %v2268_v31 = vld [vmem:[%s2881_s1 + $0x70] sm:$0xff]   ;;  %v2272_v35 = vld [vmem:[%s2881_s1 + $0x68] sm:$0xff]   ;;  %vm2439_vm0 = vmmov 0   ;;  %p2035_p5 = scmp.ne.s32.totalorder %s2419_s18, 1 }
  0xa8   : > { %v2265_v28 = vld [vmem:[%s2881_s1 + $0xf8] sm:$0xff]   ;;  %2052 = vmatprep.subr.bf16.mxu0 %v2264_v27  ;;  %v2269_v32 = vld [vmem:[%s2881_s1 + $0xf0] sm:$0xff]   ;;  %v2273_v36 = vld [vmem:[%s2881_s1 + $0xe8] sm:$0xff]  }
  0xa9   : > { %v2266_v29 = vld [vmem:[%s2881_s1 + $0x38] sm:$0xff]   ;;  %2074 = vmatprep.subr.bf16.mxu1 %v2265_v28  ;;  %v2270_v33 = vld [vmem:[%s2881_s1 + $0x30] sm:$0xff]   ;;  %v2274_v37 = vld [vmem:[%s2881_s1 + $0x28] sm:$0xff]  }
  0xaa   : > { %v2267_v30 = vld [vmem:[%s2881_s1 + $0xb8] sm:$0xff]   ;;  %2053 = vmatpush3.bf16.msra.mxu0 %v2266_v29  ;;  %v2271_v34 = vld [vmem:[%s2881_s1 + $0xb0] sm:$0xff]   ;;  %v2275_v38 = vld [vmem:[%s2881_s1 + $0xa8] sm:$0xff]  }
  0xab   : > { %2075 = vmatpush3.bf16.msra.mxu1 %v2267_v30  ;;  %2054 = vmatprep.subr.bf16.mxu0 %v2268_v31  ;;  %v2276_v39 = vld [vmem:[%s2881_s1 + $0x60] sm:$0xff]   ;;  %v2280_v43 = vld [vmem:[%s2881_s1 + $0x58] sm:$0xff]   ;;  %v2284_v47 = vld [vmem:[%s2881_s1 + $0x50] sm:$0xff]  }
  0xac   : > { %2076 = vmatprep.subr.bf16.mxu1 %v2269_v32  ;;  %v2277_v40 = vld [vmem:[%s2881_s1 + $0xe0] sm:$0xff]   ;;  %v2281_v44 = vld [vmem:[%s2881_s1 + $0xd8] sm:$0xff]   ;;  %v2285_v48 = vld [vmem:[%s2881_s1 + $0xd0] sm:$0xff]  }
  0xad   : > { %v2278_v41 = vld [vmem:[%s2881_s1 + $0x20] sm:$0xff]   ;;  %v2282_v45 = vld [vmem:[%s2881_s1 + $0x18] sm:$0xff]   ;;  %v2286_v49 = vld [vmem:[%s2881_s1 + $0x10] sm:$0xff]  }
  0xae   : > { %2055 = vmatpush3.bf16.msra.mxu0 %v2270_v33  ;;  %v2279_v42 = vld [vmem:[%s2881_s1 + $0xa0] sm:$0xff]   ;;  %v2283_v46 = vld [vmem:[%s2881_s1 + $0x98] sm:$0xff]   ;;  %v2287_v50 = vld [vmem:[%s2881_s1 + $0x90] sm:$0xff]   ;;  %v2438_v33 = vmov 0.0  }
  0xaf   : > { %2077 = vmatpush3.bf16.msra.mxu1 %v2271_v34  ;;  %2056 = vmatprep.subr.bf16.mxu0 %v2272_v35  ;;  %v2288_v51 = vld [vmem:[%s2881_s1 + $0x48] sm:$0xff]   ;;  %v2292_v55 = vld [vmem:[%s2881_s1 + $0x40] sm:$0xff]   ;;  %v2296_v59 = vld [vmem:[%s2879_s6] ss:$36 sps:$4 sm:$0xff]  }
  0xb0   : > { %2078 = vmatprep.subr.bf16.mxu1 %v2273_v36  ;;  %v2289_v52 = vld [vmem:[%s2881_s1 + $0xc8] sm:$0xff]   ;;  %v2293_v56 = vld [vmem:[%s2881_s1 + $0xc0] sm:$0xff]   ;;  %v2302_v63 = vld [vmem:[%s2881_s1 + $0x178] sm:$0xff]  }
  0xb1   : > { %v2290_v53 = vld [vmem:[%s2881_s1 + $0x8] sm:$0xff]   ;;  %v2294_v57 = vld [vmem:[%s2881_s1] sm:$0xff]   ;;  %v2303_v0 = vld [vmem:[%s2881_s1 + $0x138] sm:$0xff]  }
  0xb2   : > { %2057 = vmatpush3.bf16.msra.mxu0 %v2274_v37  ;;  %v2291_v54 = vld [vmem:[%s2881_s1 + $0x88] sm:$0xff]   ;;  %v2295_v58 = vld [vmem:[%s2881_s1 + $0x80] sm:$0xff]   ;;  %v2304_v1 = vld [vmem:[%s2881_s1 + $0x1f8] sm:$0xff]  }
  0xb3   : > { %2079 = vmatpush3.bf16.msra.mxu1 %v2275_v38  ;;  %2058 = vmatprep.subr.bf16.mxu0 %v2276_v39  ;;  %v2298_v60 = vld [vmem:[%s2879_s6 + $0x4] ss:$36 sps:$4 sm:$0xff]   ;;  %v2301_v62 = vld [vmem:[%s2879_s6 + $0xc] ss:$36 sps:$4 sm:$0xff]   ;;  %v2335_v31 = vld [vmem:[%s2879_s6 + $0x14] ss:$36 sps:$4 sm:$0xff]  }
  0xb4   : > { %2080 = vmatprep.subr.bf16.mxu1 %v2277_v40  ;;  %v2299_v61 = vld [vmem:[%s2879_s6 + $0x8] ss:$36 sps:$4 sm:$0xff]   ;;  %1570 = vmatprep.mubr.bf16.mxu0 %v2298_v60  ;;  %v2306_v3 = vld [vmem:[%s2881_s1 + $0x170] sm:$0xff]   ;;  %v2310_v7 = vld [vmem:[%s2881_s1 + $0x168] sm:$0xff]  }
  0xb5   : > { %1611 = vmatprep.mubr.bf16.mxu1 %v2301_v62  ;;  %v2305_v2 = vld [vmem:[%s2881_s1 + $0x1b8] sm:$0xff]   ;;  %v2307_v4 = vld [vmem:[%s2881_s1 + $0x130] sm:$0xff]   ;;  %v2311_v8 = vld [vmem:[%s2881_s1 + $0x128] sm:$0xff]  }
  0xb6   : > { %2059 = vmatpush3.bf16.msra.mxu0 %v2278_v41  ;;  %v2308_v5 = vld [vmem:[%s2881_s1 + $0x1f0] sm:$0xff]   ;;  %v2312_v9 = vld [vmem:[%s2881_s1 + $0x1e8] sm:$0xff]   ;;  %v2314_v11 = vld [vmem:[%s2881_s1 + $0x160] sm:$0xff]  }
  0xb7   : > { %2081 = vmatpush3.bf16.msra.mxu1 %v2279_v42  ;;  %2060 = vmatprep.subr.bf16.mxu0 %v2280_v43  ;;  %v2309_v6 = vld [vmem:[%s2881_s1 + $0x1b0] sm:$0xff]   ;;  %v2313_v10 = vld [vmem:[%s2881_s1 + $0x1a8] sm:$0xff]   ;;  %v2315_v12 = vld [vmem:[%s2881_s1 + $0x120] sm:$0xff]  }
  0xb8   : > { %2082 = vmatprep.subr.bf16.mxu1 %v2281_v44  ;;  %v2316_v13 = vld [vmem:[%s2881_s1 + $0x1e0] sm:$0xff]   ;;  %v2318_v15 = vld [vmem:[%s2881_s1 + $0x158] sm:$0xff]   ;;  %v2322_v19 = vld [vmem:[%s2881_s1 + $0x150] sm:$0xff]  }
  0xb9   : > { %v2317_v14 = vld [vmem:[%s2881_s1 + $0x1a0] sm:$0xff]   ;;  %v2319_v16 = vld [vmem:[%s2881_s1 + $0x118] sm:$0xff]   ;;  %v2323_v20 = vld [vmem:[%s2881_s1 + $0x110] sm:$0xff]  }
  0xba   : > { %2061 = vmatpush3.bf16.msra.mxu0 %v2282_v45  ;;  %v2320_v17 = vld [vmem:[%s2881_s1 + $0x1d8] sm:$0xff]   ;;  %v2324_v21 = vld [vmem:[%s2881_s1 + $0x1d0] sm:$0xff]   ;;  %v2326_v23 = vld [vmem:[%s2881_s1 + $0x148] sm:$0xff]  }
  0xbb   : > { %2083 = vmatpush3.bf16.msra.mxu1 %v2283_v46  ;;  %2062 = vmatprep.subr.bf16.mxu0 %v2284_v47  ;;  %v2321_v18 = vld [vmem:[%s2881_s1 + $0x198] sm:$0xff]   ;;  %v2325_v22 = vld [vmem:[%s2881_s1 + $0x190] sm:$0xff]   ;;  %v2327_v24 = vld [vmem:[%s2881_s1 + $0x108] sm:$0xff]  }
  0xbc   : > { %2084 = vmatprep.subr.bf16.mxu1 %v2285_v48  ;;  %v2328_v25 = vld [vmem:[%s2881_s1 + $0x1c8] sm:$0xff]   ;;  %v2330_v27 = vld [vmem:[%s2881_s1 + $0x140] sm:$0xff]   ;;  %v2340_v36 = vld [vmem:[%s2881_s1 + $0x238] sm:$0xff]  }
  0xbd   : > { %v2329_v26 = vld [vmem:[%s2881_s1 + $0x188] sm:$0xff]   ;;  %v2331_v28 = vld [vmem:[%s2881_s1 + $0x100] sm:$0xff]   ;;  %v2341_v37 = vld [vmem:[%s2881_s1 + $0x230] sm:$0xff]  }
  0xbe   : > { %2063 = vmatpush3.bf16.msra.mxu0 %v2286_v49  ;;  %v2332_v29 = vld [vmem:[%s2881_s1 + $0x1c0] sm:$0xff]   ;;  %v2337_v34 = vld [vmem:[%s2879_s6 + $0x18] ss:$36 sps:$4 sm:$0xff]   ;;  %v2344_v40 = vld [vmem:[%s2881_s1 + $0x218] sm:$0xff]  }
  0xbf   : > { %2085 = vmatpush3.bf16.msra.mxu1 %v2287_v50  ;;  %2064 = vmatprep.subr.bf16.mxu0 %v2288_v51  ;;  %v2333_v30 = vld [vmem:[%s2879_s6 + $0x10] ss:$36 sps:$4 sm:$0xff]   ;;  %v2339_v35 = vld [vmem:[%s2879_s6 + $0x1c] ss:$36 sps:$4 sm:$0xff]  }
  0xc0   : > { %2086 = vmatprep.subr.bf16.mxu1 %v2289_v52  ;;  %v2336_v32 = vld [vmem:[%s2881_s1 + $0x180] sm:$0xff]   ;;  %v2342_v38 = vld [vmem:[%s2881_s1 + $0x228] sm:$0xff]   ;;  %v2345_v41 = vld [vmem:[%s2881_s1 + $0x210] sm:$0xff]  }
  0xc1   : > { %v2343_v39 = vld [vmem:[%s2881_s1 + $0x220] sm:$0xff]   ;;  %v2346_v42 = vld [vmem:[%s2881_s1 + $0x208] sm:$0xff]   ;;  %v2348_v44 = vld [vmem:[%s2879_s6 + $0x20] ss:$36 sps:$4 sm:$0xff]  }
  0xc2   : > { %2065 = vmatpush3.bf16.msra.mxu0 %v2290_v53  ;;  %v2347_v43 = vld [vmem:[%s2881_s1 + $0x200] sm:$0xff]  }
  0xc3   : > { %2087 = vmatpush3.bf16.msra.mxu1 %v2291_v54  ;;  %2066 = vmatprep.subr.bf16.mxu0 %v2292_v55 }
  0xc4   : > { %2088 = vmatprep.subr.bf16.mxu1 %v2293_v56 }
  0xc6   : > { %2067 = vmatpush3.bf16.msra.mxu0 %v2294_v57 }
  0xc7   : > { %2089 = vmatpush3.bf16.msra.mxu1 %v2295_v58  ;;  %2096 = vmatprep.subr.bf16.mxu0 %v2302_v63 }
  0xc8   : > { %2118 = vmatprep.subr.bf16.mxu1 %v2304_v1 }
  0xc9   : > { %1571 = vmatmul.mubr.bf16.vlgmr.msra.gmra.mxu0 %v2296_v59 }
  0xca   : > { %1612 = vmatmul.mubr.bf16.vlgmr.msra.gmra.mxu1 %v2299_v61  ;;  %2097 = vmatpush3.bf16.msra.mxu0 %v2303_v0 }
  0xcb   : > { %2119 = vmatpush3.bf16.msra.mxu1 %v2305_v2  ;;  %2098 = vmatprep.subr.bf16.mxu0 %v2306_v3 }
  0xcc   : > { %2120 = vmatprep.subr.bf16.mxu1 %v2308_v5  ;;  %1652 = vmatprep.mubr.bf16.mxu0 %v2335_v31 }
  0xcd   : > { %1693 = vmatprep.mubr.bf16.mxu1 %v2339_v35 }
  0xce   : > { %2099 = vmatpush3.bf16.msra.mxu0 %v2307_v4 }
  0xcf   : > { %2121 = vmatpush3.bf16.msra.mxu1 %v2309_v6  ;;  %2100 = vmatprep.subr.bf16.mxu0 %v2310_v7 }
  0xd0   : > { %2122 = vmatprep.subr.bf16.mxu1 %v2312_v9 }
  0xd2   : > { %2101 = vmatpush3.bf16.msra.mxu0 %v2311_v8 }
  0xd3   : > { %2123 = vmatpush3.bf16.msra.mxu1 %v2313_v10  ;;  %2102 = vmatprep.subr.bf16.mxu0 %v2314_v11  ;;  %v914_v10 = vld [vmem:[#allocation2] sm:$0xff] }
  0xd4   : > { %2124 = vmatprep.subr.bf16.mxu1 %v2316_v13 }
  0xd6   : > { %2103 = vmatpush3.bf16.msra.mxu0 %v2315_v12 }
  0xd7   : > { %2125 = vmatpush3.bf16.msra.mxu1 %v2317_v14  ;;  %2104 = vmatprep.subr.bf16.mxu0 %v2318_v15 }
  0xd8   : > { %2126 = vmatprep.subr.bf16.mxu1 %v2320_v17 }
  0xda   : > { %2105 = vmatpush3.bf16.msra.mxu0 %v2319_v16  ;;  %v915_v16 = vld [vmem:[#allocation2 + $0x8] sm:$0xff] }
  0xdb   : > { %2127 = vmatpush3.bf16.msra.mxu1 %v2321_v18  ;;  %2106 = vmatprep.subr.bf16.mxu0 %v2322_v19 }
  0xdc   : > { %2128 = vmatprep.subr.bf16.mxu1 %v2324_v21 }
  0xde   : > { %2107 = vmatpush3.bf16.msra.mxu0 %v2323_v20 }
  0xdf   : > { %2129 = vmatpush3.bf16.msra.mxu1 %v2325_v22  ;;  %2108 = vmatprep.subr.bf16.mxu0 %v2326_v23 }
  0xe0   : > { %2130 = vmatprep.subr.bf16.mxu1 %v2328_v25 }
  0xe2   : > { %2109 = vmatpush3.bf16.msra.mxu0 %v2327_v24 }
  0xe3   : > { %2131 = vmatpush3.bf16.msra.mxu1 %v2329_v26  ;;  %2110 = vmatprep.subr.bf16.mxu0 %v2330_v27 }
  0xe4   : > { %2132 = vmatprep.subr.bf16.mxu1 %v2332_v29 }
  0xe6   : > { %2111 = vmatpush3.bf16.msra.mxu0 %v2331_v28 }
  0xe7   : > { %2149 = vmatprep.subr.bf16.mxu0 %v2438_v33  ;;  %2133 = vmatpush3.bf16.msra.mxu1 %v2336_v32 }
  0xe9   : > { %1653 = vmatmul.mubr.bf16.vlgmr.msra.gmra.mxu0 %v2333_v30 }
  0xea   : > { %2165 = vmatprep.mubr.msk.bf16.mxu0 %vm2439_vm0, %v2438_v33  ;;  %2150 = vmatpush3.bf16.msra.mxu0 %v2340_v36 }
  0xeb   : > { %1694 = vmatmul.mubr.bf16.vlgmr.msra.gmra.mxu1 %v2337_v34  ;;  %2151 = vmatprep.subr.bf16.mxu0 %v2438_v33 }
  0xee   : > { %2152 = vmatpush3.bf16.msra.mxu0 %v2341_v37 }
  0xef   : > { %2153 = vmatprep.subr.bf16.mxu0 %v2438_v33 }
  0xf2   : > { %2154 = vmatpush3.bf16.msra.mxu0 %v2342_v38 }
  0xf3   : > { %2155 = vmatprep.subr.bf16.mxu0 %v2438_v33 }
  0xf6   : > { %2156 = vmatpush3.bf16.msra.mxu0 %v2343_v39 }
  0xf7   : > { %2157 = vmatprep.subr.bf16.mxu0 %v2438_v33 }
  0xfa   : > { %2158 = vmatpush3.bf16.msra.mxu0 %v2344_v40 }
  0xfb   : > { %2159 = vmatprep.subr.bf16.mxu0 %v2438_v33 }
  0xfe   : > { %2160 = vmatpush3.bf16.msra.mxu0 %v2345_v41 }
  0xff   : > { %2161 = vmatprep.subr.bf16.mxu0 %v2438_v33 }
 0x102   : > { %2162 = vmatpush3.bf16.msra.mxu0 %v2346_v42 }
 0x103   : > { %2163 = vmatprep.subr.bf16.mxu0 %v2438_v33 }
 0x106   : > { %2164 = vmatpush3.bf16.msra.mxu0 %v2347_v43 }
 0x109   : > { %2166 = vmatmul.mubr.bf16.vlgmr.msra.gmra.mxu0 %v2348_v44 }
 0x189   : > { %v2068_v45 = vpop.f32.mrf.mxu0 }
 0x18a   : > { %v2090_v46 = vpop.f32.mrf.mxu1 }
 0x18b   : > { %v2069_v47 = vpop.f32.mrf.mxu0 }
 0x18c   : > { %v2091_v48 = vpop.f32.mrf.mxu1  ;;  %v2070_v58 = vadd.f32 %v2069_v47, %v2068_v45 }
 0x18d   : > { %v2071_v49 = vpop.f32.mrf.mxu0  ;;  %v2092_v59 = vadd.f32 %v2091_v48, %v2090_v46 }
 0x18e   : > { %v2093_v50 = vpop.f32.mrf.mxu1 }
 0x18f   : > { %v2072_v51 = vpop.f32.mrf.mxu0  ;;  %v1614_v63 = vadd.f32 %v2092_v59, %v2070_v58 }
 0x190   : > { %v2094_v53 = vpop.f32.mrf.mxu1  ;;  %v2073_v0 = vadd.f32 %v2072_v51, %v2071_v49 }
 0x191   : > { %v2095_v1 = vadd.f32 %v2094_v53, %v2093_v50 }
 0x193   : > { %v1617_v6 = vadd.f32 %v2095_v1, %v2073_v0 }
 0x1a9   : > { %v2112_v52 = vpop.f32.mrf.mxu0 }
 0x1ab   : > { %v2113_v54 = vpop.f32.mrf.mxu0  ;;  %v2134_v55 = vpop.f32.mrf.mxu1 }
 0x1ac   : > { %v2114_v60 = vadd.f32 %v2113_v54, %v2112_v52 }
 0x1ad   : > { %v2115_v56 = vpop.f32.mrf.mxu0  ;;  %v2135_v57 = vpop.f32.mrf.mxu1 }
 0x1ae   : > { %v1655_v2 = vadd.f32 %v2114_v60, %v1614_v63  ;;  %v2136_v3 = vadd.f32 %v2135_v57, %v2134_v55 }
 0x1af   : > { %v2116_v61 = vpop.f32.mrf.mxu0  ;;  %v2137_v62 = vpop.f32.mrf.mxu1 }
 0x1b0   : > { %v2117_v4 = vadd.f32 %v2116_v61, %v2115_v56  ;;  %v1696_v9 = vadd.f32 %v2136_v3, %v1655_v2 }
 0x1b1   : > { %v2138_v5 = vpop.f32.mrf.mxu1 }
 0x1b2   : > { %v1658_v7 = vadd.f32 %v2117_v4, %v1617_v6  ;;  %v2139_v8 = vadd.f32 %v2138_v5, %v2137_v62 }
 0x1b4   : > { %v1699_v15 = vadd.f32 %v2139_v8, %v1658_v7 }
 0x1c9   : > { %v1736_v11 = vpop.f32.mrf.mxu0 }
 0x1ca   : > { %v1737_v12 = vadd.f32 %v1736_v11, %v1696_v9 }
 0x1cb   : > { %v2167_v13 = vpop.f32.mrf.mxu0 }
 0x1cc   : > { %v1743_v14 = vadd.f32 %v1737_v12, %v914_v10 }
 0x1cd   : > { %v1739_v17 = vpop.f32.mrf.mxu0 }
 0x1ce   : > { %1745 = vst [vmem:[#allocation2] sm:$0xff] %v1743_v14  ;;  %v1740_v18 = vadd.f32 %v1739_v17, %v1699_v15  ;;  %1750 = sbr.rel (%p2035_p5) target bundleno = 481 (0x1e1), region = 107 }
 0x1cf   : > { %v2168_v19 = vpop.f32.mrf.mxu0 }
 0x1d0   : > { %v1744_v20 = vadd.f32 %v1740_v18, %v915_v16 }
 0x1d2   : > { %1746 = vst [vmem:[#allocation2 + $0x8] sm:$0xff] %v1744_v20 }
 0x1d3   : > { %v2036_v23 = vld [vmem:[%s895_s4] ss:$0 sm:$0xff] }
 0x1d5   : > { %v1751_v21 = vld [vmem:[#allocation2] sm:$0xff] }
 0x1d6   : > { %v1760_v24 = vadd.f32 %v2036_v23, %v1751_v21 }
 0x1d8   : > { %v1762_v26 = vmax.f32 %v1760_v24, 0.0 }
 0x1d9   : > { %v1752_v22 = vld [vmem:[#allocation2 + $0x8] sm:$0xff] }
 0x1da   : > { %v1761_v25 = vadd.f32 %v2036_v23, %v1752_v22 }
 0x1dc   : > { %v1763_v27 = vmax.f32 %v1761_v25, 0.0 }
 0x1de   : > { %v2050_v28 = vpack.c.bf16 %v1763_v27, %v1762_v26 }
 0x1e0   : > { %2051 = vst [vmem:[%s2883_s25] sm:$0xff] %v2050_v28  }
 0x1e1 PF: > { %1780 = sbr.rel (!%p2554_p12) target bundleno = 489 (0x1e9), region = 111  ;;  %s2040_s14 = sshll.u32 (%p2554_p12), %s2423_s19, 2 }
 0x1e2   : > { %s1785_s5 = scalar_lea.vmem (%p2554_p12), %s3018_s3, %s2040_s14 }
 0x1e7   : > { %v1802_v29 = vld [vmem:[%s2883_s25] sm:$0xf]  ;;  %v1804_v30 = vld [vmem:[%s2883_s25 + $0x4] sm:$0xf] }
 0x1e8   : > { %1803 = vst [vmem:[%s1785_s5] sm:$0xf] %v1802_v29  ;;  %1805 = vst [vmem:[%s1785_s5 + $0x8] sm:$0xf] %v1804_v30 }
 0x1e9 PF: > { %s13_s22 = sadd.s32 1, %s2435_s22   ;;  %s3028_s25 = sld [smem:[#allocation6_spill]] }
 0x1ea   : > { %p10_p6 = scmp.ge.s32.totalorder %s13_s22, 6   ;;  %s3029_s12 = smov %s2399_s13 }
 0x1eb   : > { %s3030_s13 = smov %s2552_s9  ;;  %s3031_s14 = smov %s2407_s15 }
 0x1ec   : > { %s3032_s15 = smov %s2549_s8  ;;  %s3033_s16 = smov %s2415_s17 }
 0x1ed   : > { %s3034_s17 = smov %s2535_s30  ;;  %s3035_s18 = smov %s2427_s20 }
 0x1ee   : > { %s3036_s19 = smov %s2431_s21  ;;  %s3037_s20 = smov %s3040_s24 }
 0x1ef   : > { %s3038_s21 = smov %s3028_s25  ;;  %12 = sbr.rel (!%p10_p6) target bundleno = 9 (0x9), region = 200 }

</bundles_post_ra>
